<compile_context>
chip_gen: v5e
topology: v5e:2x2
jax: 0.10.0
libtpu: 0.0.40
codegen_flags: <defaults>
</compile_context>

<pallas_src>
import jax
import jax.numpy as jnp
from jax import lax
from jax.experimental import pallas as pl
from jax.experimental.pallas import tpu as pltpu

F32 = jnp.float32
BF16 = jnp.bfloat16


# ---------------------------------------------------------------------------
# Host-side helpers
# ---------------------------------------------------------------------------

def _flat_taps(w):
    """(nt, c_out, c_in) -> (c_out, nt*c_in), tap-major / channel-minor columns."""
    k, co, ci = w.shape
    return jnp.transpose(w, (1, 0, 2)).reshape(co, k * ci)


def _bcast_spec(shape):
    nd = len(shape)
    return pl.BlockSpec(tuple(int(s) for s in shape),
                        lambda n, _nd=nd: (0,) * _nd)


# ---------------------------------------------------------------------------
# Fused STEncoder forward kernel
# ---------------------------------------------------------------------------

def make_st_pre_kernel(cfg):
    V = cfg["V"]
    kt, ks = cfg["kt"], cfg["ks"]
    c0p, d_half, d_model = cfg["c0p"], cfg["d_half"], cfg["d_model"]
    nq, out_len = cfg["nq"], cfg["out_len"]

    def _bdot(a, b):
        """bf16-operand MXU matmul with f32 accumulation."""
        return jnp.dot(a.astype(BF16), b.astype(BF16),
                       preferred_element_type=F32)

    def _tconv(x, s_ref, w_ref, b_ref, nt, c_out, act, align, align_par=None):
        """Temporal conv (kernel (nt,1)) + Align residual + GLU/ReLU.

        x: (c_in, L_in*Vb); s_ref[k]: (L_in*Vb, L_out*Vb) host-built 0/1
        tap-shift operator.  Returns (c_out, L_out*Vb).
        """
        taps = [_bdot(x, s_ref[k]) for k in range(nt)]
        xs = jnp.concatenate(taps, axis=0)                 # (nt*c_in, L_out*Vb)
        conv = _bdot(w_ref[...], xs) + b_ref[...]          # (c_conv, L_out*Vb)
        x_win = taps[nt - 1]                               # Align time window
        if align == "conv":                                # 1x1 conv (c_in > c_out)
            wa, ba = align_par
            x_al = _bdot(wa[...], x_win) + ba[...]
        elif align == "pad":                               # zero-pad channels
            c_in = x.shape[0]
            if c_out > c_in:
                x_al = jnp.concatenate(
                    [x_win, jnp.zeros((c_out - c_in, x_win.shape[1]), F32)],
                    axis=0)
            else:
                x_al = x_win
        else:                                              # identity
            x_al = x_win
        if act == "GLU":
            return (conv[:c_out] + x_al) * jax.nn.sigmoid(conv[c_out:])
        return jnp.maximum(conv + x_al, 0.0)

    def _sconv(x, kron_ref, th_ref, b_ref):
        """Chebyshev graph conv + identity Align residual + ReLU."""
        xc = jnp.concatenate([_bdot(x, kron_ref[k]) for k in range(ks)], axis=0)
        gc = _bdot(th_ref[...], xc) + b_ref[...]
        return jnp.maximum(gc + x, 0.0)

    def _pooler(x, watt, batt, sv, embp, selwin):
        """Attention pooling over time:  (C, L0*Vb) -> (C, nq*Vb)."""
        att = _bdot(watt[...], x) + batt[...]              # (nq, L0*Vb), f32
        m = jnp.max(att, axis=1, keepdims=True)            # per-query stabiliser
        e = jnp.exp(att - m)                               # f32 (EUP)
        sv_f = sv[...]                                     # (L0*Vb, Vb), f32
        # softmax denominators per (query, sample, node) -- kept in f32
        inv = 1.0 / jnp.dot(e, sv_f, preferred_element_type=F32)   # (nq, Vb)
        sv_b = sv_f.astype(BF16)
        out = _bdot(x, selwin[...])                        # Align: last nq steps
        for q in range(nq):                                # static unroll
            xe = (x * e[q:q + 1, :]).astype(BF16)
            wsum = (jnp.dot(xe, sv_b, preferred_element_type=F32)
                    * inv[q:q + 1, :])                     # (C, Vb)
            out = out + jnp.dot(wsum.astype(BF16), embp[q],
                                preferred_element_type=F32)
        return jnp.maximum(out, 0.0)

    def _ln(x, cs, ce, g, b, eps=1e-5):
        """LayerNorm over (nodes, channels) per (sample, timestep) group."""
        inv_n = 1.0 / float(x.shape[0] * V)
        s = jnp.sum(x, axis=0, keepdims=True)              # (1, L*Vb), f32 stats
        mean = jnp.dot(jnp.dot(s, cs[...], preferred_element_type=F32),
                       ce[...], preferred_element_type=F32) * inv_n
        xc = x - mean
        ss = jnp.sum(xc * xc, axis=0, keepdims=True)
        var = jnp.dot(jnp.dot(ss, cs[...], preferred_element_type=F32),
                      ce[...], preferred_element_type=F32) * inv_n
        return xc * lax.rsqrt(var + eps) * g[...] + b[...]

    def kernel(xs0_ref,
               sv, selwin, embp, kron1, kron2, s13, s21, s23, sout,
               cs1, ce1, cs2, ce2, cs3, ce3,
               w11, b11, watt, batt, th12, b12, w13, b13, g1, be1,
               w21, b21, wa21, ba21, th22, b22, w23, b23, g2, be2,
               wout, bout, g3, be3,
               o_ref):
        xs = xs0_ref[0]                                    # (kt*c0p, L0*Vb)
        # ---------------- ST block 1 ----------------
        # tconv11 (GLU, c_in0 -> d_half); taps pre-stacked on the host.
        conv = _bdot(w11[...], xs) + b11[...]              # (2*d_half, L0*Vb)
        x_win = xs[(kt - 1) * c0p:, :]                     # last tap = align window
        if d_half > c0p:
            x_al = jnp.concatenate(
                [x_win, jnp.zeros((d_half - c0p, x_win.shape[1]), F32)], axis=0)
        else:
            x_al = x_win
        x = (conv[:d_half] + x_al) * jax.nn.sigmoid(conv[d_half:])
        x = _pooler(x, watt, batt, sv, embp, selwin)
        # TODO(synk): s_sim_mx / t_sim_mx similarity side-buffers (detached
        #             diagnostics, unused by the forward output) not computed.
        x = _sconv(x, kron1, th12, b12)
        x = _tconv(x, s13, w13, b13, kt, d_model, "relu", "pad")
        x = _ln(x, cs1, ce1, g1, be1)
        # TODO(synk): nn.Dropout layers treated as identity (inference mode).
        # ---------------- ST block 2 ----------------
        x = _tconv(x, s21, w21, b21, kt, d_half, "GLU", "conv", (wa21, ba21))
        x = _sconv(x, kron2, th22, b22)
        x = _tconv(x, s23, w23, b23, kt, d_model, "relu", "pad")
        x = _ln(x, cs2, ce2, g2, be2)
        # ---------------- output block ----------------
        x = _tconv(x, sout, wout, bout, out_len, d_model, "GLU", "id")
        x = _ln(x, cs3, ce3, g3, be3)
        o_ref[0] = x                                       # (d_model, Lf*Vb)

    return kernel


# ---------------------------------------------------------------------------
# Host-side wrapper
# ---------------------------------------------------------------------------

def st_pre_forward(view, graph, p, kt=3, ks=3, batch_block=None):
    """view: (N, L0, V, C0) nlvc; graph: (V, V).  Returns (N, 1, V, d_model)."""
    N, L0, V, C0 = view.shape
    d_half = p["b12"].shape[0]
    d_model = p["b13"].shape[0]
    nq = p["w_att"].shape[0]
    out_len = p["wout"].shape[0]
    c0p = ((C0 + 7) // 8) * 8              # pad input channels to sublane multiple
    assert c0p <= d_half, "input-channel padding exceeds d_model // 2"

    # Batch packing: B samples share one grid step, carried on lanes as
    # (C, L*B*V).  B*V >= 128 gives lane-dense matmuls / writebacks.
    if batch_block is None:
        batch_block = max(1, min(N, max(1, 128 // V)))
    B = int(batch_block)
    Ng = -(-N // B)                        # grid steps (batch padded if needed)
    Np = Ng * B
    Vb = B * V

    # -------- temporal bookkeeping (identical to the PyTorch STEncoder) -----
    L1 = nq - (kt - 1)                     # after tconv13 (LN1)
    L_s2 = L1 - (kt - 1)                   # at second graph conv
    L2 = L_s2 - (kt - 1)                   # after tconv23 (LN2)
    Lf = L2 - out_len + 1                  # after output conv (== 1 here)
    assert nq <= L0, "Pooler n_query exceeds sequence length"
    assert Lf >= 1, "output temporal conv longer than remaining sequence"

    # --- Chebyshev polynomials of the graph Laplacian (plain JAX, one-off) ---
    eye_v = jnp.eye(V, dtype=F32)
    gmat = graph.astype(F32) + eye_v
    dinv = lax.rsqrt(jnp.sum(gmat, axis=1))
    lap = eye_v - (gmat * dinv[:, None]) * dinv[None, :]
    cheb = [eye_v, lap]
    for _ in range(max(0, ks - 2)):
        cheb.append(2.0 * jnp.dot(lap, cheb[-1]) - cheb[-2])
    lkT = [t.T for t in cheb[:ks]]

    # -------- host-precomputed, grid-invariant operator constants -----------
    eye_vb = jnp.eye(Vb, dtype=F32)
    kron1 = jnp.stack([jnp.kron(jnp.eye(nq * B, dtype=F32), lkT[k])
                       for k in range(ks)]).astype(BF16)
    kron2 = jnp.stack([jnp.kron(jnp.eye(L_s2 * B, dtype=F32), lkT[k])
                       for k in range(ks)]).astype(BF16)

    def shift_stack(L_in, L_out, taps):
        # S[k][i*Vb+u, o*Vb+u'] = 1 iff i == o + k and u == u'
        return jnp.stack([jnp.kron(jnp.eye(L_in, L_out, k=-k, dtype=F32), eye_vb)
                          for k in range(taps)]).astype(BF16)

    s13 = shift_stack(nq, L1, kt)
    s21 = shift_stack(L1, L_s2, kt)
    s23 = shift_stack(L_s2, L2, kt)
    sout = shift_stack(L2, Lf, out_len)
    selwin = jnp.kron(jnp.eye(L0, nq, k=-(L0 - nq), dtype=F32),
                      eye_vb).astype(BF16)                 # last-nq-timesteps window

    sv = jnp.tile(eye_vb, (L0, 1))                         # time-sum (f32 for softmax)
    eye_q = jnp.eye(nq, dtype=F32)
    embp = jnp.stack([jnp.kron(eye_q[q][None, :], eye_vb)
                      for q in range(nq)]).astype(BF16)    # (nq, Vb, nq*Vb) placement

    def ln_mats(L):
        # group-sum / broadcast matrices for LayerNorm over (V, C) per (l, b)
        cs = jnp.kron(jnp.eye(L * B, dtype=F32), jnp.ones((V, 1), F32))
        return cs, cs.T

    cs1, ce1 = ln_mats(L1)
    cs2, ce2 = ln_mats(L2)
    cs3, ce3 = ln_mats(Lf)

    # --- weights: flatten taps, pre-cast matmul operands to bf16 -------------
    w11f = _flat_taps(jnp.pad(p["w11"], ((0, 0), (0, 0), (0, c0p - C0)))).astype(BF16)
    w13f = _flat_taps(p["w13"]).astype(BF16)
    w21f = _flat_taps(p["w21"]).astype(BF16)
    w23f = _flat_taps(p["w23"]).astype(BF16)
    woutf = _flat_taps(p["wout"]).astype(BF16)
    th12f = _flat_taps(p["th12"]).astype(BF16)
    th22f = _flat_taps(p["th22"]).astype(BF16)
    wattf = p["w_att"].astype(BF16)
    wa21f = p["wa21"].astype(BF16)
    g1, be1 = jnp.tile(p["g1"], (1, L1 * B)), jnp.tile(p["be1"], (1, L1 * B))
    g2, be2 = jnp.tile(p["g2"], (1, L2 * B)), jnp.tile(p["be2"], (1, L2 * B))
    g3, be3 = jnp.tile(p["g3"], (1, Lf * B)), jnp.tile(p["be3"], (1, Lf * B))

    # --- input: nlvc -> per-grid-step (kt*c0p, L0*Vb) with taps pre-stacked --
    x = view.astype(F32)
    if Np > N:
        x = jnp.pad(x, ((0, Np - N), (0, 0), (0, 0), (0, 0)))
    x = jnp.pad(x, ((0, 0), (0, 0), (0, 0), (0, c0p - C0)))    # (Np, L0, V, c0p)
    x = jnp.transpose(x, (0, 3, 1, 2))                         # (Np, c0p, L0, V)
    x = jnp.pad(x, ((0, 0), (0, 0), (kt - 1, 0), (0, 0)))      # front zero pad
    taps0 = jnp.stack([x[:, :, k:k + L0, :] for k in range(kt)], axis=1)
    taps0 = taps0.reshape(Ng, B, kt * c0p, L0, V)
    taps0 = jnp.transpose(taps0, (0, 2, 3, 1, 4))              # (Ng, ktC, L0, B, V)
    xs0 = taps0.reshape(Ng, kt * c0p, L0 * Vb)

    consts = [sv, selwin, embp, kron1, kron2, s13, s21, s23, sout,
              cs1, ce1, cs2, ce2, cs3, ce3,
              w11f, p["b11"], wattf, p["b_att"], th12f, p["b12"],
              w13f, p["b13"], g1, be1,
              w21f, p["b21"], wa21f, p["ba21"], th22f, p["b22"],
              w23f, p["b23"], g2, be2,
              woutf, p["bout"], g3, be3]

    cfg = dict(V=V, Vb=Vb, kt=kt, ks=ks, c0p=c0p, d_half=d_half,
               d_model=d_model, nq=nq, out_len=out_len)

    # NOTE: all `consts` are grid-invariant; at production batch blocks mark
    # them pipeline_mode=pl.Buffered(1) (and raise vmem_limit_bytes) so they
    # are not double-buffered.  At these shapes they total <3 MiB.
    out = pl.pallas_call(
        make_st_pre_kernel(cfg),
        grid=(Ng,),
        in_specs=[pl.BlockSpec((1, kt * c0p, L0 * Vb), lambda n: (n, 0, 0))]
                 + [_bcast_spec(c.shape) for c in consts],
        out_specs=pl.BlockSpec((1, d_model, Lf * Vb), lambda n: (n, 0, 0)),
        out_shape=jax.ShapeDtypeStruct((Ng, d_model, Lf * Vb), F32),
        compiler_params=pltpu.CompilerParams(
            dimension_semantics=("parallel",)),
    )(xs0, *consts)

    out = out.reshape(Ng, d_model, Lf, B, V)
    out = jnp.transpose(out, (0, 3, 2, 4, 1)).reshape(Np, Lf, V, d_model)
    return out[:N]


# ---------------------------------------------------------------------------
# Deterministic synthetic parameters
# ---------------------------------------------------------------------------

def init_params(d_model, input_length, num_nodes, kt=3, ks=3, c_in0=2, seed=42):
    d_half = d_model // 2
    nq = input_length - (kt - 1)
    out_len = input_length - 2 * (kt - 1) * 2
    keys = iter(jax.random.split(jax.random.PRNGKey(seed), 32))

    def rnd(shape, fan_in):
        return jax.random.normal(next(keys), shape, F32) / (float(fan_in) ** 0.5)

    p = {}
    # ST block 1
    p["w11"] = rnd((kt, 2 * d_half, c_in0), c_in0 * kt)     # tconv11 (GLU, 2 -> d/2)
    p["b11"] = rnd((2 * d_half, 1), c_in0 * kt)
    p["w_att"] = rnd((nq, d_half), d_half)                  # Pooler FC (1x1 conv)
    p["b_att"] = rnd((nq, 1), d_half)
    p["th12"] = rnd((ks, d_half, d_half), d_half * ks)      # theta[:, :, k]^T per k
    p["b12"] = rnd((d_half, 1), d_half * ks)
    p["w13"] = rnd((kt, d_model, d_half), d_half * kt)      # tconv13 (relu, d/2 -> d)
    p["b13"] = rnd((d_model, 1), d_half * kt)
    p["g1"] = jnp.ones((d_model, num_nodes), F32)           # LayerNorm([V, d]) (C, V)
    p["be1"] = jnp.zeros((d_model, num_nodes), F32)
    # ST block 2
    p["w21"] = rnd((kt, 2 * d_half, d_model), d_model * kt)
    p["b21"] = rnd((2 * d_half, 1), d_model * kt)
    p["wa21"] = rnd((d_half, d_model), d_model)             # Align 1x1 conv (d -> d/2)
    p["ba21"] = rnd((d_half, 1), d_model)
    p["th22"] = rnd((ks, d_half, d_half), d_half * ks)
    p["b22"] = rnd((d_half, 1), d_half * ks)
    p["w23"] = rnd((kt, d_model, d_half), d_half * kt)
    p["b23"] = rnd((d_model, 1), d_half * kt)
    p["g2"] = jnp.ones((d_model, num_nodes), F32)
    p["be2"] = jnp.zeros((d_model, num_nodes), F32)
    # output block
    p["wout"] = rnd((out_len, 2 * d_model, d_model), d_model * out_len)
    p["bout"] = rnd((2 * d_model, 1), d_model * out_len)
    p["g3"] = jnp.ones((d_model, num_nodes), F32)
    p["be3"] = jnp.zeros((d_model, num_nodes), F32)
    return p


if __name__ == "__main__":
    N, L0, V, C0, D = 2, 12, 16, 2, 32        # batch, input_length, num_nodes, in-ch, d_model
    k1, k2 = jax.random.split(jax.random.PRNGKey(0))
    view = jax.random.normal(k1, (N, L0, V, C0), F32)
    graph = jax.random.uniform(k2, (V, V), F32)
    graph = 0.5 * (graph + graph.T)           # symmetric, non-negative adjacency
    params = init_params(D, L0, V)

    fwd = jax.jit(st_pre_forward)
    out = jax.block_until_ready(fwd(view, graph, params))

    assert out.shape == (N, 1, V, D), out.shape
    assert bool(jnp.all(jnp.isfinite(out)))
    print("KERNEL_OK")
</pallas_src>

<mosaic_0001>
module attributes {stable_mosaic.version = 11 : i64} {
  func.func @kernel(%arg0: i32, %arg1: memref<1x24x384xf32, #tpu.memory_space<vmem>>, %arg2: memref<384x32xf32, #tpu.memory_space<vmem>>, %arg3: memref<384x320xbf16, #tpu.memory_space<vmem>>, %arg4: memref<10x32x320xbf16, #tpu.memory_space<vmem>>, %arg5: memref<3x320x320xbf16, #tpu.memory_space<vmem>>, %arg6: memref<3x192x192xbf16, #tpu.memory_space<vmem>>, %arg7: memref<3x320x256xbf16, #tpu.memory_space<vmem>>, %arg8: memref<3x256x192xbf16, #tpu.memory_space<vmem>>, %arg9: memref<3x192x128xbf16, #tpu.memory_space<vmem>>, %arg10: memref<4x128x32xbf16, #tpu.memory_space<vmem>>, %arg11: memref<256x16xf32, #tpu.memory_space<vmem>>, %arg12: memref<16x256xf32, #tpu.memory_space<vmem>>, %arg13: memref<128x8xf32, #tpu.memory_space<vmem>>, %arg14: memref<8x128xf32, #tpu.memory_space<vmem>>, %arg15: memref<32x2xf32, #tpu.memory_space<vmem>>, %arg16: memref<2x32xf32, #tpu.memory_space<vmem>>, %arg17: memref<32x24xbf16, #tpu.memory_space<vmem>>, %arg18: memref<32x1xf32, #tpu.memory_space<vmem>>, %arg19: memref<10x16xbf16, #tpu.memory_space<vmem>>, %arg20: memref<10x1xf32, #tpu.memory_space<vmem>>, %arg21: memref<16x48xbf16, #tpu.memory_space<vmem>>, %arg22: memref<16x1xf32, #tpu.memory_space<vmem>>, %arg23: memref<32x48xbf16, #tpu.memory_space<vmem>>, %arg24: memref<32x1xf32, #tpu.memory_space<vmem>>, %arg25: memref<32x256xf32, #tpu.memory_space<vmem>>, %arg26: memref<32x256xf32, #tpu.memory_space<vmem>>, %arg27: memref<32x96xbf16, #tpu.memory_space<vmem>>, %arg28: memref<32x1xf32, #tpu.memory_space<vmem>>, %arg29: memref<16x32xbf16, #tpu.memory_space<vmem>>, %arg30: memref<16x1xf32, #tpu.memory_space<vmem>>, %arg31: memref<16x48xbf16, #tpu.memory_space<vmem>>, %arg32: memref<16x1xf32, #tpu.memory_space<vmem>>, %arg33: memref<32x48xbf16, #tpu.memory_space<vmem>>, %arg34: memref<32x1xf32, #tpu.memory_space<vmem>>, %arg35: memref<32x128xf32, #tpu.memory_space<vmem>>, %arg36: memref<32x128xf32, #tpu.memory_space<vmem>>, %arg37: memref<64x128xbf16, #tpu.memory_space<vmem>>, %arg38: memref<64x1xf32, #tpu.memory_space<vmem>>, %arg39: memref<32x32xf32, #tpu.memory_space<vmem>>, %arg40: memref<32x32xf32, #tpu.memory_space<vmem>>, %arg41: memref<1x32x32xf32, #tpu.memory_space<vmem>>) attributes {dimension_semantics = [#tpu.dimension_semantics<parallel>], iteration_bounds = array<i64: 1>, scalar_prefetch = 0 : i64, scratch_operands = 0 : i64, tpu.core_type = #tpu.core_type<tc>, window_params = [{transform_indices = @transform_0, window_bounds = array<i64: 1, 24, 384>}, {pipeline_mode = #tpu.pipeline_mode<synchronous>, transform_indices = @transform_1, window_bounds = array<i64: 384, 32>}, {pipeline_mode = #tpu.pipeline_mode<synchronous>, transform_indices = @transform_2, window_bounds = array<i64: 384, 320>}, {pipeline_mode = #tpu.pipeline_mode<synchronous>, transform_indices = @transform_3, window_bounds = array<i64: 10, 32, 320>}, {pipeline_mode = #tpu.pipeline_mode<synchronous>, transform_indices = @transform_4, window_bounds = array<i64: 3, 320, 320>}, {pipeline_mode = #tpu.pipeline_mode<synchronous>, transform_indices = @transform_5, window_bounds = array<i64: 3, 192, 192>}, {pipeline_mode = #tpu.pipeline_mode<synchronous>, transform_indices = @transform_6, window_bounds = array<i64: 3, 320, 256>}, {pipeline_mode = #tpu.pipeline_mode<synchronous>, transform_indices = @transform_7, window_bounds = array<i64: 3, 256, 192>}, {pipeline_mode = #tpu.pipeline_mode<synchronous>, transform_indices = @transform_8, window_bounds = array<i64: 3, 192, 128>}, {pipeline_mode = #tpu.pipeline_mode<synchronous>, transform_indices = @transform_9, window_bounds = array<i64: 4, 128, 32>}, {pipeline_mode = #tpu.pipeline_mode<synchronous>, transform_indices = @transform_10, window_bounds = array<i64: 256, 16>}, {pipeline_mode = #tpu.pipeline_mode<synchronous>, transform_indices = @transform_11, window_bounds = array<i64: 16, 256>}, {pipeline_mode = #tpu.pipeline_mode<synchronous>, transform_indices = @transform_12, window_bounds = array<i64: 128, 8>}, {pipeline_mode = #tpu.pipeline_mode<synchronous>, transform_indices = @transform_13, window_bounds = array<i64: 8, 128>}, {pipeline_mode = #tpu.pipeline_mode<synchronous>, transform_indices = @transform_14, window_bounds = array<i64: 32, 2>}, {pipeline_mode = #tpu.pipeline_mode<synchronous>, transform_indices = @transform_15, window_bounds = array<i64: 2, 32>}, {pipeline_mode = #tpu.pipeline_mode<synchronous>, transform_indices = @transform_16, window_bounds = array<i64: 32, 24>}, {pipeline_mode = #tpu.pipeline_mode<synchronous>, transform_indices = @transform_17, window_bounds = array<i64: 32, 1>}, {pipeline_mode = #tpu.pipeline_mode<synchronous>, transform_indices = @transform_18, window_bounds = array<i64: 10, 16>}, {pipeline_mode = #tpu.pipeline_mode<synchronous>, transform_indices = @transform_19, window_bounds = array<i64: 10, 1>}, {pipeline_mode = #tpu.pipeline_mode<synchronous>, transform_indices = @transform_20, window_bounds = array<i64: 16, 48>}, {pipeline_mode = #tpu.pipeline_mode<synchronous>, transform_indices = @transform_21, window_bounds = array<i64: 16, 1>}, {pipeline_mode = #tpu.pipeline_mode<synchronous>, transform_indices = @transform_22, window_bounds = array<i64: 32, 48>}, {pipeline_mode = #tpu.pipeline_mode<synchronous>, transform_indices = @transform_23, window_bounds = array<i64: 32, 1>}, {pipeline_mode = #tpu.pipeline_mode<synchronous>, transform_indices = @transform_24, window_bounds = array<i64: 32, 256>}, {pipeline_mode = #tpu.pipeline_mode<synchronous>, transform_indices = @transform_25, window_bounds = array<i64: 32, 256>}, {pipeline_mode = #tpu.pipeline_mode<synchronous>, transform_indices = @transform_26, window_bounds = array<i64: 32, 96>}, {pipeline_mode = #tpu.pipeline_mode<synchronous>, transform_indices = @transform_27, window_bounds = array<i64: 32, 1>}, {pipeline_mode = #tpu.pipeline_mode<synchronous>, transform_indices = @transform_28, window_bounds = array<i64: 16, 32>}, {pipeline_mode = #tpu.pipeline_mode<synchronous>, transform_indices = @transform_29, window_bounds = array<i64: 16, 1>}, {pipeline_mode = #tpu.pipeline_mode<synchronous>, transform_indices = @transform_30, window_bounds = array<i64: 16, 48>}, {pipeline_mode = #tpu.pipeline_mode<synchronous>, transform_indices = @transform_31, window_bounds = array<i64: 16, 1>}, {pipeline_mode = #tpu.pipeline_mode<synchronous>, transform_indices = @transform_32, window_bounds = array<i64: 32, 48>}, {pipeline_mode = #tpu.pipeline_mode<synchronous>, transform_indices = @transform_33, window_bounds = array<i64: 32, 1>}, {pipeline_mode = #tpu.pipeline_mode<synchronous>, transform_indices = @transform_34, window_bounds = array<i64: 32, 128>}, {pipeline_mode = #tpu.pipeline_mode<synchronous>, transform_indices = @transform_35, window_bounds = array<i64: 32, 128>}, {pipeline_mode = #tpu.pipeline_mode<synchronous>, transform_indices = @transform_36, window_bounds = array<i64: 64, 128>}, {pipeline_mode = #tpu.pipeline_mode<synchronous>, transform_indices = @transform_37, window_bounds = array<i64: 64, 1>}, {pipeline_mode = #tpu.pipeline_mode<synchronous>, transform_indices = @transform_38, window_bounds = array<i64: 32, 32>}, {pipeline_mode = #tpu.pipeline_mode<synchronous>, transform_indices = @transform_39, window_bounds = array<i64: 32, 32>}, {transform_indices = @transform_40, window_bounds = array<i64: 1, 32, 32>}]} {
    %c0 = arith.constant 0 : index
    %c0_0 = arith.constant 0 : index
    %c0_1 = arith.constant 0 : index
    %0 = vector.load %arg1[%c0, %c0_0, %c0_1] : memref<1x24x384xf32, #tpu.memory_space<vmem>>, vector<1x24x384xf32>
    %1 = vector.shape_cast %0 : vector<1x24x384xf32> to vector<24x384xf32>
    %c0_2 = arith.constant 0 : index
    %c0_3 = arith.constant 0 : index
    %2 = vector.load %arg17[%c0_2, %c0_3] : memref<32x24xbf16, #tpu.memory_space<vmem>>, vector<32x24xbf16>
    %3 = arith.truncf %1 : vector<24x384xf32> to vector<24x384xbf16>
    %cst = arith.constant dense<0.000000e+00> : vector<32x384xf32>
    %4 = tpu.matmul %2, %3, %cst {dimension_numbers = #tpu.dot_dimension_numbers<[1], [0], [0], [1], [0, 0, 1, 1], [], []>} : vector<32x24xbf16>, vector<24x384xbf16>, vector<32x384xf32> -> vector<32x384xf32>
    %c0_4 = arith.constant 0 : index
    %c0_5 = arith.constant 0 : index
    %5 = vector.load %arg18[%c0_4, %c0_5] : memref<32x1xf32, #tpu.memory_space<vmem>>, vector<32x1xf32>
    %6 = vector.broadcast %5 : vector<32x1xf32> to vector<32x384xf32>
    %7 = arith.addf %4, %6 : vector<32x384xf32>
    %8 = vector.extract_strided_slice %1 {offsets = [16, 0], sizes = [8, 384], strides = [1, 1]} : vector<24x384xf32> to vector<8x384xf32>
    %cst_6 = arith.constant 0.000000e+00 : f32
    %9 = vector.broadcast %cst_6 : f32 to vector<8x384xf32>
    %10 = tpu.concatenate %8, %9 in 0 : vector<8x384xf32>, vector<8x384xf32> -> vector<16x384xf32>
    %11 = vector.extract_strided_slice %7 {offsets = [0, 0], sizes = [16, 384], strides = [1, 1]} : vector<32x384xf32> to vector<16x384xf32>
    %12 = arith.addf %11, %10 : vector<16x384xf32>
    %13 = vector.extract_strided_slice %7 {offsets = [16, 0], sizes = [16, 384], strides = [1, 1]} : vector<32x384xf32> to vector<16x384xf32>
    %14 = arith.negf %13 : vector<16x384xf32>
    %15 = math.exp %14 : vector<16x384xf32>
    %cst_7 = arith.constant 1.000000e+00 : f32
    %16 = vector.broadcast %cst_7 : f32 to vector<16x384xf32>
    %17 = arith.addf %16, %15 : vector<16x384xf32>
    %18 = arith.divf %16, %17 : vector<16x384xf32>
    %19 = arith.mulf %12, %18 : vector<16x384xf32>
    %c0_8 = arith.constant 0 : index
    %c0_9 = arith.constant 0 : index
    %20 = vector.load %arg19[%c0_8, %c0_9] : memref<10x16xbf16, #tpu.memory_space<vmem>>, vector<10x16xbf16>
    %21 = arith.truncf %19 : vector<16x384xf32> to vector<16x384xbf16>
    %cst_10 = arith.constant dense<0.000000e+00> : vector<10x384xf32>
    %22 = tpu.matmul %20, %21, %cst_10 {dimension_numbers = #tpu.dot_dimension_numbers<[1], [0], [0], [1], [0, 0, 1, 1], [], []>} : vector<10x16xbf16>, vector<16x384xbf16>, vector<10x384xf32> -> vector<10x384xf32>
    %c0_11 = arith.constant 0 : index
    %c0_12 = arith.constant 0 : index
    %23 = vector.load %arg20[%c0_11, %c0_12] : memref<10x1xf32, #tpu.memory_space<vmem>>, vector<10x1xf32>
    %24 = vector.broadcast %23 : vector<10x1xf32> to vector<10x384xf32>
    %25 = arith.addf %22, %24 : vector<10x384xf32>
    %cst_13 = arith.constant dense<0xFF800000> : vector<10xf32>
    %26 = vector.multi_reduction <maximumf>, %25, %cst_13 [1] : vector<10x384xf32> to vector<10xf32>
    %27 = vector.shape_cast %26 : vector<10xf32> to vector<10x1xf32>
    %28 = vector.broadcast %27 : vector<10x1xf32> to vector<10x384xf32>
    %29 = arith.subf %25, %28 : vector<10x384xf32>
    %30 = math.exp %29 : vector<10x384xf32>
    %c0_14 = arith.constant 0 : index
    %c0_15 = arith.constant 0 : index
    %31 = vector.load %arg2[%c0_14, %c0_15] : memref<384x32xf32, #tpu.memory_space<vmem>>, vector<384x32xf32>
    %cst_16 = arith.constant dense<0.000000e+00> : vector<10x32xf32>
    %32 = tpu.matmul %30, %31, %cst_16 {dimension_numbers = #tpu.dot_dimension_numbers<[1], [0], [0], [1], [0, 0, 1, 1], [], []>} : vector<10x384xf32>, vector<384x32xf32>, vector<10x32xf32> -> vector<10x32xf32>
    %cst_17 = arith.constant 1.000000e+00 : f32
    %33 = vector.broadcast %cst_17 : f32 to vector<10x32xf32>
    %34 = arith.divf %33, %32 : vector<10x32xf32>
    %35 = arith.truncf %31 : vector<384x32xf32> to vector<384x32xbf16>
    %c0_18 = arith.constant 0 : index
    %c0_19 = arith.constant 0 : index
    %36 = vector.load %arg3[%c0_18, %c0_19] : memref<384x320xbf16, #tpu.memory_space<vmem>>, vector<384x320xbf16>
    %37 = arith.truncf %19 : vector<16x384xf32> to vector<16x384xbf16>
    %cst_20 = arith.constant dense<0.000000e+00> : vector<16x320xf32>
    %38 = tpu.matmul %37, %36, %cst_20 {dimension_numbers = #tpu.dot_dimension_numbers<[1], [0], [0], [1], [0, 0, 1, 1], [], []>} : vector<16x384xbf16>, vector<384x320xbf16>, vector<16x320xf32> -> vector<16x320xf32>
    %39 = vector.extract_strided_slice %30 {offsets = [0, 0], sizes = [1, 384], strides = [1, 1]} : vector<10x384xf32> to vector<1x384xf32>
    %40 = vector.broadcast %39 : vector<1x384xf32> to vector<16x384xf32>
    %41 = arith.mulf %19, %40 : vector<16x384xf32>
    %42 = arith.truncf %41 : vector<16x384xf32> to vector<16x384xbf16>
    %cst_21 = arith.constant dense<0.000000e+00> : vector<16x32xf32>
    %43 = tpu.matmul %42, %35, %cst_21 {dimension_numbers = #tpu.dot_dimension_numbers<[1], [0], [0], [1], [0, 0, 1, 1], [], []>} : vector<16x384xbf16>, vector<384x32xbf16>, vector<16x32xf32> -> vector<16x32xf32>
    %44 = vector.extract_strided_slice %34 {offsets = [0, 0], sizes = [1, 32], strides = [1, 1]} : vector<10x32xf32> to vector<1x32xf32>
    %45 = vector.broadcast %44 : vector<1x32xf32> to vector<16x32xf32>
    %46 = arith.mulf %43, %45 : vector<16x32xf32>
    %47 = arith.truncf %46 : vector<16x32xf32> to vector<16x32xbf16>
    %c0_22 = arith.constant 0 : index
    %c0_23 = arith.constant 0 : index
    %c0_24 = arith.constant 0 : index
    %48 = vector.load %arg4[%c0_22, %c0_23, %c0_24] : memref<10x32x320xbf16, #tpu.memory_space<vmem>>, vector<1x32x320xbf16>
    %49 = vector.shape_cast %48 : vector<1x32x320xbf16> to vector<32x320xbf16>
    %cst_25 = arith.constant dense<0.000000e+00> : vector<16x320xf32>
    %50 = tpu.matmul %47, %49, %cst_25 {dimension_numbers = #tpu.dot_dimension_numbers<[1], [0], [0], [1], [0, 0, 1, 1], [], []>} : vector<16x32xbf16>, vector<32x320xbf16>, vector<16x320xf32> -> vector<16x320xf32>
    %51 = arith.addf %38, %50 : vector<16x320xf32>
    %52 = vector.extract_strided_slice %30 {offsets = [1, 0], sizes = [1, 384], strides = [1, 1]} : vector<10x384xf32> to vector<1x384xf32>
    %53 = vector.broadcast %52 : vector<1x384xf32> to vector<16x384xf32>
    %54 = arith.mulf %19, %53 : vector<16x384xf32>
    %55 = arith.truncf %54 : vector<16x384xf32> to vector<16x384xbf16>
    %cst_26 = arith.constant dense<0.000000e+00> : vector<16x32xf32>
    %56 = tpu.matmul %55, %35, %cst_26 {dimension_numbers = #tpu.dot_dimension_numbers<[1], [0], [0], [1], [0, 0, 1, 1], [], []>} : vector<16x384xbf16>, vector<384x32xbf16>, vector<16x32xf32> -> vector<16x32xf32>
    %57 = vector.extract_strided_slice %34 {offsets = [1, 0], sizes = [1, 32], strides = [1, 1]} : vector<10x32xf32> to vector<1x32xf32>
    %58 = vector.broadcast %57 : vector<1x32xf32> to vector<16x32xf32>
    %59 = arith.mulf %56, %58 : vector<16x32xf32>
    %60 = arith.truncf %59 : vector<16x32xf32> to vector<16x32xbf16>
    %c1 = arith.constant 1 : index
    %c0_27 = arith.constant 0 : index
    %c0_28 = arith.constant 0 : index
    %61 = vector.load %arg4[%c1, %c0_27, %c0_28] : memref<10x32x320xbf16, #tpu.memory_space<vmem>>, vector<1x32x320xbf16>
    %62 = vector.shape_cast %61 : vector<1x32x320xbf16> to vector<32x320xbf16>
    %cst_29 = arith.constant dense<0.000000e+00> : vector<16x320xf32>
    %63 = tpu.matmul %60, %62, %cst_29 {dimension_numbers = #tpu.dot_dimension_numbers<[1], [0], [0], [1], [0, 0, 1, 1], [], []>} : vector<16x32xbf16>, vector<32x320xbf16>, vector<16x320xf32> -> vector<16x320xf32>
    %64 = arith.addf %51, %63 : vector<16x320xf32>
    %65 = vector.extract_strided_slice %30 {offsets = [2, 0], sizes = [1, 384], strides = [1, 1]} : vector<10x384xf32> to vector<1x384xf32>
    %66 = vector.broadcast %65 : vector<1x384xf32> to vector<16x384xf32>
    %67 = arith.mulf %19, %66 : vector<16x384xf32>
    %68 = arith.truncf %67 : vector<16x384xf32> to vector<16x384xbf16>
    %cst_30 = arith.constant dense<0.000000e+00> : vector<16x32xf32>
    %69 = tpu.matmul %68, %35, %cst_30 {dimension_numbers = #tpu.dot_dimension_numbers<[1], [0], [0], [1], [0, 0, 1, 1], [], []>} : vector<16x384xbf16>, vector<384x32xbf16>, vector<16x32xf32> -> vector<16x32xf32>
    %70 = vector.extract_strided_slice %34 {offsets = [2, 0], sizes = [1, 32], strides = [1, 1]} : vector<10x32xf32> to vector<1x32xf32>
    %71 = vector.broadcast %70 : vector<1x32xf32> to vector<16x32xf32>
    %72 = arith.mulf %69, %71 : vector<16x32xf32>
    %73 = arith.truncf %72 : vector<16x32xf32> to vector<16x32xbf16>
    %c2 = arith.constant 2 : index
    %c0_31 = arith.constant 0 : index
    %c0_32 = arith.constant 0 : index
    %74 = vector.load %arg4[%c2, %c0_31, %c0_32] : memref<10x32x320xbf16, #tpu.memory_space<vmem>>, vector<1x32x320xbf16>
    %75 = vector.shape_cast %74 : vector<1x32x320xbf16> to vector<32x320xbf16>
    %cst_33 = arith.constant dense<0.000000e+00> : vector<16x320xf32>
    %76 = tpu.matmul %73, %75, %cst_33 {dimension_numbers = #tpu.dot_dimension_numbers<[1], [0], [0], [1], [0, 0, 1, 1], [], []>} : vector<16x32xbf16>, vector<32x320xbf16>, vector<16x320xf32> -> vector<16x320xf32>
    %77 = arith.addf %64, %76 : vector<16x320xf32>
    %78 = vector.extract_strided_slice %30 {offsets = [3, 0], sizes = [1, 384], strides = [1, 1]} : vector<10x384xf32> to vector<1x384xf32>
    %79 = vector.broadcast %78 : vector<1x384xf32> to vector<16x384xf32>
    %80 = arith.mulf %19, %79 : vector<16x384xf32>
    %81 = arith.truncf %80 : vector<16x384xf32> to vector<16x384xbf16>
    %cst_34 = arith.constant dense<0.000000e+00> : vector<16x32xf32>
    %82 = tpu.matmul %81, %35, %cst_34 {dimension_numbers = #tpu.dot_dimension_numbers<[1], [0], [0], [1], [0, 0, 1, 1], [], []>} : vector<16x384xbf16>, vector<384x32xbf16>, vector<16x32xf32> -> vector<16x32xf32>
    %83 = vector.extract_strided_slice %34 {offsets = [3, 0], sizes = [1, 32], strides = [1, 1]} : vector<10x32xf32> to vector<1x32xf32>
    %84 = vector.broadcast %83 : vector<1x32xf32> to vector<16x32xf32>
    %85 = arith.mulf %82, %84 : vector<16x32xf32>
    %86 = arith.truncf %85 : vector<16x32xf32> to vector<16x32xbf16>
    %c3 = arith.constant 3 : index
    %c0_35 = arith.constant 0 : index
    %c0_36 = arith.constant 0 : index
    %87 = vector.load %arg4[%c3, %c0_35, %c0_36] : memref<10x32x320xbf16, #tpu.memory_space<vmem>>, vector<1x32x320xbf16>
    %88 = vector.shape_cast %87 : vector<1x32x320xbf16> to vector<32x320xbf16>
    %cst_37 = arith.constant dense<0.000000e+00> : vector<16x320xf32>
    %89 = tpu.matmul %86, %88, %cst_37 {dimension_numbers = #tpu.dot_dimension_numbers<[1], [0], [0], [1], [0, 0, 1, 1], [], []>} : vector<16x32xbf16>, vector<32x320xbf16>, vector<16x320xf32> -> vector<16x320xf32>
    %90 = arith.addf %77, %89 : vector<16x320xf32>
    %91 = vector.extract_strided_slice %30 {offsets = [4, 0], sizes = [1, 384], strides = [1, 1]} : vector<10x384xf32> to vector<1x384xf32>
    %92 = vector.broadcast %91 : vector<1x384xf32> to vector<16x384xf32>
    %93 = arith.mulf %19, %92 : vector<16x384xf32>
    %94 = arith.truncf %93 : vector<16x384xf32> to vector<16x384xbf16>
    %cst_38 = arith.constant dense<0.000000e+00> : vector<16x32xf32>
    %95 = tpu.matmul %94, %35, %cst_38 {dimension_numbers = #tpu.dot_dimension_numbers<[1], [0], [0], [1], [0, 0, 1, 1], [], []>} : vector<16x384xbf16>, vector<384x32xbf16>, vector<16x32xf32> -> vector<16x32xf32>
    %96 = vector.extract_strided_slice %34 {offsets = [4, 0], sizes = [1, 32], strides = [1, 1]} : vector<10x32xf32> to vector<1x32xf32>
    %97 = vector.broadcast %96 : vector<1x32xf32> to vector<16x32xf32>
    %98 = arith.mulf %95, %97 : vector<16x32xf32>
    %99 = arith.truncf %98 : vector<16x32xf32> to vector<16x32xbf16>
    %c4 = arith.constant 4 : index
    %c0_39 = arith.constant 0 : index
    %c0_40 = arith.constant 0 : index
    %100 = vector.load %arg4[%c4, %c0_39, %c0_40] : memref<10x32x320xbf16, #tpu.memory_space<vmem>>, vector<1x32x320xbf16>
    %101 = vector.shape_cast %100 : vector<1x32x320xbf16> to vector<32x320xbf16>
    %cst_41 = arith.constant dense<0.000000e+00> : vector<16x320xf32>
    %102 = tpu.matmul %99, %101, %cst_41 {dimension_numbers = #tpu.dot_dimension_numbers<[1], [0], [0], [1], [0, 0, 1, 1], [], []>} : vector<16x32xbf16>, vector<32x320xbf16>, vector<16x320xf32> -> vector<16x320xf32>
    %103 = arith.addf %90, %102 : vector<16x320xf32>
    %104 = vector.extract_strided_slice %30 {offsets = [5, 0], sizes = [1, 384], strides = [1, 1]} : vector<10x384xf32> to vector<1x384xf32>
    %105 = vector.broadcast %104 : vector<1x384xf32> to vector<16x384xf32>
    %106 = arith.mulf %19, %105 : vector<16x384xf32>
    %107 = arith.truncf %106 : vector<16x384xf32> to vector<16x384xbf16>
    %cst_42 = arith.constant dense<0.000000e+00> : vector<16x32xf32>
    %108 = tpu.matmul %107, %35, %cst_42 {dimension_numbers = #tpu.dot_dimension_numbers<[1], [0], [0], [1], [0, 0, 1, 1], [], []>} : vector<16x384xbf16>, vector<384x32xbf16>, vector<16x32xf32> -> vector<16x32xf32>
    %109 = vector.extract_strided_slice %34 {offsets = [5, 0], sizes = [1, 32], strides = [1, 1]} : vector<10x32xf32> to vector<1x32xf32>
    %110 = vector.broadcast %109 : vector<1x32xf32> to vector<16x32xf32>
    %111 = arith.mulf %108, %110 : vector<16x32xf32>
    %112 = arith.truncf %111 : vector<16x32xf32> to vector<16x32xbf16>
    %c5 = arith.constant 5 : index
    %c0_43 = arith.constant 0 : index
    %c0_44 = arith.constant 0 : index
    %113 = vector.load %arg4[%c5, %c0_43, %c0_44] : memref<10x32x320xbf16, #tpu.memory_space<vmem>>, vector<1x32x320xbf16>
    %114 = vector.shape_cast %113 : vector<1x32x320xbf16> to vector<32x320xbf16>
    %cst_45 = arith.constant dense<0.000000e+00> : vector<16x320xf32>
    %115 = tpu.matmul %112, %114, %cst_45 {dimension_numbers = #tpu.dot_dimension_numbers<[1], [0], [0], [1], [0, 0, 1, 1], [], []>} : vector<16x32xbf16>, vector<32x320xbf16>, vector<16x320xf32> -> vector<16x320xf32>
    %116 = arith.addf %103, %115 : vector<16x320xf32>
    %117 = vector.extract_strided_slice %30 {offsets = [6, 0], sizes = [1, 384], strides = [1, 1]} : vector<10x384xf32> to vector<1x384xf32>
    %118 = vector.broadcast %117 : vector<1x384xf32> to vector<16x384xf32>
    %119 = arith.mulf %19, %118 : vector<16x384xf32>
    %120 = arith.truncf %119 : vector<16x384xf32> to vector<16x384xbf16>
    %cst_46 = arith.constant dense<0.000000e+00> : vector<16x32xf32>
    %121 = tpu.matmul %120, %35, %cst_46 {dimension_numbers = #tpu.dot_dimension_numbers<[1], [0], [0], [1], [0, 0, 1, 1], [], []>} : vector<16x384xbf16>, vector<384x32xbf16>, vector<16x32xf32> -> vector<16x32xf32>
    %122 = vector.extract_strided_slice %34 {offsets = [6, 0], sizes = [1, 32], strides = [1, 1]} : vector<10x32xf32> to vector<1x32xf32>
    %123 = vector.broadcast %122 : vector<1x32xf32> to vector<16x32xf32>
    %124 = arith.mulf %121, %123 : vector<16x32xf32>
    %125 = arith.truncf %124 : vector<16x32xf32> to vector<16x32xbf16>
    %c6 = arith.constant 6 : index
    %c0_47 = arith.constant 0 : index
    %c0_48 = arith.constant 0 : index
    %126 = vector.load %arg4[%c6, %c0_47, %c0_48] : memref<10x32x320xbf16, #tpu.memory_space<vmem>>, vector<1x32x320xbf16>
    %127 = vector.shape_cast %126 : vector<1x32x320xbf16> to vector<32x320xbf16>
    %cst_49 = arith.constant dense<0.000000e+00> : vector<16x320xf32>
    %128 = tpu.matmul %125, %127, %cst_49 {dimension_numbers = #tpu.dot_dimension_numbers<[1], [0], [0], [1], [0, 0, 1, 1], [], []>} : vector<16x32xbf16>, vector<32x320xbf16>, vector<16x320xf32> -> vector<16x320xf32>
    %129 = arith.addf %116, %128 : vector<16x320xf32>
    %130 = vector.extract_strided_slice %30 {offsets = [7, 0], sizes = [1, 384], strides = [1, 1]} : vector<10x384xf32> to vector<1x384xf32>
    %131 = vector.broadcast %130 : vector<1x384xf32> to vector<16x384xf32>
    %132 = arith.mulf %19, %131 : vector<16x384xf32>
    %133 = arith.truncf %132 : vector<16x384xf32> to vector<16x384xbf16>
    %cst_50 = arith.constant dense<0.000000e+00> : vector<16x32xf32>
    %134 = tpu.matmul %133, %35, %cst_50 {dimension_numbers = #tpu.dot_dimension_numbers<[1], [0], [0], [1], [0, 0, 1, 1], [], []>} : vector<16x384xbf16>, vector<384x32xbf16>, vector<16x32xf32> -> vector<16x32xf32>
    %135 = vector.extract_strided_slice %34 {offsets = [7, 0], sizes = [1, 32], strides = [1, 1]} : vector<10x32xf32> to vector<1x32xf32>
    %136 = vector.broadcast %135 : vector<1x32xf32> to vector<16x32xf32>
    %137 = arith.mulf %134, %136 : vector<16x32xf32>
    %138 = arith.truncf %137 : vector<16x32xf32> to vector<16x32xbf16>
    %c7 = arith.constant 7 : index
    %c0_51 = arith.constant 0 : index
    %c0_52 = arith.constant 0 : index
    %139 = vector.load %arg4[%c7, %c0_51, %c0_52] : memref<10x32x320xbf16, #tpu.memory_space<vmem>>, vector<1x32x320xbf16>
    %140 = vector.shape_cast %139 : vector<1x32x320xbf16> to vector<32x320xbf16>
    %cst_53 = arith.constant dense<0.000000e+00> : vector<16x320xf32>
    %141 = tpu.matmul %138, %140, %cst_53 {dimension_numbers = #tpu.dot_dimension_numbers<[1], [0], [0], [1], [0, 0, 1, 1], [], []>} : vector<16x32xbf16>, vector<32x320xbf16>, vector<16x320xf32> -> vector<16x320xf32>
    %142 = arith.addf %129, %141 : vector<16x320xf32>
    %143 = vector.extract_strided_slice %30 {offsets = [8, 0], sizes = [1, 384], strides = [1, 1]} : vector<10x384xf32> to vector<1x384xf32>
    %144 = vector.broadcast %143 : vector<1x384xf32> to vector<16x384xf32>
    %145 = arith.mulf %19, %144 : vector<16x384xf32>
    %146 = arith.truncf %145 : vector<16x384xf32> to vector<16x384xbf16>
    %cst_54 = arith.constant dense<0.000000e+00> : vector<16x32xf32>
    %147 = tpu.matmul %146, %35, %cst_54 {dimension_numbers = #tpu.dot_dimension_numbers<[1], [0], [0], [1], [0, 0, 1, 1], [], []>} : vector<16x384xbf16>, vector<384x32xbf16>, vector<16x32xf32> -> vector<16x32xf32>
    %148 = vector.extract_strided_slice %34 {offsets = [8, 0], sizes = [1, 32], strides = [1, 1]} : vector<10x32xf32> to vector<1x32xf32>
    %149 = vector.broadcast %148 : vector<1x32xf32> to vector<16x32xf32>
    %150 = arith.mulf %147, %149 : vector<16x32xf32>
    %151 = arith.truncf %150 : vector<16x32xf32> to vector<16x32xbf16>
    %c8 = arith.constant 8 : index
    %c0_55 = arith.constant 0 : index
    %c0_56 = arith.constant 0 : index
    %152 = vector.load %arg4[%c8, %c0_55, %c0_56] : memref<10x32x320xbf16, #tpu.memory_space<vmem>>, vector<1x32x320xbf16>
    %153 = vector.shape_cast %152 : vector<1x32x320xbf16> to vector<32x320xbf16>
    %cst_57 = arith.constant dense<0.000000e+00> : vector<16x320xf32>
    %154 = tpu.matmul %151, %153, %cst_57 {dimension_numbers = #tpu.dot_dimension_numbers<[1], [0], [0], [1], [0, 0, 1, 1], [], []>} : vector<16x32xbf16>, vector<32x320xbf16>, vector<16x320xf32> -> vector<16x320xf32>
    %155 = arith.addf %142, %154 : vector<16x320xf32>
    %156 = vector.extract_strided_slice %30 {offsets = [9, 0], sizes = [1, 384], strides = [1, 1]} : vector<10x384xf32> to vector<1x384xf32>
    %157 = vector.broadcast %156 : vector<1x384xf32> to vector<16x384xf32>
    %158 = arith.mulf %19, %157 : vector<16x384xf32>
    %159 = arith.truncf %158 : vector<16x384xf32> to vector<16x384xbf16>
    %cst_58 = arith.constant dense<0.000000e+00> : vector<16x32xf32>
    %160 = tpu.matmul %159, %35, %cst_58 {dimension_numbers = #tpu.dot_dimension_numbers<[1], [0], [0], [1], [0, 0, 1, 1], [], []>} : vector<16x384xbf16>, vector<384x32xbf16>, vector<16x32xf32> -> vector<16x32xf32>
    %161 = vector.extract_strided_slice %34 {offsets = [9, 0], sizes = [1, 32], strides = [1, 1]} : vector<10x32xf32> to vector<1x32xf32>
    %162 = vector.broadcast %161 : vector<1x32xf32> to vector<16x32xf32>
    %163 = arith.mulf %160, %162 : vector<16x32xf32>
    %164 = arith.truncf %163 : vector<16x32xf32> to vector<16x32xbf16>
    %c9 = arith.constant 9 : index
    %c0_59 = arith.constant 0 : index
    %c0_60 = arith.constant 0 : index
    %165 = vector.load %arg4[%c9, %c0_59, %c0_60] : memref<10x32x320xbf16, #tpu.memory_space<vmem>>, vector<1x32x320xbf16>
    %166 = vector.shape_cast %165 : vector<1x32x320xbf16> to vector<32x320xbf16>
    %cst_61 = arith.constant dense<0.000000e+00> : vector<16x320xf32>
    %167 = tpu.matmul %164, %166, %cst_61 {dimension_numbers = #tpu.dot_dimension_numbers<[1], [0], [0], [1], [0, 0, 1, 1], [], []>} : vector<16x32xbf16>, vector<32x320xbf16>, vector<16x320xf32> -> vector<16x320xf32>
    %168 = arith.addf %155, %167 : vector<16x320xf32>
    %cst_62 = arith.constant 0.000000e+00 : f32
    %169 = vector.broadcast %cst_62 : f32 to vector<16x320xf32>
    %170 = arith.maximumf %168, %169 : vector<16x320xf32>
    %c0_63 = arith.constant 0 : index
    %c0_64 = arith.constant 0 : index
    %c0_65 = arith.constant 0 : index
    %171 = vector.load %arg5[%c0_63, %c0_64, %c0_65] : memref<3x320x320xbf16, #tpu.memory_space<vmem>>, vector<1x320x320xbf16>
    %172 = vector.shape_cast %171 : vector<1x320x320xbf16> to vector<320x320xbf16>
    %173 = arith.truncf %170 : vector<16x320xf32> to vector<16x320xbf16>
    %cst_66 = arith.constant dense<0.000000e+00> : vector<16x320xf32>
    %174 = tpu.matmul %173, %172, %cst_66 {dimension_numbers = #tpu.dot_dimension_numbers<[1], [0], [0], [1], [0, 0, 1, 1], [], []>} : vector<16x320xbf16>, vector<320x320xbf16>, vector<16x320xf32> -> vector<16x320xf32>
    %c1_67 = arith.constant 1 : index
    %c0_68 = arith.constant 0 : index
    %c0_69 = arith.constant 0 : index
    %175 = vector.load %arg5[%c1_67, %c0_68, %c0_69] : memref<3x320x320xbf16, #tpu.memory_space<vmem>>, vector<1x320x320xbf16>
    %176 = vector.shape_cast %175 : vector<1x320x320xbf16> to vector<320x320xbf16>
    %177 = arith.truncf %170 : vector<16x320xf32> to vector<16x320xbf16>
    %cst_70 = arith.constant dense<0.000000e+00> : vector<16x320xf32>
    %178 = tpu.matmul %177, %176, %cst_70 {dimension_numbers = #tpu.dot_dimension_numbers<[1], [0], [0], [1], [0, 0, 1, 1], [], []>} : vector<16x320xbf16>, vector<320x320xbf16>, vector<16x320xf32> -> vector<16x320xf32>
    %c2_71 = arith.constant 2 : index
    %c0_72 = arith.constant 0 : index
    %c0_73 = arith.constant 0 : index
    %179 = vector.load %arg5[%c2_71, %c0_72, %c0_73] : memref<3x320x320xbf16, #tpu.memory_space<vmem>>, vector<1x320x320xbf16>
    %180 = vector.shape_cast %179 : vector<1x320x320xbf16> to vector<320x320xbf16>
    %181 = arith.truncf %170 : vector<16x320xf32> to vector<16x320xbf16>
    %cst_74 = arith.constant dense<0.000000e+00> : vector<16x320xf32>
    %182 = tpu.matmul %181, %180, %cst_74 {dimension_numbers = #tpu.dot_dimension_numbers<[1], [0], [0], [1], [0, 0, 1, 1], [], []>} : vector<16x320xbf16>, vector<320x320xbf16>, vector<16x320xf32> -> vector<16x320xf32>
    %183 = tpu.concatenate %174, %178, %182 in 0 : vector<16x320xf32>, vector<16x320xf32>, vector<16x320xf32> -> vector<48x320xf32>
    %c0_75 = arith.constant 0 : index
    %c0_76 = arith.constant 0 : index
    %184 = vector.load %arg21[%c0_75, %c0_76] : memref<16x48xbf16, #tpu.memory_space<vmem>>, vector<16x48xbf16>
    %185 = arith.truncf %183 : vector<48x320xf32> to vector<48x320xbf16>
    %cst_77 = arith.constant dense<0.000000e+00> : vector<16x320xf32>
    %186 = tpu.matmul %184, %185, %cst_77 {dimension_numbers = #tpu.dot_dimension_numbers<[1], [0], [0], [1], [0, 0, 1, 1], [], []>} : vector<16x48xbf16>, vector<48x320xbf16>, vector<16x320xf32> -> vector<16x320xf32>
    %c0_78 = arith.constant 0 : index
    %c0_79 = arith.constant 0 : index
    %187 = vector.load %arg22[%c0_78, %c0_79] : memref<16x1xf32, #tpu.memory_space<vmem>>, vector<16x1xf32>
    %188 = vector.broadcast %187 : vector<16x1xf32> to vector<16x320xf32>
    %189 = arith.addf %186, %188 : vector<16x320xf32>
    %190 = arith.addf %189, %170 : vector<16x320xf32>
    %cst_80 = arith.constant 0.000000e+00 : f32
    %191 = vector.broadcast %cst_80 : f32 to vector<16x320xf32>
    %192 = arith.maximumf %190, %191 : vector<16x320xf32>
    %c0_81 = arith.constant 0 : index
    %c0_82 = arith.constant 0 : index
    %c0_83 = arith.constant 0 : index
    %193 = vector.load %arg7[%c0_81, %c0_82, %c0_83] : memref<3x320x256xbf16, #tpu.memory_space<vmem>>, vector<1x320x256xbf16>
    %194 = vector.shape_cast %193 : vector<1x320x256xbf16> to vector<320x256xbf16>
    %195 = arith.truncf %192 : vector<16x320xf32> to vector<16x320xbf16>
    %cst_84 = arith.constant dense<0.000000e+00> : vector<16x256xf32>
    %196 = tpu.matmul %195, %194, %cst_84 {dimension_numbers = #tpu.dot_dimension_numbers<[1], [0], [0], [1], [0, 0, 1, 1], [], []>} : vector<16x320xbf16>, vector<320x256xbf16>, vector<16x256xf32> -> vector<16x256xf32>
    %c1_85 = arith.constant 1 : index
    %c0_86 = arith.constant 0 : index
    %c0_87 = arith.constant 0 : index
    %197 = vector.load %arg7[%c1_85, %c0_86, %c0_87] : memref<3x320x256xbf16, #tpu.memory_space<vmem>>, vector<1x320x256xbf16>
    %198 = vector.shape_cast %197 : vector<1x320x256xbf16> to vector<320x256xbf16>
    %199 = arith.truncf %192 : vector<16x320xf32> to vector<16x320xbf16>
    %cst_88 = arith.constant dense<0.000000e+00> : vector<16x256xf32>
    %200 = tpu.matmul %199, %198, %cst_88 {dimension_numbers = #tpu.dot_dimension_numbers<[1], [0], [0], [1], [0, 0, 1, 1], [], []>} : vector<16x320xbf16>, vector<320x256xbf16>, vector<16x256xf32> -> vector<16x256xf32>
    %c2_89 = arith.constant 2 : index
    %c0_90 = arith.constant 0 : index
    %c0_91 = arith.constant 0 : index
    %201 = vector.load %arg7[%c2_89, %c0_90, %c0_91] : memref<3x320x256xbf16, #tpu.memory_space<vmem>>, vector<1x320x256xbf16>
    %202 = vector.shape_cast %201 : vector<1x320x256xbf16> to vector<320x256xbf16>
    %203 = arith.truncf %192 : vector<16x320xf32> to vector<16x320xbf16>
    %cst_92 = arith.constant dense<0.000000e+00> : vector<16x256xf32>
    %204 = tpu.matmul %203, %202, %cst_92 {dimension_numbers = #tpu.dot_dimension_numbers<[1], [0], [0], [1], [0, 0, 1, 1], [], []>} : vector<16x320xbf16>, vector<320x256xbf16>, vector<16x256xf32> -> vector<16x256xf32>
    %205 = tpu.concatenate %196, %200, %204 in 0 : vector<16x256xf32>, vector<16x256xf32>, vector<16x256xf32> -> vector<48x256xf32>
    %c0_93 = arith.constant 0 : index
    %c0_94 = arith.constant 0 : index
    %206 = vector.load %arg23[%c0_93, %c0_94] : memref<32x48xbf16, #tpu.memory_space<vmem>>, vector<32x48xbf16>
    %207 = arith.truncf %205 : vector<48x256xf32> to vector<48x256xbf16>
    %cst_95 = arith.constant dense<0.000000e+00> : vector<32x256xf32>
    %208 = tpu.matmul %206, %207, %cst_95 {dimension_numbers = #tpu.dot_dimension_numbers<[1], [0], [0], [1], [0, 0, 1, 1], [], []>} : vector<32x48xbf16>, vector<48x256xbf16>, vector<32x256xf32> -> vector<32x256xf32>
    %c0_96 = arith.constant 0 : index
    %c0_97 = arith.constant 0 : index
    %209 = vector.load %arg24[%c0_96, %c0_97] : memref<32x1xf32, #tpu.memory_space<vmem>>, vector<32x1xf32>
    %210 = vector.broadcast %209 : vector<32x1xf32> to vector<32x256xf32>
    %211 = arith.addf %208, %210 : vector<32x256xf32>
    %cst_98 = arith.constant 0.000000e+00 : f32
    %212 = vector.broadcast %cst_98 : f32 to vector<16x256xf32>
    %213 = tpu.concatenate %204, %212 in 0 : vector<16x256xf32>, vector<16x256xf32> -> vector<32x256xf32>
    %214 = arith.addf %211, %213 : vector<32x256xf32>
    %cst_99 = arith.constant 0.000000e+00 : f32
    %215 = vector.broadcast %cst_99 : f32 to vector<32x256xf32>
    %216 = arith.maximumf %214, %215 : vector<32x256xf32>
    %cst_100 = arith.constant dense<0.000000e+00> : vector<256xf32>
    %217 = vector.multi_reduction <add>, %216, %cst_100 [0] : vector<32x256xf32> to vector<256xf32>
    %218 = vector.shape_cast %217 : vector<256xf32> to vector<1x256xf32>
    %c0_101 = arith.constant 0 : index
    %c0_102 = arith.constant 0 : index
    %219 = vector.load %arg11[%c0_101, %c0_102] : memref<256x16xf32, #tpu.memory_space<vmem>>, vector<256x16xf32>
    %cst_103 = arith.constant dense<0.000000e+00> : vector<1x16xf32>
    %220 = tpu.matmul %218, %219, %cst_103 {dimension_numbers = #tpu.dot_dimension_numbers<[1], [0], [0], [1], [0, 0, 1, 1], [], []>} : vector<1x256xf32>, vector<256x16xf32>, vector<1x16xf32> -> vector<1x16xf32>
    %c0_104 = arith.constant 0 : index
    %c0_105 = arith.constant 0 : index
    %221 = vector.load %arg12[%c0_104, %c0_105] : memref<16x256xf32, #tpu.memory_space<vmem>>, vector<16x256xf32>
    %cst_106 = arith.constant dense<0.000000e+00> : vector<1x256xf32>
    %222 = tpu.matmul %220, %221, %cst_106 {dimension_numbers = #tpu.dot_dimension_numbers<[1], [0], [0], [1], [0, 0, 1, 1], [], []>} : vector<1x16xf32>, vector<16x256xf32>, vector<1x256xf32> -> vector<1x256xf32>
    %cst_107 = arith.constant 0.001953125 : f32
    %223 = vector.broadcast %cst_107 : f32 to vector<1x256xf32>
    %224 = arith.mulf %222, %223 : vector<1x256xf32>
    %225 = vector.broadcast %224 : vector<1x256xf32> to vector<32x256xf32>
    %226 = arith.subf %216, %225 : vector<32x256xf32>
    %227 = arith.mulf %226, %226 : vector<32x256xf32>
    %cst_108 = arith.constant dense<0.000000e+00> : vector<256xf32>
    %228 = vector.multi_reduction <add>, %227, %cst_108 [0] : vector<32x256xf32> to vector<256xf32>
    %229 = vector.shape_cast %228 : vector<256xf32> to vector<1x256xf32>
    %c0_109 = arith.constant 0 : index
    %c0_110 = arith.constant 0 : index
    %230 = vector.load %arg11[%c0_109, %c0_110] : memref<256x16xf32, #tpu.memory_space<vmem>>, vector<256x16xf32>
    %cst_111 = arith.constant dense<0.000000e+00> : vector<1x16xf32>
    %231 = tpu.matmul %229, %230, %cst_111 {dimension_numbers = #tpu.dot_dimension_numbers<[1], [0], [0], [1], [0, 0, 1, 1], [], []>} : vector<1x256xf32>, vector<256x16xf32>, vector<1x16xf32> -> vector<1x16xf32>
    %c0_112 = arith.constant 0 : index
    %c0_113 = arith.constant 0 : index
    %232 = vector.load %arg12[%c0_112, %c0_113] : memref<16x256xf32, #tpu.memory_space<vmem>>, vector<16x256xf32>
    %cst_114 = arith.constant dense<0.000000e+00> : vector<1x256xf32>
    %233 = tpu.matmul %231, %232, %cst_114 {dimension_numbers = #tpu.dot_dimension_numbers<[1], [0], [0], [1], [0, 0, 1, 1], [], []>} : vector<1x16xf32>, vector<16x256xf32>, vector<1x256xf32> -> vector<1x256xf32>
    %cst_115 = arith.constant 0.001953125 : f32
    %234 = vector.broadcast %cst_115 : f32 to vector<1x256xf32>
    %235 = arith.mulf %233, %234 : vector<1x256xf32>
    %cst_116 = arith.constant 9.99999974E-6 : f32
    %236 = vector.broadcast %cst_116 : f32 to vector<1x256xf32>
    %237 = arith.addf %235, %236 : vector<1x256xf32>
    %238 = math.rsqrt %237 : vector<1x256xf32>
    %239 = vector.broadcast %238 : vector<1x256xf32> to vector<32x256xf32>
    %240 = arith.mulf %226, %239 : vector<32x256xf32>
    %c0_117 = arith.constant 0 : index
    %c0_118 = arith.constant 0 : index
    %241 = vector.load %arg25[%c0_117, %c0_118] : memref<32x256xf32, #tpu.memory_space<vmem>>, vector<32x256xf32>
    %242 = arith.mulf %240, %241 : vector<32x256xf32>
    %c0_119 = arith.constant 0 : index
    %c0_120 = arith.constant 0 : index
    %243 = vector.load %arg26[%c0_119, %c0_120] : memref<32x256xf32, #tpu.memory_space<vmem>>, vector<32x256xf32>
    %244 = arith.addf %242, %243 : vector<32x256xf32>
    %c0_121 = arith.constant 0 : index
    %c0_122 = arith.constant 0 : index
    %c0_123 = arith.constant 0 : index
    %245 = vector.load %arg8[%c0_121, %c0_122, %c0_123] : memref<3x256x192xbf16, #tpu.memory_space<vmem>>, vector<1x256x192xbf16>
    %246 = vector.shape_cast %245 : vector<1x256x192xbf16> to vector<256x192xbf16>
    %247 = arith.truncf %244 : vector<32x256xf32> to vector<32x256xbf16>
    %cst_124 = arith.constant dense<0.000000e+00> : vector<32x192xf32>
    %248 = tpu.matmul %247, %246, %cst_124 {dimension_numbers = #tpu.dot_dimension_numbers<[1], [0], [0], [1], [0, 0, 1, 1], [], []>} : vector<32x256xbf16>, vector<256x192xbf16>, vector<32x192xf32> -> vector<32x192xf32>
    %c1_125 = arith.constant 1 : index
    %c0_126 = arith.constant 0 : index
    %c0_127 = arith.constant 0 : index
    %249 = vector.load %arg8[%c1_125, %c0_126, %c0_127] : memref<3x256x192xbf16, #tpu.memory_space<vmem>>, vector<1x256x192xbf16>
    %250 = vector.shape_cast %249 : vector<1x256x192xbf16> to vector<256x192xbf16>
    %251 = arith.truncf %244 : vector<32x256xf32> to vector<32x256xbf16>
    %cst_128 = arith.constant dense<0.000000e+00> : vector<32x192xf32>
    %252 = tpu.matmul %251, %250, %cst_128 {dimension_numbers = #tpu.dot_dimension_numbers<[1], [0], [0], [1], [0, 0, 1, 1], [], []>} : vector<32x256xbf16>, vector<256x192xbf16>, vector<32x192xf32> -> vector<32x192xf32>
    %c2_129 = arith.constant 2 : index
    %c0_130 = arith.constant 0 : index
    %c0_131 = arith.constant 0 : index
    %253 = vector.load %arg8[%c2_129, %c0_130, %c0_131] : memref<3x256x192xbf16, #tpu.memory_space<vmem>>, vector<1x256x192xbf16>
    %254 = vector.shape_cast %253 : vector<1x256x192xbf16> to vector<256x192xbf16>
    %255 = arith.truncf %244 : vector<32x256xf32> to vector<32x256xbf16>
    %cst_132 = arith.constant dense<0.000000e+00> : vector<32x192xf32>
    %256 = tpu.matmul %255, %254, %cst_132 {dimension_numbers = #tpu.dot_dimension_numbers<[1], [0], [0], [1], [0, 0, 1, 1], [], []>} : vector<32x256xbf16>, vector<256x192xbf16>, vector<32x192xf32> -> vector<32x192xf32>
    %257 = tpu.concatenate %248, %252, %256 in 0 : vector<32x192xf32>, vector<32x192xf32>, vector<32x192xf32> -> vector<96x192xf32>
    %c0_133 = arith.constant 0 : index
    %c0_134 = arith.constant 0 : index
    %258 = vector.load %arg27[%c0_133, %c0_134] : memref<32x96xbf16, #tpu.memory_space<vmem>>, vector<32x96xbf16>
    %259 = arith.truncf %257 : vector<96x192xf32> to vector<96x192xbf16>
    %cst_135 = arith.constant dense<0.000000e+00> : vector<32x192xf32>
    %260 = tpu.matmul %258, %259, %cst_135 {dimension_numbers = #tpu.dot_dimension_numbers<[1], [0], [0], [1], [0, 0, 1, 1], [], []>} : vector<32x96xbf16>, vector<96x192xbf16>, vector<32x192xf32> -> vector<32x192xf32>
    %c0_136 = arith.constant 0 : index
    %c0_137 = arith.constant 0 : index
    %261 = vector.load %arg28[%c0_136, %c0_137] : memref<32x1xf32, #tpu.memory_space<vmem>>, vector<32x1xf32>
    %262 = vector.broadcast %261 : vector<32x1xf32> to vector<32x192xf32>
    %263 = arith.addf %260, %262 : vector<32x192xf32>
    %c0_138 = arith.constant 0 : index
    %c0_139 = arith.constant 0 : index
    %264 = vector.load %arg29[%c0_138, %c0_139] : memref<16x32xbf16, #tpu.memory_space<vmem>>, vector<16x32xbf16>
    %265 = arith.truncf %256 : vector<32x192xf32> to vector<32x192xbf16>
    %cst_140 = arith.constant dense<0.000000e+00> : vector<16x192xf32>
    %266 = tpu.matmul %264, %265, %cst_140 {dimension_numbers = #tpu.dot_dimension_numbers<[1], [0], [0], [1], [0, 0, 1, 1], [], []>} : vector<16x32xbf16>, vector<32x192xbf16>, vector<16x192xf32> -> vector<16x192xf32>
    %c0_141 = arith.constant 0 : index
    %c0_142 = arith.constant 0 : index
    %267 = vector.load %arg30[%c0_141, %c0_142] : memref<16x1xf32, #tpu.memory_space<vmem>>, vector<16x1xf32>
    %268 = vector.broadcast %267 : vector<16x1xf32> to vector<16x192xf32>
    %269 = arith.addf %266, %268 : vector<16x192xf32>
    %270 = vector.extract_strided_slice %263 {offsets = [0, 0], sizes = [16, 192], strides = [1, 1]} : vector<32x192xf32> to vector<16x192xf32>
    %271 = arith.addf %270, %269 : vector<16x192xf32>
    %272 = vector.extract_strided_slice %263 {offsets = [16, 0], sizes = [16, 192], strides = [1, 1]} : vector<32x192xf32> to vector<16x192xf32>
    %273 = arith.negf %272 : vector<16x192xf32>
    %274 = math.exp %273 : vector<16x192xf32>
    %cst_143 = arith.constant 1.000000e+00 : f32
    %275 = vector.broadcast %cst_143 : f32 to vector<16x192xf32>
    %276 = arith.addf %275, %274 : vector<16x192xf32>
    %277 = arith.divf %275, %276 : vector<16x192xf32>
    %278 = arith.mulf %271, %277 : vector<16x192xf32>
    %c0_144 = arith.constant 0 : index
    %c0_145 = arith.constant 0 : index
    %c0_146 = arith.constant 0 : index
    %279 = vector.load %arg6[%c0_144, %c0_145, %c0_146] : memref<3x192x192xbf16, #tpu.memory_space<vmem>>, vector<1x192x192xbf16>
    %280 = vector.shape_cast %279 : vector<1x192x192xbf16> to vector<192x192xbf16>
    %281 = arith.truncf %278 : vector<16x192xf32> to vector<16x192xbf16>
    %cst_147 = arith.constant dense<0.000000e+00> : vector<16x192xf32>
    %282 = tpu.matmul %281, %280, %cst_147 {dimension_numbers = #tpu.dot_dimension_numbers<[1], [0], [0], [1], [0, 0, 1, 1], [], []>} : vector<16x192xbf16>, vector<192x192xbf16>, vector<16x192xf32> -> vector<16x192xf32>
    %c1_148 = arith.constant 1 : index
    %c0_149 = arith.constant 0 : index
    %c0_150 = arith.constant 0 : index
    %283 = vector.load %arg6[%c1_148, %c0_149, %c0_150] : memref<3x192x192xbf16, #tpu.memory_space<vmem>>, vector<1x192x192xbf16>
    %284 = vector.shape_cast %283 : vector<1x192x192xbf16> to vector<192x192xbf16>
    %285 = arith.truncf %278 : vector<16x192xf32> to vector<16x192xbf16>
    %cst_151 = arith.constant dense<0.000000e+00> : vector<16x192xf32>
    %286 = tpu.matmul %285, %284, %cst_151 {dimension_numbers = #tpu.dot_dimension_numbers<[1], [0], [0], [1], [0, 0, 1, 1], [], []>} : vector<16x192xbf16>, vector<192x192xbf16>, vector<16x192xf32> -> vector<16x192xf32>
    %c2_152 = arith.constant 2 : index
    %c0_153 = arith.constant 0 : index
    %c0_154 = arith.constant 0 : index
    %287 = vector.load %arg6[%c2_152, %c0_153, %c0_154] : memref<3x192x192xbf16, #tpu.memory_space<vmem>>, vector<1x192x192xbf16>
    %288 = vector.shape_cast %287 : vector<1x192x192xbf16> to vector<192x192xbf16>
    %289 = arith.truncf %278 : vector<16x192xf32> to vector<16x192xbf16>
    %cst_155 = arith.constant dense<0.000000e+00> : vector<16x192xf32>
    %290 = tpu.matmul %289, %288, %cst_155 {dimension_numbers = #tpu.dot_dimension_numbers<[1], [0], [0], [1], [0, 0, 1, 1], [], []>} : vector<16x192xbf16>, vector<192x192xbf16>, vector<16x192xf32> -> vector<16x192xf32>
    %291 = tpu.concatenate %282, %286, %290 in 0 : vector<16x192xf32>, vector<16x192xf32>, vector<16x192xf32> -> vector<48x192xf32>
    %c0_156 = arith.constant 0 : index
    %c0_157 = arith.constant 0 : index
    %292 = vector.load %arg31[%c0_156, %c0_157] : memref<16x48xbf16, #tpu.memory_space<vmem>>, vector<16x48xbf16>
    %293 = arith.truncf %291 : vector<48x192xf32> to vector<48x192xbf16>
    %cst_158 = arith.constant dense<0.000000e+00> : vector<16x192xf32>
    %294 = tpu.matmul %292, %293, %cst_158 {dimension_numbers = #tpu.dot_dimension_numbers<[1], [0], [0], [1], [0, 0, 1, 1], [], []>} : vector<16x48xbf16>, vector<48x192xbf16>, vector<16x192xf32> -> vector<16x192xf32>
    %c0_159 = arith.constant 0 : index
    %c0_160 = arith.constant 0 : index
    %295 = vector.load %arg32[%c0_159, %c0_160] : memref<16x1xf32, #tpu.memory_space<vmem>>, vector<16x1xf32>
    %296 = vector.broadcast %295 : vector<16x1xf32> to vector<16x192xf32>
    %297 = arith.addf %294, %296 : vector<16x192xf32>
    %298 = arith.addf %297, %278 : vector<16x192xf32>
    %cst_161 = arith.constant 0.000000e+00 : f32
    %299 = vector.broadcast %cst_161 : f32 to vector<16x192xf32>
    %300 = arith.maximumf %298, %299 : vector<16x192xf32>
    %c0_162 = arith.constant 0 : index
    %c0_163 = arith.constant 0 : index
    %c0_164 = arith.constant 0 : index
    %301 = vector.load %arg9[%c0_162, %c0_163, %c0_164] : memref<3x192x128xbf16, #tpu.memory_space<vmem>>, vector<1x192x128xbf16>
    %302 = vector.shape_cast %301 : vector<1x192x128xbf16> to vector<192x128xbf16>
    %303 = arith.truncf %300 : vector<16x192xf32> to vector<16x192xbf16>
    %cst_165 = arith.constant dense<0.000000e+00> : vector<16x128xf32>
    %304 = tpu.matmul %303, %302, %cst_165 {dimension_numbers = #tpu.dot_dimension_numbers<[1], [0], [0], [1], [0, 0, 1, 1], [], []>} : vector<16x192xbf16>, vector<192x128xbf16>, vector<16x128xf32> -> vector<16x128xf32>
    %c1_166 = arith.constant 1 : index
    %c0_167 = arith.constant 0 : index
    %c0_168 = arith.constant 0 : index
    %305 = vector.load %arg9[%c1_166, %c0_167, %c0_168] : memref<3x192x128xbf16, #tpu.memory_space<vmem>>, vector<1x192x128xbf16>
    %306 = vector.shape_cast %305 : vector<1x192x128xbf16> to vector<192x128xbf16>
    %307 = arith.truncf %300 : vector<16x192xf32> to vector<16x192xbf16>
    %cst_169 = arith.constant dense<0.000000e+00> : vector<16x128xf32>
    %308 = tpu.matmul %307, %306, %cst_169 {dimension_numbers = #tpu.dot_dimension_numbers<[1], [0], [0], [1], [0, 0, 1, 1], [], []>} : vector<16x192xbf16>, vector<192x128xbf16>, vector<16x128xf32> -> vector<16x128xf32>
    %c2_170 = arith.constant 2 : index
    %c0_171 = arith.constant 0 : index
    %c0_172 = arith.constant 0 : index
    %309 = vector.load %arg9[%c2_170, %c0_171, %c0_172] : memref<3x192x128xbf16, #tpu.memory_space<vmem>>, vector<1x192x128xbf16>
    %310 = vector.shape_cast %309 : vector<1x192x128xbf16> to vector<192x128xbf16>
    %311 = arith.truncf %300 : vector<16x192xf32> to vector<16x192xbf16>
    %cst_173 = arith.constant dense<0.000000e+00> : vector<16x128xf32>
    %312 = tpu.matmul %311, %310, %cst_173 {dimension_numbers = #tpu.dot_dimension_numbers<[1], [0], [0], [1], [0, 0, 1, 1], [], []>} : vector<16x192xbf16>, vector<192x128xbf16>, vector<16x128xf32> -> vector<16x128xf32>
    %313 = tpu.concatenate %304, %308, %312 in 0 : vector<16x128xf32>, vector<16x128xf32>, vector<16x128xf32> -> vector<48x128xf32>
    %c0_174 = arith.constant 0 : index
    %c0_175 = arith.constant 0 : index
    %314 = vector.load %arg33[%c0_174, %c0_175] : memref<32x48xbf16, #tpu.memory_space<vmem>>, vector<32x48xbf16>
    %315 = arith.truncf %313 : vector<48x128xf32> to vector<48x128xbf16>
    %cst_176 = arith.constant dense<0.000000e+00> : vector<32x128xf32>
    %316 = tpu.matmul %314, %315, %cst_176 {dimension_numbers = #tpu.dot_dimension_numbers<[1], [0], [0], [1], [0, 0, 1, 1], [], []>} : vector<32x48xbf16>, vector<48x128xbf16>, vector<32x128xf32> -> vector<32x128xf32>
    %c0_177 = arith.constant 0 : index
    %c0_178 = arith.constant 0 : index
    %317 = vector.load %arg34[%c0_177, %c0_178] : memref<32x1xf32, #tpu.memory_space<vmem>>, vector<32x1xf32>
    %318 = vector.broadcast %317 : vector<32x1xf32> to vector<32x128xf32>
    %319 = arith.addf %316, %318 : vector<32x128xf32>
    %cst_179 = arith.constant 0.000000e+00 : f32
    %320 = vector.broadcast %cst_179 : f32 to vector<16x128xf32>
    %321 = tpu.concatenate %312, %320 in 0 : vector<16x128xf32>, vector<16x128xf32> -> vector<32x128xf32>
    %322 = arith.addf %319, %321 : vector<32x128xf32>
    %cst_180 = arith.constant 0.000000e+00 : f32
    %323 = vector.broadcast %cst_180 : f32 to vector<32x128xf32>
    %324 = arith.maximumf %322, %323 : vector<32x128xf32>
    %cst_181 = arith.constant dense<0.000000e+00> : vector<128xf32>
    %325 = vector.multi_reduction <add>, %324, %cst_181 [0] : vector<32x128xf32> to vector<128xf32>
    %326 = vector.shape_cast %325 : vector<128xf32> to vector<1x128xf32>
    %c0_182 = arith.constant 0 : index
    %c0_183 = arith.constant 0 : index
    %327 = vector.load %arg13[%c0_182, %c0_183] : memref<128x8xf32, #tpu.memory_space<vmem>>, vector<128x8xf32>
    %cst_184 = arith.constant dense<0.000000e+00> : vector<1x8xf32>
    %328 = tpu.matmul %326, %327, %cst_184 {dimension_numbers = #tpu.dot_dimension_numbers<[1], [0], [0], [1], [0, 0, 1, 1], [], []>} : vector<1x128xf32>, vector<128x8xf32>, vector<1x8xf32> -> vector<1x8xf32>
    %c0_185 = arith.constant 0 : index
    %c0_186 = arith.constant 0 : index
    %329 = vector.load %arg14[%c0_185, %c0_186] : memref<8x128xf32, #tpu.memory_space<vmem>>, vector<8x128xf32>
    %cst_187 = arith.constant dense<0.000000e+00> : vector<1x128xf32>
    %330 = tpu.matmul %328, %329, %cst_187 {dimension_numbers = #tpu.dot_dimension_numbers<[1], [0], [0], [1], [0, 0, 1, 1], [], []>} : vector<1x8xf32>, vector<8x128xf32>, vector<1x128xf32> -> vector<1x128xf32>
    %cst_188 = arith.constant 0.001953125 : f32
    %331 = vector.broadcast %cst_188 : f32 to vector<1x128xf32>
    %332 = arith.mulf %330, %331 : vector<1x128xf32>
    %333 = vector.broadcast %332 : vector<1x128xf32> to vector<32x128xf32>
    %334 = arith.subf %324, %333 : vector<32x128xf32>
    %335 = arith.mulf %334, %334 : vector<32x128xf32>
    %cst_189 = arith.constant dense<0.000000e+00> : vector<128xf32>
    %336 = vector.multi_reduction <add>, %335, %cst_189 [0] : vector<32x128xf32> to vector<128xf32>
    %337 = vector.shape_cast %336 : vector<128xf32> to vector<1x128xf32>
    %c0_190 = arith.constant 0 : index
    %c0_191 = arith.constant 0 : index
    %338 = vector.load %arg13[%c0_190, %c0_191] : memref<128x8xf32, #tpu.memory_space<vmem>>, vector<128x8xf32>
    %cst_192 = arith.constant dense<0.000000e+00> : vector<1x8xf32>
    %339 = tpu.matmul %337, %338, %cst_192 {dimension_numbers = #tpu.dot_dimension_numbers<[1], [0], [0], [1], [0, 0, 1, 1], [], []>} : vector<1x128xf32>, vector<128x8xf32>, vector<1x8xf32> -> vector<1x8xf32>
    %c0_193 = arith.constant 0 : index
    %c0_194 = arith.constant 0 : index
    %340 = vector.load %arg14[%c0_193, %c0_194] : memref<8x128xf32, #tpu.memory_space<vmem>>, vector<8x128xf32>
    %cst_195 = arith.constant dense<0.000000e+00> : vector<1x128xf32>
    %341 = tpu.matmul %339, %340, %cst_195 {dimension_numbers = #tpu.dot_dimension_numbers<[1], [0], [0], [1], [0, 0, 1, 1], [], []>} : vector<1x8xf32>, vector<8x128xf32>, vector<1x128xf32> -> vector<1x128xf32>
    %cst_196 = arith.constant 0.001953125 : f32
    %342 = vector.broadcast %cst_196 : f32 to vector<1x128xf32>
    %343 = arith.mulf %341, %342 : vector<1x128xf32>
    %cst_197 = arith.constant 9.99999974E-6 : f32
    %344 = vector.broadcast %cst_197 : f32 to vector<1x128xf32>
    %345 = arith.addf %343, %344 : vector<1x128xf32>
    %346 = math.rsqrt %345 : vector<1x128xf32>
    %347 = vector.broadcast %346 : vector<1x128xf32> to vector<32x128xf32>
    %348 = arith.mulf %334, %347 : vector<32x128xf32>
    %c0_198 = arith.constant 0 : index
    %c0_199 = arith.constant 0 : index
    %349 = vector.load %arg35[%c0_198, %c0_199] : memref<32x128xf32, #tpu.memory_space<vmem>>, vector<32x128xf32>
    %350 = arith.mulf %348, %349 : vector<32x128xf32>
    %c0_200 = arith.constant 0 : index
    %c0_201 = arith.constant 0 : index
    %351 = vector.load %arg36[%c0_200, %c0_201] : memref<32x128xf32, #tpu.memory_space<vmem>>, vector<32x128xf32>
    %352 = arith.addf %350, %351 : vector<32x128xf32>
    %c0_202 = arith.constant 0 : index
    %c0_203 = arith.constant 0 : index
    %c0_204 = arith.constant 0 : index
    %353 = vector.load %arg10[%c0_202, %c0_203, %c0_204] : memref<4x128x32xbf16, #tpu.memory_space<vmem>>, vector<1x128x32xbf16>
    %354 = vector.shape_cast %353 : vector<1x128x32xbf16> to vector<128x32xbf16>
    %355 = arith.truncf %352 : vector<32x128xf32> to vector<32x128xbf16>
    %cst_205 = arith.constant dense<0.000000e+00> : vector<32x32xf32>
    %356 = tpu.matmul %355, %354, %cst_205 {dimension_numbers = #tpu.dot_dimension_numbers<[1], [0], [0], [1], [0, 0, 1, 1], [], []>} : vector<32x128xbf16>, vector<128x32xbf16>, vector<32x32xf32> -> vector<32x32xf32>
    %c1_206 = arith.constant 1 : index
    %c0_207 = arith.constant 0 : index
    %c0_208 = arith.constant 0 : index
    %357 = vector.load %arg10[%c1_206, %c0_207, %c0_208] : memref<4x128x32xbf16, #tpu.memory_space<vmem>>, vector<1x128x32xbf16>
    %358 = vector.shape_cast %357 : vector<1x128x32xbf16> to vector<128x32xbf16>
    %359 = arith.truncf %352 : vector<32x128xf32> to vector<32x128xbf16>
    %cst_209 = arith.constant dense<0.000000e+00> : vector<32x32xf32>
    %360 = tpu.matmul %359, %358, %cst_209 {dimension_numbers = #tpu.dot_dimension_numbers<[1], [0], [0], [1], [0, 0, 1, 1], [], []>} : vector<32x128xbf16>, vector<128x32xbf16>, vector<32x32xf32> -> vector<32x32xf32>
    %c2_210 = arith.constant 2 : index
    %c0_211 = arith.constant 0 : index
    %c0_212 = arith.constant 0 : index
    %361 = vector.load %arg10[%c2_210, %c0_211, %c0_212] : memref<4x128x32xbf16, #tpu.memory_space<vmem>>, vector<1x128x32xbf16>
    %362 = vector.shape_cast %361 : vector<1x128x32xbf16> to vector<128x32xbf16>
    %363 = arith.truncf %352 : vector<32x128xf32> to vector<32x128xbf16>
    %cst_213 = arith.constant dense<0.000000e+00> : vector<32x32xf32>
    %364 = tpu.matmul %363, %362, %cst_213 {dimension_numbers = #tpu.dot_dimension_numbers<[1], [0], [0], [1], [0, 0, 1, 1], [], []>} : vector<32x128xbf16>, vector<128x32xbf16>, vector<32x32xf32> -> vector<32x32xf32>
    %c3_214 = arith.constant 3 : index
    %c0_215 = arith.constant 0 : index
    %c0_216 = arith.constant 0 : index
    %365 = vector.load %arg10[%c3_214, %c0_215, %c0_216] : memref<4x128x32xbf16, #tpu.memory_space<vmem>>, vector<1x128x32xbf16>
    %366 = vector.shape_cast %365 : vector<1x128x32xbf16> to vector<128x32xbf16>
    %367 = arith.truncf %352 : vector<32x128xf32> to vector<32x128xbf16>
    %cst_217 = arith.constant dense<0.000000e+00> : vector<32x32xf32>
    %368 = tpu.matmul %367, %366, %cst_217 {dimension_numbers = #tpu.dot_dimension_numbers<[1], [0], [0], [1], [0, 0, 1, 1], [], []>} : vector<32x128xbf16>, vector<128x32xbf16>, vector<32x32xf32> -> vector<32x32xf32>
    %369 = tpu.concatenate %356, %360, %364, %368 in 0 : vector<32x32xf32>, vector<32x32xf32>, vector<32x32xf32>, vector<32x32xf32> -> vector<128x32xf32>
    %c0_218 = arith.constant 0 : index
    %c0_219 = arith.constant 0 : index
    %370 = vector.load %arg37[%c0_218, %c0_219] : memref<64x128xbf16, #tpu.memory_space<vmem>>, vector<64x128xbf16>
    %371 = arith.truncf %369 : vector<128x32xf32> to vector<128x32xbf16>
    %cst_220 = arith.constant dense<0.000000e+00> : vector<64x32xf32>
    %372 = tpu.matmul %370, %371, %cst_220 {dimension_numbers = #tpu.dot_dimension_numbers<[1], [0], [0], [1], [0, 0, 1, 1], [], []>} : vector<64x128xbf16>, vector<128x32xbf16>, vector<64x32xf32> -> vector<64x32xf32>
    %c0_221 = arith.constant 0 : index
    %c0_222 = arith.constant 0 : index
    %373 = vector.load %arg38[%c0_221, %c0_222] : memref<64x1xf32, #tpu.memory_space<vmem>>, vector<64x1xf32>
    %374 = vector.broadcast %373 : vector<64x1xf32> to vector<64x32xf32>
    %375 = arith.addf %372, %374 : vector<64x32xf32>
    %376 = vector.extract_strided_slice %375 {offsets = [0, 0], sizes = [32, 32], strides = [1, 1]} : vector<64x32xf32> to vector<32x32xf32>
    %377 = arith.addf %376, %368 : vector<32x32xf32>
    %378 = vector.extract_strided_slice %375 {offsets = [32, 0], sizes = [32, 32], strides = [1, 1]} : vector<64x32xf32> to vector<32x32xf32>
    %379 = arith.negf %378 : vector<32x32xf32>
    %380 = math.exp %379 : vector<32x32xf32>
    %cst_223 = arith.constant 1.000000e+00 : f32
    %381 = vector.broadcast %cst_223 : f32 to vector<32x32xf32>
    %382 = arith.addf %381, %380 : vector<32x32xf32>
    %383 = arith.divf %381, %382 : vector<32x32xf32>
    %384 = arith.mulf %377, %383 : vector<32x32xf32>
    %cst_224 = arith.constant dense<0.000000e+00> : vector<32xf32>
    %385 = vector.multi_reduction <add>, %384, %cst_224 [0] : vector<32x32xf32> to vector<32xf32>
    %386 = vector.shape_cast %385 : vector<32xf32> to vector<1x32xf32>
    %c0_225 = arith.constant 0 : index
    %c0_226 = arith.constant 0 : index
    %387 = vector.load %arg15[%c0_225, %c0_226] : memref<32x2xf32, #tpu.memory_space<vmem>>, vector<32x2xf32>
    %cst_227 = arith.constant dense<0.000000e+00> : vector<1x2xf32>
    %388 = tpu.matmul %386, %387, %cst_227 {dimension_numbers = #tpu.dot_dimension_numbers<[1], [0], [0], [1], [0, 0, 1, 1], [], []>} : vector<1x32xf32>, vector<32x2xf32>, vector<1x2xf32> -> vector<1x2xf32>
    %c0_228 = arith.constant 0 : index
    %c0_229 = arith.constant 0 : index
    %389 = vector.load %arg16[%c0_228, %c0_229] : memref<2x32xf32, #tpu.memory_space<vmem>>, vector<2x32xf32>
    %cst_230 = arith.constant dense<0.000000e+00> : vector<1x32xf32>
    %390 = tpu.matmul %388, %389, %cst_230 {dimension_numbers = #tpu.dot_dimension_numbers<[1], [0], [0], [1], [0, 0, 1, 1], [], []>} : vector<1x2xf32>, vector<2x32xf32>, vector<1x32xf32> -> vector<1x32xf32>
    %cst_231 = arith.constant 0.001953125 : f32
    %391 = vector.broadcast %cst_231 : f32 to vector<1x32xf32>
    %392 = arith.mulf %390, %391 : vector<1x32xf32>
    %393 = vector.broadcast %392 : vector<1x32xf32> to vector<32x32xf32>
    %394 = arith.subf %384, %393 : vector<32x32xf32>
    %395 = arith.mulf %394, %394 : vector<32x32xf32>
    %cst_232 = arith.constant dense<0.000000e+00> : vector<32xf32>
    %396 = vector.multi_reduction <add>, %395, %cst_232 [0] : vector<32x32xf32> to vector<32xf32>
    %397 = vector.shape_cast %396 : vector<32xf32> to vector<1x32xf32>
    %c0_233 = arith.constant 0 : index
    %c0_234 = arith.constant 0 : index
    %398 = vector.load %arg15[%c0_233, %c0_234] : memref<32x2xf32, #tpu.memory_space<vmem>>, vector<32x2xf32>
    %cst_235 = arith.constant dense<0.000000e+00> : vector<1x2xf32>
    %399 = tpu.matmul %397, %398, %cst_235 {dimension_numbers = #tpu.dot_dimension_numbers<[1], [0], [0], [1], [0, 0, 1, 1], [], []>} : vector<1x32xf32>, vector<32x2xf32>, vector<1x2xf32> -> vector<1x2xf32>
    %c0_236 = arith.constant 0 : index
    %c0_237 = arith.constant 0 : index
    %400 = vector.load %arg16[%c0_236, %c0_237] : memref<2x32xf32, #tpu.memory_space<vmem>>, vector<2x32xf32>
    %cst_238 = arith.constant dense<0.000000e+00> : vector<1x32xf32>
    %401 = tpu.matmul %399, %400, %cst_238 {dimension_numbers = #tpu.dot_dimension_numbers<[1], [0], [0], [1], [0, 0, 1, 1], [], []>} : vector<1x2xf32>, vector<2x32xf32>, vector<1x32xf32> -> vector<1x32xf32>
    %cst_239 = arith.constant 0.001953125 : f32
    %402 = vector.broadcast %cst_239 : f32 to vector<1x32xf32>
    %403 = arith.mulf %401, %402 : vector<1x32xf32>
    %cst_240 = arith.constant 9.99999974E-6 : f32
    %404 = vector.broadcast %cst_240 : f32 to vector<1x32xf32>
    %405 = arith.addf %403, %404 : vector<1x32xf32>
    %406 = math.rsqrt %405 : vector<1x32xf32>
    %407 = vector.broadcast %406 : vector<1x32xf32> to vector<32x32xf32>
    %408 = arith.mulf %394, %407 : vector<32x32xf32>
    %c0_241 = arith.constant 0 : index
    %c0_242 = arith.constant 0 : index
    %409 = vector.load %arg39[%c0_241, %c0_242] : memref<32x32xf32, #tpu.memory_space<vmem>>, vector<32x32xf32>
    %410 = arith.mulf %408, %409 : vector<32x32xf32>
    %c0_243 = arith.constant 0 : index
    %c0_244 = arith.constant 0 : index
    %411 = vector.load %arg40[%c0_243, %c0_244] : memref<32x32xf32, #tpu.memory_space<vmem>>, vector<32x32xf32>
    %412 = arith.addf %410, %411 : vector<32x32xf32>
    %c0_245 = arith.constant 0 : index
    %c0_246 = arith.constant 0 : index
    %c0_247 = arith.constant 0 : index
    %413 = vector.load %arg41[%c0_245, %c0_246, %c0_247] : memref<1x32x32xf32, #tpu.memory_space<vmem>>, vector<1x32x32xf32>
    %414 = vector.shape_cast %413 : vector<1x32x32xf32> to vector<32x32xf32>
    %415 = vector.shape_cast %412 : vector<32x32xf32> to vector<1x32x32xf32>
    tpu.vector_store %arg41[%c0_245, %c0_246, %c0_247], %415 {strides = array<i32>} : memref<1x32x32xf32, #tpu.memory_space<vmem>>, vector<1x32x32xf32>,
    return
  }
  func.func @transform_0(%arg0: i32) -> (i32, i32, i32) {
    %c0_i32 = arith.constant 0 : i32
    %c0_i32_0 = arith.constant 0 : i32
    %c0_i32_1 = arith.constant 0 : i32
    return %arg0, %c0_i32, %c0_i32_0 : i32, i32, i32
  }
  func.func @transform_1(%arg0: i32) -> (i32, i32) {
    %c0_i32 = arith.constant 0 : i32
    %c0_i32_0 = arith.constant 0 : i32
    %c0_i32_1 = arith.constant 0 : i32
    return %c0_i32, %c0_i32_0 : i32, i32
  }
  func.func @transform_2(%arg0: i32) -> (i32, i32) {
    %c0_i32 = arith.constant 0 : i32
    %c0_i32_0 = arith.constant 0 : i32
    %c0_i32_1 = arith.constant 0 : i32
    return %c0_i32, %c0_i32_0 : i32, i32
  }
  func.func @transform_3(%arg0: i32) -> (i32, i32, i32) {
    %c0_i32 = arith.constant 0 : i32
    %c0_i32_0 = arith.constant 0 : i32
    %c0_i32_1 = arith.constant 0 : i32
    %c0_i32_2 = arith.constant 0 : i32
    return %c0_i32, %c0_i32_0, %c0_i32_1 : i32, i32, i32
  }
  func.func @transform_4(%arg0: i32) -> (i32, i32, i32) {
    %c0_i32 = arith.constant 0 : i32
    %c0_i32_0 = arith.constant 0 : i32
    %c0_i32_1 = arith.constant 0 : i32
    %c0_i32_2 = arith.constant 0 : i32
    return %c0_i32, %c0_i32_0, %c0_i32_1 : i32, i32, i32
  }
  func.func @transform_5(%arg0: i32) -> (i32, i32, i32) {
    %c0_i32 = arith.constant 0 : i32
    %c0_i32_0 = arith.constant 0 : i32
    %c0_i32_1 = arith.constant 0 : i32
    %c0_i32_2 = arith.constant 0 : i32
    return %c0_i32, %c0_i32_0, %c0_i32_1 : i32, i32, i32
  }
  func.func @transform_6(%arg0: i32) -> (i32, i32, i32) {
    %c0_i32 = arith.constant 0 : i32
    %c0_i32_0 = arith.constant 0 : i32
    %c0_i32_1 = arith.constant 0 : i32
    %c0_i32_2 = arith.constant 0 : i32
    return %c0_i32, %c0_i32_0, %c0_i32_1 : i32, i32, i32
  }
  func.func @transform_7(%arg0: i32) -> (i32, i32, i32) {
    %c0_i32 = arith.constant 0 : i32
    %c0_i32_0 = arith.constant 0 : i32
    %c0_i32_1 = arith.constant 0 : i32
    %c0_i32_2 = arith.constant 0 : i32
    return %c0_i32, %c0_i32_0, %c0_i32_1 : i32, i32, i32
  }
  func.func @transform_8(%arg0: i32) -> (i32, i32, i32) {
    %c0_i32 = arith.constant 0 : i32
    %c0_i32_0 = arith.constant 0 : i32
    %c0_i32_1 = arith.constant 0 : i32
    %c0_i32_2 = arith.constant 0 : i32
    return %c0_i32, %c0_i32_0, %c0_i32_1 : i32, i32, i32
  }
  func.func @transform_9(%arg0: i32) -> (i32, i32, i32) {
    %c0_i32 = arith.constant 0 : i32
    %c0_i32_0 = arith.constant 0 : i32
    %c0_i32_1 = arith.constant 0 : i32
    %c0_i32_2 = arith.constant 0 : i32
    return %c0_i32, %c0_i32_0, %c0_i32_1 : i32, i32, i32
  }
  func.func @transform_10(%arg0: i32) -> (i32, i32) {
    %c0_i32 = arith.constant 0 : i32
    %c0_i32_0 = arith.constant 0 : i32
    %c0_i32_1 = arith.constant 0 : i32
    return %c0_i32, %c0_i32_0 : i32, i32
  }
  func.func @transform_11(%arg0: i32) -> (i32, i32) {
    %c0_i32 = arith.constant 0 : i32
    %c0_i32_0 = arith.constant 0 : i32
    %c0_i32_1 = arith.constant 0 : i32
    return %c0_i32, %c0_i32_0 : i32, i32
  }
  func.func @transform_12(%arg0: i32) -> (i32, i32) {
    %c0_i32 = arith.constant 0 : i32
    %c0_i32_0 = arith.constant 0 : i32
    %c0_i32_1 = arith.constant 0 : i32
    return %c0_i32, %c0_i32_0 : i32, i32
  }
  func.func @transform_13(%arg0: i32) -> (i32, i32) {
    %c0_i32 = arith.constant 0 : i32
    %c0_i32_0 = arith.constant 0 : i32
    %c0_i32_1 = arith.constant 0 : i32
    return %c0_i32, %c0_i32_0 : i32, i32
  }
  func.func @transform_14(%arg0: i32) -> (i32, i32) {
    %c0_i32 = arith.constant 0 : i32
    %c0_i32_0 = arith.constant 0 : i32
    %c0_i32_1 = arith.constant 0 : i32
    return %c0_i32, %c0_i32_0 : i32, i32
  }
  func.func @transform_15(%arg0: i32) -> (i32, i32) {
    %c0_i32 = arith.constant 0 : i32
    %c0_i32_0 = arith.constant 0 : i32
    %c0_i32_1 = arith.constant 0 : i32
    return %c0_i32, %c0_i32_0 : i32, i32
  }
  func.func @transform_16(%arg0: i32) -> (i32, i32) {
    %c0_i32 = arith.constant 0 : i32
    %c0_i32_0 = arith.constant 0 : i32
    %c0_i32_1 = arith.constant 0 : i32
    return %c0_i32, %c0_i32_0 : i32, i32
  }
  func.func @transform_17(%arg0: i32) -> (i32, i32) {
    %c0_i32 = arith.constant 0 : i32
    %c0_i32_0 = arith.constant 0 : i32
    %c0_i32_1 = arith.constant 0 : i32
    return %c0_i32, %c0_i32_0 : i32, i32
  }
  func.func @transform_18(%arg0: i32) -> (i32, i32) {
    %c0_i32 = arith.constant 0 : i32
    %c0_i32_0 = arith.constant 0 : i32
    %c0_i32_1 = arith.constant 0 : i32
    return %c0_i32, %c0_i32_0 : i32, i32
  }
  func.func @transform_19(%arg0: i32) -> (i32, i32) {
    %c0_i32 = arith.constant 0 : i32
    %c0_i32_0 = arith.constant 0 : i32
    %c0_i32_1 = arith.constant 0 : i32
    return %c0_i32, %c0_i32_0 : i32, i32
  }
  func.func @transform_20(%arg0: i32) -> (i32, i32) {
    %c0_i32 = arith.constant 0 : i32
    %c0_i32_0 = arith.constant 0 : i32
    %c0_i32_1 = arith.constant 0 : i32
    return %c0_i32, %c0_i32_0 : i32, i32
  }
  func.func @transform_21(%arg0: i32) -> (i32, i32) {
    %c0_i32 = arith.constant 0 : i32
    %c0_i32_0 = arith.constant 0 : i32
    %c0_i32_1 = arith.constant 0 : i32
    return %c0_i32, %c0_i32_0 : i32, i32
  }
  func.func @transform_22(%arg0: i32) -> (i32, i32) {
    %c0_i32 = arith.constant 0 : i32
    %c0_i32_0 = arith.constant 0 : i32
    %c0_i32_1 = arith.constant 0 : i32
    return %c0_i32, %c0_i32_0 : i32, i32
  }
  func.func @transform_23(%arg0: i32) -> (i32, i32) {
    %c0_i32 = arith.constant 0 : i32
    %c0_i32_0 = arith.constant 0 : i32
    %c0_i32_1 = arith.constant 0 : i32
    return %c0_i32, %c0_i32_0 : i32, i32
  }
  func.func @transform_24(%arg0: i32) -> (i32, i32) {
    %c0_i32 = arith.constant 0 : i32
    %c0_i32_0 = arith.constant 0 : i32
    %c0_i32_1 = arith.constant 0 : i32
    return %c0_i32, %c0_i32_0 : i32, i32
  }
  func.func @transform_25(%arg0: i32) -> (i32, i32) {
    %c0_i32 = arith.constant 0 : i32
    %c0_i32_0 = arith.constant 0 : i32
    %c0_i32_1 = arith.constant 0 : i32
    return %c0_i32, %c0_i32_0 : i32, i32
  }
  func.func @transform_26(%arg0: i32) -> (i32, i32) {
    %c0_i32 = arith.constant 0 : i32
    %c0_i32_0 = arith.constant 0 : i32
    %c0_i32_1 = arith.constant 0 : i32
    return %c0_i32, %c0_i32_0 : i32, i32
  }
  func.func @transform_27(%arg0: i32) -> (i32, i32) {
    %c0_i32 = arith.constant 0 : i32
    %c0_i32_0 = arith.constant 0 : i32
    %c0_i32_1 = arith.constant 0 : i32
    return %c0_i32, %c0_i32_0 : i32, i32
  }
  func.func @transform_28(%arg0: i32) -> (i32, i32) {
    %c0_i32 = arith.constant 0 : i32
    %c0_i32_0 = arith.constant 0 : i32
    %c0_i32_1 = arith.constant 0 : i32
    return %c0_i32, %c0_i32_0 : i32, i32
  }
  func.func @transform_29(%arg0: i32) -> (i32, i32) {
    %c0_i32 = arith.constant 0 : i32
    %c0_i32_0 = arith.constant 0 : i32
    %c0_i32_1 = arith.constant 0 : i32
    return %c0_i32, %c0_i32_0 : i32, i32
  }
  func.func @transform_30(%arg0: i32) -> (i32, i32) {
    %c0_i32 = arith.constant 0 : i32
    %c0_i32_0 = arith.constant 0 : i32
    %c0_i32_1 = arith.constant 0 : i32
    return %c0_i32, %c0_i32_0 : i32, i32
  }
  func.func @transform_31(%arg0: i32) -> (i32, i32) {
    %c0_i32 = arith.constant 0 : i32
    %c0_i32_0 = arith.constant 0 : i32
    %c0_i32_1 = arith.constant 0 : i32
    return %c0_i32, %c0_i32_0 : i32, i32
  }
  func.func @transform_32(%arg0: i32) -> (i32, i32) {
    %c0_i32 = arith.constant 0 : i32
    %c0_i32_0 = arith.constant 0 : i32
    %c0_i32_1 = arith.constant 0 : i32
    return %c0_i32, %c0_i32_0 : i32, i32
  }
  func.func @transform_33(%arg0: i32) -> (i32, i32) {
    %c0_i32 = arith.constant 0 : i32
    %c0_i32_0 = arith.constant 0 : i32
    %c0_i32_1 = arith.constant 0 : i32
    return %c0_i32, %c0_i32_0 : i32, i32
  }
  func.func @transform_34(%arg0: i32) -> (i32, i32) {
    %c0_i32 = arith.constant 0 : i32
    %c0_i32_0 = arith.constant 0 : i32
    %c0_i32_1 = arith.constant 0 : i32
    return %c0_i32, %c0_i32_0 : i32, i32
  }
  func.func @transform_35(%arg0: i32) -> (i32, i32) {
    %c0_i32 = arith.constant 0 : i32
    %c0_i32_0 = arith.constant 0 : i32
    %c0_i32_1 = arith.constant 0 : i32
    return %c0_i32, %c0_i32_0 : i32, i32
  }
  func.func @transform_36(%arg0: i32) -> (i32, i32) {
    %c0_i32 = arith.constant 0 : i32
    %c0_i32_0 = arith.constant 0 : i32
    %c0_i32_1 = arith.constant 0 : i32
    return %c0_i32, %c0_i32_0 : i32, i32
  }
  func.func @transform_37(%arg0: i32) -> (i32, i32) {
    %c0_i32 = arith.constant 0 : i32
    %c0_i32_0 = arith.constant 0 : i32
    %c0_i32_1 = arith.constant 0 : i32
    return %c0_i32, %c0_i32_0 : i32, i32
  }
  func.func @transform_38(%arg0: i32) -> (i32, i32) {
    %c0_i32 = arith.constant 0 : i32
    %c0_i32_0 = arith.constant 0 : i32
    %c0_i32_1 = arith.constant 0 : i32
    return %c0_i32, %c0_i32_0 : i32, i32
  }
  func.func @transform_39(%arg0: i32) -> (i32, i32) {
    %c0_i32 = arith.constant 0 : i32
    %c0_i32_0 = arith.constant 0 : i32
    %c0_i32_1 = arith.constant 0 : i32
    return %c0_i32, %c0_i32_0 : i32, i32
  }
  func.func @transform_40(%arg0: i32) -> (i32, i32, i32) {
    %c0_i32 = arith.constant 0 : i32
    %c0_i32_0 = arith.constant 0 : i32
    %c0_i32_1 = arith.constant 0 : i32
    return %arg0, %c0_i32, %c0_i32_0 : i32, i32, i32
  }
}

</mosaic_0001>

<bundles_post_ra>
// kernel: st_pre_forward.1
= control target key start
LH: loop header
LB: loop body
LE: loop exit
PB: predicated region body
PF: predicated region fallthrough
CT: control target
= control target key end

     0   :  { %v13130_v0 = vmov 0   ;;  %s13131_s6 = smov 17   ;;  %s13132_s10 = smov 16   ;;  %vm227_vm0 = vcmask 1043456   ;;  %vm220_vm1 = vcmask 195584   ;;  %s16456_s0 = inlined_call_operand.smem [shape: u32[41], index: -1, kind: input, shape index: {}] }
   0x1   :  { %s1_s5 = sld [smem:[%s16456_s0]]   ;;  %13048 = vset.pattern.permute.xlu1 %v13130_v0  ;;  %13047 = vset.pattern.permute.xlu0 %v13130_v0  ;;  %s13133_s14 = smov 19  }
   0x2   :  { %13049 = vset.pattern.permute.xlu2 %v13130_v0  ;;  %s13182_s9 = sld [smem:[%s16456_s0 + %s13131_s6]]   ;;  %s13134_s18 = smov 21  }
   0x3   :  { %s13187_s13 = sld [smem:[%s16456_s0 + %s13132_s10]]   ;;  %s13135_s22 = smov 23  }
   0x4   :  { %s8938_s17 = sld [smem:[%s16456_s0 + %s13133_s14]]   ;;  %s13136_s26 = smov 18  }
   0x5   :  { %s8940_s21 = sld [smem:[%s16456_s0 + %s13134_s18]]   ;;  %s13137_s30 = smov 27  }
   0x6   :  { %s13226_s25 = sld [smem:[%s16456_s0 + %s13135_s22]]   ;;  %s13138_s4 = smov 29  }
   0x7   :  { %v13189_v1 = vld [vmem:[%s1_s5 + $0x30] sm:$0xff]  ;;  %v13191_v2 = vld [vmem:[%s1_s5 + $0x38] sm:$0xff]  ;;  %v13193_v3 = vld [vmem:[%s1_s5 + $0x40] sm:$0xff]  ;;  %s13252_s29 = sld [smem:[%s16456_s0 + %s13136_s26]]   ;;  %s13139_s8 = smov 33  }
   0x8   :  { %v183_v4 = vpack.c.bf16 %v13189_v1, %v13189_v1  ;;  %v184_v5 = vpack.c.bf16 %v13191_v2, %v13191_v2  ;;  %v185_v6 = vpack.c.bf16 %v13193_v3, %v13193_v3  ;;  %v167_v7 = vld [vmem:[%s1_s5] sm:$0xff]  ;;  %v170_v8 = vld [vmem:[%s1_s5 + $0x18] sm:$0xff]  ;;  %v168_v9 = vld [vmem:[%s1_s5 + $0x8] sm:$0xff]  ;;  %s13331_s3 = sld [smem:[%s16456_s0 + %s13137_s30]]   ;;  %s13140_s12 = smov 37  }
   0x9   :  { %v171_v10 = vld [vmem:[%s1_s5 + $0x20] sm:$0xff]  ;;  %v169_v11 = vld [vmem:[%s1_s5 + $0x10] sm:$0xff]  ;;  %v172_v12 = vld [vmem:[%s1_s5 + $0x28] sm:$0xff]  ;;  %v180_v17 = vpack.c.bf16 %v170_v8, %v167_v7  ;;  %s13406_s7 = sld [smem:[%s16456_s0 + %s13138_s4]]   ;;  %s13141_s16 = smov 31  }
   0xa   :  { %v229_v13 = vsel %vm227_vm0, %v183_v4, 0  ;;  %v232_v14 = vsel %vm227_vm0, %v184_v5, 0  ;;  %v235_v15 = vsel %vm227_vm0, %v185_v6, 0  ;;  %v186_v16 = vld [vmem:[%s13182_s9] sm:$0xff]  ;;  %v181_v18 = vpack.c.bf16 %v171_v10, %v168_v9  ;;  %v188_v19 = vld [vmem:[%s13182_s9 + $0x10] sm:$0xff]  ;;  %v187_v22 = vld [vmem:[%s13182_s9 + $0x8] sm:$0xff]  ;;  %s13413_s11 = sld [smem:[%s16456_s0 + %s13139_s8]]  }
   0xb   :  { %243 = vmatpush.bf16.msra.mxu0 %v229_v13  ;;  %262 = vmatpush.bf16.msra.mxu1 %v232_v14  ;;  %v182_v20 = vpack.c.bf16 %v172_v12, %v169_v11  ;;  %v12322_v21 = vld [vmem:[%s13187_s13] sm:$0xff]  ;;  %v189_v23 = vld [vmem:[%s13182_s9 + $0x18] sm:$0xff]  ;;  %v12323_v24 = vld [vmem:[%s13187_s13 + $0x8] sm:$0xff]  ;;  %s13422_s15 = sld [smem:[%s16456_s0 + %s13140_s12]]   ;;  %s13142_s20 = smov 1  }
   0xc   :  { %281 = vmatpush.bf16.msra.mxu2 %v235_v15  ;;  %192 = vperm.xlu1 %13048, %v186_v16   ;;  %v425_v25 = vld [vmem:[%s8938_s17] sm:$0xff]  ;;  %v426_v28 = vld [vmem:[%s8938_s17 + $0x8] sm:$0x3]  ;;  %s8950_s19 = sld [smem:[%s16456_s0 + %s13141_s16]]   ;;  %s13143_s24 = smov 2  }
   0xd   :  { %202 = vperm.xlu0 %13047, %v188_v19   ;;  %429 = vperm.xlu2 %13049, %v425_v25   ;;  %v4393_v33 = vld [vmem:[%s8940_s21] sm:$0xff]  ;;  %v4394_v41 = vld [vmem:[%s8940_s21 + $0x8] sm:$0xff]  ;;  %s13457_s23 = sld [smem:[%s16456_s0 + %s13142_s20]]   ;;  %s13144_s28 = smov 3  }
   0xe   :  { %v5458_v56 = vld [vmem:[%s13226_s25] sm:$0xff]  ;;  %v5459_v0 = vld [vmem:[%s13226_s25 + $0x8] sm:$0xff]  ;;  %s13643_s27 = sld [smem:[%s16456_s0 + %s13143_s24]]   ;;  %s13145_s2 = smov 4  }
   0xf   :  { %244 = vmatpush.bf16.msra.mxu0 %v180_v17  ;;  %263 = vmatpush.bf16.msra.mxu1 %v181_v18  ;;  %s13775_s1 = sld [smem:[%s16456_s0 + %s13144_s28]]   ;;  %s13146_s6 = smov 20  }
  0x10   :  { %282 = vmatpush.bf16.msra.mxu2 %v182_v20  ;;  %s14451_s5 = sld [smem:[%s16456_s0 + %s13145_s2]]   ;;  %s13147_s10 = smov 6  }
  0x11   :  { %s8939_s9 = sld [smem:[%s16456_s0 + %s13146_s6]]   ;;  %s13148_s14 = smov 22  }
  0x12   :  { %8968 = vmatmul.msk.bf16.vlgmr.msra.gmra.mxu0 %vm220_vm1, %v12322_v21  ;;  %8970 = vmatmul.msk.bf16.vlgmr.msra.gmra.mxu1 %vm220_vm1, %v12322_v21  ;;  %s14970_s13 = sld [smem:[%s16456_s0 + %s13147_s10]]   ;;  %s13149_s18 = smov 10  }
  0x13   :  { %8972 = vmatmul.msk.bf16.vlgmr.msra.gmra.mxu2 %vm220_vm1, %v12322_v21  ;;  %s8941_s17 = sld [smem:[%s16456_s0 + %s13148_s14]]   ;;  %s13150_s22 = smov 11  }
  0x14   :  { %197 = vperm.xlu1 %13048, %v187_v22   ;;  %s15300_s21 = sld [smem:[%s16456_s0 + %s13149_s18]]   ;;  %s13151_s26 = smov 7  }
  0x15   :  { %207 = vperm.xlu0 %13047, %v189_v23   ;;  %434 = vperm.xlu2 %13049, %v426_v28   ;;  %v5460_v23 = vld [vmem:[%s13226_s25 + $0x10] sm:$0xff]  ;;  %s13152_s30 = smov 24   ;;  %s13153_s4 = smov 25  }
  0x16   :  { %s13154_s8 = smov 28   ;;  %s13155_s12 = smov 26  }
  0x17   :  { %s13156_s16 = smov 5   ;;  %s13157_s20 = smov 8  }
  0x18   :  { %s13158_s24 = smov 30   ;;  %s13159_s28 = smov 32  }
  0x19   :  { %s13160_s2 = smov 12   ;;  %s13161_s6 = smov 13  }
  0x1a   :  { %s13162_s10 = smov 9   ;;  %s13163_s14 = smov 34  }
  0x1b   :  { %s13164_s18 = smov 35  }
  0x1d   :  { %4397 = vperm.xlu2 %13049, %v4393_v33  }
  0x22   :  { %8969 = vmatmul.msk.bf16.gmra.mxu0 %vm220_vm1, %v12323_v24  ;;  %8971 = vmatmul.msk.bf16.gmra.mxu1 %vm220_vm1, %v12323_v24 }
  0x23   :  { %8973 = vmatmul.msk.bf16.gmra.mxu2 %vm220_vm1, %v12323_v24 }
  0x25   :  { %4402 = vperm.xlu2 %13049, %v4394_v41  }
  0x2d   :  { %5464 = vperm.xlu2 %13049, %v5458_v56  }
  0x35   :  { %5469 = vperm.xlu2 %13049, %v5459_v0  }
  0x3d   :  { %5474 = vperm.xlu2 %13049, %v5460_v23  }
  0x7e   :  { %v193_v58 = vpop.permute.xlu1 %192 }
  0x7f   :  { %v203_v32 = vpop.permute.xlu0 %202 }
  0x86   :  { %v13261_v17 = vpop.permute.xlu1 %197 }
  0x87   :  { %v208_v42 = vpop.permute.xlu0 %207 }
  0x8f   :  { %v246_v26 = vpop.f32.mrf.mxu0  ;;  %v13210_v27 = vpop.f32.mrf.mxu1 }
  0x90   :  { %v247_v9 = vadd.f32 %v246_v26, %v193_v58  ;;  %v266_v11 = vadd.f32 %v13210_v27, %v193_v58 }
  0x92   :  { %v13259_v16 = vadd.f32 %v247_v9, %v13189_v1  ;;  %v13267_v20 = vadd.f32 %v266_v11, %v13191_v2 }
  0x96   :  { %v13215_v29 = vpop.f32.mrf.mxu2 }
  0x97   :  { %v13217_v30 = vpop.f32.mrf.mxu0  ;;  %v13219_v31 = vpop.f32.mrf.mxu1  ;;  %v13274_v1 = vadd.f32 %v13215_v29, %v193_v58 }
  0x98   :  { %v249_v27 = vadd.f32 %v13217_v30, %v13261_v17  ;;  %v13284_v28 = vadd.f32 %v13219_v31, %v13261_v17 }
  0x9e   :  { %v13221_v34 = vpop.f32.mrf.mxu2 }
  0x9f   :  { %v251_v35 = vpop.f32.mrf.mxu0  ;;  %v270_v36 = vpop.f32.mrf.mxu1 }
  0xa0   :  { %v252_v37 = vadd.f32 %v251_v35, %v203_v32  ;;  %v271_v38 = vadd.f32 %v270_v36, %v203_v32  ;;  %v8982_v36 = vld [vmem:[%s13252_s29] sm:$0xf] }
  0xa2   :  { %v8974_v39 = vmul.f32 -1.442695, %v252_v37  ;;  %v8975_v40 = vmul.f32 -1.442695, %v271_v38  ;;  %v12324_v37 = vld [vmem:[%s13252_s29] sm:$0x10]  ;;  %s15484_s29 = sld [smem:[%s16456_s0 + %s13151_s26]]  }
  0xa3   :  { %s13166_s26 = smov 14  }
  0xa4   :  { %13050 = vpow2.f32 %v8974_v39  ;;  %v8558_v39 = vld [vmem:[%s13422_s15 + $0x8] sm:$0xff] }
  0xa5   :  { %13052 = vpow2.f32 %v8975_v40 }
  0xa6   :  { %v289_v43 = vpop.f32.mrf.mxu2 }
  0xa7   :  { %v290_v44 = vadd.f32 %v289_v43, %v203_v32  ;;  %v253_v45 = vpop.f32.mrf.mxu0  ;;  %v272_v46 = vpop.f32.mrf.mxu1 }
  0xa8   :  { %v254_v47 = vadd.f32 %v253_v45, %v208_v42  ;;  %v273_v48 = vadd.f32 %v272_v46, %v208_v42 }
  0xa9   :  { %v8976_v49 = vmul.f32 -1.442695, %v290_v44  ;;  %v430_v44 = vpop.permute.xlu2 %429 }
  0xaa   :  { %v13051_v50 = vpop.eup %13050  ;;  %v8977_v51 = vmul.f32 -1.442695, %v254_v47  ;;  %v8978_v54 = vmul.f32 -1.442695, %v273_v48  ;;  %v13317_v47 = vor.u32 %v12324_v37, %v8982_v36 }
  0xab   :  { %v13053_v52 = vpop.eup %13052  ;;  %v13228_v53 = vadd.f32 1.0, %v13051_v50  ;;  %13054 = vpow2.f32 %v8976_v49 }
  0xac   :  { %v13230_v55 = vadd.f32 1.0, %v13053_v52  ;;  %13056 = vpow2.f32 %v8977_v51 }
  0xad   :  { %13058 = vrcp.f32 %v13228_v53  ;;  %v333_v21 = vand.u32 2147483647, %v13228_v53  ;;  %v335_v22 = vand.u32 2147483648, %v13228_v53  ;;  %vm329_vm2 = vweird.f32 %v13228_v53 }
  0xae   :  { %13060 = vrcp.f32 %v13230_v55  ;;  %v291_v57 = vpop.f32.mrf.mxu2  ;;  %v348_v24 = vand.u32 2147483647, %v13230_v55  ;;  %v350_v25 = vand.u32 2147483648, %v13230_v55  ;;  %vm344_vm5 = vweird.f32 %v13230_v55 }
  0xaf   :  { %13062 = vpow2.f32 %v8978_v54  ;;  %v292_v59 = vadd.f32 %v291_v57, %v208_v42  ;;  %vm13295_vm4 = vcmp.eq.f32.partialorder %v333_v21, 8.507059e+37  ;;  %v336_v31 = vor.u32 1.1754944e-38, %v335_v22  ;;  %v5461_v54 = vld [vmem:[%s13226_s25 + $0x18] sm:$0xff]  ;;  %s8930_s25 = sld [smem:[%s16456_s0 + %s13150_s22]]   ;;  %s13165_s22 = smov 36  }
  0xb0   :  { %vm13300_vm6 = vcmp.eq.f32.partialorder %v348_v24, 8.507059e+37  ;;  %v351_v40 = vor.u32 1.1754944e-38, %v350_v25  ;;  %5479 = vperm.xlu2 %13049, %v5461_v54  }
  0xb1   :  { %v13055_v60 = vpop.eup %13054  ;;  %v8979_v61 = vmul.f32 -1.442695, %v292_v59 }
  0xb2   :  { %v13057_v62 = vpop.eup %13056  ;;  %v13235_v63 = vadd.f32 1.0, %v13055_v60 }
  0xb3   :  { %v13238_v4 = vpop.eup %13058  ;;  %v13240_v5 = vadd.f32 1.0, %v13057_v62  ;;  %13064 = vpow2.f32 %v8979_v61 }
  0xb4   :  { %v13242_v6 = vpop.eup %13060  ;;  %v325_v7 = vmul.f32 %v13238_v4, %v13228_v53  ;;  %13066 = vrcp.f32 %v13235_v63  ;;  %vm330_vm3 = vweird.f32 %v13238_v4  ;;  %vm359_vm10 = vweird.f32 %v13235_v63 }
  0xb5   :  { %v13063_v8 = vpop.eup %13062  ;;  %v340_v10 = vmul.f32 %v13242_v6, %v13230_v55  ;;  %13068 = vrcp.f32 %v13240_v5  ;;  %v378_v42 = vand.u32 2147483647, %v13240_v5  ;;  %vm13310_vm7 = vmor %vm329_vm2, %vm330_vm3  ;;  %vm345_vm8 = vweird.f32 %v13242_v6 }
  0xb6   :  { %v326_v12 = vsub.f32 1.0, %v325_v7  ;;  %v13256_v14 = vadd.f32 1.0, %v13063_v8  ;;  %v380_v46 = vand.u32 2147483648, %v13240_v5  ;;  %v363_v52 = vand.u32 2147483647, %v13235_v63  ;;  %vm13335_vm11 = vmor %vm344_vm5, %vm345_vm8 }
  0xb7   :  { %v341_v13 = vsub.f32 1.0, %v340_v10  ;;  %v365_v53 = vand.u32 2147483648, %v13235_v63  ;;  %vm374_vm12 = vweird.f32 %v13240_v5  ;;  %vm379_vm13 = vcmp.eq.f32.partialorder %v378_v42, 8.507059e+37 }
  0xb8   :  { %v327_v18 = vmul.f32 %v13238_v4, %v326_v12  ;;  %13070 = vrcp.f32 %v13256_v14  ;;  %v381_v60 = vor.u32 1.1754944e-38, %v380_v46  ;;  %v393_v61 = vand.u32 2147483647, %v13256_v14 }
  0xb9   :  { %v13065_v15 = vpop.eup %13064  ;;  %v342_v32 = vmul.f32 %v13242_v6, %v341_v13  ;;  %v395_v62 = vand.u32 2147483648, %v13256_v14  ;;  %vm389_vm1 = vweird.f32 %v13256_v14 }
  0xba   :  { %v13264_v19 = vpop.eup %13066  ;;  %v13287_v33 = vadd.f32 1.0, %v13065_v15  ;;  %v328_v29 = vadd.f32 %v13238_v4, %v327_v18  ;;  %vm394_vm3 = vcmp.eq.f32.partialorder %v393_v61, 8.507059e+37  ;;  %v13478_v18 = vld [vmem:[%s13457_s23 + $0xe0] sm:$0xff] }
  0xbb   :  { %v355_v2 = vmul.f32 %v13264_v19, %v13235_v63  ;;  %v13069_v26 = vpop.eup %13068  ;;  %v343_v45 = vadd.f32 %v13242_v6, %v342_v32  ;;  %vm360_vm0 = vweird.f32 %v13264_v19  ;;  %v396_v13 = vor.u32 1.1754944e-38, %v395_v62  ;;  %v6702_v63 = vld [vmem:[%s13331_s3] sm:$0xff]  ;;  %v6704_v62 = vld [vmem:[%s13331_s3 + $0x10] sm:$0xff] }
  0xbc   :  { %v370_v35 = vmul.f32 %v13069_v26, %v13240_v5  ;;  %13072 = vrcp.f32 %v13287_v33  ;;  %v332_v48 = vsel %vm13310_vm7, %v13238_v4, %v328_v29  ;;  %vm375_vm9 = vweird.f32 %v13069_v26  ;;  %6708 = vperm.xlu2 %13049, %v6702_v63   ;;  %v13493_v63 = vld [vmem:[%s13457_s23 + $0xd0] sm:$0xff] }
  0xbd   :  { %v356_v38 = vsub.f32 1.0, %v355_v2  ;;  %v337_v59 = vsel %vm13295_vm4, %v336_v31, %v332_v48  ;;  %vm376_vm14 = vmor %vm374_vm12, %vm375_vm9  ;;  %v347_v0 = vsel %vm13335_vm11, %v13242_v6, %v343_v45  ;;  %v408_v21 = vand.u32 2147483647, %v13287_v33 }
  0xbe   :  { %v371_v41 = vsub.f32 1.0, %v370_v35  ;;  %v13071_v43 = vpop.eup %13070  ;;  %v13352_v10 = vmul.f32 %v337_v59, %v13259_v16  ;;  %v352_v6 = vsel %vm13300_vm6, %v351_v40, %v347_v0  ;;  %vm13361_vm4 = vmor %vm359_vm10, %vm360_vm0  ;;  %v410_v22 = vand.u32 2147483648, %v13287_v33  ;;  %v6705_v0 = vld [vmem:[%s13331_s3 + $0x18] sm:$0xff] }
  0xbf   :  { %v385_v50 = vmul.f32 %v13071_v43, %v13256_v14  ;;  %v357_v51 = vmul.f32 %v13264_v19, %v356_v38  ;;  %vm390_vm15 = vweird.f32 %v13071_v43  ;;  %v13376_v2 = vmul.f32 %v352_v6, %v13267_v20  ;;  %v8563_v38 = vld [vmem:[%s13422_s15 + $0x30] sm:$0xff] }
  0xc0   :  { %v372_v49 = vmul.f32 %v13069_v26, %v371_v41  ;;  %vm391_vm2 = vmor %vm389_vm1, %vm390_vm15  ;;  %vm442_vm6 = vcmask 130048   ;;  %vm364_vm7 = vcmp.eq.f32.partialorder %v363_v52, 8.507059e+37  ;;  %vm404_vm8 = vweird.f32 %v13287_v33 }
  0xc1   :  { %v386_v58 = vsub.f32 1.0, %v385_v50  ;;  %v358_v5 = vadd.f32 %v13264_v19, %v357_v51  ;;  %v411_v29 = vor.u32 1.1754944e-38, %v410_v22  ;;  %v296_v20 = vadd.f32 %v13274_v1, %v13193_v3  ;;  %v6703_v3 = vld [vmem:[%s13331_s3 + $0x8] sm:$0xff]  ;;  %v7975_v1 = vld [vmem:[%s13413_s11 + $0x18] sm:$0xff]  ;;  %v435_v51 = vpop.permute.xlu2 %434  ;;  %v7974_v22 = vld [vmem:[%s13413_s11 + $0x10] sm:$0xff]  ;;  %s15559_s3 = sld [smem:[%s16456_s0 + %s13152_s30]]   ;;  %s13167_s30 = smov 15  }
  0xc2   :  { %v373_v57 = vadd.f32 %v13069_v26, %v372_v49  ;;  %v13073_v55 = vpop.eup %13072  ;;  %vm409_vm10 = vcmp.eq.f32.partialorder %v408_v21, 8.507059e+37  ;;  %vm492_vm11 = vcmask 1041408   ;;  %vm883_vm0 = vcmask 261120  }
  0xc3   :  { %v387_v7 = vmul.f32 %v13071_v43, %v386_v58  ;;  %v400_v9 = vmul.f32 %v13073_v55, %v13287_v33  ;;  %v362_v23 = vsel %vm13361_vm4, %v13264_v19, %v358_v5  ;;  %vm405_vm5 = vweird.f32 %v13073_v55  ;;  %v13462_v5 = vld [vmem:[%s13457_s23 + $0xf8] sm:$0xff] }
  0xc4   :  { %v377_v4 = vsel %vm376_vm14, %v13069_v26, %v373_v57  ;;  %v366_v26 = vor.u32 1.1754944e-38, %v365_v53  ;;  %vm406_vm9 = vmor %vm404_vm8, %vm405_vm5  ;;  %6713 = vperm.xlu2 %13049, %v6703_v3   ;;  %589 = vmatpush.msrb.mxu1 %v13462_v5  ;;  %v8562_v3 = vld [vmem:[%s13422_s15 + $0x28] sm:$0xff]  ;;  %vm3198_vm5 = vcmask 523264  }
  0xc5   :  { %v382_v8 = vsel %vm379_vm13, %v381_v60, %v377_v4  ;;  %v388_v12 = vadd.f32 %v13071_v43, %v387_v7  ;;  %v401_v15 = vsub.f32 1.0, %v400_v9  ;;  %v7531_v4 = vld [vmem:[%s8950_s19 + $0x8] sm:$0xff]  ;;  %v533_v7 = vld [vmem:[%s13457_s23 + $0x78] sm:$0xff]  ;;  %v13467_v9 = vld [vmem:[%s13457_s23 + $0xf0] sm:$0xff] }
  0xc6   :  { %v13354_v11 = vmul.f32 %v382_v8, %v249_v27  ;;  %v367_v19 = vsel %vm364_vm7, %v366_v26, %v362_v23  ;;  %566 = vmatpush.msrb.mxu0 %v533_v7  ;;  %v532_v8 = vld [vmem:[%s13457_s23 + $0x70] sm:$0xff]  ;;  %590 = vmatpush.msrb.mxu1 %v13467_v9  ;;  %v529_v23 = vld [vmem:[%s13457_s23 + $0x58] sm:$0xff]  ;;  %vm4410_vm7 = vcmask 392192  }
  0xc7   :  { %v392_v16 = vsel %vm391_vm2, %v13071_v43, %v388_v12  ;;  %v402_v25 = vmul.f32 %v13073_v55, %v401_v15  ;;  %v13394_v37 = vmul.f32 %v367_v19, %v296_v20  ;;  %v531_v12 = vld [vmem:[%s13457_s23 + $0x68] sm:$0xff]  ;;  %v13470_v6 = vpack.c.bf16 %v533_v7, %v532_v8  ;;  %v530_v15 = vld [vmem:[%s13457_s23 + $0x60] sm:$0xff] }
  0xc8   :  { %v13369_v14 = vpack.c.bf16 %v13354_v11, %v13352_v10  ;;  %v397_v24 = vsel %vm394_vm3, %v396_v13, %v392_v16  ;;  %567 = vmatpush.msrb.mxu0 %v532_v8  ;;  %v13474_v13 = vld [vmem:[%s13457_s23 + $0xe8] sm:$0xff]  ;;  %v7530_v16 = vld [vmem:[%s8950_s19] sm:$0xff]  ;;  %v13481_v21 = vpack.c.bf16 %v531_v12, %v530_v15  ;;  %s15840_s19 = sld [smem:[%s16456_s0 + %s13156_s16]]  }
  0xc9   :  { %v13379_v27 = vmul.f32 %v397_v24, %v13284_v28  ;;  %v403_v32 = vadd.f32 %v13073_v55, %v402_v25  ;;  %v287_v28 = vadd.f32 %v13221_v34, %v13261_v17  ;;  %v6784_v34 = vld [vmem:[%s13406_s7 + $0x8] sm:$0xff]  ;;  %v7972_v17 = vld [vmem:[%s13413_s11] sm:$0xff]  ;;  %591 = vmatpush.msrb.mxu1 %v13474_v13  ;;  %v13488_v24 = vld [vmem:[%s13457_s23 + $0xd8] sm:$0xff] }
  0xca   :  { %453 = vmatpush.bf16.msra.mxu3 %v13369_v14  ;;  %568 = vmatpush.msrb.mxu0 %v531_v12  ;;  %v528_v25 = vld [vmem:[%s13457_s23 + $0x50] sm:$0xff]  ;;  %v13499_v19 = vld [vmem:[%s13457_s23 + $0xc8] sm:$0xff]  ;;  %v13505_v20 = vld [vmem:[%s13457_s23 + $0xc0] sm:$0xff] }
  0xcb   :  { %v13385_v35 = vpack.c.bf16 %v13379_v27, %v13376_v2  ;;  %v407_v36 = vsel %vm406_vm9, %v13073_v55, %v403_v32  ;;  %v6783_v55 = vld [vmem:[%s13406_s7] sm:$0xff]  ;;  %592 = vmatpush.msrb.mxu1 %v13478_v18  ;;  %v13495_v26 = vpack.c.bf16 %v529_v23, %v528_v25  ;;  %v527_v32 = vld [vmem:[%s13457_s23 + $0x48] sm:$0xff]  ;;  %v8564_v12 = vld [vmem:[%s13422_s15 + $0x38] sm:$0xff]  ;;  %s15574_s7 = sld [smem:[%s16456_s0 + %s13153_s4]]   ;;  %s13168_s4 = smov 38  }
  0xcc   :  { %v412_v33 = vsel %vm409_vm10, %v411_v29, %v407_v36  ;;  %6792 = vperm.xlu2 %13049, %v6784_v34   ;;  %569 = vmatpush.msrb.mxu0 %v530_v15  ;;  %v526_v29 = vld [vmem:[%s13457_s23 + $0x40] sm:$0xff]  ;;  %v525_v36 = vld [vmem:[%s13457_s23 + $0x38] sm:$0xff] }
  0xcd   :  { %8984 = vmatmul.msk.bf16.vlgmr.msra.gmra.mxu3 %vm442_vm6, %v13317_v47  ;;  %v13396_v30 = vmul.f32 %v412_v33, %v287_v28  ;;  %593 = vmatpush.msrb.mxu1 %v13488_v24  ;;  %v7973_v28 = vld [vmem:[%s13413_s11 + $0x8] sm:$0xff]  ;;  %v13511_v33 = vld [vmem:[%s13457_s23 + $0xb8] sm:$0xff]  ;;  %v518_v7 = vld [vmem:[%s13457_s23] sm:$0xff]  ;;  %s8947_s11 = sld [smem:[%s16456_s0 + %s13154_s8]]   ;;  %s13169_s8 = smov 39  }
  0xce   :  { %467 = vmatpush.bf16.msrb.mxu3 %v13385_v35  ;;  %570 = vmatpush.msrb.mxu0 %v529_v23  ;;  %v565_v34 = vld [vmem:[%s13457_s23 + $0x178] sm:$0xff]  ;;  %v534_v8 = vld [vmem:[%s13457_s23 + $0x80] sm:$0xff] }
  0xcf   :  { %v13400_v31 = vpack.c.bf16 %v13396_v30, %v13394_v37  ;;  %594 = vmatpush.msrb.mxu1 %v13493_v63  ;;  %612 = vmatpush.msrb.mxu2 %v565_v34  ;;  %v557_v23 = vld [vmem:[%s13457_s23 + $0x138] sm:$0xff] }
  0xd0   :  { %571 = vmatpush.msrb.mxu0 %v528_v25  ;;  %v8560_v25 = vld [vmem:[%s13422_s15 + $0x18] sm:$0xff] }
  0xd1   :  { %595 = vmatpush.msrb.mxu1 %v13499_v19 }
  0xd2   :  { %481 = vmatpush.bf16.msra.mxu3 %v13400_v31  ;;  %572 = vmatpush.msrb.mxu0 %v527_v32 }
  0xd3   :  { %596 = vmatpush.msrb.mxu1 %v13505_v20 }
  0xd4   :  { %7978 = vperm.xlu2 %13049, %v7972_v17   ;;  %573 = vmatpush.msrb.mxu0 %v526_v29  ;;  %v13517_v17 = vpack.c.bf16 %v527_v32, %v526_v29  ;;  %v556_v29 = vld [vmem:[%s13457_s23 + $0x130] sm:$0xff] }
  0xd5   :  { %597 = vmatpush.msrb.mxu1 %v13511_v33 }
  0xd6   :  { %574 = vmatpush.msrb.mxu0 %v525_v36 }
  0xdc   :  { %7993 = vperm.xlu2 %13049, %v7975_v1   ;;  %v524_v1 = vld [vmem:[%s13457_s23 + $0x30] sm:$0xff] }
  0xdd   :  { %8985 = vmatmul.msk.bf16.vlgmr.msrb.gmra.mxu3 %vm442_vm6, %v13317_v47  ;;  %575 = vmatpush.msrb.mxu0 %v524_v1 }
  0xde   :  { %797 = vmatpush.bf16.msrb.mxu3 %v13470_v6 }
  0xe2   :  { %798 = vmatpush.bf16.msrb.mxu3 %v13481_v21 }
  0xe4   :  { %8597 = vperm.xlu2 %13049, %v8563_v38   ;;  %v13521_v38 = vld [vmem:[%s13457_s23 + $0xb0] sm:$0xff] }
  0xe5   :  { %598 = vmatpush.msrb.mxu1 %v13521_v38 }
  0xe6   :  { %799 = vmatpush.bf16.msrb.mxu3 %v13495_v26 }
  0xea   :  { %800 = vmatpush.bf16.msrb.mxu3 %v13517_v17 }
  0xec   :  { %8572 = vperm.xlu2 %13049, %v8558_v39   ;;  %v564_v39 = vld [vmem:[%s13457_s23 + $0x170] sm:$0xff] }
  0xed   :  { %8986 = vmatmul.msk.bf16.vlgmr.msra.gmra.mxu3 %vm442_vm6, %v13317_v47  ;;  %613 = vmatpush.msrb.mxu2 %v564_v39  ;;  %v13563_v15 = vpack.c.bf16 %v565_v34, %v564_v39 }
 0x150   :  { %v455_v40 = vpop.f32.mrf.mxu3 }
 0x151   :  { %v13428_v46 = vadd.f32 %v455_v40, %v430_v44  ;;  %v563_v40 = vld [vmem:[%s13457_s23 + $0x168] sm:$0xff] }
 0x152   :  { %614 = vmatpush.msrb.mxu2 %v563_v40 }
 0x158   :  { %v457_v41 = vpop.f32.mrf.mxu3 }
 0x159   :  { %v13437_v52 = vadd.f32 %v457_v41, %v435_v51  ;;  %v523_v41 = vld [vmem:[%s13457_s23 + $0x28] sm:$0xff] }
 0x15a   :  { %576 = vmatpush.msrb.mxu0 %v523_v41 }
 0x15b   :  { %v493_v57 = vsel %vm492_vm11, %v13437_v52, -inf }
 0x160   :  { %v469_v42 = vpop.f32.mrf.mxu3 }
 0x161   :  { %v13432_v49 = vadd.f32 %v469_v42, %v430_v44  ;;  %v13528_v42 = vld [vmem:[%s13457_s23 + $0xa8] sm:$0xff] }
 0x162   :  { %599 = vmatpush.msrb.mxu1 %v13528_v42 }
 0x168   :  { %v471_v43 = vpop.f32.mrf.mxu3 }
 0x169   :  { %v13439_v54 = vadd.f32 %v471_v43, %v435_v51  ;;  %v522_v43 = vld [vmem:[%s13457_s23 + $0x20] sm:$0xff] }
 0x16a   :  { %577 = vmatpush.msrb.mxu0 %v522_v43 }
 0x16b   :  { %v494_v60 = vsel %vm492_vm11, %v13439_v54, -inf }
 0x170   :  { %v483_v45 = vpop.f32.mrf.mxu3 }
 0x171   :  { %v13430_v48 = vadd.f32 %v483_v45, %v430_v44  ;;  %v13533_v44 = vld [vmem:[%s13457_s23 + $0xa0] sm:$0xff] }
 0x172   :  { %v8561_v45 = vld [vmem:[%s13422_s15 + $0x20] sm:$0xff]  ;;  %600 = vmatpush.msrb.mxu1 %v13533_v44 }
 0x173   :  { %v488_v47 = vmax.f32 %v13428_v46, %v13430_v48 }
 0x175   :  { %v489_v50 = vmax.f32 %v488_v47, %v13432_v49  ;;  %v562_v47 = vld [vmem:[%s13457_s23 + $0x160] sm:$0xff] }
 0x176   :  { %615 = vmatpush.msrb.mxu2 %v562_v47 }
 0x177   :  { %490 = vmax.xlane.f32.xlu0 %v489_v50  ;;  %v561_v50 = vld [vmem:[%s13457_s23 + $0x158] sm:$0xff] }
 0x178   :  { %v485_v53 = vpop.f32.mrf.mxu3  ;;  %616 = vmatpush.msrb.mxu2 %v561_v50 }
 0x179   :  { %v13441_v56 = vadd.f32 %v485_v53, %v435_v51  ;;  %v521_v51 = vld [vmem:[%s13457_s23 + $0x18] sm:$0xff] }
 0x17a   :  { %v13542_v53 = vld [vmem:[%s13457_s23 + $0x98] sm:$0xff]  ;;  %578 = vmatpush.msrb.mxu0 %v521_v51 }
 0x17b   :  { %v495_v58 = vsel %vm492_vm11, %v13441_v56, -inf  ;;  %601 = vmatpush.msrb.mxu1 %v13542_v53 }
 0x17c   :  { %v496_v59 = vmax.f32 %v493_v57, %v495_v58  ;;  %v8557_v57 = vld [vmem:[%s13422_s15] sm:$0xff]  ;;  %v13546_v58 = vpack.c.bf16 %v525_v36, %v524_v1 }
 0x17d   :  { %v554_v1 = vld [vmem:[%s13457_s23 + $0x120] sm:$0xff] }
 0x17e   :  { %v497_v61 = vmax.f32 %v496_v59, %v494_v60  ;;  %v520_v59 = vld [vmem:[%s13457_s23 + $0x10] sm:$0xff]  ;;  %801 = vmatpush.bf16.msrb.mxu3 %v13546_v58 }
 0x17f   :  { %v536_v60 = vld [vmem:[%s13457_s23 + $0x90] sm:$0xff]  ;;  %579 = vmatpush.msrb.mxu0 %v520_v59  ;;  %v13578_v32 = vpack.c.bf16 %v521_v51, %v520_v59 }
 0x180   :  { %498 = vmax.xlane.f32.xlu1 %v497_v61  ;;  %v560_v61 = vld [vmem:[%s13457_s23 + $0x150] sm:$0xff]  ;;  %602 = vmatpush.msrb.mxu1 %v536_v60  ;;  %v13618_v34 = vpack.c.bf16 %v13542_v53, %v536_v60 }
 0x181   :  { %617 = vmatpush.msrb.mxu2 %v560_v61 }
 0x18b   :  { %6718 = vperm.xlu0 %13047, %v6704_v62   ;;  %v559_v62 = vld [vmem:[%s13457_s23 + $0x148] sm:$0xff] }
 0x18c   :  { %618 = vmatpush.msrb.mxu2 %v559_v62 }
 0x193   :  { %6787 = vperm.xlu0 %13047, %v6783_v55   ;;  %v519_v55 = vld [vmem:[%s13457_s23 + $0x8] sm:$0xff] }
 0x194   :  { %580 = vmatpush.msrb.mxu0 %v519_v55  ;;  %v13591_v36 = vpack.c.bf16 %v519_v55, %v518_v7  ;;  %v9196_v55 = vld [vmem:[%s13643_s27 + $0x168] sm:$0xf] }
 0x196   :  { %581 = vmatpush.msrb.mxu0 %v518_v7 }
 0x199   :  { %6723 = vperm.xlu1 %13048, %v6705_v0   ;;  %v535_v0 = vld [vmem:[%s13457_s23 + $0x88] sm:$0xff] }
 0x19a   :  { %603 = vmatpush.msrb.mxu1 %v535_v0 }
 0x19b   :  { %7539 = vperm.xlu0 %13047, %v7531_v4   ;;  %v13557_v4 = vpack.c.bf16 %v13462_v5, %v13467_v9  ;;  %v13572_v5 = vpack.c.bf16 %v13474_v13, %v13478_v18  ;;  %v13576_v9 = vpack.c.bf16 %v563_v40, %v562_v47  ;;  %v8559_v13 = vld [vmem:[%s13422_s15 + $0x10] sm:$0xff]  ;;  %v13589_v18 = vpack.c.bf16 %v561_v50, %v560_v61  ;;  %v553_v40 = vld [vmem:[%s13457_s23 + $0x118] sm:$0xff]  ;;  %v9100_v61 = vld [vmem:[%s13643_s27 + $0xa8] sm:$0xf]  ;;  %s8945_s15 = sld [smem:[%s16456_s0 + %s13155_s12]]   ;;  %s13170_s12 = smov 40  }
 0x19c   :  { %604 = vmatpush.msrb.mxu1 %v534_v8 }
 0x19d   :  { %811 = vmatpush.bf16.msra.mxu0 %v13557_v4 }
 0x19e   :  { %825 = vmatpush.bf16.msra.mxu1 %v13563_v15 }
 0x1a1   :  { %7534 = vperm.xlu1 %13048, %v7530_v16   ;;  %v558_v16 = vld [vmem:[%s13457_s23 + $0x140] sm:$0xff]  ;;  %812 = vmatpush.bf16.msra.mxu0 %v13572_v5 }
 0x1a2   :  { %619 = vmatpush.msrb.mxu2 %v558_v16  ;;  %826 = vmatpush.bf16.msra.mxu1 %v13576_v9 }
 0x1a3   :  { %7988 = vperm.xlu0 %13047, %v7974_v22   ;;  %v13566_v22 = vpack.c.bf16 %v523_v41, %v522_v43  ;;  %v552_v41 = vld [vmem:[%s13457_s23 + $0x110] sm:$0xff]  ;;  %v551_v43 = vld [vmem:[%s13457_s23 + $0x108] sm:$0xff] }
 0x1a4   :  { %620 = vmatpush.msrb.mxu2 %v557_v23 }
 0x1a5   :  { %802 = vmatpush.bf16.msrb.mxu3 %v13566_v22 }
 0x1a6   :  { %621 = vmatpush.msrb.mxu2 %v556_v29  ;;  %827 = vmatpush.bf16.msra.mxu1 %v13589_v18 }
 0x1a9   :  { %7983 = vperm.xlu1 %13048, %v7973_v28   ;;  %v13584_v28 = vpack.c.bf16 %v13488_v24, %v13493_v63  ;;  %803 = vmatpush.bf16.msrb.mxu3 %v13578_v32  ;;  %v13600_v24 = vpack.c.bf16 %v559_v62, %v558_v16  ;;  %v13605_v63 = vpack.c.bf16 %v13511_v33, %v13521_v38  ;;  %v555_v33 = vld [vmem:[%s13457_s23 + $0x128] sm:$0xff]  ;;  %v12347_v62 = vld [vmem:[%s13643_s27 + $0xb0] sm:$0xf0]  ;;  %v9088_v16 = vld [vmem:[%s13643_s27 + $0x90] sm:$0xf] }
 0x1aa   :  { %v13623_v38 = vpack.c.bf16 %v535_v0, %v534_v8  ;;  %622 = vmatpush.msrb.mxu2 %v555_v33  ;;  %v13625_v39 = vpack.c.bf16 %v555_v33, %v554_v1  ;;  %v12371_v0 = vld [vmem:[%s13643_s27 + $0x170] sm:$0xf0] }
 0x1ab   :  { %8592 = vperm.xlu0 %13047, %v8562_v3   ;;  %v13596_v3 = vpack.c.bf16 %v13499_v19, %v13505_v20  ;;  %813 = vmatpush.bf16.msra.mxu0 %v13584_v28  ;;  %v13609_v19 = vpack.c.bf16 %v557_v23, %v556_v29  ;;  %v13613_v20 = vpack.c.bf16 %v13528_v42, %v13533_v44  ;;  %v550_v44 = vld [vmem:[%s13457_s23 + $0x100] sm:$0xff]  ;;  %v12344_v23 = vld [vmem:[%s13643_s27 + $0x98] sm:$0xf0]  ;;  %v9184_v29 = vld [vmem:[%s13643_s27 + $0x150] sm:$0xf]  ;;  %s16168_s23 = sld [smem:[%s16456_s0 + %s13157_s20]]  }
 0x1ac   :  { %828 = vmatpush.bf16.msra.mxu1 %v13600_v24  ;;  %623 = vmatpush.msrb.mxu2 %v554_v1  ;;  %v13631_v42 = vpack.c.bf16 %v553_v40, %v552_v41 }
 0x1ad   :  { %804 = vmatpush.bf16.msrb.mxu3 %v13591_v36 }
 0x1ae   :  { %624 = vmatpush.msrb.mxu2 %v553_v40 }
 0x1af   :  { %814 = vmatpush.bf16.msra.mxu0 %v13596_v3 }
 0x1b0   :  { %829 = vmatpush.bf16.msra.mxu1 %v13609_v19  ;;  %625 = vmatpush.msrb.mxu2 %v552_v41 }
 0x1b1   :  { %8587 = vperm.xlu1 %13048, %v8561_v45   ;;  %v13637_v45 = vpack.c.bf16 %v551_v43, %v550_v44 }
 0x1b2   :  { %626 = vmatpush.msrb.mxu2 %v551_v43 }
 0x1b3   :  { %8567 = vperm.xlu0 %13047, %v8557_v57   ;;  %815 = vmatpush.bf16.msra.mxu0 %v13605_v63 }
 0x1b4   :  { %830 = vmatpush.bf16.msra.mxu1 %v13625_v39  ;;  %627 = vmatpush.msrb.mxu2 %v550_v44  ;;  %v9076_v44 = vld [vmem:[%s13643_s27 + $0x78] sm:$0xf] }
 0x1b7   :  { %816 = vmatpush.bf16.msra.mxu0 %v13613_v20 }
 0x1b8   :  { %831 = vmatpush.bf16.msra.mxu1 %v13631_v42 }
 0x1b9   :  { %8602 = vperm.xlu1 %13048, %v8564_v12   ;;  %v9197_v12 = vor.u32 %v12371_v0, %v9196_v55  ;;  %v12338_v55 = vld [vmem:[%s13643_s27 + $0x68] sm:$0xf0]  ;;  %v9160_v0 = vld [vmem:[%s13643_s27 + $0x120] sm:$0xf] }
 0x1bb   :  { %8582 = vperm.xlu0 %13047, %v8560_v25   ;;  %817 = vmatpush.bf16.msra.mxu0 %v13618_v34 }
 0x1bc   :  { %832 = vmatpush.bf16.msra.mxu1 %v13637_v45 }
 0x1bf   :  { %818 = vmatpush.bf16.msra.mxu0 %v13623_v38 }
 0x1c1   :  { %8577 = vperm.xlu1 %13048, %v8559_v13   ;;  %v12368_v13 = vld [vmem:[%s13643_s27 + $0x158] sm:$0xf0] }
 0x1c2   :  { %v9185_v43 = vor.u32 %v12368_v13, %v9184_v29  ;;  %v9052_v29 = vld [vmem:[%s13643_s27 + $0x48] sm:$0xf]  ;;  %v12335_v13 = vld [vmem:[%s13643_s27 + $0x50] sm:$0xf0] }
 0x1ea   :  { %v491_v47 = vpop.xlane.xlu0 %490 }
 0x1eb   :  { %v500_v50 = vsub.f32 %v13428_v46, %v491_v47  ;;  %v501_v51 = vsub.f32 %v13432_v49, %v491_v47  ;;  %v502_v53 = vsub.f32 %v13430_v48, %v491_v47  ;;  %v9101_v46 = vor.u32 %v12347_v62, %v9100_v61  ;;  %v12341_v47 = vld [vmem:[%s13643_s27 + $0x80] sm:$0xf0]  ;;  %v9064_v62 = vld [vmem:[%s13643_s27 + $0x60] sm:$0xf] }
 0x1ed   :  { %v506_v57 = vmul.f32 1.442695, %v500_v50  ;;  %v508_v59 = vmul.f32 1.442695, %v501_v51  ;;  %v510_v60 = vmul.f32 1.442695, %v502_v53 }
 0x1ee   :  { %v9172_v53 = vld [vmem:[%s13643_s27 + $0x138] sm:$0xf] }
 0x1ef   :  { %13074 = vpow2.f32 %v506_v57  ;;  %v12365_v57 = vld [vmem:[%s13643_s27 + $0x140] sm:$0xf0] }
 0x1f0   :  { %13076 = vpow2.f32 %v508_v59  ;;  %v9173_v61 = vor.u32 %v12365_v57, %v9172_v53  ;;  %v9136_v53 = vld [vmem:[%s13643_s27 + $0xf0] sm:$0xf]  ;;  %v12356_v57 = vld [vmem:[%s13643_s27 + $0xf8] sm:$0xf0] }
 0x1f1   :  { %13078 = vpow2.f32 %v510_v60  ;;  %v9077_v60 = vor.u32 %v12341_v47, %v9076_v44 }
 0x1f3   :  { %v499_v7 = vpop.xlane.xlu1 %498 }
 0x1f4   :  { %v503_v49 = vsub.f32 %v13437_v52, %v499_v7  ;;  %v504_v48 = vsub.f32 %v13439_v54, %v499_v7  ;;  %v505_v8 = vsub.f32 %v13441_v56, %v499_v7  ;;  %v9089_v54 = vor.u32 %v12344_v23, %v9088_v16  ;;  %v12362_v7 = vld [vmem:[%s13643_s27 + $0x128] sm:$0xf0] }
 0x1f5   :  { %v13657_v25 = vpop.eup %13074  ;;  %v9161_v23 = vor.u32 %v12362_v7, %v9160_v0  ;;  %v12329_v0 = vld [vmem:[%s13643_s27 + $0x20] sm:$0xf0]  ;;  %v9124_v7 = vld [vmem:[%s13643_s27 + $0xd8] sm:$0xf] }
 0x1f6   :  { %v13661_v33 = vpop.eup %13076  ;;  %v512_v1 = vmul.f32 1.442695, %v503_v49  ;;  %v514_v40 = vmul.f32 1.442695, %v504_v48  ;;  %v516_v41 = vmul.f32 1.442695, %v505_v8  ;;  %582 = vmatmul.f32.vlgmr.msrb.gmra.mxu0 %v13657_v25  ;;  %v9065_v8 = vor.u32 %v12338_v55, %v9064_v62 }
 0x1f7   :  { %v13664_v52 = vpop.eup %13078  ;;  %605 = vmatmul.f32.vlgmr.msrb.gmra.mxu1 %v13661_v33  ;;  %1313 = vmatpush.bf16.msrb.mxu0 %v9101_v46  ;;  %v785_v56 = vperm.slane %v13657_v25, 0  ;;  %v786_v49 = vperm.slane %v13661_v33, 0  ;;  %v9137_v62 = vor.u32 %v12356_v57, %v9136_v53  ;;  %v9028_v55 = vld [vmem:[%s13643_s27 + $0x18] sm:$0xf]  ;;  %v9186_v53 = vld [vmem:[%s13643_s27 + $0x15c] sm:$0xf0] }
 0x1f8   :  { %13080 = vpow2.f32 %v512_v1  ;;  %628 = vmatmul.f32.vlgmr.msrb.gmra.mxu2 %v13664_v52  ;;  %1327 = vmatpush.bf16.msrb.mxu1 %v9197_v12  ;;  %v787_v12 = vperm.slane %v13664_v52, 0  ;;  %v9148_v1 = vld [vmem:[%s13643_s27 + $0x108] sm:$0xf]  ;;  %v12391_v57 = vld [vmem:[%s13643_s27 + $0x214] sm:$0xf] }
 0x1f9   :  { %13082 = vpow2.f32 %v514_v40  ;;  %v788_v50 = vmul.f32 %v785_v56, %v13352_v10  ;;  %v791_v51 = vmul.f32 %v785_v56, %v13354_v11  ;;  %v12359_v40 = vld [vmem:[%s13643_s27 + $0x110] sm:$0xf0]  ;;  %v9053_v56 = vor.u32 %v12335_v13, %v9052_v29  ;;  %v12326_v29 = vld [vmem:[%s13643_s27 + $0x8] sm:$0xf0]  ;;  %v9112_v13 = vld [vmem:[%s13643_s27 + $0xc0] sm:$0xf] }
 0x1fa   :  { %13084 = vpow2.f32 %v516_v41  ;;  %v789_v41 = vmul.f32 %v786_v49, %v13376_v2  ;;  %v793_v44 = vmul.f32 %v787_v12, %v13396_v30  ;;  %v9149_v47 = vor.u32 %v12359_v40, %v9148_v1  ;;  %v12350_v1 = vld [vmem:[%s13643_s27 + $0xc8] sm:$0xf0] }
 0x1fb   :  { %1314 = vmatpush.bf16.msrb.mxu0 %v9089_v54  ;;  %v794_v59 = vpack.c.bf16 %v791_v51, %v788_v50  ;;  %v792_v54 = vmul.f32 %v786_v49, %v13379_v27  ;;  %v9040_v50 = vld [vmem:[%s13643_s27 + $0x30] sm:$0xf]  ;;  %v12332_v51 = vld [vmem:[%s13643_s27 + $0x38] sm:$0xf0]  ;;  %v12353_v49 = vld [vmem:[%s13643_s27 + $0xe0] sm:$0xf0] }
 0x1fc   :  { %1328 = vmatpush.bf16.msrb.mxu1 %v9185_v43  ;;  %v790_v43 = vmul.f32 %v787_v12, %v13394_v37  ;;  %v9125_v12 = vor.u32 %v12353_v49, %v9124_v7  ;;  %v12370_v40 = vld [vmem:[%s13643_s27 + $0x16c] sm:$0xf]  ;;  %v9270_v7 = vld [vmem:[%s13643_s27 + $0x204] sm:$0xf0] }
 0x1fd   :  { %805 = vmatmul.bf16.vlgmr.msrb.gmra.mxu3 %v794_v59  ;;  %v795_v59 = vpack.c.bf16 %v792_v54, %v789_v41  ;;  %v9198_v41 = vld [vmem:[%s13643_s27 + $0x174] sm:$0xf0]  ;;  %v12394_v54 = vld [vmem:[%s13643_s27 + $0x22c] sm:$0xf] }
 0x1fe   :  { %v13679_v46 = vpop.eup %13080 }
 0x1ff   :  { %v13682_v48 = vpop.eup %13082  ;;  %1315 = vmatpush.bf16.msrb.mxu0 %v9077_v60  ;;  %v796_v60 = vpack.c.bf16 %v793_v44, %v790_v43  ;;  %v9113_v44 = vor.u32 %v12350_v1, %v9112_v13  ;;  %v9258_v13 = vld [vmem:[%s13643_s27 + $0x1ec] sm:$0xf0] }
 0x200   :  { %v13685_v16 = vpop.eup %13084  ;;  %1329 = vmatpush.bf16.msrb.mxu1 %v9173_v61  ;;  %585 = vmatmul.f32.gmra.mxu0 %v13679_v46  ;;  %v9041_v61 = vor.u32 %v12332_v51, %v9040_v50  ;;  %v12367_v51 = vld [vmem:[%s13643_s27 + $0x154] sm:$0xf] }
 0x201   :  { %608 = vmatmul.f32.gmra.mxu1 %v13682_v48  ;;  %631 = vmatmul.f32.gmra.mxu2 %v13685_v16 }
 0x203   :  { %1316 = vmatpush.bf16.msrb.mxu0 %v9065_v8  ;;  %v9029_v8 = vor.u32 %v12329_v0, %v9028_v55  ;;  %v9174_v55 = vld [vmem:[%s13643_s27 + $0x144] sm:$0xf0]  ;;  %v12388_v0 = vld [vmem:[%s13643_s27 + $0x1fc] sm:$0xf] }
 0x204   :  { %1330 = vmatpush.bf16.msrb.mxu1 %v9161_v23  ;;  %v9016_v23 = vld [vmem:[%s13643_s27] sm:$0xf] }
 0x205   :  { %v9017_v43 = vor.u32 %v12326_v29, %v9016_v23  ;;  %v9162_v23 = vld [vmem:[%s13643_s27 + $0x12c] sm:$0xf0]  ;;  %v12385_v29 = vld [vmem:[%s13643_s27 + $0x1e4] sm:$0xf] }
 0x207   :  { %1317 = vmatpush.bf16.msrb.mxu0 %v9053_v56  ;;  %v9294_v56 = vld [vmem:[%s13643_s27 + $0x234] sm:$0xf0] }
 0x208   :  { %1331 = vmatpush.bf16.msrb.mxu1 %v9149_v47  ;;  %819 = vmatmul.bf16.vlgmr.msra.gmra.mxu0 %v795_v59  ;;  %v9201_v47 = vor.u32 %v12370_v40, %v9198_v41  ;;  %v9297_v50 = vor.u32 %v12394_v54, %v9294_v56  ;;  %v9282_v59 = vld [vmem:[%s13643_s27 + $0x21c] sm:$0xf0]  ;;  %v9261_v40 = vor.u32 %v12385_v29, %v9258_v13  ;;  %v12358_v41 = vld [vmem:[%s13643_s27 + $0x10c] sm:$0xf]  ;;  %v9150_v54 = vld [vmem:[%s13643_s27 + $0x114] sm:$0xf0] }
 0x209   :  { %833 = vmatmul.bf16.vlgmr.msra.gmra.mxu1 %v796_v60  ;;  %v9189_v60 = vor.u32 %v12367_v51, %v9186_v53  ;;  %v12382_v56 = vld [vmem:[%s13643_s27 + $0x1cc] sm:$0xf]  ;;  %v9138_v51 = vld [vmem:[%s13643_s27 + $0xfc] sm:$0xf0]  ;;  %v12379_v53 = vld [vmem:[%s13643_s27 + $0x1b4] sm:$0xf] }
 0x20a   :  { %v9210_v29 = vld [vmem:[%s13643_s27 + $0x18c] sm:$0xf0] }
 0x20b   :  { %1318 = vmatpush.bf16.msrb.mxu0 %v9041_v61  ;;  %v9285_v61 = vor.u32 %v12391_v57, %v9282_v59  ;;  %v9234_v57 = vld [vmem:[%s13643_s27 + $0x1bc] sm:$0xf0]  ;;  %v9300_v13 = vld [vmem:[%s13643_s27 + $0x230] sm:$0xf] }
 0x20c   :  { %1332 = vmatpush.bf16.msrb.mxu1 %v9137_v62  ;;  %v12364_v62 = vld [vmem:[%s13643_s27 + $0x13c] sm:$0xf] }
 0x20d   :  { %v9177_v49 = vor.u32 %v12364_v62, %v9174_v55  ;;  %v9126_v62 = vld [vmem:[%s13643_s27 + $0xe4] sm:$0xf0]  ;;  %v12376_v55 = vld [vmem:[%s13643_s27 + $0x19c] sm:$0xf] }
 0x20f   :  { %1319 = vmatpush.bf16.msrb.mxu0 %v9029_v8  ;;  %v9273_v8 = vor.u32 %v12388_v0, %v9270_v7  ;;  %v9222_v0 = vld [vmem:[%s13643_s27 + $0x1a4] sm:$0xf0] }
 0x210   :  { %1333 = vmatpush.bf16.msrb.mxu1 %v9125_v12  ;;  %v12361_v12 = vld [vmem:[%s13643_s27 + $0x124] sm:$0xf] }
 0x211   :  { %v9165_v1 = vor.u32 %v12361_v12, %v9162_v23  ;;  %v9114_v12 = vld [vmem:[%s13643_s27 + $0xcc] sm:$0xf0]  ;;  %v12373_v23 = vld [vmem:[%s13643_s27 + $0x184] sm:$0xf] }
 0x213   :  { %1320 = vmatpush.bf16.msrb.mxu0 %v9017_v43  ;;  %v9246_v43 = vld [vmem:[%s13643_s27 + $0x1d4] sm:$0xf0] }
 0x214   :  { %1334 = vmatpush.bf16.msrb.mxu1 %v9113_v44  ;;  %v9153_v44 = vor.u32 %v12358_v41, %v9150_v54  ;;  %v9213_v41 = vor.u32 %v12373_v23, %v9210_v29  ;;  %v9216_v23 = vld [vmem:[%s13643_s27 + $0x188] sm:$0xf]  ;;  %v12375_v29 = vld [vmem:[%s13643_s27 + $0x190] sm:$0xf0] }
 0x217   :  { %1369 = vmatpush.bf16.msra.mxu0 %v9201_v47  ;;  %v9249_v47 = vor.u32 %v12382_v56, %v9246_v43  ;;  %v9288_v56 = vld [vmem:[%s13643_s27 + $0x218] sm:$0xf]  ;;  %v12393_v43 = vld [vmem:[%s13643_s27 + $0x220] sm:$0xf0] }
 0x218   :  { %1383 = vmatpush.bf16.msra.mxu1 %v9297_v50  ;;  %1321 = vmatmul.bf16.vlgmr.msrb.gmra.mxu0 %v13369_v14  ;;  %v12355_v50 = vld [vmem:[%s13643_s27 + $0xf4] sm:$0xf] }
 0x219   :  { %1335 = vmatmul.bf16.vlgmr.msrb.gmra.mxu1 %v13385_v35  ;;  %v9141_v59 = vor.u32 %v12355_v50, %v9138_v51  ;;  %v12390_v50 = vld [vmem:[%s13643_s27 + $0x208] sm:$0xf0] }
 0x21b   :  { %1370 = vmatpush.bf16.msra.mxu0 %v9189_v60  ;;  %v9237_v60 = vor.u32 %v12379_v53, %v9234_v57  ;;  %v9264_v53 = vld [vmem:[%s13643_s27 + $0x1e8] sm:$0xf]  ;;  %v12387_v57 = vld [vmem:[%s13643_s27 + $0x1f0] sm:$0xf0] }
 0x21c   :  { %1384 = vmatpush.bf16.msra.mxu1 %v9285_v61  ;;  %v12352_v61 = vld [vmem:[%s13643_s27 + $0xdc] sm:$0xf] }
 0x21d   :  { %v9129_v7 = vor.u32 %v12352_v61, %v9126_v62  ;;  %v12384_v61 = vld [vmem:[%s13643_s27 + $0x1d8] sm:$0xf0] }
 0x21f   :  { %1371 = vmatpush.bf16.msra.mxu0 %v9177_v49  ;;  %v9225_v49 = vor.u32 %v12376_v55, %v9222_v0  ;;  %v9240_v55 = vld [vmem:[%s13643_s27 + $0x1b8] sm:$0xf]  ;;  %v12381_v0 = vld [vmem:[%s13643_s27 + $0x1c0] sm:$0xf0] }
 0x220   :  { %1385 = vmatpush.bf16.msra.mxu1 %v9273_v8  ;;  %v12349_v8 = vld [vmem:[%s13643_s27 + $0xc4] sm:$0xf] }
 0x223   :  { %1372 = vmatpush.bf16.msra.mxu0 %v9165_v1  ;;  %v12396_v1 = vld [vmem:[%s13643_s27 + $0x238] sm:$0xf0] }
 0x224   :  { %1386 = vmatpush.bf16.msra.mxu1 %v9261_v40  ;;  %v9117_v40 = vor.u32 %v12349_v8, %v9114_v12  ;;  %v9301_v54 = vor.u32 %v12396_v1, %v9300_v13  ;;  %v12378_v8 = vld [vmem:[%s13643_s27 + $0x1a8] sm:$0xf0]  ;;  %v1439_v13 = vperm.slane %v13657_v25, 1  ;;  %v9217_v1 = vor.u32 %v12375_v29, %v9216_v23  ;;  %v9244_v23 = vld [vmem:[%s13643_s27 + $0x1c8] sm:$0xf] }
 0x225   :  { %v12383_v29 = vld [vmem:[%s13643_s27 + $0x1d0] sm:$0xf0] }
 0x227   :  { %1373 = vmatpush.bf16.msra.mxu0 %v9153_v44  ;;  %v9289_v44 = vor.u32 %v12393_v43, %v9288_v56  ;;  %v12400_v56 = vld [vmem:[%s13775_s1 + $0x1c] sm:$0xf]  ;;  %v9003_v43 = vld [vmem:[%s13775_s1 + $0x24] sm:$0xf0] }
 0x228   :  { %1387 = vmatpush.bf16.msra.mxu1 %v9249_v47  ;;  %v9276_v47 = vld [vmem:[%s13643_s27 + $0x200] sm:$0xf] }
 0x229   :  { %v9277_v51 = vor.u32 %v12390_v50, %v9276_v47  ;;  %v9006_v47 = vor.u32 %v12400_v56, %v9003_v43  ;;  %v8991_v50 = vld [vmem:[%s13775_s1 + $0xc] sm:$0xf0]  ;;  %v12380_v56 = vld [vmem:[%s13643_s27 + $0x1b8] sm:$0xf0] }
 0x22b   :  { %1374 = vmatpush.bf16.msra.mxu0 %v9141_v59  ;;  %v9265_v59 = vor.u32 %v12387_v57, %v9264_v53  ;;  %v12395_v53 = vld [vmem:[%s13643_s27 + $0x230] sm:$0xf0]  ;;  %907 = vmatpush.bf16.msra.mxu2 %v9006_v47  ;;  %v12398_v47 = vld [vmem:[%s13775_s1 + $0x8] sm:$0xf0] }
 0x22c   :  { %1388 = vmatpush.bf16.msra.mxu1 %v9237_v60  ;;  %v9252_v60 = vld [vmem:[%s13643_s27 + $0x1d0] sm:$0xf] }
 0x22d   :  { %v9253_v62 = vor.u32 %v12384_v61, %v9252_v60  ;;  %v9280_v60 = vld [vmem:[%s13643_s27 + $0x210] sm:$0xf]  ;;  %v12392_v61 = vld [vmem:[%s13643_s27 + $0x218] sm:$0xf0] }
 0x22f   :  { %1375 = vmatpush.bf16.msra.mxu0 %v9129_v7  ;;  %v9241_v7 = vor.u32 %v12381_v0, %v9240_v55  ;;  %v9268_v55 = vld [vmem:[%s13643_s27 + $0x1f8] sm:$0xf]  ;;  %v12389_v0 = vld [vmem:[%s13643_s27 + $0x200] sm:$0xf0] }
 0x230   :  { %1389 = vmatpush.bf16.msra.mxu1 %v9225_v49  ;;  %v9228_v49 = vld [vmem:[%s13643_s27 + $0x1a0] sm:$0xf] }
 0x231   :  { %v9229_v12 = vor.u32 %v12378_v8, %v9228_v49  ;;  %v9256_v49 = vld [vmem:[%s13643_s27 + $0x1e0] sm:$0xf]  ;;  %v12386_v8 = vld [vmem:[%s13643_s27 + $0x1e8] sm:$0xf0] }
 0x233   :  { %1376 = vmatpush.bf16.msra.mxu0 %v9117_v40  ;;  %v1442_v40 = vmul.f32 %v1439_v13, %v13352_v10 }
 0x234   :  { %1390 = vmatpush.bf16.msra.mxu1 %v9213_v41  ;;  %v1445_v41 = vmul.f32 %v1439_v13, %v13354_v11  ;;  %v9245_v13 = vor.u32 %v12383_v29, %v9244_v23 }
 0x236   :  { %1377 = vmatmul.bf16.vlgmr.msra.gmra.mxu0 %v13385_v35 }
 0x237   :  { %1425 = vmatpush.bf16.msrb.mxu0 %v9301_v54  ;;  %1391 = vmatmul.bf16.vlgmr.msra.gmra.mxu1 %v13400_v31  ;;  %v1448_v54 = vpack.c.bf16 %v1445_v41, %v1442_v40  ;;  %v12401_v40 = vld [vmem:[%s13775_s1 + $0x20] sm:$0xf0] }
 0x238   :  { %1451 = vmatpush.bf16.msrb.mxu1 %v13470_v6 }
 0x23b   :  { %1426 = vmatpush.bf16.msrb.mxu0 %v9289_v44  ;;  %v12397_v44 = vld [vmem:[%s13775_s1 + $0x4] sm:$0xf] }
 0x23c   :  { %1452 = vmatpush.bf16.msrb.mxu1 %v13481_v21  ;;  %v8994_v57 = vor.u32 %v12397_v44, %v8991_v50  ;;  %v8989_v44 = vld [vmem:[%s13775_s1] sm:$0xf] }
 0x23e   :  { %908 = vmatpush.bf16.msra.mxu2 %v8994_v57  ;;  %v12402_v57 = vld [vmem:[%s13775_s1 + $0x28] sm:$0xf0] }
 0x23f   :  { %1427 = vmatpush.bf16.msrb.mxu0 %v9277_v51  ;;  %v9292_v51 = vld [vmem:[%s13643_s27 + $0x228] sm:$0xf] }
 0x240   :  { %1453 = vmatpush.bf16.msrb.mxu1 %v13495_v26 }
 0x243   :  { %1428 = vmatpush.bf16.msrb.mxu0 %v9265_v59  ;;  %v9293_v59 = vor.u32 %v12395_v53, %v9292_v51  ;;  %v8990_v51 = vor.u32 %v12398_v47, %v8989_v44  ;;  %v9009_v53 = vld [vmem:[%s13775_s1 + $0x20] sm:$0xf] }
 0x244   :  { %1454 = vmatpush.bf16.msrb.mxu1 %v13517_v17 }
 0x245   :  { %1341 = vmatpush.bf16.msrb.mxu2 %v9293_v59  ;;  %v9220_v59 = vld [vmem:[%s13643_s27 + $0x198] sm:$0xf] }
 0x247   :  { %1429 = vmatpush.bf16.msrb.mxu0 %v9253_v62  ;;  %v9281_v62 = vor.u32 %v12392_v61, %v9280_v60  ;;  %v9010_v61 = vor.u32 %v12402_v57, %v9009_v53 }
 0x248   :  { %1455 = vmatpush.bf16.msrb.mxu1 %v13546_v58 }
 0x249   :  { %1342 = vmatpush.bf16.msrb.mxu2 %v9281_v62  ;;  %v12377_v62 = vld [vmem:[%s13643_s27 + $0x1a0] sm:$0xf0] }
 0x24b   :  { %1430 = vmatpush.bf16.msrb.mxu0 %v9241_v7  ;;  %v9269_v7 = vor.u32 %v12389_v0, %v9268_v55  ;;  %v8997_v55 = vld [vmem:[%s13775_s1 + $0x8] sm:$0xf]  ;;  %v12399_v0 = vld [vmem:[%s13775_s1 + $0x10] sm:$0xf0] }
 0x24c   :  { %1456 = vmatpush.bf16.msrb.mxu1 %v13566_v22 }
 0x24d   :  { %1343 = vmatpush.bf16.msrb.mxu2 %v9269_v7  ;;  %v9221_v7 = vor.u32 %v12377_v62, %v9220_v59 }
 0x24f   :  { %1431 = vmatpush.bf16.msrb.mxu0 %v9229_v12  ;;  %v9257_v12 = vor.u32 %v12386_v8, %v9256_v49  ;;  %v8998_v49 = vor.u32 %v12399_v0, %v8997_v55  ;;  %v9208_v8 = vld [vmem:[%s13643_s27 + $0x180] sm:$0xf] }
 0x250   :  { %1457 = vmatpush.bf16.msrb.mxu1 %v13578_v32 }
 0x251   :  { %1344 = vmatpush.bf16.msrb.mxu2 %v9257_v12  ;;  %v12374_v12 = vld [vmem:[%s13643_s27 + $0x188] sm:$0xf0] }
 0x252   :  { %v9209_v23 = vor.u32 %v12374_v12, %v9208_v8 }
 0x253   :  { %1432 = vmatpush.bf16.msrb.mxu0 %v9217_v1  ;;  %v9001_v1 = vld [vmem:[%s13775_s1 + $0x18] sm:$0xf] }
 0x254   :  { %1458 = vmatpush.bf16.msrb.mxu1 %v13591_v36  ;;  %v9002_v41 = vor.u32 %v12401_v40, %v9001_v1 }
 0x255   :  { %1345 = vmatpush.bf16.msrb.mxu2 %v9245_v13 }
 0x256   :  { %1433 = vmatmul.bf16.vlgmr.msrb.gmra.mxu0 %v13400_v31  ;;  %893 = vmatpush.bf16.msra.mxu3 %v9002_v41 }
 0x257   :  { %1459 = vmatmul.bf16.vlgmr.msrb.gmra.mxu1 %v1448_v54  ;;  %v9232_v54 = vld [vmem:[%s13643_s27 + $0x1b0] sm:$0xf] }
 0x258   :  { %v9233_v43 = vor.u32 %v12380_v56, %v9232_v54 }
 0x25a   :  { %1346 = vmatpush.bf16.msrb.mxu2 %v9233_v43  ;;  %894 = vmatpush.bf16.msra.mxu3 %v8990_v51 }
 0x25e   :  { %921 = vmatpush.bf16.msrb.mxu3 %v9010_v61  ;;  %1347 = vmatpush.bf16.msrb.mxu2 %v9221_v7 }
 0x262   :  { %922 = vmatpush.bf16.msrb.mxu3 %v8998_v49  ;;  %1348 = vmatpush.bf16.msrb.mxu2 %v9209_v23  ;;  %v12346_v23 = vld [vmem:[%s13643_s27 + $0xac] sm:$0xf] }
 0x273   :  { %v583_v50 = vpop.f32.mrf.mxu0 }
 0x274   :  { %v606_v60 = vpop.f32.mrf.mxu1 }
 0x275   :  { %v607_v29 = vadd.f32 %v606_v60, %v583_v50 }
 0x27b   :  { %v629_v13 = vpop.f32.mrf.mxu2 }
 0x27c   :  { %v630_v1 = vadd.f32 %v629_v13, %v607_v29 }
 0x27d   :  { %v13807_v40 = vpop.f32.mrf.mxu0 }
 0x27e   :  { %13086 = vrcp.f32 %v630_v1  ;;  %v13809_v41 = vpop.f32.mrf.mxu1  ;;  %v646_v53 = vand.u32 2147483648, %v630_v1  ;;  %v644_v50 = vand.u32 2147483647, %v630_v1  ;;  %vm640_vm13 = vweird.f32 %v630_v1 }
 0x280   :  { %v806_v54 = vpop.f32.mrf.mxu3  ;;  %v647_v60 = vor.u32 1.1754944e-38, %v646_v53  ;;  %vm645_vm15 = vcmp.eq.f32.partialorder %v644_v50, 8.507059e+37 }
 0x284   :  { %v13087_v56 = vpop.eup %13086 }
 0x285   :  { %v636_v43 = vmul.f32 %v13087_v56, %v630_v1  ;;  %v820_v44 = vpop.f32.mrf.mxu0  ;;  %vm641_vm12 = vweird.f32 %v13087_v56  ;;  %v9102_v1 = vld [vmem:[%s13643_s27 + $0xb4] sm:$0xf0] }
 0x286   :  { %v834_v47 = vpop.f32.mrf.mxu1  ;;  %vm642_vm14 = vmor %vm640_vm13, %vm641_vm12  ;;  %v821_v61 = vadd.f32 %v820_v44, %v806_v54  ;;  %v12348_v54 = vld [vmem:[%s13643_s27 + $0xb8] sm:$0xf0] }
 0x287   :  { %v637_v51 = vsub.f32 1.0, %v636_v43  ;;  %v9108_v43 = vld [vmem:[%s13643_s27 + $0xb0] sm:$0xf] }
 0x288   :  { %v808_v55 = vpop.f32.mrf.mxu3  ;;  %v835_v29 = vadd.f32 %v834_v47, %v821_v61  ;;  %v9109_v53 = vor.u32 %v12348_v54, %v9108_v43  ;;  %v12339_v43 = vld [vmem:[%s13643_s27 + $0x70] sm:$0xf0] }
 0x289   :  { %v638_v57 = vmul.f32 %v13087_v56, %v637_v51  ;;  %v9105_v51 = vor.u32 %v12346_v23, %v9102_v1  ;;  %v9072_v1 = vld [vmem:[%s13643_s27 + $0x68] sm:$0xf] }
 0x28b   :  { %v639_v59 = vadd.f32 %v13087_v56, %v638_v57  ;;  %v12343_v57 = vld [vmem:[%s13643_s27 + $0x94] sm:$0xf] }
 0x28d   :  { %v643_v62 = vsel %vm642_vm14, %v13087_v56, %v639_v59  ;;  %v822_v0 = vpop.f32.mrf.mxu0  ;;  %v9090_v59 = vld [vmem:[%s13643_s27 + $0x9c] sm:$0xf0]  ;;  %vm6736_vm14 = vcmask 785408  }
 0x28e   :  { %v13811_v7 = vsel %vm645_vm15, %v647_v60, %v643_v62  ;;  %v823_v49 = vadd.f32 %v822_v0, %v808_v55  ;;  %v836_v12 = vpop.f32.mrf.mxu1  ;;  %v9096_v60 = vld [vmem:[%s13643_s27 + $0x98] sm:$0xf]  ;;  %v12345_v62 = vld [vmem:[%s13643_s27 + $0xa0] sm:$0xf0]  ;;  %v9093_v47 = vor.u32 %v12343_v57, %v9090_v59  ;;  %v12340_v55 = vld [vmem:[%s13643_s27 + $0x7c] sm:$0xf] }
 0x28f   :  { %v839_v8 = vperm.slane %v13811_v7, 0  ;;  %v9097_v61 = vor.u32 %v12345_v62, %v9096_v60  ;;  %v9078_v0 = vld [vmem:[%s13643_s27 + $0x84] sm:$0xf0]  ;;  %v12336_v57 = vld [vmem:[%s13643_s27 + $0x58] sm:$0xf0] }
 0x290   :  { %v837_v13 = vadd.f32 %v836_v12, %v823_v49  ;;  %v9084_v49 = vld [vmem:[%s13643_s27 + $0x80] sm:$0xf]  ;;  %v9081_v12 = vor.u32 %v12340_v55, %v9078_v0  ;;  %v12331_v62 = vld [vmem:[%s13643_s27 + $0x34] sm:$0xf]  ;;  %v12333_v55 = vld [vmem:[%s13643_s27 + $0x40] sm:$0xf0] }
 0x291   :  { %v840_v56 = vmul.f32 %v839_v8, %v835_v29  ;;  %v12337_v29 = vld [vmem:[%s13643_s27 + $0x64] sm:$0xf] }
 0x292   :  { %v841_v44 = vmul.f32 %v839_v8, %v837_v13  ;;  %v12342_v8 = vld [vmem:[%s13643_s27 + $0x88] sm:$0xf0]  ;;  %v9066_v13 = vld [vmem:[%s13643_s27 + $0x6c] sm:$0xf0] }
 0x293   :  { %v9085_v23 = vor.u32 %v12342_v8, %v9084_v49  ;;  %v9069_v54 = vor.u32 %v12337_v29, %v9066_v13  ;;  %v12328_v8 = vld [vmem:[%s13643_s27 + $0x1c] sm:$0xf]  ;;  %v12330_v29 = vld [vmem:[%s13643_s27 + $0x28] sm:$0xf0] }
 0x294   :  { %v842_v50 = vpack.c.bf16 %v841_v44, %v840_v56  ;;  %v9073_v56 = vor.u32 %v12339_v43, %v9072_v1  ;;  %v12334_v44 = vld [vmem:[%s13643_s27 + $0x4c] sm:$0xf]  ;;  %v12325_v1 = vld [vmem:[%s13643_s27 + $0x4] sm:$0xf]  ;;  %v9018_v43 = vld [vmem:[%s13643_s27 + $0xc] sm:$0xf0] }
 0x296   :  { %9011 = vmatmul.msk.bf16.vlgmr.msra.gmra.mxu3 %vm883_vm0, %v842_v50  ;;  %9012 = vmatmul.msk.bf16.vlgmr.msra.gmra.mxu2 %vm883_vm0, %v842_v50 }
 0x297   :  { %1355 = vmatpush.bf16.msra.mxu3 %v9105_v51  ;;  %1397 = vmatpush.bf16.msra.mxu2 %v9109_v53  ;;  %v9054_v51 = vld [vmem:[%s13643_s27 + $0x54] sm:$0xf0]  ;;  %v9060_v53 = vld [vmem:[%s13643_s27 + $0x50] sm:$0xf] }
 0x298   :  { %v9057_v59 = vor.u32 %v12334_v44, %v9054_v51  ;;  %v9061_v60 = vor.u32 %v12336_v57, %v9060_v53  ;;  %v12372_v44 = vld [vmem:[%s13643_s27 + $0x178] sm:$0xf0]  ;;  %v9021_v51 = vor.u32 %v12325_v1, %v9018_v43  ;;  %v9132_v1 = vld [vmem:[%s13643_s27 + $0xe0] sm:$0xf]  ;;  %v12354_v43 = vld [vmem:[%s13643_s27 + $0xe8] sm:$0xf0] }
 0x29b   :  { %1356 = vmatpush.bf16.msra.mxu3 %v9093_v47  ;;  %1398 = vmatpush.bf16.msra.mxu2 %v9097_v61  ;;  %v9042_v47 = vld [vmem:[%s13643_s27 + $0x3c] sm:$0xf0]  ;;  %v9048_v61 = vld [vmem:[%s13643_s27 + $0x38] sm:$0xf] }
 0x29c   :  { %v9045_v0 = vor.u32 %v12331_v62, %v9042_v47  ;;  %v9049_v49 = vor.u32 %v12333_v55, %v9048_v61  ;;  %v9180_v47 = vld [vmem:[%s13643_s27 + $0x140] sm:$0xf]  ;;  %v12366_v61 = vld [vmem:[%s13643_s27 + $0x148] sm:$0xf0] }
 0x29d   :  { %v9181_v55 = vor.u32 %v12366_v61, %v9180_v47  ;;  %v1589_v61 = vperm.slane %v13657_v25, 2 }
 0x29f   :  { %1357 = vmatpush.bf16.msra.mxu3 %v9081_v12  ;;  %1399 = vmatpush.bf16.msra.mxu2 %v9085_v23  ;;  %v9030_v12 = vld [vmem:[%s13643_s27 + $0x24] sm:$0xf0]  ;;  %v9036_v23 = vld [vmem:[%s13643_s27 + $0x20] sm:$0xf] }
 0x2a0   :  { %v9033_v13 = vor.u32 %v12328_v8, %v9030_v12  ;;  %v9156_v12 = vld [vmem:[%s13643_s27 + $0x110] sm:$0xf] }
 0x2a3   :  { %1358 = vmatpush.bf16.msra.mxu3 %v9069_v54  ;;  %1400 = vmatpush.bf16.msra.mxu2 %v9073_v56  ;;  %v12327_v54 = vld [vmem:[%s13643_s27 + $0x10] sm:$0xf0]  ;;  %v9204_v56 = vld [vmem:[%s13643_s27 + $0x170] sm:$0xf] }
 0x2a4   :  { %v9205_v57 = vor.u32 %v12372_v44, %v9204_v56  ;;  %v12351_v56 = vld [vmem:[%s13643_s27 + $0xd0] sm:$0xf0]  ;;  %v1440_v44 = vperm.slane %v13661_v33, 1 }
 0x2a6   :  { %9013 = vmatmul.msk.bf16.vlgmr.msrb.gmra.mxu3 %vm883_vm0, %v842_v50  ;;  %1349 = vmatmul.bf16.vlgmr.msrb.gmra.mxu2 %v13400_v31  ;;  %v9037_v50 = vor.u32 %v12330_v29, %v9036_v23  ;;  %v9024_v31 = vld [vmem:[%s13643_s27 + $0x8] sm:$0xf]  ;;  %v12360_v23 = vld [vmem:[%s13643_s27 + $0x118] sm:$0xf0]  ;;  %v9144_v29 = vld [vmem:[%s13643_s27 + $0xf8] sm:$0xf] }
 0x2a7   :  { %1359 = vmatpush.bf16.msra.mxu3 %v9057_v59  ;;  %1401 = vmatpush.bf16.msra.mxu2 %v9061_v60  ;;  %v9025_v53 = vor.u32 %v12327_v54, %v9024_v31  ;;  %v9192_v59 = vld [vmem:[%s13643_s27 + $0x158] sm:$0xf]  ;;  %v12369_v60 = vld [vmem:[%s13643_s27 + $0x160] sm:$0xf0]  ;;  %v9133_v31 = vor.u32 %v12354_v43, %v9132_v1  ;;  %v9120_v54 = vld [vmem:[%s13643_s27 + $0xc8] sm:$0xf]  ;;  %v1336_v1 = vpop.f32.mrf.mxu1 }
 0x2a8   :  { %v9193_v62 = vor.u32 %v12369_v60, %v9192_v59  ;;  %v1441_v60 = vperm.slane %v13664_v52, 1 }
 0x2aa   :  { %v1447_v47 = vmul.f32 %v1441_v60, %v13396_v30 }
 0x2ab   :  { %1360 = vmatpush.bf16.msra.mxu3 %v9045_v0  ;;  %1402 = vmatpush.bf16.msra.mxu2 %v9049_v49  ;;  %v9168_v0 = vld [vmem:[%s13643_s27 + $0x128] sm:$0xf]  ;;  %v12363_v49 = vld [vmem:[%s13643_s27 + $0x130] sm:$0xf0] }
 0x2ac   :  { %v9169_v8 = vor.u32 %v12363_v49, %v9168_v0  ;;  %v1595_v0 = vmul.f32 %v1589_v61, %v13354_v11 }
 0x2af   :  { %1361 = vmatpush.bf16.msra.mxu3 %v9033_v13  ;;  %1403 = vmatpush.bf16.msra.mxu2 %v9037_v50  ;;  %v12357_v13 = vld [vmem:[%s13643_s27 + $0x100] sm:$0xf0]  ;;  %s8949_s27 = sld [smem:[%s16456_s0 + %s13158_s24]]  }
 0x2b0   :  { %v9145_v50 = vor.u32 %v12357_v13, %v9144_v29  ;;  %v1322_v13 = vpop.f32.mrf.mxu0 }
 0x2b3   :  { %1362 = vmatpush.bf16.msra.mxu3 %v9021_v51  ;;  %1404 = vmatpush.bf16.msra.mxu2 %v9025_v53  ;;  %v9121_v51 = vor.u32 %v12351_v56, %v9120_v54  ;;  %v1443_v53 = vmul.f32 %v1440_v44, %v13376_v2 }
 0x2b6   :  { %1363 = vmatmul.bf16.vlgmr.msra.gmra.mxu3 %v13369_v14  ;;  %1405 = vmatmul.bf16.vlgmr.msra.gmra.mxu2 %v13369_v14  ;;  %v9157_v14 = vor.u32 %v12360_v23, %v9156_v12 }
 0x2b7   :  { %1411 = vmatpush.bf16.msrb.mxu3 %v9205_v57  ;;  %1465 = vmatpush.bf16.msrb.mxu2 %v13557_v4  ;;  %v1446_v57 = vmul.f32 %v1440_v44, %v13379_v27 }
 0x2b9   :  { %v1449_v59 = vpack.c.bf16 %v1446_v57, %v1443_v53 }
 0x2bb   :  { %1412 = vmatpush.bf16.msrb.mxu3 %v9193_v62  ;;  %1466 = vmatpush.bf16.msrb.mxu2 %v13572_v5  ;;  %v1444_v62 = vmul.f32 %v1441_v60, %v13394_v37 }
 0x2bf   :  { %1413 = vmatpush.bf16.msrb.mxu3 %v9181_v55  ;;  %1467 = vmatpush.bf16.msrb.mxu2 %v13584_v28  ;;  %v1592_v55 = vmul.f32 %v1589_v61, %v13352_v10 }
 0x2c1   :  { %v1598_v49 = vpack.c.bf16 %v1595_v0, %v1592_v55  ;;  %v12407_v55 = vld [vmem:[%s13775_s1 + $0x50] sm:$0xf0] }
 0x2c2   :  { %v12403_v0 = vld [vmem:[%s13775_s1 + $0x34] sm:$0xf] }
 0x2c3   :  { %1414 = vmatpush.bf16.msrb.mxu3 %v9169_v8  ;;  %1468 = vmatpush.bf16.msrb.mxu2 %v13596_v3  ;;  %v13902_v8 = vpop.f32.mrf.mxu2 }
 0x2c7   :  { %1415 = vmatpush.bf16.msrb.mxu3 %v9157_v14  ;;  %1469 = vmatpush.bf16.msrb.mxu2 %v13605_v63 }
 0x2cb   :  { %1416 = vmatpush.bf16.msrb.mxu3 %v9145_v50  ;;  %1470 = vmatpush.bf16.msrb.mxu2 %v13613_v20 }
 0x2cf   :  { %1417 = vmatpush.bf16.msrb.mxu3 %v9133_v31  ;;  %1471 = vmatpush.bf16.msrb.mxu2 %v13618_v34 }
 0x2d3   :  { %1418 = vmatpush.bf16.msrb.mxu3 %v9121_v51  ;;  %1472 = vmatpush.bf16.msrb.mxu2 %v13623_v38 }
 0x2d6   :  { %1419 = vmatmul.bf16.vlgmr.msrb.gmra.mxu3 %v13385_v35  ;;  %1473 = vmatmul.bf16.vlgmr.msrb.gmra.mxu2 %v1449_v59  ;;  %v1450_v35 = vpack.c.bf16 %v1447_v47, %v1444_v62  ;;  %v12406_v62 = vld [vmem:[%s13775_s1 + $0x4c] sm:$0xf]  ;;  %v9326_v47 = vld [vmem:[%s13775_s1 + $0x54] sm:$0xf0] }
 0x2d7   :  { %1479 = vmatpush.bf16.msra.mxu3 %v13563_v15  ;;  %v9329_v61 = vor.u32 %v12406_v62, %v9326_v47  ;;  %v12408_v62 = vld [vmem:[%s13775_s1 + $0x58] sm:$0xf0] }
 0x2d9   :  { %1561 = vmatpush.bf16.msra.mxu1 %v9329_v61  ;;  %v12405_v61 = vld [vmem:[%s13775_s1 + $0x40] sm:$0xf0] }
 0x2db   :  { %1480 = vmatpush.bf16.msra.mxu3 %v13576_v9 }
 0x2df   :  { %1481 = vmatpush.bf16.msra.mxu3 %v13589_v18 }
 0x2e3   :  { %1482 = vmatpush.bf16.msra.mxu3 %v13600_v24 }
 0x2e7   :  { %1483 = vmatpush.bf16.msra.mxu3 %v13609_v19 }
 0x2eb   :  { %1484 = vmatpush.bf16.msra.mxu3 %v13625_v39 }
 0x2ef   :  { %1485 = vmatpush.bf16.msra.mxu3 %v13631_v42 }
 0x2f3   :  { %1486 = vmatpush.bf16.msra.mxu3 %v13637_v45 }
 0x2f6   :  { %1487 = vmatmul.bf16.vlgmr.msra.gmra.mxu3 %v1450_v35  ;;  %v9324_v35 = vld [vmem:[%s13775_s1 + $0x48] sm:$0xf] }
 0x2f7   :  { %1601 = vmatpush.bf16.msrb.mxu3 %v13470_v6 }
 0x2fb   :  { %1602 = vmatpush.bf16.msrb.mxu3 %v13481_v21 }
 0x2ff   :  { %1603 = vmatpush.bf16.msrb.mxu3 %v13495_v26 }
 0x303   :  { %1604 = vmatpush.bf16.msrb.mxu3 %v13517_v17 }
 0x307   :  { %1605 = vmatpush.bf16.msrb.mxu3 %v13546_v58 }
 0x30b   :  { %1606 = vmatpush.bf16.msrb.mxu3 %v13566_v22 }
 0x30f   :  { %1607 = vmatpush.bf16.msrb.mxu3 %v13578_v32 }
 0x313   :  { %1608 = vmatpush.bf16.msrb.mxu3 %v13591_v36 }
 0x316   :  { %1609 = vmatmul.bf16.vlgmr.msrb.gmra.mxu3 %v1598_v49  ;;  %v9314_v49 = vld [vmem:[%s13775_s1 + $0x3c] sm:$0xf0] }
 0x319   :  { %v896_v12 = vpop.f32.mrf.mxu3  ;;  %v910_v23 = vpop.f32.mrf.mxu2 }
 0x31a   :  { %v1323_v50 = vadd.f32 %v1322_v13, %v896_v12  ;;  %v9325_v12 = vor.u32 %v12407_v55, %v9324_v35  ;;  %v9312_v13 = vld [vmem:[%s13775_s1 + $0x30] sm:$0xf] }
 0x31c   :  { %v1337_v43 = vadd.f32 %v1336_v1, %v1323_v50  ;;  %v12404_v50 = vld [vmem:[%s13775_s1 + $0x38] sm:$0xf0]  ;;  %v9317_v1 = vor.u32 %v12403_v0, %v9314_v49  ;;  %1547 = vmatpush.bf16.msra.mxu0 %v9325_v12 }
 0x31e   :  { %1562 = vmatpush.bf16.msra.mxu1 %v9317_v1 }
 0x321   :  { %v13904_v14 = vpop.f32.mrf.mxu3  ;;  %v13906_v29 = vpop.f32.mrf.mxu2 }
 0x322   :  { %16467 = vst [vmem:[#allocation2_spill] sm:$0xff] %v13904_v14  ;;  %1629 = vmatpush.bf16.msrb.mxu1 %v13563_v15 }
 0x323   :  { %16468 = vst [vmem:[#allocation3_spill] sm:$0xff] %v13906_v29 }
 0x326   :  { %1630 = vmatpush.bf16.msrb.mxu1 %v13576_v9 }
 0x329   :  { %v924_v31 = vpop.f32.mrf.mxu3  ;;  %v1350_v54 = vpop.f32.mrf.mxu2 }
 0x32a   :  { %v13908_v56 = vadd.f32 %v1350_v54, %v1337_v43  ;;  %v9313_v43 = vor.u32 %v12404_v50, %v9312_v13  ;;  %1631 = vmatpush.bf16.msrb.mxu1 %v13589_v18 }
 0x32c   :  { %1548 = vmatpush.bf16.msra.mxu0 %v9313_v43 }
 0x32e   :  { %1632 = vmatpush.bf16.msrb.mxu1 %v13600_v24 }
 0x330   :  { %1615 = vmatpush.bf16.msrb.mxu0 %v13557_v4 }
 0x331   :  { %v13910_v44 = vpop.f32.mrf.mxu3  ;;  %v13912_v51 = vpop.f32.mrf.mxu2 }
 0x332   :  { %16469 = vst [vmem:[#allocation4_spill] sm:$0xff] %v13910_v44  ;;  %1633 = vmatpush.bf16.msrb.mxu1 %v13609_v19 }
 0x333   :  { %16470 = vst [vmem:[#allocation5_spill] sm:$0xff] %v13912_v51 }
 0x334   :  { %1616 = vmatpush.bf16.msrb.mxu0 %v13572_v5 }
 0x336   :  { %1634 = vmatpush.bf16.msrb.mxu1 %v13625_v39 }
 0x338   :  { %1617 = vmatpush.bf16.msrb.mxu0 %v13584_v28 }
 0x339   :  { %v1364_v53 = vpop.f32.mrf.mxu3  ;;  %v1406_v57 = vpop.f32.mrf.mxu2 }
 0x33a   :  { %v13914_v59 = vadd.f32 %v1364_v53, %v910_v23  ;;  %v1407_v60 = vadd.f32 %v1406_v57, %v924_v31  ;;  %v13934_v31 = vpop.f32.mrf.mxu1  ;;  %v9332_v57 = vld [vmem:[%s13775_s1 + $0x50] sm:$0xf]  ;;  %1635 = vmatpush.bf16.msrb.mxu1 %v13631_v42 }
 0x33b   :  { %16472 = vst [vmem:[#allocation7_spill] sm:$0xff] %v13934_v31  ;;  %v9333_v35 = vor.u32 %v12408_v62, %v9332_v57  ;;  %v9349_v31 = vld [vmem:[%s13775_s1 + $0x6c] sm:$0xf0] }
 0x33c   :  { %1618 = vmatpush.bf16.msrb.mxu0 %v13596_v3 }
 0x33d   :  { %1575 = vmatpush.bf16.msra.mxu2 %v9333_v35 }
 0x33e   :  { %1636 = vmatpush.bf16.msrb.mxu1 %v13637_v45 }
 0x340   :  { %1619 = vmatpush.bf16.msrb.mxu0 %v13605_v63 }
 0x341   :  { %v13928_v23 = vpop.f32.mrf.mxu3  ;;  %v13952_v0 = vpop.f32.mrf.mxu2 }
 0x342   :  { %16471 = vst [vmem:[#allocation6_spill] sm:$0xff] %v13928_v23  ;;  %v13944_v47 = vpop.f32.mrf.mxu1 }
 0x343   :  { %16473 = vst [vmem:[#allocation8_spill] sm:$0xff] %v13952_v0  ;;  %v12412_v0 = vld [vmem:[%s13775_s1 + $0x7c] sm:$0xf] }
 0x344   :  { %1620 = vmatpush.bf16.msrb.mxu0 %v13613_v20 }
 0x348   :  { %1621 = vmatpush.bf16.msrb.mxu0 %v13618_v34 }
 0x34a   :  { %v13954_v49 = vpop.f32.mrf.mxu1 }
 0x34b   :  { %16474 = vst [vmem:[#allocation9_spill] sm:$0xff] %v13954_v49 }
 0x34c   :  { %1622 = vmatpush.bf16.msrb.mxu0 %v13623_v38 }
 0x352   :  { %v1460_v50 = vpop.f32.mrf.mxu1 }
 0x359   :  { %v1420_v54 = vpop.f32.mrf.mxu3  ;;  %v1474_v13 = vpop.f32.mrf.mxu2 }
 0x35a   :  { %v13936_v53 = vadd.f32 %v1420_v54, %v1407_v60  ;;  %v9320_v60 = vld [vmem:[%s13775_s1 + $0x38] sm:$0xf]  ;;  %v1475_v54 = vadd.f32 %v1474_v13, %v1460_v50  ;;  %v1462_v57 = vpop.f32.mrf.mxu1  ;;  %v1590_v13 = vperm.slane %v13661_v33, 2  ;;  %v1591_v50 = vperm.slane %v13664_v52, 2 }
 0x35b   :  { %v9321_v55 = vor.u32 %v12405_v61, %v9320_v60  ;;  %v1493_v61 = vperm.slane %v13811_v7, 1 }
 0x35d   :  { %1576 = vmatpush.bf16.msra.mxu2 %v9321_v55 }
 0x361   :  { %v13956_v12 = vpop.f32.mrf.mxu3  ;;  %v1476_v43 = vpop.f32.mrf.mxu2 }
 0x362   :  { %16475 = vst [vmem:[#allocation10_spill] sm:$0xff] %v13956_v12  ;;  %v1477_v62 = vadd.f32 %v1476_v43, %v1462_v57  ;;  %v1740_v57 = vperm.slane %v13661_v33, 3  ;;  %v12410_v12 = vld [vmem:[%s13775_s1 + $0x68] sm:$0xf0] }
 0x379   :  { %v1488_v1 = vpop.f32.mrf.mxu3 }
 0x37a   :  { %v1489_v35 = vadd.f32 %v1488_v1, %v1475_v54  ;;  %v1597_v1 = vmul.f32 %v1591_v50, %v13396_v30 }
 0x37c   :  { %v1494_v23 = vmul.f32 %v1493_v61, %v1489_v35  ;;  %v1743_v35 = vmul.f32 %v1740_v57, %v13376_v2 }
 0x381   :  { %v1490_v60 = vpop.f32.mrf.mxu3 }
 0x382   :  { %v1491_v55 = vadd.f32 %v1490_v60, %v1477_v62  ;;  %v1739_v62 = vperm.slane %v13657_v25, 3  ;;  %v1746_v60 = vmul.f32 %v1740_v57, %v13379_v27 }
 0x384   :  { %v1495_v29 = vmul.f32 %v1493_v61, %v1491_v55  ;;  %v1742_v61 = vmul.f32 %v1739_v62, %v13352_v10  ;;  %v1745_v55 = vmul.f32 %v1739_v62, %v13354_v11 }
 0x386   :  { %v1496_v44 = vpack.c.bf16 %v1495_v29, %v1494_v23  ;;  %v1593_v29 = vmul.f32 %v1590_v13, %v13376_v2  ;;  %v1594_v23 = vmul.f32 %v1591_v50, %v13394_v37  ;;  %v1748_v50 = vpack.c.bf16 %v1745_v55, %v1742_v61 }
 0x388   :  { %9334 = vmatmul.msk.bf16.vlgmr.msra.gmra.mxu0 %vm883_vm0, %v1496_v44  ;;  %9335 = vmatmul.msk.bf16.vlgmr.msra.gmra.mxu1 %vm883_vm0, %v1496_v44  ;;  %v1600_v54 = vpack.c.bf16 %v1597_v1, %v1594_v23 }
 0x389   :  { %9336 = vmatmul.msk.bf16.vlgmr.msra.gmra.mxu2 %vm883_vm0, %v1496_v44  ;;  %1765 = vmatpush.bf16.msra.mxu1 %v13557_v4  ;;  %v1596_v44 = vmul.f32 %v1590_v13, %v13379_v27  ;;  %v1749_v13 = vpack.c.bf16 %v1746_v60, %v1743_v35  ;;  %v9359_v35 = vld [vmem:[%s13775_s1 + $0x78] sm:$0xf]  ;;  %v12413_v60 = vld [vmem:[%s13775_s1 + $0x80] sm:$0xf0] }
 0x38a   :  { %1751 = vmatpush.bf16.msra.mxu0 %v13470_v6  ;;  %v9360_v61 = vor.u32 %v12413_v60, %v9359_v35  ;;  %v9361_v35 = vld [vmem:[%s13775_s1 + $0x84] sm:$0xf0] }
 0x38b   :  { %v1599_v43 = vpack.c.bf16 %v1596_v44, %v1593_v29  ;;  %v1889_v29 = vperm.slane %v13657_v25, 4 }
 0x38c   :  { %1697 = vmatpush.bf16.msrb.mxu2 %v9360_v61 }
 0x38d   :  { %1766 = vmatpush.bf16.msra.mxu1 %v13572_v5  ;;  %v1892_v44 = vmul.f32 %v1889_v29, %v13352_v10  ;;  %v1895_v23 = vmul.f32 %v1889_v29, %v13354_v11  ;;  %v9367_v29 = vld [vmem:[%s13775_s1 + $0x80] sm:$0xf] }
 0x38e   :  { %1752 = vmatpush.bf16.msra.mxu0 %v13481_v21 }
 0x38f   :  { %v1898_v1 = vpack.c.bf16 %v1895_v23, %v1892_v44  ;;  %v12414_v44 = vld [vmem:[%s13775_s1 + $0x88] sm:$0xf0]  ;;  %v9347_v23 = vld [vmem:[%s13775_s1 + $0x60] sm:$0xf] }
 0x391   :  { %1767 = vmatpush.bf16.msra.mxu1 %v13584_v28 }
 0x392   :  { %1753 = vmatpush.bf16.msra.mxu0 %v13495_v26 }
 0x395   :  { %1768 = vmatpush.bf16.msra.mxu1 %v13596_v3 }
 0x396   :  { %1754 = vmatpush.bf16.msra.mxu0 %v13517_v17 }
 0x398   :  { %1623 = vmatmul.bf16.vlgmr.msrb.gmra.mxu0 %v1599_v43  ;;  %1637 = vmatmul.bf16.vlgmr.msrb.gmra.mxu1 %v1600_v54  ;;  %v14001_v43 = vpop.f32.mrf.mxu0 }
 0x399   :  { %1769 = vmatpush.bf16.msra.mxu1 %v13605_v63  ;;  %16476 = vst [vmem:[#allocation11_spill] sm:$0xff] %v14001_v43 }
 0x39a   :  { %1755 = vmatpush.bf16.msra.mxu0 %v13546_v58 }
 0x39d   :  { %1770 = vmatpush.bf16.msra.mxu1 %v13613_v20 }
 0x39e   :  { %1756 = vmatpush.bf16.msra.mxu0 %v13566_v22 }
 0x3a0   :  { %v1378_v54 = vpop.f32.mrf.mxu0 }
 0x3a1   :  { %1771 = vmatpush.bf16.msra.mxu1 %v13618_v34 }
 0x3a2   :  { %1757 = vmatpush.bf16.msra.mxu0 %v13578_v32 }
 0x3a5   :  { %1772 = vmatpush.bf16.msra.mxu1 %v13623_v38 }
 0x3a6   :  { %1758 = vmatpush.bf16.msra.mxu0 %v13591_v36 }
 0x3a8   :  { %1773 = vmatmul.bf16.vlgmr.msra.gmra.mxu1 %v1749_v13  ;;  %v14003_v57 = vpop.f32.mrf.mxu0  ;;  %v1379_v13 = vadd.f32 %v1378_v54, %v13914_v59  ;;  %v9348_v59 = vor.u32 %v12410_v12, %v9347_v23  ;;  %v9364_v54 = vor.u32 %v12412_v0, %v9361_v35  ;;  %v1610_v0 = vpop.f32.mrf.mxu3 }
 0x3a9   :  { %1901 = vmatpush.bf16.msrb.mxu1 %v13470_v6  ;;  %1759 = vmatmul.bf16.vlgmr.msra.gmra.mxu0 %v1748_v50  ;;  %16477 = vst [vmem:[#allocation12_spill] sm:$0xff] %v14003_v57  ;;  %v9368_v57 = vor.u32 %v12414_v44, %v9367_v29 }
 0x3aa   :  { %v1393_v50 = vadd.f32 %v13944_v47, %v1379_v13  ;;  %v12411_v47 = vld [vmem:[%s13775_s1 + $0x70] sm:$0xf0]  ;;  %v12409_v13 = vld [vmem:[%s13775_s1 + $0x64] sm:$0xf]  ;;  %1698 = vmatpush.bf16.msrb.mxu2 %v9348_v59 }
 0x3ab   :  { %1725 = vmatpush.bf16.msra.mxu3 %v9368_v57  ;;  %v9352_v43 = vor.u32 %v12409_v13, %v9349_v31 }
 0x3ad   :  { %1902 = vmatpush.bf16.msrb.mxu1 %v13481_v21 }
 0x3ae   :  { %1711 = vmatpush.bf16.msra.mxu2 %v9364_v54 }
 0x3b0   :  { %v1434_v62 = vpop.f32.mrf.mxu0 }
 0x3b1   :  { %1903 = vmatpush.bf16.msrb.mxu1 %v13495_v26  ;;  %v1435_v29 = vadd.f32 %v1434_v62, %v13936_v53  ;;  %v1643_v53 = vperm.slane %v13811_v7, 2 }
 0x3b2   :  { %1712 = vmatpush.bf16.msra.mxu2 %v9352_v43  ;;  %v1741_v43 = vperm.slane %v13664_v52, 3 }
 0x3b4   :  { %v1747_v13 = vmul.f32 %v1741_v43, %v13396_v30 }
 0x3b5   :  { %1904 = vmatpush.bf16.msrb.mxu1 %v13517_v17 }
 0x3b8   :  { %v14007_v55 = vpop.f32.mrf.mxu0 }
 0x3b9   :  { %1905 = vmatpush.bf16.msrb.mxu1 %v13546_v58  ;;  %16478 = vst [vmem:[#allocation13_spill] sm:$0xff] %v14007_v55  ;;  %v9355_v55 = vld [vmem:[%s13775_s1 + $0x68] sm:$0xf] }
 0x3ba   :  { %v9356_v51 = vor.u32 %v12411_v47, %v9355_v55  ;;  %v1612_v55 = vpop.f32.mrf.mxu3  ;;  %v1744_v47 = vmul.f32 %v1741_v43, %v13394_v37 }
 0x3bc   :  { %1726 = vmatpush.bf16.msra.mxu3 %v9356_v51 }
 0x3bd   :  { %1906 = vmatpush.bf16.msrb.mxu1 %v13566_v22 }
 0x3c1   :  { %1907 = vmatpush.bf16.msrb.mxu1 %v13578_v32 }
 0x3c5   :  { %1908 = vmatpush.bf16.msrb.mxu1 %v13591_v36 }
 0x3c8   :  { %1909 = vmatmul.bf16.vlgmr.msrb.gmra.mxu1 %v1898_v1 }
 0x405   :  { %v1550_v1 = vpop.f32.mrf.mxu0  ;;  %v1564_v49 = vpop.f32.mrf.mxu1 }
 0x406   :  { %v14018_v60 = vadd.f32 %v1550_v1, %v13908_v56  ;;  %v14020_v61 = vadd.f32 %v1564_v49, %v1393_v50 }
 0x40c   :  { %v1578_v44 = vpop.f32.mrf.mxu2 }
 0x40d   :  { %v14027_v14 = vadd.f32 %v1578_v44, %v1435_v29  ;;  %v14029_v56 = vpop.f32.mrf.mxu0  ;;  %v14031_v49 = vpop.f32.mrf.mxu1  ;;  %v1750_v29 = vpack.c.bf16 %v1747_v13, %v1744_v47  ;;  %v1890_v44 = vperm.slane %v13661_v33, 4  ;;  %v9402_v13 = vld [vmem:[%s13775_s1 + $0xb0] sm:$0xf] }
 0x40e   :  { %16479 = vst [vmem:[#allocation14_spill] sm:$0xff] %v14031_v49 }
 0x415   :  { %v1624_v12 = vpop.f32.mrf.mxu0  ;;  %v1638_v50 = vpop.f32.mrf.mxu1 }
 0x416   :  { %v1625_v57 = vadd.f32 %v1624_v12, %v1610_v0  ;;  %v1893_v0 = vmul.f32 %v1890_v44, %v13376_v2  ;;  %v1896_v12 = vmul.f32 %v1890_v44, %v13379_v27  ;;  %v9382_v44 = vld [vmem:[%s13775_s1 + $0x90] sm:$0xf] }
 0x418   :  { %v1639_v1 = vadd.f32 %v1638_v50, %v1625_v57  ;;  %v1899_v50 = vpack.c.bf16 %v1896_v12, %v1893_v0  ;;  %v2039_v57 = vperm.slane %v13657_v25, 5  ;;  %v12416_v12 = vld [vmem:[%s13775_s1 + $0x98] sm:$0xf0] }
 0x41a   :  { %v1644_v62 = vmul.f32 %v1643_v53, %v1639_v1 }
 0x41d   :  { %v1626_v23 = vpop.f32.mrf.mxu0  ;;  %v1640_v31 = vpop.f32.mrf.mxu1 }
 0x41e   :  { %v1627_v35 = vadd.f32 %v1626_v23, %v1612_v55  ;;  %v2042_v55 = vmul.f32 %v2039_v57, %v13352_v10  ;;  %v2045_v23 = vmul.f32 %v2039_v57, %v13354_v11  ;;  %v9383_v57 = vor.u32 %v12416_v12, %v9382_v44 }
 0x420   :  { %v1641_v51 = vadd.f32 %v1640_v31, %v1627_v35  ;;  %v2048_v1 = vpack.c.bf16 %v2045_v23, %v2042_v55  ;;  %v14070_v35 = vpop.f32.mrf.mxu2  ;;  %v12417_v23 = vld [vmem:[%s13775_s1 + $0xa0] sm:$0xf0] }
 0x421   :  { %16480 = vst [vmem:[#allocation15_spill] sm:$0xff] %v14070_v35 }
 0x422   :  { %v1645_v59 = vmul.f32 %v1643_v53, %v1641_v51 }
 0x424   :  { %v1646_v54 = vpack.c.bf16 %v1645_v59, %v1644_v62  ;;  %v9394_v59 = vld [vmem:[%s13775_s1 + $0xa8] sm:$0xf] }
 0x425   :  { %v1774_v44 = vpop.f32.mrf.mxu1 }
 0x426   :  { %9369 = vmatmul.msk.bf16.vlgmr.msrb.gmra.mxu2 %vm883_vm0, %v1646_v54  ;;  %9371 = vmatmul.msk.bf16.vlgmr.msra.gmra.mxu3 %vm883_vm0, %v1646_v54 }
 0x427   :  { %1779 = vmatpush.bf16.msrb.mxu2 %v13563_v15 }
 0x42b   :  { %1780 = vmatpush.bf16.msrb.mxu2 %v13576_v9 }
 0x42f   :  { %1781 = vmatpush.bf16.msrb.mxu2 %v13589_v18 }
 0x433   :  { %1782 = vmatpush.bf16.msrb.mxu2 %v13600_v24 }
 0x436   :  { %9370 = vmatmul.msk.bf16.vlgmr.msra.gmra.mxu2 %vm883_vm0, %v1646_v54  ;;  %v12419_v54 = vld [vmem:[%s13775_s1 + $0xb0] sm:$0xf0] }
 0x437   :  { %1783 = vmatpush.bf16.msrb.mxu2 %v13609_v19  ;;  %v9395_v43 = vor.u32 %v12419_v54, %v9394_v59  ;;  %v9384_v59 = vld [vmem:[%s13775_s1 + $0x9c] sm:$0xf0] }
 0x439   :  { %1847 = vmatpush.bf16.msrb.mxu3 %v9395_v43 }
 0x43b   :  { %1784 = vmatpush.bf16.msrb.mxu2 %v13625_v39 }
 0x43d   :  { %1848 = vmatpush.bf16.msrb.mxu3 %v9383_v57 }
 0x43f   :  { %1785 = vmatpush.bf16.msrb.mxu2 %v13631_v42 }
 0x443   :  { %1786 = vmatpush.bf16.msrb.mxu2 %v13637_v45 }
 0x446   :  { %1787 = vmatmul.bf16.vlgmr.msrb.gmra.mxu2 %v1750_v29  ;;  %v12420_v29 = vld [vmem:[%s13775_s1 + $0xb8] sm:$0xf0] }
 0x447   :  { %1915 = vmatpush.bf16.msra.mxu2 %v13557_v4  ;;  %v9403_v0 = vor.u32 %v12420_v29, %v9402_v13  ;;  %v1760_v29 = vpop.f32.mrf.mxu0 }
 0x448   :  { %v1775_v49 = vadd.f32 %v1774_v44, %v1760_v29 }
 0x449   :  { %1875 = vmatpush.bf16.msrb.mxu0 %v9403_v0 }
 0x44b   :  { %1916 = vmatpush.bf16.msra.mxu2 %v13572_v5 }
 0x44f   :  { %1917 = vmatpush.bf16.msra.mxu2 %v13584_v28 }
 0x453   :  { %1918 = vmatpush.bf16.msra.mxu2 %v13596_v3 }
 0x457   :  { %1919 = vmatpush.bf16.msra.mxu2 %v13605_v63 }
 0x45b   :  { %1920 = vmatpush.bf16.msra.mxu2 %v13613_v20 }
 0x45f   :  { %1921 = vmatpush.bf16.msra.mxu2 %v13618_v34 }
 0x463   :  { %1922 = vmatpush.bf16.msra.mxu2 %v13623_v38 }
 0x466   :  { %1923 = vmatmul.bf16.vlgmr.msra.gmra.mxu2 %v1899_v50  ;;  %v9396_v50 = vld [vmem:[%s13775_s1 + $0xb4] sm:$0xf0] }
 0x467   :  { %2051 = vmatpush.bf16.msrb.mxu2 %v13470_v6 }
 0x46b   :  { %2052 = vmatpush.bf16.msrb.mxu2 %v13481_v21 }
 0x46f   :  { %2053 = vmatpush.bf16.msrb.mxu2 %v13495_v26 }
 0x473   :  { %2054 = vmatpush.bf16.msrb.mxu2 %v13517_v17 }
 0x477   :  { %2055 = vmatpush.bf16.msrb.mxu2 %v13546_v58 }
 0x47b   :  { %2056 = vmatpush.bf16.msrb.mxu2 %v13566_v22 }
 0x47f   :  { %2057 = vmatpush.bf16.msrb.mxu2 %v13578_v32 }
 0x483   :  { %2058 = vmatpush.bf16.msrb.mxu2 %v13591_v36 }
 0x486   :  { %2059 = vmatmul.bf16.vlgmr.msrb.gmra.mxu2 %v2048_v1  ;;  %v12415_v1 = vld [vmem:[%s13775_s1 + $0x94] sm:$0xf] }
 0x487   :  { %v9387_v43 = vor.u32 %v12415_v1, %v9384_v59  ;;  %v2040_v59 = vperm.slane %v13661_v33, 5 }
 0x489   :  { %v2046_v29 = vmul.f32 %v2040_v59, %v13379_v27 }
 0x4a9   :  { %v1700_v31 = vpop.f32.mrf.mxu2  ;;  %v1728_v53 = vpop.f32.mrf.mxu3 }
 0x4aa   :  { %v14073_v51 = vadd.f32 %v1700_v31, %v14018_v60  ;;  %v14076_v62 = vadd.f32 %v1728_v53, %v14027_v14  ;;  %v12418_v60 = vld [vmem:[%s13775_s1 + $0xac] sm:$0xf]  ;;  %v9390_v14 = vld [vmem:[%s13775_s1 + $0x98] sm:$0xf] }
 0x4ab   :  { %v9399_v55 = vor.u32 %v12418_v60, %v9396_v50  ;;  %v9391_v53 = vor.u32 %v12417_v23, %v9390_v14  ;;  %v1762_v60 = vpop.f32.mrf.mxu0  ;;  %v1776_v50 = vpop.f32.mrf.mxu1  ;;  %v1793_v23 = vperm.slane %v13811_v7, 3 }
 0x4ac   :  { %v1777_v35 = vadd.f32 %v1776_v50, %v1762_v60 }
 0x4ad   :  { %1861 = vmatpush.bf16.msra.mxu3 %v9399_v55  ;;  %1876 = vmatpush.bf16.msrb.mxu0 %v9391_v53 }
 0x4b1   :  { %v14080_v47 = vpop.f32.mrf.mxu2  ;;  %1862 = vmatpush.bf16.msra.mxu3 %v9387_v43  ;;  %v2043_v43 = vmul.f32 %v2040_v59, %v13376_v2  ;;  %v12426_v59 = vld [vmem:[%s13775_s1 + $0xe8] sm:$0xf0] }
 0x4b3   :  { %v2049_v44 = vpack.c.bf16 %v2046_v29, %v2043_v43  ;;  %v9417_v43 = vld [vmem:[%s13775_s1 + $0xc0] sm:$0xf] }
 0x4b9   :  { %v1714_v31 = vpop.f32.mrf.mxu2 }
 0x4ba   :  { %v14093_v54 = vadd.f32 %v1714_v31, %v14020_v61 }
 0x4c1   :  { %v14095_v13 = vpop.f32.mrf.mxu2 }
 0x4c2   :  { %16481 = vst [vmem:[#allocation16_spill] sm:$0xff] %v14095_v13 }
 0x4c9   :  { %v1788_v12 = vpop.f32.mrf.mxu2 }
 0x4ca   :  { %v1789_v0 = vadd.f32 %v1788_v12, %v1775_v49  ;;  %v1891_v49 = vperm.slane %v13664_v52, 4  ;;  %v2189_v12 = vperm.slane %v13657_v25, 6 }
 0x4cc   :  { %v1794_v31 = vmul.f32 %v1793_v23, %v1789_v0  ;;  %v1897_v1 = vmul.f32 %v1891_v49, %v13396_v30  ;;  %v2192_v60 = vmul.f32 %v2189_v12, %v13352_v10  ;;  %v2195_v50 = vmul.f32 %v2189_v12, %v13354_v11  ;;  %v9431_v12 = vld [vmem:[%s13775_s1 + $0xe4] sm:$0xf0] }
 0x4ce   :  { %v2198_v0 = vpack.c.bf16 %v2195_v50, %v2192_v60 }
 0x4d1   :  { %v1790_v14 = vpop.f32.mrf.mxu2 }
 0x4d2   :  { %v1791_v61 = vadd.f32 %v1790_v14, %v1777_v35  ;;  %v1894_v35 = vmul.f32 %v1891_v49, %v13394_v37  ;;  %v14134_v14 = vpop.f32.mrf.mxu3  ;;  %v12425_v49 = vld [vmem:[%s13775_s1 + $0xe0] sm:$0xf0] }
 0x4d3   :  { %16482 = vst [vmem:[#allocation17_spill] sm:$0xff] %v14134_v14 }
 0x4d4   :  { %v1795_v57 = vmul.f32 %v1793_v23, %v1791_v61  ;;  %v1900_v53 = vpack.c.bf16 %v1897_v1, %v1894_v35 }
 0x4d6   :  { %v1796_v55 = vpack.c.bf16 %v1795_v57, %v1794_v31 }
 0x4d8   :  { %9404 = vmatmul.msk.bf16.vlgmr.msrb.gmra.mxu3 %vm883_vm0, %v1796_v55  ;;  %9406 = vmatmul.msk.bf16.vlgmr.msrb.gmra.mxu0 %vm883_vm0, %v1796_v55 }
 0x4d9   :  { %1929 = vmatpush.bf16.msrb.mxu3 %v13563_v15 }
 0x4dd   :  { %1930 = vmatpush.bf16.msrb.mxu3 %v13576_v9 }
 0x4e1   :  { %1931 = vmatpush.bf16.msrb.mxu3 %v13589_v18 }
 0x4e5   :  { %1932 = vmatpush.bf16.msrb.mxu3 %v13600_v24 }
 0x4e8   :  { %9405 = vmatmul.msk.bf16.vlgmr.msra.gmra.mxu3 %vm883_vm0, %v1796_v55  ;;  %v9429_v55 = vld [vmem:[%s13775_s1 + $0xd8] sm:$0xf] }
 0x4e9   :  { %1933 = vmatpush.bf16.msrb.mxu3 %v13609_v19  ;;  %v9430_v35 = vor.u32 %v12425_v49, %v9429_v55  ;;  %v9419_v55 = vld [vmem:[%s13775_s1 + $0xcc] sm:$0xf0] }
 0x4eb   :  { %1997 = vmatpush.bf16.msra.mxu0 %v9430_v35 }
 0x4ed   :  { %1934 = vmatpush.bf16.msrb.mxu3 %v13625_v39 }
 0x4f1   :  { %1935 = vmatpush.bf16.msrb.mxu3 %v13631_v42 }
 0x4f5   :  { %1936 = vmatpush.bf16.msrb.mxu3 %v13637_v45 }
 0x4f8   :  { %1937 = vmatmul.bf16.vlgmr.msrb.gmra.mxu3 %v1900_v53  ;;  %v9437_v53 = vld [vmem:[%s13775_s1 + $0xe0] sm:$0xf] }
 0x4f9   :  { %2065 = vmatpush.bf16.msra.mxu3 %v13557_v4  ;;  %v9438_v29 = vor.u32 %v12426_v59, %v9437_v53  ;;  %v1924_v59 = vpop.f32.mrf.mxu2 }
 0x4fb   :  { %2025 = vmatpush.bf16.msra.mxu1 %v9438_v29 }
 0x4fd   :  { %2066 = vmatpush.bf16.msra.mxu3 %v13572_v5 }
 0x501   :  { %2067 = vmatpush.bf16.msra.mxu3 %v13584_v28 }
 0x505   :  { %2068 = vmatpush.bf16.msra.mxu3 %v13596_v3 }
 0x509   :  { %2069 = vmatpush.bf16.msra.mxu3 %v13605_v63 }
 0x50d   :  { %2070 = vmatpush.bf16.msra.mxu3 %v13613_v20 }
 0x511   :  { %2071 = vmatpush.bf16.msra.mxu3 %v13618_v34 }
 0x515   :  { %2072 = vmatpush.bf16.msra.mxu3 %v13623_v38 }
 0x518   :  { %2073 = vmatmul.bf16.vlgmr.msra.gmra.mxu3 %v2049_v44  ;;  %v12424_v44 = vld [vmem:[%s13775_s1 + $0xdc] sm:$0xf] }
 0x519   :  { %2201 = vmatpush.bf16.msrb.mxu3 %v13470_v6  ;;  %v9434_v50 = vor.u32 %v12424_v44, %v9431_v12  ;;  %v1926_v44 = vpop.f32.mrf.mxu2 }
 0x51d   :  { %2202 = vmatpush.bf16.msrb.mxu3 %v13481_v21 }
 0x521   :  { %2203 = vmatpush.bf16.msrb.mxu3 %v13495_v26 }
 0x525   :  { %2204 = vmatpush.bf16.msrb.mxu3 %v13517_v17 }
 0x529   :  { %2205 = vmatpush.bf16.msrb.mxu3 %v13546_v58 }
 0x52d   :  { %2206 = vmatpush.bf16.msrb.mxu3 %v13566_v22 }
 0x531   :  { %2207 = vmatpush.bf16.msrb.mxu3 %v13578_v32 }
 0x535   :  { %2208 = vmatpush.bf16.msrb.mxu3 %v13591_v36 }
 0x538   :  { %2209 = vmatmul.bf16.vlgmr.msrb.gmra.mxu3 %v2198_v0  ;;  %v12423_v0 = vld [vmem:[%s13775_s1 + $0xd0] sm:$0xf0] }
 0x555   :  { %v1878_v23 = vpop.f32.mrf.mxu0 }
 0x556   :  { %v14137_v61 = vadd.f32 %v1878_v23, %v14076_v62  ;;  %v12422_v62 = vld [vmem:[%s13775_s1 + $0xc8] sm:$0xf0]  ;;  %v12421_v23 = vld [vmem:[%s13775_s1 + $0xc4] sm:$0xf] }
 0x557   :  { %v9418_v60 = vor.u32 %v12422_v62, %v9417_v43  ;;  %v9422_v35 = vor.u32 %v12421_v23, %v9419_v55  ;;  %v1910_v43 = vpop.f32.mrf.mxu1  ;;  %v2190_v55 = vperm.slane %v13661_v33, 6 }
 0x558   :  { %v1925_v12 = vadd.f32 %v1924_v59, %v1910_v43 }
 0x559   :  { %1998 = vmatpush.bf16.msra.mxu0 %v9418_v60  ;;  %v2196_v59 = vmul.f32 %v2190_v55, %v13379_v27 }
 0x55b   :  { %v1850_v31 = vpop.f32.mrf.mxu3 }
 0x55c   :  { %v14140_v57 = vadd.f32 %v1850_v31, %v14073_v51  ;;  %v9425_v51 = vld [vmem:[%s13775_s1 + $0xc8] sm:$0xf] }
 0x55d   :  { %v9426_v13 = vor.u32 %v12423_v0, %v9425_v51  ;;  %2011 = vmatpush.bf16.msrb.mxu0 %v9434_v50  ;;  %v1943_v0 = vperm.slane %v13811_v7, 4 }
 0x55f   :  { %2026 = vmatpush.bf16.msra.mxu1 %v9426_v13  ;;  %v1912_v14 = vpop.f32.mrf.mxu1  ;;  %v2041_v13 = vperm.slane %v13664_v52, 5 }
 0x561   :  { %2012 = vmatpush.bf16.msrb.mxu0 %v9422_v35  ;;  %v2193_v35 = vmul.f32 %v2190_v55, %v13376_v2  ;;  %v9452_v55 = vld [vmem:[%s13775_s1 + $0xf0] sm:$0xf] }
 0x563   :  { %v14144_v1 = vpop.f32.mrf.mxu3  ;;  %v2199_v43 = vpack.c.bf16 %v2196_v59, %v2193_v35  ;;  %v12428_v59 = vld [vmem:[%s13775_s1 + $0xf8] sm:$0xf0] }
 0x564   :  { %16483 = vst [vmem:[#allocation18_spill] sm:$0xff] %v14144_v1  ;;  %v1927_v1 = vadd.f32 %v1926_v44, %v1912_v14  ;;  %v2044_v14 = vmul.f32 %v2041_v13, %v13394_v37 }
 0x56b   :  { %v1864_v31 = vpop.f32.mrf.mxu3 }
 0x56c   :  { %v14157_v49 = vadd.f32 %v1864_v31, %v14093_v54 }
 0x573   :  { %v14159_v53 = vpop.f32.mrf.mxu3 }
 0x574   :  { %16484 = vst [vmem:[#allocation19_spill] sm:$0xff] %v14159_v53 }
 0x57b   :  { %v1938_v62 = vpop.f32.mrf.mxu3 }
 0x57c   :  { %v1939_v29 = vadd.f32 %v1938_v62, %v1925_v12  ;;  %v2339_v62 = vperm.slane %v13657_v25, 7 }
 0x57e   :  { %v1944_v31 = vmul.f32 %v1943_v0, %v1939_v29  ;;  %v2342_v44 = vmul.f32 %v2339_v62, %v13352_v10  ;;  %v2345_v12 = vmul.f32 %v2339_v62, %v13354_v11  ;;  %v9453_v62 = vor.u32 %v12428_v59, %v9452_v55  ;;  %v2060_v55 = vpop.f32.mrf.mxu2 }
 0x580   :  { %v2348_v29 = vpack.c.bf16 %v2345_v12, %v2342_v44  ;;  %v12429_v12 = vld [vmem:[%s13775_s1 + $0x100] sm:$0xf0] }
 0x583   :  { %v1940_v51 = vpop.f32.mrf.mxu3 }
 0x584   :  { %v1941_v54 = vadd.f32 %v1940_v51, %v1927_v1  ;;  %v2047_v1 = vmul.f32 %v2041_v13, %v13396_v30  ;;  %v14198_v51 = vpop.f32.mrf.mxu0 }
 0x585   :  { %16485 = vst [vmem:[#allocation20_spill] sm:$0xff] %v14198_v51 }
 0x586   :  { %v1945_v60 = vmul.f32 %v1943_v0, %v1941_v54  ;;  %v2050_v23 = vpack.c.bf16 %v2047_v1, %v2044_v14  ;;  %v9472_v1 = vld [vmem:[%s13775_s1 + $0x110] sm:$0xf]  ;;  %v2062_v53 = vpop.f32.mrf.mxu2 }
 0x588   :  { %v1946_v50 = vpack.c.bf16 %v1945_v60, %v1944_v31  ;;  %v9464_v60 = vld [vmem:[%s13775_s1 + $0x108] sm:$0xf] }
 0x58a   :  { %9439 = vmatmul.msk.bf16.vlgmr.msra.gmra.mxu0 %vm883_vm0, %v1946_v50  ;;  %9441 = vmatmul.msk.bf16.vlgmr.msra.gmra.mxu1 %vm883_vm0, %v1946_v50 }
 0x58b   :  { %2079 = vmatpush.bf16.msra.mxu0 %v13563_v15 }
 0x58f   :  { %2080 = vmatpush.bf16.msra.mxu0 %v13576_v9 }
 0x593   :  { %2081 = vmatpush.bf16.msra.mxu0 %v13589_v18 }
 0x597   :  { %2082 = vmatpush.bf16.msra.mxu0 %v13600_v24 }
 0x59a   :  { %9440 = vmatmul.msk.bf16.vlgmr.msrb.gmra.mxu0 %vm883_vm0, %v1946_v50  ;;  %v12431_v50 = vld [vmem:[%s13775_s1 + $0x110] sm:$0xf0] }
 0x59b   :  { %2083 = vmatpush.bf16.msra.mxu0 %v13609_v19  ;;  %v9465_v13 = vor.u32 %v12431_v50, %v9464_v60  ;;  %v9454_v60 = vld [vmem:[%s13775_s1 + $0xfc] sm:$0xf0] }
 0x59d   :  { %2147 = vmatpush.bf16.msrb.mxu1 %v9465_v13 }
 0x59f   :  { %2084 = vmatpush.bf16.msra.mxu0 %v13625_v39 }
 0x5a1   :  { %2148 = vmatpush.bf16.msrb.mxu1 %v9453_v62 }
 0x5a3   :  { %2085 = vmatpush.bf16.msra.mxu0 %v13631_v42 }
 0x5a7   :  { %2086 = vmatpush.bf16.msra.mxu0 %v13637_v45 }
 0x5aa   :  { %2087 = vmatmul.bf16.vlgmr.msra.gmra.mxu0 %v2050_v23  ;;  %v12432_v23 = vld [vmem:[%s13775_s1 + $0x118] sm:$0xf0] }
 0x5ab   :  { %2215 = vmatpush.bf16.msrb.mxu0 %v13557_v4  ;;  %v9473_v35 = vor.u32 %v12432_v23, %v9472_v1  ;;  %v2074_v23 = vpop.f32.mrf.mxu3 }
 0x5ad   :  { %2175 = vmatpush.bf16.msra.mxu2 %v9473_v35 }
 0x5af   :  { %2216 = vmatpush.bf16.msrb.mxu0 %v13572_v5 }
 0x5b3   :  { %2217 = vmatpush.bf16.msrb.mxu0 %v13584_v28 }
 0x5b7   :  { %2218 = vmatpush.bf16.msrb.mxu0 %v13596_v3 }
 0x5bb   :  { %2219 = vmatpush.bf16.msrb.mxu0 %v13605_v63 }
 0x5bf   :  { %2220 = vmatpush.bf16.msrb.mxu0 %v13613_v20 }
 0x5c3   :  { %2221 = vmatpush.bf16.msrb.mxu0 %v13618_v34 }
 0x5c7   :  { %2222 = vmatpush.bf16.msrb.mxu0 %v13623_v38 }
 0x5ca   :  { %2223 = vmatmul.bf16.vlgmr.msrb.gmra.mxu0 %v2199_v43  ;;  %v9466_v43 = vld [vmem:[%s13775_s1 + $0x114] sm:$0xf0] }
 0x5cb   :  { %2351 = vmatpush.bf16.msra.mxu0 %v13470_v6 }
 0x5cf   :  { %2352 = vmatpush.bf16.msra.mxu0 %v13481_v21 }
 0x5d3   :  { %2353 = vmatpush.bf16.msra.mxu0 %v13495_v26 }
 0x5d7   :  { %2354 = vmatpush.bf16.msra.mxu0 %v13517_v17 }
 0x5db   :  { %2355 = vmatpush.bf16.msra.mxu0 %v13546_v58 }
 0x5df   :  { %2356 = vmatpush.bf16.msra.mxu0 %v13566_v22 }
 0x5e3   :  { %2357 = vmatpush.bf16.msra.mxu0 %v13578_v32 }
 0x5e7   :  { %2358 = vmatpush.bf16.msra.mxu0 %v13591_v36 }
 0x5ea   :  { %2359 = vmatmul.bf16.vlgmr.msra.gmra.mxu0 %v2348_v29  ;;  %v12427_v29 = vld [vmem:[%s13775_s1 + $0xf4] sm:$0xf] }
 0x5eb   :  { %v9457_v13 = vor.u32 %v12427_v29, %v9454_v60  ;;  %v2340_v60 = vperm.slane %v13661_v33, 7  ;;  %v2489_v33 = vperm.slane %v13679_v46, 0 }
 0x607   :  { %v2000_v0 = vpop.f32.mrf.mxu0  ;;  %v2028_v25 = vpop.f32.mrf.mxu1 }
 0x608   :  { %v14201_v54 = vadd.f32 %v2000_v0, %v14140_v57  ;;  %v14204_v31 = vadd.f32 %v2028_v25, %v14137_v61  ;;  %v12430_v57 = vld [vmem:[%s13775_s1 + $0x10c] sm:$0xf]  ;;  %v9460_v61 = vld [vmem:[%s13775_s1 + $0xf8] sm:$0xf] }
 0x609   :  { %v9469_v44 = vor.u32 %v12430_v57, %v9466_v43  ;;  %v9461_v25 = vor.u32 %v12429_v12, %v9460_v61  ;;  %v2076_v57 = vpop.f32.mrf.mxu3  ;;  %v2075_v43 = vadd.f32 %v2074_v23, %v2060_v55  ;;  %v2093_v12 = vperm.slane %v13811_v7, 5 }
 0x60a   :  { %v2077_v51 = vadd.f32 %v2076_v57, %v2062_v53  ;;  %v2191_v53 = vperm.slane %v13664_v52, 6  ;;  %v2346_v23 = vmul.f32 %v2340_v60, %v13379_v27  ;;  %v2495_v57 = vmul.f32 %v2489_v33, %v13354_v11 }
 0x60b   :  { %2161 = vmatpush.bf16.msra.mxu1 %v9469_v44  ;;  %2176 = vmatpush.bf16.msra.mxu2 %v9461_v25 }
 0x60c   :  { %v2197_v29 = vmul.f32 %v2191_v53, %v13396_v30 }
 0x60f   :  { %v14208_v14 = vpop.f32.mrf.mxu0  ;;  %2162 = vmatpush.bf16.msra.mxu1 %v9457_v13  ;;  %v2343_v13 = vmul.f32 %v2340_v60, %v13376_v2  ;;  %v9487_v60 = vld [vmem:[%s13775_s1 + $0x120] sm:$0xf] }
 0x611   :  { %v2349_v55 = vpack.c.bf16 %v2346_v23, %v2343_v13  ;;  %v12436_v23 = vld [vmem:[%s13775_s1 + $0x13c] sm:$0xf] }
 0x617   :  { %v2014_v0 = vpop.f32.mrf.mxu0 }
 0x618   :  { %v14221_v50 = vadd.f32 %v2014_v0, %v14157_v49 }
 0x61f   :  { %v14223_v1 = vpop.f32.mrf.mxu0 }
 0x620   :  { %16486 = vst [vmem:[#allocation21_spill] sm:$0xff] %v14223_v1 }
 0x627   :  { %v2088_v59 = vpop.f32.mrf.mxu0 }
 0x628   :  { %v2089_v35 = vadd.f32 %v2088_v59, %v2075_v43  ;;  %v2492_v59 = vmul.f32 %v2489_v33, %v13352_v10 }
 0x62a   :  { %v2094_v0 = vmul.f32 %v2093_v12, %v2089_v35  ;;  %v2498_v43 = vpack.c.bf16 %v2495_v57, %v2492_v59  ;;  %v14262_v35 = vpop.f32.mrf.mxu1  ;;  %v9495_v57 = vld [vmem:[%s13775_s1 + $0x128] sm:$0xf] }
 0x62b   :  { %16487 = vst [vmem:[#allocation22_spill] sm:$0xff] %v14262_v35 }
 0x62f   :  { %v2090_v61 = vpop.f32.mrf.mxu0 }
 0x630   :  { %v2091_v49 = vadd.f32 %v2090_v61, %v2077_v51  ;;  %v2194_v51 = vmul.f32 %v2191_v53, %v13394_v37 }
 0x632   :  { %v2095_v62 = vmul.f32 %v2093_v12, %v2091_v49  ;;  %v2200_v25 = vpack.c.bf16 %v2197_v29, %v2194_v51  ;;  %v9499_v49 = vld [vmem:[%s13775_s1 + $0x138] sm:$0xf]  ;;  %v9507_v29 = vld [vmem:[%s13775_s1 + $0x140] sm:$0xf] }
 0x634   :  { %v2096_v44 = vpack.c.bf16 %v2095_v62, %v2094_v0  ;;  %v12437_v0 = vld [vmem:[%s13775_s1 + $0x140] sm:$0xf0] }
 0x635   :  { %v9500_v62 = vor.u32 %v12437_v0, %v9499_v49 }
 0x636   :  { %9474 = vmatmul.msk.bf16.vlgmr.msrb.gmra.mxu1 %vm883_vm0, %v2096_v44  ;;  %9476 = vmatmul.msk.bf16.vlgmr.msra.gmra.mxu2 %vm883_vm0, %v2096_v44 }
 0x637   :  { %2229 = vmatpush.bf16.msrb.mxu1 %v13563_v15  ;;  %2297 = vmatpush.bf16.msrb.mxu2 %v9500_v62 }
 0x63b   :  { %2230 = vmatpush.bf16.msrb.mxu1 %v13576_v9 }
 0x63f   :  { %2231 = vmatpush.bf16.msrb.mxu1 %v13589_v18 }
 0x643   :  { %2232 = vmatpush.bf16.msrb.mxu1 %v13600_v24 }
 0x646   :  { %9475 = vmatmul.msk.bf16.vlgmr.msra.gmra.mxu1 %vm883_vm0, %v2096_v44 }
 0x647   :  { %2233 = vmatpush.bf16.msrb.mxu1 %v13609_v19 }
 0x64b   :  { %2234 = vmatpush.bf16.msrb.mxu1 %v13625_v39 }
 0x64f   :  { %2235 = vmatpush.bf16.msrb.mxu1 %v13631_v42 }
 0x653   :  { %2236 = vmatpush.bf16.msrb.mxu1 %v13637_v45 }
 0x656   :  { %2237 = vmatmul.bf16.vlgmr.msrb.gmra.mxu1 %v2200_v25  ;;  %v12438_v25 = vld [vmem:[%s13775_s1 + $0x148] sm:$0xf0] }
 0x657   :  { %2365 = vmatpush.bf16.msra.mxu1 %v13557_v4  ;;  %v9508_v13 = vor.u32 %v12438_v25, %v9507_v29  ;;  %v2224_v25 = vpop.f32.mrf.mxu0 }
 0x659   :  { %2325 = vmatpush.bf16.msra.mxu3 %v9508_v13 }
 0x65b   :  { %2366 = vmatpush.bf16.msra.mxu1 %v13572_v5 }
 0x65f   :  { %2367 = vmatpush.bf16.msra.mxu1 %v13584_v28 }
 0x663   :  { %2368 = vmatpush.bf16.msra.mxu1 %v13596_v3 }
 0x667   :  { %2369 = vmatpush.bf16.msra.mxu1 %v13605_v63 }
 0x66b   :  { %2370 = vmatpush.bf16.msra.mxu1 %v13613_v20 }
 0x66f   :  { %2371 = vmatpush.bf16.msra.mxu1 %v13618_v34 }
 0x673   :  { %2372 = vmatpush.bf16.msra.mxu1 %v13623_v38 }
 0x676   :  { %2373 = vmatmul.bf16.vlgmr.msra.gmra.mxu1 %v2349_v55  ;;  %v9501_v55 = vld [vmem:[%s13775_s1 + $0x144] sm:$0xf0] }
 0x677   :  { %2501 = vmatpush.bf16.msrb.mxu1 %v13470_v6  ;;  %v9504_v59 = vor.u32 %v12436_v23, %v9501_v55  ;;  %v2226_v23 = vpop.f32.mrf.mxu0 }
 0x67b   :  { %2502 = vmatpush.bf16.msrb.mxu1 %v13481_v21 }
 0x67f   :  { %2503 = vmatpush.bf16.msrb.mxu1 %v13495_v26 }
 0x683   :  { %2504 = vmatpush.bf16.msrb.mxu1 %v13517_v17 }
 0x687   :  { %2505 = vmatpush.bf16.msrb.mxu1 %v13546_v58 }
 0x68b   :  { %2506 = vmatpush.bf16.msrb.mxu1 %v13566_v22 }
 0x68f   :  { %2507 = vmatpush.bf16.msrb.mxu1 %v13578_v32 }
 0x693   :  { %2508 = vmatpush.bf16.msrb.mxu1 %v13591_v36 }
 0x696   :  { %2509 = vmatmul.bf16.vlgmr.msrb.gmra.mxu1 %v2498_v43  ;;  %v12435_v43 = vld [vmem:[%s13775_s1 + $0x130] sm:$0xf0] }
 0x697   :  { %v9496_v0 = vor.u32 %v12435_v43, %v9495_v57  ;;  %v2243_v43 = vperm.slane %v13811_v7, 6 }
 0x699   :  { %2326 = vmatpush.bf16.msra.mxu3 %v9496_v0 }
 0x6b3   :  { %v2150_v61 = vpop.f32.mrf.mxu1 }
 0x6b4   :  { %v14265_v12 = vadd.f32 %v2150_v61, %v14201_v54  ;;  %v12434_v54 = vld [vmem:[%s13775_s1 + $0x128] sm:$0xf0]  ;;  %v12433_v61 = vld [vmem:[%s13775_s1 + $0x124] sm:$0xf] }
 0x6b5   :  { %v9488_v33 = vor.u32 %v12434_v54, %v9487_v60  ;;  %v2210_v60 = vpop.f32.mrf.mxu3 }
 0x6b6   :  { %v2225_v55 = vadd.f32 %v2224_v25, %v2210_v60  ;;  %v2639_v60 = vperm.slane %v13679_v46, 1 }
 0x6b7   :  { %2298 = vmatpush.bf16.msrb.mxu2 %v9488_v33 }
 0x6b9   :  { %v2178_v44 = vpop.f32.mrf.mxu2 }
 0x6ba   :  { %v14270_v53 = vadd.f32 %v2178_v44, %v14204_v31  ;;  %v9489_v31 = vld [vmem:[%s13775_s1 + $0x12c] sm:$0xf0] }
 0x6bb   :  { %v14272_v51 = vpop.f32.mrf.mxu1  ;;  %2311 = vmatpush.bf16.msra.mxu2 %v9504_v59  ;;  %v9492_v44 = vor.u32 %v12433_v61, %v9489_v31 }
 0x6bd   :  { %v2212_v1 = vpop.f32.mrf.mxu3 }
 0x6be   :  { %v2227_v35 = vadd.f32 %v2226_v23, %v2212_v1  ;;  %v2341_v1 = vperm.slane %v13664_v52, 7  ;;  %v2490_v52 = vperm.slane %v13682_v48, 0  ;;  %v9542_v23 = vld [vmem:[%s13775_s1 + $0x170] sm:$0xf] }
 0x6bf   :  { %2312 = vmatpush.bf16.msra.mxu2 %v9492_v44 }
 0x6c0   :  { %v2347_v61 = vmul.f32 %v2341_v1, %v13396_v30  ;;  %v2493_v31 = vmul.f32 %v2490_v52, %v13376_v2  ;;  %v2496_v44 = vmul.f32 %v2490_v52, %v13379_v27 }
 0x6c2   :  { %v2499_v25 = vpack.c.bf16 %v2496_v44, %v2493_v31 }
 0x6c3   :  { %v2164_v49 = vpop.f32.mrf.mxu1 }
 0x6c4   :  { %v14285_v62 = vadd.f32 %v2164_v49, %v14221_v50 }
 0x6cb   :  { %v14287_v29 = vpop.f32.mrf.mxu1 }
 0x6d3   :  { %v2238_v54 = vpop.f32.mrf.mxu1 }
 0x6d4   :  { %v2239_v13 = vadd.f32 %v2238_v54, %v2225_v55  ;;  %v12444_v55 = vld [vmem:[%s13775_s1 + $0x178] sm:$0xf0] }
 0x6d6   :  { %v2244_v49 = vmul.f32 %v2243_v43, %v2239_v13  ;;  %v9522_v13 = vld [vmem:[%s13775_s1 + $0x150] sm:$0xf] }
 0x6db   :  { %v2240_v57 = vpop.f32.mrf.mxu1 }
 0x6dc   :  { %v2241_v50 = vadd.f32 %v2240_v57, %v2227_v35  ;;  %v2344_v35 = vmul.f32 %v2341_v1, %v13394_v37  ;;  %v9543_v57 = vor.u32 %v12444_v55, %v9542_v23  ;;  %v12439_v1 = vld [vmem:[%s13775_s1 + $0x154] sm:$0xf] }
 0x6de   :  { %v2245_v33 = vmul.f32 %v2243_v43, %v2241_v50  ;;  %v2350_v0 = vpack.c.bf16 %v2347_v61, %v2344_v35  ;;  %v12440_v43 = vld [vmem:[%s13775_s1 + $0x158] sm:$0xf0]  ;;  %v9536_v50 = vld [vmem:[%s13775_s1 + $0x174] sm:$0xf0]  ;;  %2475 = vmatpush.bf16.msrb.mxu0 %v9543_v57 }
 0x6e0   :  { %v2246_v59 = vpack.c.bf16 %v2245_v33, %v2244_v49  ;;  %v9523_v49 = vor.u32 %v12440_v43, %v9522_v13 }
 0x6e2   :  { %9509 = vmatmul.msk.bf16.vlgmr.msrb.gmra.mxu2 %vm883_vm0, %v2246_v59  ;;  %9511 = vmatmul.msk.bf16.vlgmr.msra.gmra.mxu3 %vm883_vm0, %v2246_v59 }
 0x6e3   :  { %2379 = vmatpush.bf16.msrb.mxu2 %v13563_v15 }
 0x6e7   :  { %2380 = vmatpush.bf16.msrb.mxu2 %v13576_v9 }
 0x6eb   :  { %2381 = vmatpush.bf16.msrb.mxu2 %v13589_v18 }
 0x6ef   :  { %2382 = vmatpush.bf16.msrb.mxu2 %v13600_v24 }
 0x6f2   :  { %9510 = vmatmul.msk.bf16.vlgmr.msra.gmra.mxu2 %vm883_vm0, %v2246_v59  ;;  %v12441_v59 = vld [vmem:[%s13775_s1 + $0x160] sm:$0xf0] }
 0x6f3   :  { %2383 = vmatpush.bf16.msrb.mxu2 %v13609_v19 }
 0x6f7   :  { %2384 = vmatpush.bf16.msrb.mxu2 %v13625_v39 }
 0x6fb   :  { %2385 = vmatpush.bf16.msrb.mxu2 %v13631_v42 }
 0x6ff   :  { %2386 = vmatpush.bf16.msrb.mxu2 %v13637_v45 }
 0x702   :  { %2387 = vmatmul.bf16.vlgmr.msrb.gmra.mxu2 %v2350_v0  ;;  %v9524_v0 = vld [vmem:[%s13775_s1 + $0x15c] sm:$0xf0] }
 0x703   :  { %2515 = vmatpush.bf16.msra.mxu2 %v13557_v4  ;;  %v9527_v31 = vor.u32 %v12439_v1, %v9524_v0  ;;  %v9571_v0 = vld [vmem:[%s13775_s1 + $0x1a4] sm:$0xf0] }
 0x707   :  { %2516 = vmatpush.bf16.msra.mxu2 %v13572_v5 }
 0x70b   :  { %2517 = vmatpush.bf16.msra.mxu2 %v13584_v28 }
 0x70f   :  { %2518 = vmatpush.bf16.msra.mxu2 %v13596_v3 }
 0x713   :  { %2519 = vmatpush.bf16.msra.mxu2 %v13605_v63 }
 0x717   :  { %2520 = vmatpush.bf16.msra.mxu2 %v13613_v20 }
 0x71b   :  { %2521 = vmatpush.bf16.msra.mxu2 %v13618_v34 }
 0x71f   :  { %2522 = vmatpush.bf16.msra.mxu2 %v13623_v38 }
 0x722   :  { %2523 = vmatmul.bf16.vlgmr.msra.gmra.mxu2 %v2499_v25  ;;  %v2374_v25 = vpop.f32.mrf.mxu1 }
 0x723   :  { %2651 = vmatpush.bf16.msrb.mxu2 %v13470_v6  ;;  %v2642_v6 = vmul.f32 %v2639_v60, %v13352_v10 }
 0x727   :  { %2652 = vmatpush.bf16.msrb.mxu2 %v13481_v21  ;;  %v2645_v21 = vmul.f32 %v2639_v60, %v13354_v11  ;;  %v9534_v11 = vld [vmem:[%s13775_s1 + $0x168] sm:$0xf]  ;;  %v2360_v60 = vpop.f32.mrf.mxu0 }
 0x72b   :  { %2653 = vmatpush.bf16.msrb.mxu2 %v13495_v26  ;;  %v2648_v26 = vpack.c.bf16 %v2645_v21, %v2642_v6  ;;  %v2376_v21 = vpop.f32.mrf.mxu1 }
 0x72f   :  { %2654 = vmatpush.bf16.msrb.mxu2 %v13517_v17  ;;  %v14326_v17 = vpop.f32.mrf.mxu2 }
 0x733   :  { %2655 = vmatpush.bf16.msrb.mxu2 %v13546_v58 }
 0x737   :  { %2656 = vmatpush.bf16.msrb.mxu2 %v13566_v22 }
 0x73b   :  { %2657 = vmatpush.bf16.msrb.mxu2 %v13578_v32 }
 0x73f   :  { %2658 = vmatpush.bf16.msrb.mxu2 %v13591_v36  ;;  %v12443_v36 = vld [vmem:[%s13775_s1 + $0x170] sm:$0xf0] }
 0x740   :  { %v9535_v46 = vor.u32 %v12443_v36, %v9534_v11 }
 0x742   :  { %2659 = vmatmul.bf16.vlgmr.msrb.gmra.mxu2 %v2648_v26  ;;  %2447 = vmatpush.bf16.msrb.mxu3 %v9535_v46  ;;  %v2375_v26 = vadd.f32 %v2374_v25, %v2360_v60  ;;  %v2393_v46 = vperm.slane %v13811_v7, 7  ;;  %v2491_v7 = vperm.slane %v13685_v16, 0  ;;  %v12445_v60 = vld [vmem:[%s13775_s1 + $0x184] sm:$0xf] }
 0x744   :  { %v2494_v57 = vmul.f32 %v2491_v7, %v13394_v37  ;;  %v2497_v43 = vmul.f32 %v2491_v7, %v13396_v30 }
 0x746   :  { %2448 = vmatpush.bf16.msrb.mxu3 %v9523_v49 }
 0x765   :  { %v2300_v58 = vpop.f32.mrf.mxu2  ;;  %v2328_v22 = vpop.f32.mrf.mxu3 }
 0x766   :  { %v14329_v32 = vadd.f32 %v2300_v58, %v14265_v12  ;;  %v14332_v10 = vadd.f32 %v2328_v22, %v14270_v53  ;;  %v12442_v12 = vld [vmem:[%s13775_s1 + $0x16c] sm:$0xf]  ;;  %v9530_v53 = vld [vmem:[%s13775_s1 + $0x158] sm:$0xf]  ;;  %v2362_v58 = vpop.f32.mrf.mxu0 }
 0x767   :  { %v9539_v33 = vor.u32 %v12442_v12, %v9536_v50  ;;  %v9531_v61 = vor.u32 %v12441_v59, %v9530_v53  ;;  %v2377_v22 = vadd.f32 %v2376_v21, %v2362_v58  ;;  %v2500_v12 = vpack.c.bf16 %v2497_v43, %v2494_v57  ;;  %v9577_v53 = vld [vmem:[%s13775_s1 + $0x1a0] sm:$0xf]  ;;  %v12450_v59 = vld [vmem:[%s13775_s1 + $0x1a8] sm:$0xf0] }
 0x768   :  { %v2640_v50 = vperm.slane %v13682_v48, 1  ;;  %v9578_v1 = vor.u32 %v12450_v59, %v9577_v53 }
 0x769   :  { %2461 = vmatpush.bf16.msra.mxu3 %v9539_v33  ;;  %2476 = vmatpush.bf16.msrb.mxu0 %v9531_v61  ;;  %v12448_v61 = vld [vmem:[%s13775_s1 + $0x19c] sm:$0xf] }
 0x76a   :  { %v2646_v49 = vmul.f32 %v2640_v50, %v13379_v27  ;;  %v9569_v27 = vld [vmem:[%s13775_s1 + $0x198] sm:$0xf]  ;;  %v9574_v25 = vor.u32 %v12448_v61, %v9571_v0  ;;  %2625 = vmatpush.bf16.msra.mxu1 %v9578_v1  ;;  %v12456_v1 = vld [vmem:[%s13775_s1 + $0x1d8] sm:$0xf0] }
 0x76b   :  { %v9600_v0 = vld [vmem:[%s13775_s1 + $0x1b8] sm:$0xf] }
 0x76d   :  { %v14336_v54 = vpop.f32.mrf.mxu2  ;;  %2462 = vmatpush.bf16.msra.mxu3 %v9527_v31 }
 0x775   :  { %v2314_v35 = vpop.f32.mrf.mxu2 }
 0x776   :  { %v14349_v52 = vadd.f32 %v2314_v35, %v14285_v62  ;;  %v12446_v35 = vld [vmem:[%s13775_s1 + $0x188] sm:$0xf0] }
 0x77d   :  { %v14351_v44 = vpop.f32.mrf.mxu2 }
 0x785   :  { %v2388_v6 = vpop.f32.mrf.mxu2 }
 0x786   :  { %v2389_v11 = vadd.f32 %v2388_v6, %v2375_v26  ;;  %v9559_v26 = vld [vmem:[%s13775_s1 + $0x18c] sm:$0xf0] }
 0x788   :  { %v2394_v23 = vmul.f32 %v2393_v46, %v2389_v11 }
 0x78d   :  { %v2390_v36 = vpop.f32.mrf.mxu2 }
 0x78e   :  { %v2391_v62 = vadd.f32 %v2390_v36, %v2377_v22  ;;  %v9562_v22 = vor.u32 %v12445_v60, %v9559_v26  ;;  %v9594_v26 = vld [vmem:[%s13775_s1 + $0x1bc] sm:$0xf0] }
 0x790   :  { %v2395_v55 = vmul.f32 %v2393_v46, %v2391_v62 }
 0x792   :  { %v2396_v13 = vpack.c.bf16 %v2395_v55, %v2394_v23  ;;  %v2510_v55 = vpop.f32.mrf.mxu1 }
 0x794   :  { %9544 = vmatmul.msk.bf16.vlgmr.msrb.gmra.mxu3 %vm883_vm0, %v2396_v13  ;;  %9546 = vmatmul.msk.bf16.vlgmr.msrb.gmra.mxu0 %vm883_vm0, %v2396_v13 }
 0x795   :  { %2529 = vmatpush.bf16.msrb.mxu3 %v13563_v15 }
 0x799   :  { %2530 = vmatpush.bf16.msrb.mxu3 %v13576_v9 }
 0x79d   :  { %2531 = vmatpush.bf16.msrb.mxu3 %v13589_v18 }
 0x7a1   :  { %2532 = vmatpush.bf16.msrb.mxu3 %v13600_v24 }
 0x7a4   :  { %9545 = vmatmul.msk.bf16.vlgmr.msra.gmra.mxu3 %vm883_vm0, %v2396_v13 }
 0x7a5   :  { %2533 = vmatpush.bf16.msrb.mxu3 %v13609_v19  ;;  %v2524_v62 = vpop.f32.mrf.mxu2 }
 0x7a9   :  { %2534 = vmatpush.bf16.msrb.mxu3 %v13625_v39 }
 0x7ad   :  { %2535 = vmatpush.bf16.msrb.mxu3 %v13631_v42 }
 0x7b1   :  { %2536 = vmatpush.bf16.msrb.mxu3 %v13637_v45 }
 0x7b4   :  { %2537 = vmatmul.bf16.vlgmr.msrb.gmra.mxu3 %v2500_v12  ;;  %v2526_v12 = vpop.f32.mrf.mxu2 }
 0x7b5   :  { %2665 = vmatpush.bf16.msra.mxu3 %v13557_v4  ;;  %v2643_v4 = vmul.f32 %v2640_v50, %v13376_v2 }
 0x7b9   :  { %2666 = vmatpush.bf16.msra.mxu3 %v13572_v5  ;;  %v2649_v5 = vpack.c.bf16 %v2646_v49, %v2643_v4  ;;  %v2525_v4 = vadd.f32 %v2524_v62, %v2510_v55  ;;  %v2512_v49 = vpop.f32.mrf.mxu1  ;;  %v12478_v62 = vld [vmem:[%s14451_s5 + $0xac] sm:$0xf]  ;;  %v12475_v55 = vld [vmem:[%s14451_s5 + $0x94] sm:$0xf] }
 0x7bd   :  { %2667 = vmatpush.bf16.msra.mxu3 %v13584_v28  ;;  %v14379_v28 = vpop.f32.mrf.mxu3 }
 0x7c1   :  { %2668 = vmatpush.bf16.msra.mxu3 %v13596_v3 }
 0x7c5   :  { %2669 = vmatpush.bf16.msra.mxu3 %v13605_v63 }
 0x7c9   :  { %2670 = vmatpush.bf16.msra.mxu3 %v13613_v20 }
 0x7cd   :  { %2671 = vmatpush.bf16.msra.mxu3 %v13618_v34  ;;  %v12449_v34 = vld [vmem:[%s13775_s1 + $0x1a0] sm:$0xf0] }
 0x7ce   :  { %v9570_v48 = vor.u32 %v12449_v34, %v9569_v27 }
 0x7d0   :  { %2597 = vmatpush.bf16.msra.mxu0 %v9570_v48 }
 0x7d1   :  { %2672 = vmatpush.bf16.msra.mxu3 %v13623_v38  ;;  %v610_v38 = vadd.f32 %v13809_v41, %v13807_v40  ;;  %v9565_v40 = vld [vmem:[%s13775_s1 + $0x188] sm:$0xf]  ;;  %v12447_v41 = vld [vmem:[%s13775_s1 + $0x190] sm:$0xf0] }
 0x7d3   :  { %v633_v33 = vadd.f32 %v13902_v8, %v610_v38  ;;  %v9566_v8 = vor.u32 %v12447_v41, %v9565_v40  ;;  %v9606_v41 = vld [vmem:[%s13775_s1 + $0x1d4] sm:$0xf0] }
 0x7d4   :  { %2673 = vmatmul.bf16.vlgmr.msra.gmra.mxu3 %v2649_v5 }
 0x7d5   :  { %13088 = vrcp.f32 %v633_v33  ;;  %2626 = vmatpush.bf16.msra.mxu1 %v9566_v8  ;;  %v661_v7 = vand.u32 2147483648, %v633_v33  ;;  %vm655_vm2 = vweird.f32 %v633_v33  ;;  %v659_v43 = vand.u32 2147483647, %v633_v33  ;;  %v12451_v8 = vld [vmem:[%s13775_s1 + $0x1b4] sm:$0xf] }
 0x7d7   :  { %v662_v50 = vor.u32 1.1754944e-38, %v661_v7  ;;  %vm660_vm4 = vcmp.eq.f32.partialorder %v659_v43, 8.507059e+37 }
 0x7db   :  { %v13089_v6 = vpop.eup %13088 }
 0x7dc   :  { %v651_v11 = vmul.f32 %v13089_v6, %v633_v33  ;;  %vm656_vm1 = vweird.f32 %v13089_v6  ;;  %v2641_v33 = vperm.slane %v13685_v16, 1  ;;  %v9604_v16 = vld [vmem:[%s13775_s1 + $0x1c8] sm:$0xf] }
 0x7dd   :  { %vm657_vm3 = vmor %vm655_vm2, %vm656_vm1 }
 0x7de   :  { %v652_v36 = vsub.f32 1.0, %v651_v11 }
 0x7e0   :  { %v653_v23 = vmul.f32 %v13089_v6, %v652_v36  ;;  %v2660_v36 = vpop.f32.mrf.mxu2 }
 0x7e2   :  { %v654_v13 = vadd.f32 %v13089_v6, %v653_v23  ;;  %v9705_v23 = vld [vmem:[%s14451_s5 + $0xb4] sm:$0xf0] }
 0x7e3   :  { %v9708_v7 = vor.u32 %v12478_v62, %v9705_v23  ;;  %v9763_v62 = vld [vmem:[%s14451_s5 + $0x120] sm:$0xf] }
 0x811   :  { %v2478_v3 = vpop.f32.mrf.mxu0 }
 0x812   :  { %v14382_v63 = vadd.f32 %v2478_v3, %v14332_v10  ;;  %v2527_v3 = vadd.f32 %v2526_v12, %v2512_v49  ;;  %v9703_v12 = vld [vmem:[%s14451_s5 + $0xa8] sm:$0xf] }
 0x817   :  { %v2450_v20 = vpop.f32.mrf.mxu3 }
 0x818   :  { %v14385_v2 = vadd.f32 %v2450_v20, %v14329_v32  ;;  %v9557_v32 = vld [vmem:[%s13775_s1 + $0x180] sm:$0xf] }
 0x819   :  { %v9558_v31 = vor.u32 %v12446_v35, %v9557_v32  ;;  %v9612_v32 = vld [vmem:[%s13775_s1 + $0x1d0] sm:$0xf]  ;;  %v12452_v35 = vld [vmem:[%s13775_s1 + $0x1b8] sm:$0xf0] }
 0x81a   :  { %v9613_v61 = vor.u32 %v12456_v1, %v9612_v32  ;;  %v9669_v32 = vld [vmem:[%s14451_s5 + $0x6c] sm:$0xf0]  ;;  %v9679_v1 = vld [vmem:[%s14451_s5 + $0x78] sm:$0xf] }
 0x81b   :  { %2598 = vmatpush.bf16.msra.mxu0 %v9558_v31  ;;  %v12453_v31 = vld [vmem:[%s13775_s1 + $0x1c0] sm:$0xf0] }
 0x81c   :  { %2775 = vmatpush.bf16.msra.mxu2 %v9613_v61  ;;  %v9775_v61 = vld [vmem:[%s14451_s5 + $0x138] sm:$0xf] }
 0x81f   :  { %v14392_v10 = vpop.f32.mrf.mxu3  ;;  %2611 = vmatpush.bf16.msrb.mxu0 %v9574_v25  ;;  %v12454_v25 = vld [vmem:[%s13775_s1 + $0x1cc] sm:$0xf] }
 0x823   :  { %2612 = vmatpush.bf16.msrb.mxu0 %v9562_v22  ;;  %v9597_v22 = vor.u32 %v12451_v8, %v9594_v26  ;;  %v9657_v8 = vld [vmem:[%s14451_s5 + $0x54] sm:$0xf0] }
 0x827   :  { %v2464_v21 = vpop.f32.mrf.mxu3 }
 0x828   :  { %v14405_v58 = vadd.f32 %v2464_v21, %v14349_v52  ;;  %v658_v52 = vsel %vm657_vm3, %v13089_v6, %v654_v13  ;;  %v9601_v6 = vor.u32 %v12453_v31, %v9600_v0  ;;  %v9609_v21 = vor.u32 %v12454_v25, %v9606_v41  ;;  %v12497_v0 = vld [vmem:[%s14451_s5 + $0x140] sm:$0xf0] }
 0x829   :  { %v14409_v5 = vsel %vm660_vm4, %v662_v50, %v658_v52  ;;  %v12472_v52 = vld [vmem:[%s14451_s5 + $0x7c] sm:$0xf]  ;;  %v12479_v50 = vld [vmem:[%s14451_s5 + $0xb0] sm:$0xf0]  ;;  %v9776_v26 = vor.u32 %v12497_v0, %v9775_v61  ;;  %v12457_v0 = vld [vmem:[%s14451_s5 + $0x4] sm:$0xf] }
 0x82a   :  { %v2543_v34 = vperm.slane %v14409_v5, 0  ;;  %2776 = vmatpush.bf16.msra.mxu2 %v9601_v6  ;;  %v9704_v49 = vor.u32 %v12479_v50, %v9703_v12  ;;  %v2693_v31 = vperm.slane %v14409_v5, 1  ;;  %v9667_v5 = vld [vmem:[%s14451_s5 + $0x60] sm:$0xf]  ;;  %v12463_v12 = vld [vmem:[%s14451_s5 + $0x34] sm:$0xf] }
 0x82c   :  { %3202 = vmatpush.bf16.msrb.mxu3 %v9704_v49  ;;  %v12467_v49 = vld [vmem:[%s14451_s5 + $0x50] sm:$0xf0] }
 0x82e   :  { %3244 = vmatpush.bf16.msrb.mxu2 %v9708_v7  ;;  %v9835_v7 = vld [vmem:[%s14451_s5 + $0x1b0] sm:$0xf] }
 0x82f   :  { %v14407_v46 = vpop.f32.mrf.mxu3 }
 0x837   :  { %v2538_v57 = vpop.f32.mrf.mxu3 }
 0x838   :  { %v2539_v20 = vadd.f32 %v2538_v57, %v2525_v4  ;;  %v9693_v57 = vld [vmem:[%s14451_s5 + $0x9c] sm:$0xf0]  ;;  %v9681_v4 = vld [vmem:[%s14451_s5 + $0x84] sm:$0xf0] }
 0x839   :  { %v9696_v43 = vor.u32 %v12475_v55, %v9693_v57  ;;  %v12494_v55 = vld [vmem:[%s14451_s5 + $0x128] sm:$0xf0]  ;;  %v12512_v57 = vld [vmem:[%s14451_s5 + $0x1b8] sm:$0xf0] }
 0x83a   :  { %v2544_v48 = vmul.f32 %v2543_v34, %v2539_v20  ;;  %v12503_v20 = vld [vmem:[%s14451_s5 + $0x170] sm:$0xf0]  ;;  %v9764_v50 = vor.u32 %v12494_v55, %v9763_v62  ;;  %v12498_v55 = vld [vmem:[%s14451_s5 + $0x148] sm:$0xf0] }
 0x83b   :  { %3245 = vmatpush.bf16.msrb.mxu2 %v9696_v43 }
 0x83f   :  { %v2540_v27 = vpop.f32.mrf.mxu3 }
 0x840   :  { %v2541_v38 = vadd.f32 %v2540_v27, %v2527_v3  ;;  %v9799_v3 = vld [vmem:[%s14451_s5 + $0x168] sm:$0xf] }
 0x842   :  { %v2545_v53 = vmul.f32 %v2543_v34, %v2541_v38  ;;  %v9800_v34 = vor.u32 %v12503_v20, %v9799_v3  ;;  %v9645_v3 = vld [vmem:[%s14451_s5 + $0x3c] sm:$0xf0]  ;;  %v9751_v20 = vld [vmem:[%s14451_s5 + $0x108] sm:$0xf] }
 0x844   :  { %v2546_v59 = vpack.c.bf16 %v2545_v53, %v2544_v48  ;;  %v9691_v48 = vld [vmem:[%s14451_s5 + $0x90] sm:$0xf]  ;;  %v12476_v53 = vld [vmem:[%s14451_s5 + $0x98] sm:$0xf0] }
 0x846   :  { %9579 = vmatmul.msk.bf16.vlgmr.msra.gmra.mxu0 %vm883_vm0, %v2546_v59  ;;  %9581 = vmatmul.msk.bf16.vlgmr.msra.gmra.mxu1 %vm883_vm0, %v2546_v59 }
 0x847   :  { %2679 = vmatpush.bf16.msra.mxu0 %v13563_v15  ;;  %v2644_v15 = vmul.f32 %v2641_v33, %v13394_v37  ;;  %v12455_v37 = vld [vmem:[%s13775_s1 + $0x1d0] sm:$0xf0] }
 0x84b   :  { %2680 = vmatpush.bf16.msra.mxu0 %v13576_v9  ;;  %v2647_v9 = vmul.f32 %v2641_v33, %v13396_v30  ;;  %v9605_v30 = vor.u32 %v12455_v37, %v9604_v16  ;;  %v2662_v33 = vpop.f32.mrf.mxu2  ;;  %v12469_v37 = vld [vmem:[%s14451_s5 + $0x64] sm:$0xf] }
 0x84c   :  { %v9672_v6 = vor.u32 %v12469_v37, %v9669_v32  ;;  %v12488_v37 = vld [vmem:[%s14451_s5 + $0xf8] sm:$0xf0] }
 0x84d   :  { %2747 = vmatpush.bf16.msrb.mxu1 %v9605_v30 }
 0x84f   :  { %2681 = vmatpush.bf16.msra.mxu0 %v13589_v18  ;;  %v2650_v18 = vpack.c.bf16 %v2647_v9, %v2644_v15  ;;  %v9684_v15 = vor.u32 %v12472_v52, %v9681_v4  ;;  %v9692_v9 = vor.u32 %v12476_v53, %v9691_v48  ;;  %v9655_v4 = vld [vmem:[%s14451_s5 + $0x48] sm:$0xf]  ;;  %v12509_v48 = vld [vmem:[%s14451_s5 + $0x1a0] sm:$0xf0] }
 0x850   :  { %v9656_v53 = vor.u32 %v12467_v49, %v9655_v4  ;;  %v9727_v4 = vld [vmem:[%s14451_s5 + $0xd8] sm:$0xf] }
 0x851   :  { %3203 = vmatpush.bf16.msrb.mxu3 %v9692_v9  ;;  %3246 = vmatpush.bf16.msrb.mxu2 %v9684_v15  ;;  %v9643_v9 = vld [vmem:[%s14451_s5 + $0x30] sm:$0xf] }
 0x853   :  { %2682 = vmatpush.bf16.msra.mxu0 %v13600_v24  ;;  %v14426_v24 = vpop.f32.mrf.mxu0 }
 0x855   :  { %3247 = vmatpush.bf16.msrb.mxu2 %v9672_v6  ;;  %v9801_v6 = vld [vmem:[%s14451_s5 + $0x174] sm:$0xf0] }
 0x856   :  { %9580 = vmatmul.msk.bf16.vlgmr.msrb.gmra.mxu0 %vm883_vm0, %v2546_v59  ;;  %v9787_v59 = vld [vmem:[%s14451_s5 + $0x150] sm:$0xf] }
 0x857   :  { %2683 = vmatpush.bf16.msra.mxu0 %v13609_v19  ;;  %v2674_v11 = vpop.f32.mrf.mxu3 }
 0x858   :  { %v2675_v38 = vadd.f32 %v2674_v11, %v2660_v36  ;;  %v12470_v36 = vld [vmem:[%s14451_s5 + $0x68] sm:$0xf0] }
 0x859   :  { %v9668_v43 = vor.u32 %v12470_v36, %v9667_v5  ;;  %v12499_v5 = vld [vmem:[%s14451_s5 + $0x154] sm:$0xf]  ;;  %v9789_v36 = vld [vmem:[%s14451_s5 + $0x15c] sm:$0xf0] }
 0x85b   :  { %2684 = vmatpush.bf16.msra.mxu0 %v13625_v39 }
 0x85f   :  { %2685 = vmatpush.bf16.msra.mxu0 %v13631_v42  ;;  %v2676_v27 = vpop.f32.mrf.mxu3 }
 0x863   :  { %2686 = vmatpush.bf16.msra.mxu0 %v13637_v45  ;;  %v9592_v45 = vld [vmem:[%s13775_s1 + $0x1b0] sm:$0xf]  ;;  %s8951_s1 = sld [smem:[%s16456_s0 + %s13159_s28]]  }
 0x866   :  { %2687 = vmatmul.bf16.vlgmr.msra.gmra.mxu0 %v2650_v18  ;;  %v12500_v18 = vld [vmem:[%s14451_s5 + $0x158] sm:$0xf0] }
 0x867   :  { %3216 = vmatpush.bf16.msrb.mxu0 %v9800_v34  ;;  %v9788_v30 = vor.u32 %v12500_v18, %v9787_v59  ;;  %v9836_v34 = vor.u32 %v12512_v57, %v9835_v7  ;;  %v9648_v59 = vor.u32 %v12463_v12, %v9645_v3  ;;  %v12464_v18 = vld [vmem:[%s14451_s5 + $0x38] sm:$0xf0]  ;;  %v9792_v7 = vor.u32 %v12499_v5, %v9789_v36  ;;  %v9631_v12 = vld [vmem:[%s14451_s5 + $0x18] sm:$0xf]  ;;  %v12485_v3 = vld [vmem:[%s14451_s5 + $0xe0] sm:$0xf0] }
 0x868   :  { %v12477_v5 = vld [vmem:[%s14451_s5 + $0xa0] sm:$0xf0] }
 0x86b   :  { %3217 = vmatpush.bf16.msrb.mxu0 %v9788_v30  ;;  %v9811_v30 = vld [vmem:[%s14451_s5 + $0x180] sm:$0xf] }
 0x86f   :  { %3218 = vmatpush.bf16.msrb.mxu0 %v9776_v26  ;;  %v9795_v26 = vld [vmem:[%s14451_s5 + $0x158] sm:$0xf] }
 0x873   :  { %3219 = vmatpush.bf16.msrb.mxu0 %v9764_v50  ;;  %v12461_v50 = vld [vmem:[%s14451_s5 + $0x20] sm:$0xf0] }
 0x874   :  { %v9632_v49 = vor.u32 %v12461_v50, %v9631_v12  ;;  %v16488_v12 = vld [vmem:[#allocation2_spill] sm:$0xff]  ;;  %v16489_v50 = vld [vmem:[#allocation11_spill] sm:$0xff] }
 0x8c3   :  { %v2600_v19 = vpop.f32.mrf.mxu0 }
 0x8c4   :  { %v14429_v39 = vadd.f32 %v2600_v19, %v14385_v2  ;;  %v9593_v2 = vor.u32 %v12452_v35, %v9592_v45  ;;  %v2677_v19 = vadd.f32 %v2676_v27, %v2662_v33  ;;  %v12473_v35 = vld [vmem:[%s14451_s5 + $0x80] sm:$0xf0]  ;;  %v12491_v27 = vld [vmem:[%s14451_s5 + $0x110] sm:$0xf0]  ;;  %v12460_v33 = vld [vmem:[%s14451_s5 + $0x1c] sm:$0xf] }
 0x8c5   :  { %v9680_v41 = vor.u32 %v12473_v35, %v9679_v1  ;;  %v9752_v15 = vor.u32 %v12491_v27, %v9751_v20  ;;  %v12506_v1 = vld [vmem:[%s14451_s5 + $0x188] sm:$0xf0]  ;;  %v12496_v20 = vld [vmem:[%s14451_s5 + $0x13c] sm:$0xf]  ;;  %v9777_v27 = vld [vmem:[%s14451_s5 + $0x144] sm:$0xf0] }
 0x8c6   :  { %2748 = vmatpush.bf16.msrb.mxu1 %v9593_v2  ;;  %v12515_v2 = vld [vmem:[%s14451_s5 + $0x1d0] sm:$0xf0] }
 0x8c7   :  { %3204 = vmatpush.bf16.msrb.mxu3 %v9680_v41  ;;  %3220 = vmatpush.bf16.msrb.mxu0 %v9752_v15  ;;  %v12502_v41 = vld [vmem:[%s14451_s5 + $0x16c] sm:$0xf] }
 0x8c8   :  { %v12458_v15 = vld [vmem:[%s14451_s5 + $0x8] sm:$0xf0] }
 0x8ca   :  { %2761 = vmatpush.bf16.msra.mxu1 %v9609_v21  ;;  %v12466_v21 = vld [vmem:[%s14451_s5 + $0x4c] sm:$0xf] }
 0x8cb   :  { %v14431_v42 = vpop.f32.mrf.mxu0  ;;  %v9660_v52 = vor.u32 %v12466_v21, %v9657_v8  ;;  %3205 = vmatpush.bf16.msrb.mxu3 %v9668_v43  ;;  %v9771_v43 = vld [vmem:[%s14451_s5 + $0x128] sm:$0xf] }
 0x8cd   :  { %3248 = vmatpush.bf16.msrb.mxu2 %v9660_v52  ;;  %v12495_v52 = vld [vmem:[%s14451_s5 + $0x130] sm:$0xf0] }
 0x8ce   :  { %2762 = vmatpush.bf16.msra.mxu1 %v9597_v22 }
 0x8cf   :  { %3206 = vmatpush.bf16.msrb.mxu3 %v9656_v53  ;;  %v12492_v53 = vld [vmem:[%s14451_s5 + $0x118] sm:$0xf0] }
 0x8d1   :  { %3249 = vmatpush.bf16.msrb.mxu2 %v9648_v59  ;;  %v9619_v59 = vld [vmem:[%s14451_s5] sm:$0xf] }
 0x8d3   :  { %v2614_v40 = vpop.f32.mrf.mxu0 }
 0x8d4   :  { %v14444_v60 = vadd.f32 %v2614_v40, %v14405_v58  ;;  %v9847_v40 = vld [vmem:[%s14451_s5 + $0x1c8] sm:$0xf] }
 0x8d5   :  { %v9848_v23 = vor.u32 %v12515_v2, %v9847_v40  ;;  %v12504_v40 = vld [vmem:[%s14451_s5 + $0x178] sm:$0xf0]  ;;  %v9812_v2 = vor.u32 %v12506_v1, %v9811_v30  ;;  %v12514_v30 = vld [vmem:[%s14451_s5 + $0x1cc] sm:$0xf] }
 0x8db   :  { %v14453_v58 = vpop.f32.mrf.mxu0 }
 0x8e3   :  { %v2688_v13 = vpop.f32.mrf.mxu0 }
 0x8e4   :  { %v2689_v16 = vadd.f32 %v2688_v13, %v2675_v38  ;;  %v9823_v38 = vld [vmem:[%s14451_s5 + $0x198] sm:$0xf] }
 0x8e5   :  { %v9824_v32 = vor.u32 %v12509_v48, %v9823_v38  ;;  %v9780_v38 = vor.u32 %v12496_v20, %v9777_v27  ;;  %v9759_v48 = vld [vmem:[%s14451_s5 + $0x110] sm:$0xf]  ;;  %v9687_v20 = vld [vmem:[%s14451_s5 + $0x80] sm:$0xf]  ;;  %v12474_v27 = vld [vmem:[%s14451_s5 + $0x88] sm:$0xf0] }
 0x8e6   :  { %v2694_v22 = vmul.f32 %v2693_v31, %v2689_v16  ;;  %v9739_v16 = vld [vmem:[%s14451_s5 + $0xf0] sm:$0xf] }
 0x8e7   :  { %v9740_v61 = vor.u32 %v12488_v37, %v9739_v16  ;;  %v12493_v37 = vld [vmem:[%s14451_s5 + $0x124] sm:$0xf] }
 0x8e9   :  { %3221 = vmatpush.bf16.msrb.mxu0 %v9740_v61  ;;  %v12480_v61 = vld [vmem:[%s14451_s5 + $0xb8] sm:$0xf0] }
 0x8eb   :  { %v2690_v45 = vpop.f32.mrf.mxu0 }
 0x8ec   :  { %v2691_v25 = vadd.f32 %v2690_v45, %v2677_v19  ;;  %v9633_v19 = vld [vmem:[%s14451_s5 + $0x24] sm:$0xf0]  ;;  %v9644_v45 = vor.u32 %v12464_v18, %v9643_v9  ;;  %v9715_v9 = vld [vmem:[%s14451_s5 + $0xc0] sm:$0xf]  ;;  %v12482_v18 = vld [vmem:[%s14451_s5 + $0xc8] sm:$0xf0] }
 0x8ed   :  { %v9636_v35 = vor.u32 %v12460_v33, %v9633_v19  ;;  %v9760_v33 = vor.u32 %v12492_v53, %v9759_v48  ;;  %v9620_v19 = vor.u32 %v12458_v15, %v9619_v59  ;;  %v9716_v16 = vor.u32 %v12482_v18, %v9715_v9  ;;  %v12483_v48 = vld [vmem:[%s14451_s5 + $0xd0] sm:$0xf0]  ;;  %v12484_v59 = vld [vmem:[%s14451_s5 + $0xdc] sm:$0xf]  ;;  %v16490_v15 = vld [vmem:[#allocation7_spill] sm:$0xff] }
 0x8ee   :  { %v2695_v11 = vmul.f32 %v2693_v31, %v2691_v25  ;;  %v9621_v31 = vld [vmem:[%s14451_s5 + $0xc] sm:$0xf0]  ;;  %3207 = vmatpush.bf16.msrb.mxu3 %v9644_v45  ;;  %v9849_v45 = vld [vmem:[%s14451_s5 + $0x1d4] sm:$0xf0] }
 0x8ef   :  { %v9807_v25 = vld [vmem:[%s14451_s5 + $0x170] sm:$0xf]  ;;  %3250 = vmatpush.bf16.msrb.mxu2 %v9636_v35  ;;  %v9624_v21 = vor.u32 %v12457_v0, %v9621_v31  ;;  %v9852_v0 = vor.u32 %v12514_v30, %v9849_v45  ;;  %v12471_v30 = vld [vmem:[%s14451_s5 + $0x70] sm:$0xf0] }
 0x8f0   :  { %v14484_v13 = vpack.c.bf16 %v2695_v11, %v2694_v22  ;;  %v9808_v8 = vor.u32 %v12504_v40, %v9807_v25  ;;  %v12501_v22 = vld [vmem:[%s14451_s5 + $0x160] sm:$0xf0]  ;;  %v9804_v11 = vor.u32 %v12502_v41, %v9801_v6  ;;  %v9711_v35 = vld [vmem:[%s14451_s5 + $0xb0] sm:$0xf]  ;;  %v9747_v25 = vld [vmem:[%s14451_s5 + $0xf8] sm:$0xf] }
 0x8f1   :  { %v9796_v62 = vor.u32 %v12501_v22, %v9795_v26  ;;  %v9712_v31 = vor.u32 %v12480_v61, %v9711_v35  ;;  %v12489_v40 = vld [vmem:[%s14451_s5 + $0x100] sm:$0xf0]  ;;  %v12490_v41 = vld [vmem:[%s14451_s5 + $0x10c] sm:$0xf]  ;;  %v9753_v6 = vld [vmem:[%s14451_s5 + $0x114] sm:$0xf0] }
 0x8f2   :  { %9614 = vmatmul.msk.bf16.vlgmr.msrb.gmra.mxu1 %vm883_vm0, %v14484_v13  ;;  %9616 = vmatmul.msk.bf16.vlgmr.msra.gmra.mxu2 %vm883_vm0, %v14484_v13  ;;  %v9756_v26 = vor.u32 %v12490_v41, %v9753_v6  ;;  %v9837_v22 = vld [vmem:[%s14451_s5 + $0x1bc] sm:$0xf0]  ;;  %v16492_v35 = vld [vmem:[#allocation4_spill] sm:$0xff] }
 0x8f3   :  { %3234 = vmatpush.bf16.msrb.mxu1 %v9848_v23  ;;  %3251 = vmatpush.bf16.msrb.mxu2 %v9624_v21  ;;  %v9783_v23 = vld [vmem:[%s14451_s5 + $0x140] sm:$0xf]  ;;  %v12511_v21 = vld [vmem:[%s14451_s5 + $0x1b4] sm:$0xf]  ;;  %v9663_v41 = vld [vmem:[%s14451_s5 + $0x50] sm:$0xf] }
 0x8f4   :  { %v9784_v57 = vor.u32 %v12498_v55, %v9783_v23  ;;  %3208 = vmatpush.bf16.msrb.mxu3 %v9632_v49  ;;  %v9840_v36 = vor.u32 %v12511_v21, %v9837_v22  ;;  %v9735_v23 = vld [vmem:[%s14451_s5 + $0xe0] sm:$0xf]  ;;  %v12486_v55 = vld [vmem:[%s14451_s5 + $0xe8] sm:$0xf0]  ;;  %v16493_v61 = vld [vmem:[#allocation8_spill] sm:$0xff] }
 0x8f5   :  { %v16494_v6 = vld [vmem:[#allocation10_spill] sm:$0xff] }
 0x8f7   :  { %3235 = vmatpush.bf16.msrb.mxu1 %v9836_v34  ;;  %3300 = vmatpush.bf16.msra.mxu2 %v9808_v8  ;;  %v9728_v34 = vor.u32 %v12485_v3, %v9727_v4  ;;  %v14547_v8 = vpop.f32.mrf.mxu1  ;;  %v1325_v4 = vadd.f32 %v16489_v50, %v16488_v12  ;;  %v16499_v50 = vld [vmem:[#allocation15_spill] sm:$0xff] }
 0x8f8   :  { %3209 = vmatpush.bf16.msrb.mxu3 %v9620_v19  ;;  %v12505_v19 = vld [vmem:[%s14451_s5 + $0x184] sm:$0xf] }
 0x8f9   :  { %3222 = vmatpush.bf16.msrb.mxu0 %v9728_v34  ;;  %v9688_v34 = vor.u32 %v12474_v27, %v9687_v20  ;;  %v1339_v9 = vadd.f32 %v16490_v15, %v1325_v4  ;;  %v12462_v20 = vld [vmem:[%s14451_s5 + $0x28] sm:$0xf0]  ;;  %v16500_v27 = vld [vmem:[#allocation17_spill] sm:$0xff] }
 0x8fb   :  { %3236 = vmatpush.bf16.msrb.mxu1 %v9824_v32  ;;  %3301 = vmatpush.bf16.msra.mxu2 %v9796_v62  ;;  %v9765_v32 = vld [vmem:[%s14451_s5 + $0x12c] sm:$0xf0] }
 0x8fc   :  { %v9768_v1 = vor.u32 %v12493_v37, %v9765_v32  ;;  %3276 = vmatpush.bf16.msra.mxu3 %v9852_v0  ;;  %v9675_v37 = vld [vmem:[%s14451_s5 + $0x68] sm:$0xf]  ;;  %v1409_v0 = vadd.f32 %v16493_v61, %v16492_v35  ;;  %v16505_v61 = vld [vmem:[#allocation14_spill] sm:$0xff] }
 0x8fd   :  { %3223 = vmatpush.bf16.msrb.mxu0 %v9716_v16  ;;  %v9813_v16 = vld [vmem:[%s14451_s5 + $0x18c] sm:$0xf0] }
 0x8fe   :  { %v9816_v32 = vor.u32 %v12505_v19, %v9813_v16  ;;  %v1423_v21 = vadd.f32 %v16494_v6, %v1409_v0  ;;  %v12459_v19 = vld [vmem:[%s14451_s5 + $0x10] sm:$0xf0]  ;;  %v9855_v6 = vld [vmem:[%s14451_s5 + $0x1d0] sm:$0xf] }
 0x8ff   :  { %3237 = vmatpush.bf16.msrb.mxu1 %v9812_v2  ;;  %3302 = vmatpush.bf16.msra.mxu2 %v9784_v57  ;;  %v9748_v2 = vor.u32 %v12489_v40, %v9747_v25  ;;  %v9736_v57 = vor.u32 %v12486_v55, %v9735_v23  ;;  %v12481_v25 = vld [vmem:[%s14451_s5 + $0xc4] sm:$0xf]  ;;  %v2630_v40 = vpop.f32.mrf.mxu1 }
 0x900   :  { %3277 = vmatpush.bf16.msra.mxu3 %v9840_v36  ;;  %v16496_v55 = vld [vmem:[#allocation18_spill] sm:$0xff] }
 0x901   :  { %3286 = vmatpush.bf16.msra.mxu0 %v9712_v31  ;;  %v9676_v31 = vor.u32 %v12471_v30, %v9675_v37 }
 0x902   :  { %9615 = vmatmul.msk.bf16.vlgmr.msra.gmra.mxu1 %vm883_vm0, %v14484_v13  ;;  %v9772_v13 = vor.u32 %v12495_v52, %v9771_v43  ;;  %v9741_v43 = vld [vmem:[%s14451_s5 + $0xfc] sm:$0xf0]  ;;  %v12508_v52 = vld [vmem:[%s14451_s5 + $0x19c] sm:$0xf] }
 0x903   :  { %3258 = vmatpush.bf16.msra.mxu1 %v9804_v11  ;;  %v9699_v11 = vld [vmem:[%s14451_s5 + $0x98] sm:$0xf] }
 0x904   :  { %3303 = vmatpush.bf16.msra.mxu2 %v9772_v13  ;;  %v9700_v62 = vor.u32 %v12477_v5, %v9699_v11  ;;  %v9825_v13 = vld [vmem:[%s14451_s5 + $0x1a4] sm:$0xf0]  ;;  %v12468_v11 = vld [vmem:[%s14451_s5 + $0x58] sm:$0xf0] }
 0x905   :  { %v9828_v3 = vor.u32 %v12508_v52, %v9825_v13  ;;  %v9664_v5 = vor.u32 %v12468_v11, %v9663_v41  ;;  %v16497_v52 = vld [vmem:[#allocation3_spill] sm:$0xff]  ;;  %v10028_v41 = vld [vmem:[%s14451_s5 + $0x294] sm:$0xf0] }
 0x906   :  { %3287 = vmatpush.bf16.msra.mxu0 %v9700_v62  ;;  %v16495_v62 = vld [vmem:[#allocation13_spill] sm:$0xff] }
 0x907   :  { %3259 = vmatpush.bf16.msra.mxu1 %v9792_v7  ;;  %v12487_v7 = vld [vmem:[%s14451_s5 + $0xf4] sm:$0xf]  ;;  %3278 = vmatpush.bf16.msra.mxu3 %v9828_v3  ;;  %v1437_v23 = vadd.f32 %v16495_v62, %v1423_v21  ;;  %v9639_v3 = vld [vmem:[%s14451_s5 + $0x20] sm:$0xf]  ;;  %v12516_v21 = vld [vmem:[%s14451_s5 + $0x1d8] sm:$0xf0] }
 0x908   :  { %3304 = vmatpush.bf16.msra.mxu2 %v9760_v33  ;;  %v9744_v49 = vor.u32 %v12487_v7, %v9741_v43  ;;  %v9729_v33 = vld [vmem:[%s14451_s5 + $0xe4] sm:$0xf0]  ;;  %v12465_v43 = vld [vmem:[%s14451_s5 + $0x40] sm:$0xf0] }
 0x909   :  { %v9732_v18 = vor.u32 %v12484_v59, %v9729_v33  ;;  %v1588_v4 = vadd.f32 %v16499_v50, %v1437_v23  ;;  %v16502_v33 = vld [vmem:[#allocation20_spill] sm:$0xff]  ;;  %v16507_v62 = vld [vmem:[#allocation19_spill] sm:$0xff] }
 0x90a   :  { %3288 = vmatpush.bf16.msra.mxu0 %v9688_v34 }
 0x90b   :  { %3260 = vmatpush.bf16.msra.mxu1 %v9780_v38  ;;  %v9723_v38 = vld [vmem:[%s14451_s5 + $0xc8] sm:$0xf]  ;;  %3279 = vmatpush.bf16.msra.mxu3 %v9816_v32  ;;  %v1738_v34 = vadd.f32 %v16500_v27, %v1588_v4  ;;  %v16504_v32 = vld [vmem:[#allocation9_spill] sm:$0xff] }
 0x90c   :  { %3305 = vmatpush.bf16.msra.mxu2 %v9748_v2  ;;  %v9724_v53 = vor.u32 %v12483_v48, %v9723_v38  ;;  %v9717_v2 = vld [vmem:[%s14451_s5 + $0xcc] sm:$0xf0]  ;;  %v9640_v48 = vor.u32 %v12462_v20, %v9639_v3  ;;  %v12532_v3 = vld [vmem:[%s14451_s5 + $0x25c] sm:$0xf] }
 0x90d   :  { %v9720_v22 = vor.u32 %v12481_v25, %v9717_v2  ;;  %v1888_v15 = vadd.f32 %v16502_v33, %v1738_v34  ;;  %v12538_v25 = vld [vmem:[%s14451_s5 + $0x28c] sm:$0xf] }
 0x90e   :  { %3289 = vmatpush.bf16.msra.mxu0 %v9676_v31  ;;  %v10031_v11 = vor.u32 %v12538_v25, %v10028_v41  ;;  %v12563_v25 = vld [vmem:[%s14451_s5 + $0x350] sm:$0xf0]  ;;  %v10170_v41 = vld [vmem:[%s14451_s5 + $0x3a8] sm:$0xf] }
 0x90f   :  { %3261 = vmatpush.bf16.msra.mxu1 %v9768_v1  ;;  %v16491_v1 = vld [vmem:[#allocation5_spill] sm:$0xff] }
 0x910   :  { %3306 = vmatpush.bf16.msra.mxu2 %v9736_v57  ;;  %v1353_v45 = vadd.f32 %v16491_v1, %v1339_v9  ;;  %v9651_v57 = vld [vmem:[%s14451_s5 + $0x38] sm:$0xf] }
 0x911   :  { %v9652_v12 = vor.u32 %v12465_v43, %v9651_v57  ;;  %v12513_v57 = vld [vmem:[%s14451_s5 + $0x1c0] sm:$0xf0] }
 0x912   :  { %3290 = vmatpush.bf16.msra.mxu0 %v9664_v5  ;;  %v9856_v5 = vor.u32 %v12516_v21, %v9855_v6  ;;  %v12575_v6 = vld [vmem:[%s14451_s5 + $0x3b0] sm:$0xf0] }
 0x913   :  { %3262 = vmatpush.bf16.msra.mxu1 %v9756_v26  ;;  %v1586_v26 = vadd.f32 %v14029_v56, %v1353_v45  ;;  %v16498_v56 = vld [vmem:[#allocation6_spill] sm:$0xff] }
 0x914   :  { %3307 = vmatpush.bf16.msra.mxu2 %v9724_v53  ;;  %v1367_v13 = vadd.f32 %v16498_v56, %v16497_v52  ;;  %v16501_v53 = vld [vmem:[#allocation12_spill] sm:$0xff]  ;;  %v16508_v52 = vld [vmem:[#allocation21_spill] sm:$0xff] }
 0x915   :  { %v1736_v36 = vadd.f32 %v14080_v47, %v1586_v26  ;;  %v2635_v26 = vadd.f32 %v14547_v8, %v14382_v63  ;;  %v10016_v63 = vld [vmem:[%s14451_s5 + $0x27c] sm:$0xf0]  ;;  %v9843_v8 = vld [vmem:[%s14451_s5 + $0x1b8] sm:$0xf] }
 0x916   :  { %3291 = vmatpush.bf16.msra.mxu0 %v9652_v12  ;;  %v1381_v59 = vadd.f32 %v16501_v53, %v1367_v13  ;;  %v12539_v12 = vld [vmem:[%s14451_s5 + $0x290] sm:$0xf0] }
 0x917   :  { %3263 = vmatpush.bf16.msra.mxu1 %v9744_v49  ;;  %v1886_v7 = vadd.f32 %v16496_v55, %v1736_v36  ;;  %v12535_v36 = vld [vmem:[%s14451_s5 + $0x274] sm:$0xf] }
 0x918   :  { %v1395_v30 = vadd.f32 %v16504_v32, %v1381_v59  ;;  %v10019_v4 = vor.u32 %v12535_v36, %v10016_v63  ;;  %v10171_v36 = vor.u32 %v12575_v6, %v10170_v41  ;;  %v12523_v63 = vld [vmem:[%s14451_s5 + $0x214] sm:$0xf]  ;;  %v10124_v41 = vld [vmem:[%s14451_s5 + $0x354] sm:$0xf0] }
 0x919   :  { %v2036_v49 = vadd.f32 %v14208_v14, %v1886_v7  ;;  %v16503_v14 = vld [vmem:[#allocation22_spill] sm:$0xff]  ;;  %v10166_v6 = vld [vmem:[%s14451_s5 + $0x398] sm:$0xf] }
 0x91a   :  { %v2038_v16 = vadd.f32 %v16503_v14, %v1888_v15  ;;  %3292 = vmatpush.bf16.msra.mxu0 %v9640_v48  ;;  %v1587_v0 = vadd.f32 %v16505_v61, %v1395_v30  ;;  %v12510_v48 = vld [vmem:[%s14451_s5 + $0x1a8] sm:$0xf0]  ;;  %v12536_v15 = vld [vmem:[%s14451_s5 + $0x278] sm:$0xf0] }
 0x91b   :  { %3264 = vmatpush.bf16.msra.mxu1 %v9732_v18  ;;  %v2186_v38 = vadd.f32 %v14272_v51, %v2036_v49  ;;  %v9627_v18 = vld [vmem:[%s14451_s5 + $0x8] sm:$0xf]  ;;  %v9844_v49 = vor.u32 %v12513_v57, %v9843_v8  ;;  %v9968_v8 = vld [vmem:[%s14451_s5 + $0x21c] sm:$0xf0] }
 0x91c   :  { %v9628_v51 = vor.u32 %v12459_v19, %v9627_v18  ;;  %v2188_v45 = vadd.f32 %v14326_v17, %v2038_v16  ;;  %v16506_v17 = vld [vmem:[#allocation16_spill] sm:$0xff]  ;;  %v12529_v19 = vld [vmem:[%s14451_s5 + $0x244] sm:$0xf]  ;;  %v9819_v16 = vld [vmem:[%s14451_s5 + $0x188] sm:$0xf] }
 0x91d   :  { %v2336_v9 = vadd.f32 %v14336_v54, %v2186_v38  ;;  %v9831_v38 = vld [vmem:[%s14451_s5 + $0x1a0] sm:$0xf]  ;;  %v9978_v57 = vld [vmem:[%s14451_s5 + $0x228] sm:$0xf] }
 0x91e   :  { %v2338_v2 = vadd.f32 %v14379_v28, %v2188_v45  ;;  %3293 = vmatpush.bf16.msra.mxu0 %v9628_v51  ;;  %v9832_v18 = vor.u32 %v12510_v48, %v9831_v38  ;;  %v9966_v38 = vld [vmem:[%s14451_s5 + $0x210] sm:$0xf]  ;;  %v12524_v48 = vld [vmem:[%s14451_s5 + $0x218] sm:$0xf0] }
 0x91f   :  { %3265 = vmatpush.bf16.msra.mxu1 %v9720_v22  ;;  %v2486_v37 = vadd.f32 %v14392_v10, %v2336_v9 }
 0x921   :  { %v2636_v35 = vadd.f32 %v14431_v42, %v2486_v37  ;;  %v1737_v42 = vadd.f32 %v16506_v17, %v1587_v0  ;;  %v12507_v37 = vld [vmem:[%s14451_s5 + $0x190] sm:$0xf0] }
 0x922   :  { %v9820_v61 = vor.u32 %v12507_v37, %v9819_v16  ;;  %v9944_v16 = vld [vmem:[%s14451_s5 + $0x1ec] sm:$0xf0] }
 0x923   :  { %v1887_v23 = vadd.f32 %v16507_v62, %v1737_v42  ;;  %v9990_v42 = vld [vmem:[%s14451_s5 + $0x240] sm:$0xf]  ;;  %v10110_v62 = vld [vmem:[%s14451_s5 + $0x330] sm:$0xf] }
 0x924   :  { %v10178_v37 = vld [vmem:[%s14451_s5 + $0x3b0] sm:$0xf] }
 0x925   :  { %v2037_v56 = vadd.f32 %v16508_v52, %v1887_v23  ;;  %v12560_v23 = vld [vmem:[%s14451_s5 + $0x338] sm:$0xf0]  ;;  %v10158_v52 = vld [vmem:[%s14451_s5 + $0x390] sm:$0xf] }
 0x927   :  { %v2187_v20 = vadd.f32 %v14287_v29, %v2037_v56  ;;  %v10014_v29 = vld [vmem:[%s14451_s5 + $0x270] sm:$0xf]  ;;  %v12572_v56 = vld [vmem:[%s14451_s5 + $0x398] sm:$0xf0] }
 0x928   :  { %v10015_v51 = vor.u32 %v12536_v15, %v10014_v29 }
 0x929   :  { %v2337_v59 = vadd.f32 %v14351_v44, %v2187_v20  ;;  %v9992_v44 = vld [vmem:[%s14451_s5 + $0x24c] sm:$0xf0]  ;;  %v9956_v20 = vld [vmem:[%s14451_s5 + $0x204] sm:$0xf0] }
 0x92b   :  { %v2487_v14 = vadd.f32 %v14407_v46, %v2337_v59  ;;  %v10002_v46 = vld [vmem:[%s14451_s5 + $0x258] sm:$0xf]  ;;  %v12569_v59 = vld [vmem:[%s14451_s5 + $0x380] sm:$0xf0] }
 0x92d   :  { %v2637_v32 = vadd.f32 %v14453_v58, %v2487_v14  ;;  %v9980_v58 = vld [vmem:[%s14451_s5 + $0x234] sm:$0xf0] }
 0x96f   :  { %v2750_v47 = vpop.f32.mrf.mxu1 }
 0x970   :  { %v14604_v54 = vadd.f32 %v2750_v47, %v14429_v39  ;;  %v2488_v39 = vadd.f32 %v14426_v24, %v2338_v2  ;;  %v10004_v47 = vld [vmem:[%s14451_s5 + $0x264] sm:$0xf0]  ;;  %v12526_v2 = vld [vmem:[%s14451_s5 + $0x22c] sm:$0xf] }
 0x971   :  { %v10007_v9 = vor.u32 %v12532_v3, %v10004_v47  ;;  %v10159_v3 = vor.u32 %v12572_v56, %v10158_v52  ;;  %v12520_v47 = vld [vmem:[%s14451_s5 + $0x1fc] sm:$0xf]  ;;  %v12559_v52 = vld [vmem:[%s14451_s5 + $0x334] sm:$0xf]  ;;  %v10112_v56 = vld [vmem:[%s14451_s5 + $0x33c] sm:$0xf0] }
 0x972   :  { %v2789_v22 = vmax.f32 %v14604_v54, 0.0  ;;  %v2638_v55 = vadd.f32 %v2630_v40, %v2488_v39  ;;  %v10026_v40 = vld [vmem:[%s14451_s5 + $0x288] sm:$0xf]  ;;  %v12530_v39 = vld [vmem:[%s14451_s5 + $0x248] sm:$0xf0]  ;;  %v9959_v15 = vor.u32 %v12520_v47, %v9956_v20  ;;  %v10115_v47 = vor.u32 %v12559_v52, %v10112_v56 }
 0x973   :  { %v10027_v53 = vor.u32 %v12539_v12, %v10026_v40  ;;  %v10111_v40 = vor.u32 %v12560_v23, %v10110_v62  ;;  %v9971_v12 = vor.u32 %v12523_v63, %v9968_v8  ;;  %v12574_v62 = vld [vmem:[%s14451_s5 + $0x3ac] sm:$0xf]  ;;  %v10172_v23 = vld [vmem:[%s14451_s5 + $0x3b4] sm:$0xf0]  ;;  %v10062_v63 = vld [vmem:[%s14451_s5 + $0x2d0] sm:$0xf] }
 0x974   :  { %v12548_v8 = vld [vmem:[%s14451_s5 + $0x2d8] sm:$0xf0]  ;;  %v10050_v20 = vld [vmem:[%s14451_s5 + $0x2b8] sm:$0xf] }
 0x975   :  { %v2778_v1 = vpop.f32.mrf.mxu2 }
 0x976   :  { %v14622_v7 = vadd.f32 %v2778_v1, %v2635_v26  ;;  %v12533_v1 = vld [vmem:[%s14451_s5 + $0x260] sm:$0xf0] }
 0x977   :  { %v2752_v31 = vpop.f32.mrf.mxu1 }
 0x978   :  { %v14609_v10 = vadd.f32 %v2752_v31, %v2636_v35  ;;  %v2791_v27 = vmax.f32 %v14622_v7, 0.0  ;;  %v9995_v35 = vor.u32 %v12529_v19, %v9992_v44  ;;  %v10122_v31 = vld [vmem:[%s14451_s5 + $0x348] sm:$0xf]  ;;  %v9967_v19 = vor.u32 %v12524_v48, %v9966_v38  ;;  %v12517_v44 = vld [vmem:[%s14451_s5 + $0x1e4] sm:$0xf] }
 0x979   :  { %v10123_v26 = vor.u32 %v12563_v25, %v10122_v31  ;;  %v10074_v31 = vld [vmem:[%s14451_s5 + $0x2e8] sm:$0xf]  ;;  %v12551_v25 = vld [vmem:[%s14451_s5 + $0x2f0] sm:$0xf0]  ;;  %v12545_v38 = vld [vmem:[%s14451_s5 + $0x2c0] sm:$0xf0] }
 0x97a   :  { %v2792_v28 = vmax.f32 %v14609_v10, 0.0  ;;  %v12670_v10 = vld [vmem:[%s14970_s13 + $0x104] sm:$0xf]  ;;  %v11039_v7 = vld [vmem:[%s14970_s13 + $0x370] sm:$0xf] }
 0x97c   :  { %v14628_v24 = vpack.c.bf16 %v2792_v28, %v2789_v22 }
 0x97d   :  { %v2780_v43 = vpop.f32.mrf.mxu2 }
 0x97e   :  { %v14634_v13 = vadd.f32 %v2780_v43, %v2638_v55  ;;  %3210 = vmatmul.bf16.vlgmr.msrb.gmra.mxu3 %v14628_v24  ;;  %3252 = vmatmul.bf16.vlgmr.msrb.gmra.mxu2 %v14628_v24  ;;  %v9991_v55 = vor.u32 %v12530_v39, %v9990_v42  ;;  %v12527_v43 = vld [vmem:[%s14451_s5 + $0x230] sm:$0xf0]  ;;  %v12573_v39 = vld [vmem:[%s14451_s5 + $0x3a0] sm:$0xf0] }
 0x97f   :  { %3771 = vmatpush.bf16.msrb.mxu2 %v10031_v11  ;;  %v2764_v50 = vpop.f32.mrf.mxu1  ;;  %3318 = vmatpush.bf16.msrb.mxu3 %v9856_v5  ;;  %v9983_v5 = vor.u32 %v12526_v2, %v9980_v58  ;;  %v12562_v58 = vld [vmem:[%s14451_s5 + $0x34c] sm:$0xf] }
 0x980   :  { %v2794_v34 = vmax.f32 %v14634_v13, 0.0  ;;  %v14665_v30 = vadd.f32 %v2764_v50, %v14444_v60  ;;  %v10003_v60 = vor.u32 %v12533_v1, %v10002_v46  ;;  %v10098_v50 = vld [vmem:[%s14451_s5 + $0x318] sm:$0xf]  ;;  %v12521_v46 = vld [vmem:[%s14451_s5 + $0x200] sm:$0xf0] }
 0x982   :  { %v14652_v33 = vpack.c.bf16 %v2794_v34, %v2791_v27  ;;  %v2790_v21 = vmax.f32 %v14665_v30, 0.0 }
 0x983   :  { %3772 = vmatpush.bf16.msrb.mxu2 %v10019_v4  ;;  %3319 = vmatpush.bf16.msrb.mxu3 %v9844_v49  ;;  %v12557_v4 = vld [vmem:[%s14451_s5 + $0x320] sm:$0xf0]  ;;  %v9979_v49 = vor.u32 %v12527_v43, %v9978_v57  ;;  %v10167_v57 = vor.u32 %v12573_v39, %v10166_v6  ;;  %v10136_v6 = vld [vmem:[%s14451_s5 + $0x36c] sm:$0xf0] }
 0x984   :  { %9857 = vmatmul.msk.bf16.vlgmr.msrb.gmra.mxu1 %vm3198_vm5, %v14652_v33  ;;  %v10099_v29 = vor.u32 %v12557_v4, %v10098_v50  ;;  %v12570_v50 = vld [vmem:[%s14451_s5 + $0x388] sm:$0xf0]  ;;  %v10063_v4 = vor.u32 %v12548_v8, %v10062_v63  ;;  %v10022_v63 = vld [vmem:[%s14451_s5 + $0x278] sm:$0xf]  ;;  %v12537_v8 = vld [vmem:[%s14451_s5 + $0x280] sm:$0xf0] }
 0x985   :  { %3729 = vmatpush.bf16.msrb.mxu1 %v10027_v53  ;;  %v10146_v53 = vld [vmem:[%s14451_s5 + $0x378] sm:$0xf] }
 0x986   :  { %v10147_v14 = vor.u32 %v12569_v59, %v10146_v53  ;;  %v12556_v53 = vld [vmem:[%s14451_s5 + $0x31c] sm:$0xf]  ;;  %v10100_v59 = vld [vmem:[%s14451_s5 + $0x324] sm:$0xf0] }
 0x987   :  { %3773 = vmatpush.bf16.msrb.mxu2 %v10007_v9  ;;  %v2766_v45 = vpop.f32.mrf.mxu1  ;;  %3320 = vmatpush.bf16.msrb.mxu3 %v9832_v18  ;;  %v10086_v9 = vld [vmem:[%s14451_s5 + $0x300] sm:$0xf]  ;;  %v12554_v18 = vld [vmem:[%s14451_s5 + $0x308] sm:$0xf0] }
 0x988   :  { %v14669_v0 = vadd.f32 %v2766_v45, %v2637_v32  ;;  %v9954_v32 = vld [vmem:[%s14451_s5 + $0x1f8] sm:$0xf]  ;;  %v10087_v1 = vor.u32 %v12554_v18, %v10086_v9  ;;  %v10134_v45 = vld [vmem:[%s14451_s5 + $0x360] sm:$0xf]  ;;  %v12567_v9 = vld [vmem:[%s14451_s5 + $0x370] sm:$0xf0] }
 0x989   :  { %3730 = vmatpush.bf16.msrb.mxu1 %v10015_v51  ;;  %v12576_v51 = vld [vmem:[%s14451_s5 + $0x3b8] sm:$0xf0]  ;;  %v10445_v18 = vld [vmem:[%s14451_s5 + $0x528] sm:$0xf] }
 0x98a   :  { %v2793_v17 = vmax.f32 %v14669_v0, 0.0  ;;  %v10179_v2 = vor.u32 %v12576_v51, %v10178_v37  ;;  %v10103_v37 = vor.u32 %v12556_v53, %v10100_v59  ;;  %v10038_v51 = vld [vmem:[%s14451_s5 + $0x2a0] sm:$0xf]  ;;  %v12714_v0 = vld [vmem:[%s14970_s13 + $0x264] sm:$0xf] }
 0x98b   :  { %3774 = vmatpush.bf16.msrb.mxu2 %v9995_v35  ;;  %3321 = vmatpush.bf16.msrb.mxu3 %v9820_v61  ;;  %v12566_v35 = vld [vmem:[%s14451_s5 + $0x368] sm:$0xf0]  ;;  %v9947_v61 = vor.u32 %v12517_v44, %v9944_v16  ;;  %v12568_v44 = vld [vmem:[%s14451_s5 + $0x37c] sm:$0xf]  ;;  %v10148_v16 = vld [vmem:[%s14451_s5 + $0x384] sm:$0xf0] }
 0x98c   :  { %v14685_v11 = vpack.c.bf16 %v2793_v17, %v2790_v21  ;;  %v10135_v42 = vor.u32 %v12566_v35, %v10134_v45  ;;  %v10088_v45 = vld [vmem:[%s14451_s5 + $0x30c] sm:$0xf0] }
 0x98d   :  { %3731 = vmatpush.bf16.msrb.mxu1 %v10003_v60  ;;  %v9955_v60 = vor.u32 %v12521_v46, %v9954_v32  ;;  %v12542_v32 = vld [vmem:[%s14451_s5 + $0x2a8] sm:$0xf0]  ;;  %v12553_v46 = vld [vmem:[%s14451_s5 + $0x304] sm:$0xf]  ;;  %v10034_v35 = vld [vmem:[%s14451_s5 + $0x290] sm:$0xf] }
 0x98e   :  { %3224 = vmatmul.bf16.vlgmr.msrb.gmra.mxu0 %v14685_v11  ;;  %9858 = vmatmul.msk.bf16.vlgmr.msra.gmra.mxu3 %vm3198_vm5, %v14652_v33 }
 0x98f   :  { %3308 = vmatmul.bf16.vlgmr.msra.gmra.mxu2 %v14685_v11  ;;  %3743 = vmatpush.bf16.msra.mxu3 %v10123_v26  ;;  %v9942_v26 = vld [vmem:[%s14451_s5 + $0x1e0] sm:$0xf] }
 0x990   :  { %3775 = vmatpush.bf16.msrb.mxu2 %v9983_v5  ;;  %3761 = vmatpush.bf16.msrb.mxu0 %v10171_v36  ;;  %v12518_v5 = vld [vmem:[%s14451_s5 + $0x1e8] sm:$0xf0]  ;;  %v10075_v36 = vor.u32 %v12551_v25, %v10074_v31  ;;  %v10151_v25 = vor.u32 %v12568_v44, %v10148_v16  ;;  %v9998_v44 = vld [vmem:[%s14451_s5 + $0x248] sm:$0xf]  ;;  %v12531_v16 = vld [vmem:[%s14451_s5 + $0x250] sm:$0xf0] }
 0x991   :  { %3732 = vmatpush.bf16.msrb.mxu1 %v9991_v55  ;;  %v10127_v55 = vor.u32 %v12562_v58, %v10124_v41  ;;  %v9943_v43 = vor.u32 %v12518_v5, %v9942_v26  ;;  %v12620_v58 = vld [vmem:[%s14451_s5 + $0x518] sm:$0xf0]  ;;  %v12565_v41 = vld [vmem:[%s14451_s5 + $0x364] sm:$0xf]  ;;  %v12550_v26 = vld [vmem:[%s14451_s5 + $0x2ec] sm:$0xf] }
 0x992   :  { %v10076_v5 = vld [vmem:[%s14451_s5 + $0x2f4] sm:$0xf0] }
 0x993   :  { %3744 = vmatpush.bf16.msra.mxu3 %v10111_v40  ;;  %v10175_v40 = vor.u32 %v12574_v62, %v10172_v23  ;;  %v12564_v62 = vld [vmem:[%s14451_s5 + $0x358] sm:$0xf0]  ;;  %v10079_v52 = vor.u32 %v12550_v26, %v10076_v5 }
 0x994   :  { %3776 = vmatpush.bf16.msrb.mxu2 %v9971_v12  ;;  %3266 = vmatmul.bf16.vlgmr.msra.gmra.mxu1 %v14685_v11  ;;  %v10154_v12 = vld [vmem:[%s14451_s5 + $0x380] sm:$0xf] }
 0x995   :  { %3733 = vmatpush.bf16.msrb.mxu1 %v9979_v49  ;;  %3762 = vmatpush.bf16.msrb.mxu0 %v10159_v3  ;;  %v12571_v49 = vld [vmem:[%s14451_s5 + $0x394] sm:$0xf]  ;;  %v10160_v3 = vld [vmem:[%s14451_s5 + $0x39c] sm:$0xf0]  ;;  %v10155_v48 = vor.u32 %v12570_v50, %v10154_v12  ;;  %v10023_v12 = vor.u32 %v12537_v8, %v10022_v63  ;;  %v12525_v8 = vld [vmem:[%s14451_s5 + $0x220] sm:$0xf0] }
 0x996   :  { %v10064_v50 = vld [vmem:[%s14451_s5 + $0x2dc] sm:$0xf0] }
 0x997   :  { %3745 = vmatpush.bf16.msra.mxu3 %v10099_v29  ;;  %v10163_v29 = vor.u32 %v12571_v49, %v10160_v3  ;;  %v12561_v49 = vld [vmem:[%s14451_s5 + $0x340] sm:$0xf0] }
 0x998   :  { %3777 = vmatpush.bf16.msrb.mxu2 %v9959_v15  ;;  %v10142_v15 = vld [vmem:[%s14451_s5 + $0x368] sm:$0xf] }
 0x999   :  { %3734 = vmatpush.bf16.msrb.mxu1 %v9967_v19  ;;  %3763 = vmatpush.bf16.msrb.mxu0 %v10147_v14  ;;  %v10051_v19 = vor.u32 %v12545_v38, %v10050_v20  ;;  %v12623_v14 = vld [vmem:[%s14451_s5 + $0x530] sm:$0xf0]  ;;  %v12534_v20 = vld [vmem:[%s14451_s5 + $0x268] sm:$0xf0]  ;;  %v10409_v38 = vld [vmem:[%s14451_s5 + $0x4e0] sm:$0xf] }
 0x99a   :  { %v10446_v31 = vor.u32 %v12623_v14, %v10445_v18  ;;  %v10106_v18 = vld [vmem:[%s14451_s5 + $0x320] sm:$0xf] }
 0x99b   :  { %3746 = vmatpush.bf16.msra.mxu3 %v10087_v1  ;;  %v10143_v1 = vor.u32 %v12567_v9, %v10142_v15  ;;  %v10052_v9 = vld [vmem:[%s14451_s5 + $0x2c4] sm:$0xf0] }
 0x99c   :  { %3778 = vmatpush.bf16.msrb.mxu2 %v9947_v61  ;;  %v12540_v61 = vld [vmem:[%s14451_s5 + $0x298] sm:$0xf0] }
 0x99d   :  { %3735 = vmatpush.bf16.msrb.mxu1 %v9955_v60  ;;  %3764 = vmatpush.bf16.msrb.mxu0 %v10135_v42  ;;  %v10039_v60 = vor.u32 %v12542_v32, %v10038_v51  ;;  %v10091_v42 = vor.u32 %v12553_v46, %v10088_v45  ;;  %v10035_v39 = vor.u32 %v12540_v61, %v10034_v35  ;;  %v12611_v51 = vld [vmem:[%s14451_s5 + $0x4d0] sm:$0xf0]  ;;  %v10040_v45 = vld [vmem:[%s14451_s5 + $0x2ac] sm:$0xf0]  ;;  %v10094_v61 = vld [vmem:[%s14451_s5 + $0x308] sm:$0xf] }
 0x99e   :  { %9859 = vmatmul.msk.bf16.vlgmr.msrb.gmra.mxu3 %vm3198_vm5, %v14652_v33  ;;  %3294 = vmatmul.bf16.vlgmr.msra.gmra.mxu0 %v14628_v24  ;;  %v9999_v35 = vor.u32 %v12531_v16, %v9998_v44  ;;  %v12546_v44 = vld [vmem:[%s14451_s5 + $0x2c8] sm:$0xf0]  ;;  %v9950_v16 = vld [vmem:[%s14451_s5 + $0x1e8] sm:$0xf] }
 0x99f   :  { %3747 = vmatpush.bf16.msra.mxu3 %v10075_v36  ;;  %3779 = vmatmul.bf16.vlgmr.msrb.gmra.mxu2 %v14628_v24  ;;  %v10130_v36 = vld [vmem:[%s14451_s5 + $0x350] sm:$0xf] }
 0x9a0   :  { %3845 = vmatpush.bf16.msra.mxu2 %v10179_v2  ;;  %v10433_v2 = vld [vmem:[%s14451_s5 + $0x510] sm:$0xf]  ;;  %v10131_v56 = vor.u32 %v12564_v62, %v10130_v36 }
 0x9a1   :  { %3785 = vmatpush.bf16.msra.mxu0 %v10127_v55  ;;  %3736 = vmatpush.bf16.msrb.mxu1 %v9943_v43  ;;  %v10434_v23 = vor.u32 %v12620_v58, %v10433_v2  ;;  %v10139_v55 = vor.u32 %v12565_v41, %v10136_v6  ;;  %v12617_v43 = vld [vmem:[%s14451_s5 + $0x500] sm:$0xf0]  ;;  %v10349_v58 = vld [vmem:[%s14451_s5 + $0x468] sm:$0xf]  ;;  %v12599_v41 = vld [vmem:[%s14451_s5 + $0x470] sm:$0xf0] }
 0x9a2   :  { %v10385_v6 = vld [vmem:[%s14451_s5 + $0x4b0] sm:$0xf]  ;;  %v10350_v36 = vor.u32 %v12599_v41, %v10349_v58  ;;  %v10046_v58 = vld [vmem:[%s14451_s5 + $0x2a8] sm:$0xf]  ;;  %v12543_v41 = vld [vmem:[%s14451_s5 + $0x2b0] sm:$0xf0] }
 0x9a3   :  { %3748 = vmatpush.bf16.msra.mxu3 %v10063_v4  ;;  %v10118_v4 = vld [vmem:[%s14451_s5 + $0x338] sm:$0xf]  ;;  %v10082_v62 = vld [vmem:[%s14451_s5 + $0x2f0] sm:$0xf] }
 0x9a4   :  { %3846 = vmatpush.bf16.msra.mxu2 %v10167_v57  ;;  %3737 = vmatmul.bf16.vlgmr.msrb.gmra.mxu1 %v14628_v24  ;;  %v10421_v57 = vld [vmem:[%s14451_s5 + $0x4f8] sm:$0xf]  ;;  %v10119_v59 = vor.u32 %v12561_v49, %v10118_v4  ;;  %v12549_v49 = vld [vmem:[%s14451_s5 + $0x2e0] sm:$0xf0] }
 0x9a5   :  { %3803 = vmatpush.bf16.msra.mxu1 %v10175_v40  ;;  %3786 = vmatpush.bf16.msra.mxu0 %v10115_v47  ;;  %v12547_v40 = vld [vmem:[%s14451_s5 + $0x2d4] sm:$0xf]  ;;  %v10422_v3 = vor.u32 %v12617_v43, %v10421_v57  ;;  %v10010_v47 = vld [vmem:[%s14451_s5 + $0x260] sm:$0xf]  ;;  %v10337_v57 = vld [vmem:[%s14451_s5 + $0x450] sm:$0xf] }
 0x9a6   :  { %v10067_v53 = vor.u32 %v12547_v40, %v10064_v50  ;;  %v10011_v15 = vor.u32 %v12534_v20, %v10010_v47  ;;  %v12596_v43 = vld [vmem:[%s14451_s5 + $0x458] sm:$0xf0]  ;;  %v10070_v4 = vld [vmem:[%s14451_s5 + $0x2d8] sm:$0xf]  ;;  %v12522_v20 = vld [vmem:[%s14451_s5 + $0x208] sm:$0xf0] }
 0x9a7   :  { %3749 = vmatpush.bf16.msra.mxu3 %v10051_v19  ;;  %v12558_v19 = vld [vmem:[%s14451_s5 + $0x328] sm:$0xf0]  ;;  %v10338_v50 = vor.u32 %v12596_v43, %v10337_v57 }
 0x9a8   :  { %3847 = vmatpush.bf16.msra.mxu2 %v10155_v48  ;;  %v12614_v48 = vld [vmem:[%s14451_s5 + $0x4e8] sm:$0xf0]  ;;  %v10107_v46 = vor.u32 %v12558_v19, %v10106_v18 }
 0x9a9   :  { %3804 = vmatpush.bf16.msra.mxu1 %v10163_v29  ;;  %3787 = vmatpush.bf16.msra.mxu0 %v10103_v37  ;;  %v12544_v29 = vld [vmem:[%s14451_s5 + $0x2bc] sm:$0xf]  ;;  %v10410_v14 = vor.u32 %v12614_v48, %v10409_v38  ;;  %v10397_v37 = vld [vmem:[%s14451_s5 + $0x4c8] sm:$0xf]  ;;  %v10325_v38 = vld [vmem:[%s14451_s5 + $0x438] sm:$0xf] }
 0x9aa   :  { %v10055_v32 = vor.u32 %v12544_v29, %v10052_v9  ;;  %v10398_v2 = vor.u32 %v12611_v51, %v10397_v37  ;;  %v12593_v48 = vld [vmem:[%s14451_s5 + $0x440] sm:$0xf0]  ;;  %v10071_v29 = vor.u32 %v12549_v49, %v10070_v4  ;;  %v12600_v9 = vld [vmem:[%s14451_s5 + $0x478] sm:$0xf0]  ;;  %v12519_v51 = vld [vmem:[%s14451_s5 + $0x1f0] sm:$0xf0] }
 0x9ab   :  { %3750 = vmatpush.bf16.msra.mxu3 %v10039_v60  ;;  %v12528_v60 = vld [vmem:[%s14451_s5 + $0x238] sm:$0xf0]  ;;  %v10326_v19 = vor.u32 %v12593_v48, %v10325_v38  ;;  %v10469_v49 = vld [vmem:[%s14451_s5 + $0x558] sm:$0xf] }
 0x9ac   :  { %3848 = vmatpush.bf16.msra.mxu2 %v10143_v1  ;;  %v12541_v1 = vld [vmem:[%s14451_s5 + $0x2a4] sm:$0xf] }
 0x9ad   :  { %3805 = vmatpush.bf16.msra.mxu1 %v10151_v25  ;;  %3788 = vmatpush.bf16.msra.mxu0 %v10091_v42  ;;  %v9986_v25 = vld [vmem:[%s14451_s5 + $0x230] sm:$0xf]  ;;  %v12608_v42 = vld [vmem:[%s14451_s5 + $0x4b8] sm:$0xf0] }
 0x9ae   :  { %3751 = vmatmul.bf16.vlgmr.msra.gmra.mxu3 %v14685_v11  ;;  %10180 = vmatmul.msk.bf16.vlgmr.msrb.gmra.mxu0 %vm3198_vm5, %v14652_v33  ;;  %v9987_v5 = vor.u32 %v12528_v60, %v9986_v25  ;;  %v10386_v63 = vor.u32 %v12608_v42, %v10385_v6  ;;  %v12597_v25 = vld [vmem:[%s14451_s5 + $0x460] sm:$0xf0]  ;;  %v10301_v6 = vld [vmem:[%s14451_s5 + $0x408] sm:$0xf] }
 0x9af   :  { %3813 = vmatpush.bf16.msrb.mxu3 %v10035_v39  ;;  %10182 = vmatmul.msk.bf16.vlgmr.msra.gmra.mxu2 %vm3198_vm5, %v14652_v33  ;;  %v10043_v39 = vor.u32 %v12541_v1, %v10040_v45  ;;  %v10493_v45 = vld [vmem:[%s14451_s5 + $0x588] sm:$0xf] }
 0x9b0   :  { %4270 = vmatpush.bf16.msrb.mxu2 %v10446_v31  ;;  %v12555_v31 = vld [vmem:[%s14451_s5 + $0x310] sm:$0xf0] }
 0x9b1   :  { %3806 = vmatpush.bf16.msra.mxu1 %v10139_v55  ;;  %3789 = vmatpush.bf16.msra.mxu0 %v10079_v52  ;;  %v10095_v26 = vor.u32 %v12555_v31, %v10094_v61  ;;  %v9974_v55 = vld [vmem:[%s14451_s5 + $0x218] sm:$0xf] }
 0x9b2   :  { %v10373_v52 = vld [vmem:[%s14451_s5 + $0x498] sm:$0xf] }
 0x9b3   :  { %3814 = vmatpush.bf16.msrb.mxu3 %v10023_v12  ;;  %v9975_v12 = vor.u32 %v12525_v8, %v9974_v55  ;;  %v10345_v31 = vld [vmem:[%s14451_s5 + $0x458] sm:$0xf]  ;;  %v10047_v55 = vor.u32 %v12543_v41, %v10046_v58  ;;  %v12594_v8 = vld [vmem:[%s14451_s5 + $0x448] sm:$0xf0]  ;;  %v12619_v41 = vld [vmem:[%s14451_s5 + $0x514] sm:$0xf] }
 0x9b4   :  { %4271 = vmatpush.bf16.msrb.mxu2 %v10434_v23  ;;  %10181 = vmatmul.msk.bf16.vlgmr.msra.gmra.mxu1 %vm3198_vm5, %v14652_v33  ;;  %v12552_v23 = vld [vmem:[%s14451_s5 + $0x2f8] sm:$0xf0]  ;;  %v10495_v58 = vld [vmem:[%s14451_s5 + $0x594] sm:$0xf0] }
 0x9b5   :  { %3827 = vmatpush.bf16.msrb.mxu1 %v10131_v56  ;;  %3790 = vmatpush.bf16.msra.mxu0 %v10067_v53  ;;  %v12605_v56 = vld [vmem:[%s14451_s5 + $0x4a0] sm:$0xf0]  ;;  %v10083_v40 = vor.u32 %v12552_v23, %v10082_v62  ;;  %v10361_v53 = vld [vmem:[%s14451_s5 + $0x480] sm:$0xf]  ;;  %v10481_v62 = vld [vmem:[%s14451_s5 + $0x570] sm:$0xf] }
 0x9b6   :  { %v10374_v47 = vor.u32 %v12605_v56, %v10373_v52  ;;  %v12632_v23 = vld [vmem:[%s14451_s5 + $0x578] sm:$0xf0]  ;;  %v10289_v52 = vld [vmem:[%s14451_s5 + $0x3f0] sm:$0xf] }
 0x9b7   :  { %3815 = vmatpush.bf16.msrb.mxu3 %v10011_v15  ;;  %v10357_v15 = vld [vmem:[%s14451_s5 + $0x470] sm:$0xf]  ;;  %v10482_v56 = vor.u32 %v12632_v23, %v10481_v62  ;;  %v12586_v62 = vld [vmem:[%s14451_s5 + $0x40c] sm:$0xf]  ;;  %v10303_v23 = vld [vmem:[%s14451_s5 + $0x414] sm:$0xf0] }
 0x9b8   :  { %4272 = vmatpush.bf16.msrb.mxu2 %v10422_v3  ;;  %v9962_v3 = vld [vmem:[%s14451_s5 + $0x200] sm:$0xf]  ;;  %v10358_v1 = vor.u32 %v12600_v9, %v10357_v15  ;;  %v12592_v15 = vld [vmem:[%s14451_s5 + $0x43c] sm:$0xf]  ;;  %v10327_v9 = vld [vmem:[%s14451_s5 + $0x444] sm:$0xf0] }
 0x9b9   :  { %3828 = vmatpush.bf16.msrb.mxu1 %v10119_v59  ;;  %3791 = vmatpush.bf16.msra.mxu0 %v10055_v32  ;;  %v12602_v59 = vld [vmem:[%s14451_s5 + $0x488] sm:$0xf0]  ;;  %v9963_v18 = vor.u32 %v12522_v20, %v9962_v3  ;;  %v10313_v32 = vld [vmem:[%s14451_s5 + $0x420] sm:$0xf]  ;;  %v12629_v3 = vld [vmem:[%s14451_s5 + $0x560] sm:$0xf0] }
 0x9ba   :  { %v10362_v37 = vor.u32 %v12602_v59, %v10361_v53  ;;  %v12591_v20 = vld [vmem:[%s14451_s5 + $0x430] sm:$0xf0]  ;;  %v10277_v53 = vld [vmem:[%s14451_s5 + $0x3d8] sm:$0xf]  ;;  %v10470_v59 = vor.u32 %v12629_v3, %v10469_v49  ;;  %v10291_v49 = vld [vmem:[%s14451_s5 + $0x3fc] sm:$0xf0] }
 0x9bb   :  { %3816 = vmatpush.bf16.msrb.mxu3 %v9999_v35  ;;  %v12635_v35 = vld [vmem:[%s14451_s5 + $0x590] sm:$0xf0] }
 0x9bc   :  { %4273 = vmatpush.bf16.msrb.mxu2 %v10410_v14  ;;  %v10058_v14 = vld [vmem:[%s14451_s5 + $0x2c0] sm:$0xf]  ;;  %v10494_v42 = vor.u32 %v12635_v35, %v10493_v45  ;;  %v12578_v35 = vld [vmem:[%s14451_s5 + $0x3c8] sm:$0xf0] }
 0x9bd   :  { %3829 = vmatpush.bf16.msrb.mxu1 %v10107_v46  ;;  %3792 = vmatpush.bf16.msra.mxu0 %v10043_v39  ;;  %v12590_v46 = vld [vmem:[%s14451_s5 + $0x428] sm:$0xf0]  ;;  %v10059_v61 = vor.u32 %v12546_v44, %v10058_v14  ;;  %v12587_v39 = vld [vmem:[%s14451_s5 + $0x410] sm:$0xf0] }
 0x9be   :  { %v10314_v60 = vor.u32 %v12590_v46, %v10313_v32  ;;  %v10302_v57 = vor.u32 %v12587_v39, %v10301_v6  ;;  %v12626_v14 = vld [vmem:[%s14451_s5 + $0x548] sm:$0xf0]  ;;  %v10330_v46 = vor.u32 %v12592_v15, %v10327_v9  ;;  %v10435_v6 = vld [vmem:[%s14451_s5 + $0x51c] sm:$0xf0]  ;;  %v12585_v39 = vld [vmem:[%s14451_s5 + $0x400] sm:$0xf0] }
 0x9bf   :  { %3817 = vmatpush.bf16.msrb.mxu3 %v9987_v5  ;;  %v10351_v5 = vld [vmem:[%s14451_s5 + $0x474] sm:$0xf0]  ;;  %v12622_v44 = vld [vmem:[%s14451_s5 + $0x52c] sm:$0xf] }
 0x9c0   :  { %4274 = vmatpush.bf16.msrb.mxu2 %v10398_v2  ;;  %3793 = vmatmul.bf16.vlgmr.msra.gmra.mxu0 %v14685_v11  ;;  %v9951_v2 = vor.u32 %v12519_v51, %v9950_v16  ;;  %v10447_v16 = vld [vmem:[%s14451_s5 + $0x534] sm:$0xf0]  ;;  %v12588_v51 = vld [vmem:[%s14451_s5 + $0x418] sm:$0xf0] }
 0x9c1   :  { %3830 = vmatpush.bf16.msrb.mxu1 %v10095_v26  ;;  %4256 = vmatpush.bf16.msrb.mxu0 %v10350_v36  ;;  %v12598_v26 = vld [vmem:[%s14451_s5 + $0x46c] sm:$0xf]  ;;  %v10346_v36 = vor.u32 %v12597_v25, %v10345_v31  ;;  %v10315_v31 = vld [vmem:[%s14451_s5 + $0x42c] sm:$0xf0]  ;;  %v10450_v25 = vor.u32 %v12622_v44, %v10447_v16  ;;  %v12625_v16 = vld [vmem:[%s14451_s5 + $0x544] sm:$0xf] }
 0x9c2   :  { %v10354_v43 = vor.u32 %v12598_v26, %v10351_v5 }
 0x9c3   :  { %3818 = vmatpush.bf16.msrb.mxu3 %v9975_v12  ;;  %v12595_v12 = vld [vmem:[%s14451_s5 + $0x454] sm:$0xf] }
 0x9c4   :  { %4275 = vmatpush.bf16.msrb.mxu2 %v10386_v63  ;;  %v10333_v63 = vld [vmem:[%s14451_s5 + $0x440] sm:$0xf] }
 0x9c5   :  { %3831 = vmatpush.bf16.msrb.mxu1 %v10083_v40  ;;  %4257 = vmatpush.bf16.msrb.mxu0 %v10338_v50  ;;  %v12584_v40 = vld [vmem:[%s14451_s5 + $0x3f8] sm:$0xf0]  ;;  %v10339_v50 = vld [vmem:[%s14451_s5 + $0x45c] sm:$0xf0]  ;;  %v10334_v4 = vor.u32 %v12594_v8, %v10333_v63  ;;  %v12631_v8 = vld [vmem:[%s14451_s5 + $0x574] sm:$0xf] }
 0x9c6   :  { %v10290_v38 = vor.u32 %v12584_v40, %v10289_v52  ;;  %v10342_v48 = vor.u32 %v12595_v12, %v10339_v50  ;;  %v10423_v52 = vld [vmem:[%s14451_s5 + $0x504] sm:$0xf0]  ;;  %v12582_v40 = vld [vmem:[%s14451_s5 + $0x3e8] sm:$0xf0]  ;;  %v10306_v12 = vor.u32 %v12586_v62, %v10303_v23  ;;  %v12604_v23 = vld [vmem:[%s14451_s5 + $0x49c] sm:$0xf] }
 0x9c7   :  { %3819 = vmatpush.bf16.msrb.mxu3 %v9963_v18 }
 0x9c8   :  { %4276 = vmatpush.bf16.msrb.mxu2 %v10374_v47  ;;  %v10321_v47 = vld [vmem:[%s14451_s5 + $0x428] sm:$0xf] }
 0x9c9   :  { %3832 = vmatpush.bf16.msrb.mxu1 %v10071_v29  ;;  %4258 = vmatpush.bf16.msrb.mxu0 %v10326_v19  ;;  %v12581_v29 = vld [vmem:[%s14451_s5 + $0x3e0] sm:$0xf0]  ;;  %v10322_v18 = vor.u32 %v12591_v20, %v10321_v47  ;;  %v10457_v19 = vld [vmem:[%s14451_s5 + $0x540] sm:$0xf]  ;;  %v12628_v20 = vld [vmem:[%s14451_s5 + $0x55c] sm:$0xf] }
 0x9ca   :  { %v10278_v32 = vor.u32 %v12581_v29, %v10277_v53  ;;  %v10458_v45 = vor.u32 %v12626_v14, %v10457_v19  ;;  %v10411_v53 = vld [vmem:[%s14451_s5 + $0x4ec] sm:$0xf0]  ;;  %v12579_v29 = vld [vmem:[%s14451_s5 + $0x3d0] sm:$0xf0]  ;;  %v10279_v19 = vld [vmem:[%s14451_s5 + $0x3e4] sm:$0xf0] }
 0x9cb   :  { %3820 = vmatpush.bf16.msrb.mxu3 %v9951_v2 }
 0x9cc   :  { %4277 = vmatpush.bf16.msrb.mxu2 %v10362_v37  ;;  %v10309_v37 = vld [vmem:[%s14451_s5 + $0x410] sm:$0xf] }
 0x9cd   :  { %3833 = vmatpush.bf16.msrb.mxu1 %v10059_v61  ;;  %4259 = vmatpush.bf16.msrb.mxu0 %v10314_v60  ;;  %v12589_v61 = vld [vmem:[%s14451_s5 + $0x424] sm:$0xf]  ;;  %v10310_v2 = vor.u32 %v12588_v51, %v10309_v37  ;;  %v12634_v60 = vld [vmem:[%s14451_s5 + $0x58c] sm:$0xf]  ;;  %v10459_v37 = vld [vmem:[%s14451_s5 + $0x54c] sm:$0xf0] }
 0x9ce   :  { %3821 = vmatmul.bf16.vlgmr.msrb.gmra.mxu3 %v14628_v24  ;;  %v10318_v5 = vor.u32 %v12589_v61, %v10315_v31  ;;  %v12610_v51 = vld [vmem:[%s14451_s5 + $0x4cc] sm:$0xf]  ;;  %v12577_v61 = vld [vmem:[%s14451_s5 + $0x3c4] sm:$0xf]  ;;  %v10267_v31 = vld [vmem:[%s14451_s5 + $0x3cc] sm:$0xf0] }
 0x9cf   :  { %4278 = vmatmul.bf16.vlgmr.msrb.gmra.mxu2 %v14685_v11  ;;  %4288 = vmatpush.bf16.msra.mxu3 %v10494_v42  ;;  %v10297_v42 = vld [vmem:[%s14451_s5 + $0x3f8] sm:$0xf] }
 0x9d0   :  { %4340 = vmatpush.bf16.msra.mxu2 %v10358_v1  ;;  %v10265_v1 = vld [vmem:[%s14451_s5 + $0x3c0] sm:$0xf]  ;;  %v10298_v63 = vor.u32 %v12585_v39, %v10297_v42  ;;  %v10441_v42 = vld [vmem:[%s14451_s5 + $0x518] sm:$0xf]  ;;  %v12621_v39 = vld [vmem:[%s14451_s5 + $0x520] sm:$0xf0] }
 0x9d1   :  { %3834 = vmatpush.bf16.msrb.mxu1 %v10047_v55  ;;  %4260 = vmatpush.bf16.msrb.mxu0 %v10302_v57  ;;  %v10266_v26 = vor.u32 %v12578_v35, %v10265_v1  ;;  %v10438_v55 = vor.u32 %v12619_v41, %v10435_v6  ;;  %v10483_v57 = vld [vmem:[%s14451_s5 + $0x57c] sm:$0xf0]  ;;  %v12624_v1 = vld [vmem:[%s14451_s5 + $0x538] sm:$0xf0]  ;;  %v10462_v35 = vor.u32 %v12625_v16, %v10459_v37  ;;  %v12606_v16 = vld [vmem:[%s14451_s5 + $0x4a8] sm:$0xf0] }
 0x9d2   :  { %v10486_v50 = vor.u32 %v12631_v8, %v10483_v57  ;;  %v12636_v41 = vld [vmem:[%s14451_s5 + $0x598] sm:$0xf0]  ;;  %v10387_v6 = vld [vmem:[%s14451_s5 + $0x4bc] sm:$0xf0]  ;;  %v10442_v62 = vor.u32 %v12621_v39, %v10441_v42  ;;  %v10375_v8 = vld [vmem:[%s14451_s5 + $0x4a4] sm:$0xf0] }
 0x9d3   :  { %4289 = vmatpush.bf16.msra.mxu3 %v10482_v56  ;;  %v10285_v56 = vld [vmem:[%s14451_s5 + $0x3e0] sm:$0xf] }
 0x9d4   :  { %4341 = vmatpush.bf16.msra.mxu2 %v10346_v36  ;;  %3835 = vmatmul.bf16.vlgmr.msrb.gmra.mxu1 %v14685_v11  ;;  %v10498_v36 = vor.u32 %v12634_v60, %v10495_v58  ;;  %v10286_v47 = vor.u32 %v12582_v40, %v10285_v56  ;;  %v12607_v60 = vld [vmem:[%s14451_s5 + $0x4b4] sm:$0xf]  ;;  %v10501_v58 = vld [vmem:[%s14451_s5 + $0x590] sm:$0xf]  ;;  %v10429_v57 = vld [vmem:[%s14451_s5 + $0x500] sm:$0xf]  ;;  %v10378_v56 = vor.u32 %v12604_v23, %v10375_v8 }
 0x9d5   :  { %4298 = vmatpush.bf16.msra.mxu1 %v10354_v43  ;;  %4261 = vmatpush.bf16.msrb.mxu0 %v10290_v38  ;;  %v12616_v43 = vld [vmem:[%s14451_s5 + $0x4fc] sm:$0xf]  ;;  %v10471_v38 = vld [vmem:[%s14451_s5 + $0x564] sm:$0xf0] }
 0x9d6   :  { %v10426_v3 = vor.u32 %v12616_v43, %v10423_v52  ;;  %v10474_v9 = vor.u32 %v12628_v20, %v10471_v38  ;;  %v12618_v43 = vld [vmem:[%s14451_s5 + $0x508] sm:$0xf0] }
 0x9d7   :  { %4290 = vmatpush.bf16.msra.mxu3 %v10470_v59  ;;  %v10273_v59 = vld [vmem:[%s14451_s5 + $0x3c8] sm:$0xf]  ;;  %v10430_v40 = vor.u32 %v12618_v43, %v10429_v57 }
 0x9d8   :  { %4342 = vmatpush.bf16.msra.mxu2 %v10334_v4  ;;  %v12583_v4 = vld [vmem:[%s14451_s5 + $0x3f4] sm:$0xf]  ;;  %v10274_v44 = vor.u32 %v12579_v29, %v10273_v59  ;;  %v10405_v29 = vld [vmem:[%s14451_s5 + $0x4d0] sm:$0xf] }
 0x9d9   :  { %4299 = vmatpush.bf16.msra.mxu1 %v10342_v48  ;;  %4262 = vmatpush.bf16.msrb.mxu0 %v10278_v32  ;;  %v12613_v48 = vld [vmem:[%s14451_s5 + $0x4e4] sm:$0xf]  ;;  %v10294_v15 = vor.u32 %v12583_v4, %v10291_v49  ;;  %v10399_v32 = vld [vmem:[%s14451_s5 + $0x4d4] sm:$0xf0]  ;;  %v12630_v4 = vld [vmem:[%s14451_s5 + $0x568] sm:$0xf0] }
 0x9da   :  { %v10414_v14 = vor.u32 %v12613_v48, %v10411_v53  ;;  %v10363_v49 = vld [vmem:[%s14451_s5 + $0x48c] sm:$0xf0]  ;;  %v10465_v53 = vld [vmem:[%s14451_s5 + $0x548] sm:$0xf]  ;;  %v12627_v59 = vld [vmem:[%s14451_s5 + $0x550] sm:$0xf0] }
 0x9db   :  { %4291 = vmatpush.bf16.msra.mxu3 %v10458_v45 }
 0x9dc   :  { %4343 = vmatpush.bf16.msra.mxu2 %v10322_v18  ;;  %v12580_v18 = vld [vmem:[%s14451_s5 + $0x3dc] sm:$0xf] }
 0x9dd   :  { %4300 = vmatpush.bf16.msra.mxu1 %v10330_v46  ;;  %4263 = vmatpush.bf16.msrb.mxu0 %v10266_v26  ;;  %v10453_v46 = vld [vmem:[%s14451_s5 + $0x530] sm:$0xf]  ;;  %v10282_v45 = vor.u32 %v12580_v18, %v10279_v19  ;;  %v10270_v26 = vor.u32 %v12577_v61, %v10267_v31  ;;  %v10393_v18 = vld [vmem:[%s14451_s5 + $0x4b8] sm:$0xf]  ;;  %v12609_v19 = vld [vmem:[%s14451_s5 + $0x4c0] sm:$0xf0] }
 0x9de   :  { %10503 = vmatmul.msk.bf16.vlgmr.msra.gmra.mxu3 %vm3198_vm5, %v14652_v33 }
 0x9df   :  { %4312 = vmatpush.bf16.msrb.mxu3 %v10450_v25  ;;  %v10402_v25 = vor.u32 %v12610_v51, %v10399_v32  ;;  %v10369_v51 = vld [vmem:[%s14451_s5 + $0x488] sm:$0xf]  ;;  %v12603_v32 = vld [vmem:[%s14451_s5 + $0x490] sm:$0xf0] }
 0x9e0   :  { %4344 = vmatpush.bf16.msra.mxu2 %v10310_v2  ;;  %4264 = vmatmul.bf16.vlgmr.msrb.gmra.mxu0 %v14628_v24  ;;  %v10454_v2 = vor.u32 %v12624_v1, %v10453_v46  ;;  %v10370_v46 = vor.u32 %v12603_v32, %v10369_v51 }
 0x9e1   :  { %4301 = vmatpush.bf16.msra.mxu1 %v10318_v5  ;;  %4330 = vmatpush.bf16.msra.mxu0 %v10498_v36  ;;  %v10502_v5 = vor.u32 %v12636_v41, %v10501_v58  ;;  %v10390_v36 = vor.u32 %v12607_v60, %v10387_v6 }
 0x9e3   :  { %4313 = vmatpush.bf16.msrb.mxu3 %v10438_v55  ;;  %v10489_v55 = vld [vmem:[%s14451_s5 + $0x578] sm:$0xf] }
 0x9e4   :  { %4345 = vmatpush.bf16.msra.mxu2 %v10298_v63  ;;  %v12633_v63 = vld [vmem:[%s14451_s5 + $0x580] sm:$0xf0] }
 0x9e5   :  { %4302 = vmatpush.bf16.msra.mxu1 %v10306_v12  ;;  %4331 = vmatpush.bf16.msra.mxu0 %v10486_v50  ;;  %v10490_v52 = vor.u32 %v12633_v63, %v10489_v55  ;;  %v12601_v12 = vld [vmem:[%s14451_s5 + $0x484] sm:$0xf]  ;;  %v10477_v50 = vld [vmem:[%s14451_s5 + $0x560] sm:$0xf] }
 0x9e6   :  { %v10478_v20 = vor.u32 %v12630_v4, %v10477_v50  ;;  %v10366_v38 = vor.u32 %v12601_v12, %v10363_v49 }
 0x9e7   :  { %4314 = vmatpush.bf16.msrb.mxu3 %v10426_v3  ;;  %v10417_v3 = vld [vmem:[%s14451_s5 + $0x4e8] sm:$0xf] }
 0x9e8   :  { %4346 = vmatpush.bf16.msra.mxu2 %v10286_v47  ;;  %v12615_v47 = vld [vmem:[%s14451_s5 + $0x4f0] sm:$0xf0] }
 0x9e9   :  { %4303 = vmatpush.bf16.msra.mxu1 %v10294_v15  ;;  %4332 = vmatpush.bf16.msra.mxu0 %v10474_v9  ;;  %v10418_v48 = vor.u32 %v12615_v47, %v10417_v3  ;;  %v10466_v15 = vor.u32 %v12627_v59, %v10465_v53 }
 0x9eb   :  { %4315 = vmatpush.bf16.msrb.mxu3 %v10414_v14  ;;  %v10394_v14 = vor.u32 %v12609_v19, %v10393_v18 }
 0x9ec   :  { %4347 = vmatpush.bf16.msra.mxu2 %v10274_v44  ;;  %v10381_v44 = vld [vmem:[%s14451_s5 + $0x4a0] sm:$0xf] }
 0x9ed   :  { %4304 = vmatpush.bf16.msra.mxu1 %v10282_v45  ;;  %4333 = vmatpush.bf16.msra.mxu0 %v10462_v35  ;;  %v10382_v37 = vor.u32 %v12606_v16, %v10381_v44 }
 0x9ef   :  { %4348 = vmatmul.bf16.vlgmr.msra.gmra.mxu2 %v14628_v24  ;;  %4316 = vmatpush.bf16.msrb.mxu3 %v10402_v25 }
 0x9f0   :  { %10504 = vmatmul.msk.bf16.vlgmr.msra.gmra.mxu0 %vm3198_vm5, %v14652_v33 }
 0x9f1   :  { %4354 = vmatpush.bf16.msrb.mxu0 %v10454_v2  ;;  %4305 = vmatpush.bf16.msra.mxu1 %v10270_v26 }
 0x9f3   :  { %4317 = vmatpush.bf16.msrb.mxu3 %v10390_v36 }
 0x9f4   :  { %4306 = vmatmul.bf16.vlgmr.msra.gmra.mxu1 %v14628_v24  ;;  %v12612_v24 = vld [vmem:[%s14451_s5 + $0x4d8] sm:$0xf0]  ;;  %s16233_s5 = sld [smem:[%s16456_s0 + %s13160_s2]]  }
 0x9f5   :  { %4372 = vmatpush.bf16.msrb.mxu1 %v10502_v5  ;;  %4355 = vmatpush.bf16.msrb.mxu0 %v10442_v62  ;;  %v10406_v9 = vor.u32 %v12612_v24, %v10405_v29 }
 0x9f7   :  { %4318 = vmatpush.bf16.msrb.mxu3 %v10378_v56 }
 0x9f9   :  { %4373 = vmatpush.bf16.msrb.mxu1 %v10490_v52  ;;  %4356 = vmatpush.bf16.msrb.mxu0 %v10430_v40 }
 0x9fb   :  { %4319 = vmatpush.bf16.msrb.mxu3 %v10366_v38 }
 0x9fd   :  { %4374 = vmatpush.bf16.msrb.mxu1 %v10478_v20  ;;  %4357 = vmatpush.bf16.msrb.mxu0 %v10418_v48 }
 0x9fe   :  { %4320 = vmatmul.bf16.vlgmr.msrb.gmra.mxu3 %v14685_v11 }
 0xa01   :  { %4375 = vmatpush.bf16.msrb.mxu1 %v10466_v15  ;;  %4358 = vmatpush.bf16.msrb.mxu0 %v10406_v9  ;;  %v3211_v1 = vpop.f32.mrf.mxu3  ;;  %v3239_v45 = vpop.f32.mrf.mxu1 }
 0xa02   :  { %v3253_v35 = vpop.f32.mrf.mxu2 }
 0xa04   :  { %10505 = vmatmul.msk.bf16.vlgmr.msrb.gmra.mxu1 %vm3198_vm5, %v14652_v33 }
 0xa05   :  { %4359 = vmatpush.bf16.msrb.mxu0 %v10394_v14 }
 0xa09   :  { %4360 = vmatpush.bf16.msrb.mxu0 %v10382_v37  ;;  %v3213_v61 = vpop.f32.mrf.mxu3  ;;  %v3241_v31 = vpop.f32.mrf.mxu1 }
 0xa0a   :  { %v3255_v6 = vpop.f32.mrf.mxu2 }
 0xa0b   :  { %v3225_v25 = vpop.f32.mrf.mxu0 }
 0xa0c   :  { %v3226_v2 = vadd.f32 %v3225_v25, %v3211_v1 }
 0xa0d   :  { %4361 = vmatpush.bf16.msrb.mxu0 %v10370_v46 }
 0xa0e   :  { %v14937_v60 = vadd.f32 %v3239_v45, %v3226_v2 }
 0xa10   :  { %4362 = vmatmul.bf16.vlgmr.msrb.gmra.mxu0 %v14685_v11 }
 0xa11   :  { %v3267_v58 = vpop.f32.mrf.mxu1  ;;  %v3281_v41 = vpop.f32.mrf.mxu3 }
 0xa12   :  { %v3268_v42 = vadd.f32 %v3267_v58, %v3253_v35  ;;  %v14945_v23 = vpop.f32.mrf.mxu2 }
 0xa13   :  { %v3227_v33 = vpop.f32.mrf.mxu0 }
 0xa14   :  { %v14939_v36 = vadd.f32 %v3281_v41, %v3268_v42  ;;  %v3228_v58 = vadd.f32 %v3227_v33, %v3213_v61 }
 0xa19   :  { %v3269_v39 = vpop.f32.mrf.mxu1  ;;  %v3283_v26 = vpop.f32.mrf.mxu3 }
 0xa1a   :  { %v3270_v5 = vadd.f32 %v3269_v39, %v3255_v6  ;;  %v3311_v57 = vpop.f32.mrf.mxu2  ;;  %v3242_v39 = vadd.f32 %v3241_v31, %v3228_v58 }
 0xa1b   :  { %v14943_v11 = vpop.f32.mrf.mxu0 }
 0xa1c   :  { %v14941_v62 = vadd.f32 %v3283_v26, %v3270_v5 }
 0xa1e   :  { %v4385_v55 = vpack.c.bf16 %v14941_v62, %v14939_v36  ;;  %v3310_v36 = vadd.f32 %v14945_v23, %v14943_v11  ;;  %v10611_v23 = vld [vmem:[%s14970_s13 + $0xc0] sm:$0xf] }
 0xa21   :  { %v14949_v63 = vpop.f32.mrf.mxu3  ;;  %v3738_v50 = vpop.f32.mrf.mxu1 }
 0xa22   :  { %v3780_v12 = vpop.f32.mrf.mxu2 }
 0xa23   :  { %v3297_v8 = vpop.f32.mrf.mxu0 }
 0xa24   :  { %v3312_v43 = vadd.f32 %v3311_v57, %v3297_v8  ;;  %v4384_v57 = vpack.c.bf16 %v3242_v39, %v14937_v60  ;;  %v12667_v39 = vld [vmem:[%s14970_s13 + $0xe4] sm:$0xf0] }
 0xa29   :  { %v3325_v52 = vpop.f32.mrf.mxu3  ;;  %v3740_v47 = vpop.f32.mrf.mxu1 }
 0xa2a   :  { %v14951_v56 = vadd.f32 %v3325_v52, %v3312_v43  ;;  %v3782_v3 = vpop.f32.mrf.mxu2  ;;  %v14963_v43 = vld [vmem:[%s8939_s9] sm:$0xff]  ;;  %s8932_s9 = sld [smem:[%s16456_s0 + %s13161_s6]]  }
 0xa2b   :  { %v3766_v40 = vpop.f32.mrf.mxu0 }
 0xa31   :  { %v3752_v4 = vpop.f32.mrf.mxu3  ;;  %v3808_v53 = vpop.f32.mrf.mxu1 }
 0xa32   :  { %v14953_v48 = vpop.f32.mrf.mxu2  ;;  %v3753_v35 = vadd.f32 %v3752_v4, %v3738_v50 }
 0xa33   :  { %v3768_v49 = vpop.f32.mrf.mxu0 }
 0xa34   :  { %v3767_v42 = vadd.f32 %v3766_v40, %v3753_v35 }
 0xa39   :  { %v3754_v20 = vpop.f32.mrf.mxu3  ;;  %v3810_v15 = vpop.f32.mrf.mxu1 }
 0xa3a   :  { %v14957_v24 = vpop.f32.mrf.mxu2  ;;  %v3755_v51 = vadd.f32 %v3754_v20, %v3740_v47 }
 0xa3c   :  { %v3769_v41 = vadd.f32 %v3768_v49, %v3755_v51 }
 0xa3d   :  { %v3794_v38 = vpop.f32.mrf.mxu0 }
 0xa3e   :  { %v4387_v26 = vpack.c.bf16 %v3769_v41, %v3767_v42  ;;  %v10627_v42 = vld [vmem:[%s14970_s13 + $0xe0] sm:$0xf] }
 0xa45   :  { %v3796_v29 = vpop.f32.mrf.mxu0 }
 0xa46   :  { %v3797_v31 = vadd.f32 %v3796_v29, %v3782_v3 }
 0xa51   :  { %v14955_v59 = vpop.f32.mrf.mxu3  ;;  %v3836_v14 = vpop.f32.mrf.mxu1 }
 0xa52   :  { %v4279_v19 = vpop.f32.mrf.mxu2 }
 0xa59   :  { %v3824_v9 = vpop.f32.mrf.mxu3  ;;  %v3838_v1 = vpop.f32.mrf.mxu1 }
 0xa5a   :  { %v4281_v37 = vpop.f32.mrf.mxu2 }
 0xa5d   :  { %v4265_v18 = vpop.f32.mrf.mxu0 }
 0xa5e   :  { %v4280_v32 = vadd.f32 %v4279_v19, %v4265_v18  ;;  %v3795_v18 = vadd.f32 %v3794_v38, %v3780_v12  ;;  %v10635_v38 = vld [vmem:[%s14970_s13 + $0xf0] sm:$0xf] }
 0xa61   :  { %v4293_v44 = vpop.f32.mrf.mxu3 }
 0xa62   :  { %v4294_v25 = vadd.f32 %v4293_v44, %v4280_v32  ;;  %v3811_v44 = vadd.f32 %v3810_v15, %v3797_v31  ;;  %v12669_v32 = vld [vmem:[%s14970_s13 + $0xf4] sm:$0xf0]  ;;  %v12650_v31 = vld [vmem:[%s14970_s13 + $0x64] sm:$0xf] }
 0xa65   :  { %v4267_v16 = vpop.f32.mrf.mxu0 }
 0xa66   :  { %v4282_v46 = vadd.f32 %v4281_v37, %v4267_v16  ;;  %v3809_v37 = vadd.f32 %v3808_v53, %v3795_v18  ;;  %v3837_v53 = vadd.f32 %v3836_v14, %v14955_v59  ;;  %v10628_v59 = vor.u32 %v12667_v39, %v10627_v42  ;;  %v12651_v14 = vld [vmem:[%s14970_s13 + $0x64] sm:$0xf0]  ;;  %v10829_v42 = vld [vmem:[%s14970_s13 + $0x220] sm:$0xf] }
 0xa67   :  { %v12707_v39 = vld [vmem:[%s14970_s13 + $0x224] sm:$0xf0] }
 0xa68   :  { %v4388_v29 = vpack.c.bf16 %v3811_v44, %v3809_v37  ;;  %v12648_v44 = vld [vmem:[%s14970_s13 + $0x54] sm:$0xf]  ;;  %v12646_v37 = vld [vmem:[%s14970_s13 + $0x44] sm:$0xf] }
 0xa69   :  { %v4295_v45 = vpop.f32.mrf.mxu3 }
 0xa6a   :  { %v4296_v2 = vadd.f32 %v4295_v45, %v4282_v46  ;;  %v10571_v46 = vld [vmem:[%s14970_s13 + $0x70] sm:$0xf]  ;;  %v3839_v45 = vadd.f32 %v3838_v1, %v3824_v9 }
 0xa6c   :  { %v4390_v6 = vpack.c.bf16 %v4296_v2, %v4294_v25  ;;  %v10636_v25 = vor.u32 %v12669_v32, %v10635_v38  ;;  %v12653_v2 = vld [vmem:[%s14970_s13 + $0x74] sm:$0xf0]  ;;  %v3853_v9 = vadd.f32 %v14957_v24, %v3839_v45  ;;  %v10619_v24 = vld [vmem:[%s14970_s13 + $0xd0] sm:$0xf]  ;;  %v12642_v32 = vld [vmem:[%s14970_s13 + $0x24] sm:$0xf] }
 0xa6d   :  { %v4335_v8 = vpop.f32.mrf.mxu0  ;;  %v10572_v58 = vor.u32 %v12653_v2, %v10571_v46  ;;  %v10533_v46 = vld [vmem:[%s14970_s13 + $0x28] sm:$0xf0]  ;;  %v12640_v45 = vld [vmem:[%s14970_s13 + $0x14] sm:$0xf]  ;;  %v12638_v2 = vld [vmem:[%s14970_s13 + $0x4] sm:$0xf] }
 0xa6e   :  { %4419 = vmatpush.bf16.msra.mxu3 %v4390_v6  ;;  %4728 = vmatpush.bf16.msra.mxu0 %v10636_v25 }
 0xa71   :  { %v4307_v5 = vpop.f32.mrf.mxu1 }
 0xa72   :  { %4420 = vmatpush.bf16.msra.mxu3 %v4387_v26  ;;  %v4349_v40 = vpop.f32.mrf.mxu2  ;;  %v10563_v26 = vld [vmem:[%s14970_s13 + $0x60] sm:$0xf]  ;;  %4729 = vmatpush.bf16.msra.mxu0 %v10628_v59  ;;  %v10539_v59 = vld [vmem:[%s14970_s13 + $0x30] sm:$0xf] }
 0xa75   :  { %v4337_v52 = vpop.f32.mrf.mxu0 }
 0xa76   :  { %4421 = vmatpush.bf16.msra.mxu3 %v4384_v57  ;;  %v12665_v57 = vld [vmem:[%s14970_s13 + $0xd4] sm:$0xf0] }
 0xa79   :  { %10510 = vmatmul.msk.bf16.vlgmr.msra.gmra.mxu3 %vm4410_vm7, %v14963_v43  ;;  %v4309_v61 = vpop.f32.mrf.mxu1 }
 0xa7a   :  { %v4351_v51 = vpop.f32.mrf.mxu2  ;;  %4714 = vmatpush.bf16.msrb.mxu3 %v10572_v58  ;;  %v10837_v58 = vld [vmem:[%s14970_s13 + $0x230] sm:$0xf] }
 0xa81   :  { %v4321_v33 = vpop.f32.mrf.mxu3  ;;  %v4377_v47 = vpop.f32.mrf.mxu1 }
 0xa82   :  { %v4322_v50 = vadd.f32 %v4321_v33, %v4307_v5  ;;  %v10564_v5 = vor.u32 %v12651_v14, %v10563_v26  ;;  %v10620_v33 = vor.u32 %v12665_v57, %v10619_v24  ;;  %v10830_v26 = vor.u32 %v12707_v39, %v10829_v42  ;;  %v12705_v24 = vld [vmem:[%s14970_s13 + $0x214] sm:$0xf0]  ;;  %v10651_v42 = vld [vmem:[%s14970_s13 + $0x110] sm:$0xf] }
 0xa83   :  { %v12673_v39 = vld [vmem:[%s14970_s13 + $0x114] sm:$0xf0] }
 0xa84   :  { %v4336_v19 = vadd.f32 %v4335_v8, %v4322_v50  ;;  %v3851_v8 = vadd.f32 %v14953_v48, %v3837_v53  ;;  %4715 = vmatpush.bf16.msrb.mxu3 %v10564_v5  ;;  %v10573_v48 = vld [vmem:[%s14970_s13 + $0x78] sm:$0xf0]  ;;  %4730 = vmatpush.bf16.msra.mxu0 %v10620_v33  ;;  %v12709_v53 = vld [vmem:[%s14970_s13 + $0x234] sm:$0xf0]  ;;  %v12643_v33 = vld [vmem:[%s14970_s13 + $0x24] sm:$0xf0] }
 0xa85   :  { %v12645_v5 = vld [vmem:[%s14970_s13 + $0x34] sm:$0xf0] }
 0xa86   :  { %v4389_v62 = vpack.c.bf16 %v3853_v9, %v3851_v8  ;;  %v10603_v9 = vld [vmem:[%s14970_s13 + $0xb0] sm:$0xf]  ;;  %v10540_v57 = vor.u32 %v12645_v5, %v10539_v59  ;;  %v10781_v5 = vld [vmem:[%s14970_s13 + $0x1c0] sm:$0xf] }
 0xa87   :  { %v10821_v8 = vld [vmem:[%s14970_s13 + $0x210] sm:$0xf] }
 0xa88   :  { %v10757_v59 = vld [vmem:[%s14970_s13 + $0x190] sm:$0xf] }
 0xa89   :  { %v4323_v4 = vpop.f32.mrf.mxu3  ;;  %v4379_v15 = vpop.f32.mrf.mxu1 }
 0xa8a   :  { %v4324_v49 = vadd.f32 %v4323_v4, %v4309_v61  ;;  %v10555_v61 = vld [vmem:[%s14970_s13 + $0x50] sm:$0xf] }
 0xa8c   :  { %v4338_v60 = vadd.f32 %v4337_v52, %v4324_v49  ;;  %v12649_v52 = vld [vmem:[%s14970_s13 + $0x54] sm:$0xf0]  ;;  %v10565_v49 = vld [vmem:[%s14970_s13 + $0x68] sm:$0xf0] }
 0xa8d   :  { %v4363_v20 = vpop.f32.mrf.mxu0  ;;  %v10556_v50 = vor.u32 %v12649_v52, %v10555_v61  ;;  %v10822_v61 = vor.u32 %v12705_v24, %v10821_v8  ;;  %v10813_v52 = vld [vmem:[%s14970_s13 + $0x200] sm:$0xf]  ;;  %v12695_v24 = vld [vmem:[%s14970_s13 + $0x1c4] sm:$0xf0] }
 0xa8e   :  { %v4391_v16 = vpack.c.bf16 %v4338_v60, %v4336_v19  ;;  %v4364_v3 = vadd.f32 %v4363_v20, %v4349_v40  ;;  %v3324_v40 = vadd.f32 %v14949_v63, %v3310_v36  ;;  %v10547_v20 = vld [vmem:[%s14970_s13 + $0x40] sm:$0xf]  ;;  %v12647_v19 = vld [vmem:[%s14970_s13 + $0x44] sm:$0xf0]  ;;  %v10568_v60 = vor.u32 %v12650_v31, %v10565_v49  ;;  %v10587_v31 = vld [vmem:[%s14970_s13 + $0x90] sm:$0xf] }
 0xa8f   :  { %4716 = vmatpush.bf16.msrb.mxu3 %v10556_v50  ;;  %v10548_v63 = vor.u32 %v12647_v19, %v10547_v20  ;;  %v10595_v36 = vld [vmem:[%s14970_s13 + $0xa0] sm:$0xf]  ;;  %v12703_v50 = vld [vmem:[%s14970_s13 + $0x204] sm:$0xf0]  ;;  %v12657_v49 = vld [vmem:[%s14970_s13 + $0x94] sm:$0xf0] }
 0xa90   :  { %4433 = vmatpush.bf16.msra.mxu1 %v4391_v16  ;;  %v4378_v41 = vadd.f32 %v4377_v47, %v4364_v3  ;;  %v4386_v11 = vpack.c.bf16 %v14951_v56, %v3324_v40  ;;  %v12663_v47 = vld [vmem:[%s14970_s13 + $0xc4] sm:$0xf0]  ;;  %v10557_v16 = vld [vmem:[%s14970_s13 + $0x58] sm:$0xf0]  ;;  %v10549_v3 = vld [vmem:[%s14970_s13 + $0x48] sm:$0xf0] }
 0xa91   :  { %v10612_v18 = vor.u32 %v12663_v47, %v10611_v23  ;;  %v10560_v56 = vor.u32 %v12648_v44, %v10557_v16  ;;  %v10588_v23 = vor.u32 %v12657_v49, %v10587_v31  ;;  %v12641_v47 = vld [vmem:[%s14970_s13 + $0x14] sm:$0xf0]  ;;  %v10805_v20 = vld [vmem:[%s14970_s13 + $0x1f0] sm:$0xf]  ;;  %v12655_v44 = vld [vmem:[%s14970_s13 + $0x84] sm:$0xf0] }
 0xa92   :  { %v10667_v16 = vld [vmem:[%s14970_s13 + $0x130] sm:$0xf]  ;;  %v12676_v31 = vld [vmem:[%s14970_s13 + $0x134] sm:$0xf] }
 0xa93   :  { %4731 = vmatpush.bf16.msra.mxu0 %v10612_v18  ;;  %4717 = vmatpush.bf16.msrb.mxu3 %v10548_v63  ;;  %v12701_v18 = vld [vmem:[%s14970_s13 + $0x1f4] sm:$0xf0] }
 0xa94   :  { %4434 = vmatpush.bf16.msra.mxu1 %v4388_v29  ;;  %v10552_v29 = vor.u32 %v12646_v37, %v10549_v3  ;;  %v10806_v63 = vor.u32 %v12701_v18, %v10805_v20  ;;  %v12677_v37 = vld [vmem:[%s14970_s13 + $0x134] sm:$0xf0]  ;;  %v10515_v3 = vld [vmem:[%s14970_s13] sm:$0xf]  ;;  %v12666_v20 = vld [vmem:[%s14970_s13 + $0xe4] sm:$0xf] }
 0xa95   :  { %v4365_v12 = vpop.f32.mrf.mxu0  ;;  %v10629_v18 = vld [vmem:[%s14970_s13 + $0xe8] sm:$0xf0] }
 0xa96   :  { %v4366_v35 = vadd.f32 %v4365_v12, %v4351_v51  ;;  %v12644_v51 = vld [vmem:[%s14970_s13 + $0x34] sm:$0xf]  ;;  %v10541_v12 = vld [vmem:[%s14970_s13 + $0x38] sm:$0xf0] }
 0xa97   :  { %v10544_v38 = vor.u32 %v12644_v51, %v10541_v12  ;;  %4718 = vmatpush.bf16.msrb.mxu3 %v10540_v57  ;;  %v10668_v51 = vor.u32 %v12677_v37, %v10667_v16  ;;  %v10782_v57 = vor.u32 %v12695_v24, %v10781_v5  ;;  %v12674_v16 = vld [vmem:[%s14970_s13 + $0x124] sm:$0xf]  ;;  %v10605_v24 = vld [vmem:[%s14970_s13 + $0xb8] sm:$0xf0] }
 0xa98   :  { %v4380_v6 = vadd.f32 %v4379_v15, %v4366_v35  ;;  %4435 = vmatpush.bf16.msra.mxu1 %v4385_v55  ;;  %v12652_v55 = vld [vmem:[%s14970_s13 + $0x74] sm:$0xf]  ;;  %v10525_v35 = vld [vmem:[%s14970_s13 + $0x18] sm:$0xf0]  ;;  %v10517_v15 = vld [vmem:[%s14970_s13 + $0x8] sm:$0xf0] }
 0xa99   :  { %v10576_v4 = vor.u32 %v12652_v55, %v10573_v48  ;;  %v10528_v25 = vor.u32 %v12640_v45, %v10525_v35  ;;  %v10531_v55 = vld [vmem:[%s14970_s13 + $0x20] sm:$0xf]  ;;  %v12699_v45 = vld [vmem:[%s14970_s13 + $0x1e4] sm:$0xf0] }
 0xa9a   :  { %v4392_v1 = vpack.c.bf16 %v4380_v6, %v4378_v41  ;;  %v10520_v41 = vor.u32 %v12638_v2, %v10517_v15  ;;  %v10838_v6 = vor.u32 %v12709_v53, %v10837_v58  ;;  %v10532_v40 = vor.u32 %v12643_v33, %v10531_v55  ;;  %v10659_v35 = vld [vmem:[%s14970_s13 + $0x120] sm:$0xf]  ;;  %v12691_v53 = vld [vmem:[%s14970_s13 + $0x1a4] sm:$0xf0]  ;;  %v15065_v55 = vpop.permute.xlu2 %4397  ;;  %v10637_v33 = vld [vmem:[%s14970_s13 + $0xf8] sm:$0xf0] }
 0xa9b   :  { %10511 = vmatmul.msk.bf16.vlgmr.msra.gmra.mxu1 %vm4410_vm7, %v14963_v43  ;;  %v10765_v58 = vld [vmem:[%s14970_s13 + $0x1a0] sm:$0xf] }
 0xa9c   :  { %4447 = vmatpush.bf16.msrb.mxu2 %v4392_v1  ;;  %v12661_v1 = vld [vmem:[%s14970_s13 + $0xb4] sm:$0xf0]  ;;  %4719 = vmatpush.bf16.msrb.mxu3 %v10532_v40 }
 0xa9d   :  { %v10604_v14 = vor.u32 %v12661_v1, %v10603_v9  ;;  %4746 = vmatpush.bf16.msrb.mxu1 %v10668_v51  ;;  %v10652_v1 = vor.u32 %v12673_v39, %v10651_v42  ;;  %v12664_v51 = vld [vmem:[%s14970_s13 + $0xd4] sm:$0xf]  ;;  %v12681_v39 = vld [vmem:[%s14970_s13 + $0x154] sm:$0xf0] }
 0xa9f   :  { %4732 = vmatpush.bf16.msra.mxu0 %v10604_v14  ;;  %v12689_v14 = vld [vmem:[%s14970_s13 + $0x194] sm:$0xf0] }
 0xaa0   :  { %4448 = vmatpush.bf16.msrb.mxu2 %v4389_v62  ;;  %v12659_v62 = vld [vmem:[%s14970_s13 + $0xa4] sm:$0xf0]  ;;  %v10758_v8 = vor.u32 %v12689_v14, %v10757_v59 }
 0xaa1   :  { %v10596_v48 = vor.u32 %v12659_v62, %v10595_v36  ;;  %v12671_v36 = vld [vmem:[%s14970_s13 + $0x104] sm:$0xf0]  ;;  %v12668_v62 = vld [vmem:[%s14970_s13 + $0xf4] sm:$0xf] }
 0xaa2   :  { %v10640_v40 = vor.u32 %v12668_v62, %v10637_v33  ;;  %v15079_v37 = vpop.permute.xlu2 %4402  ;;  %v12731_v59 = vld [vmem:[%s14970_s13 + $0x2e4] sm:$0xf0]  ;;  %v12717_v33 = vld [vmem:[%s14970_s13 + $0x274] sm:$0xf0] }
 0xaa3   :  { %4733 = vmatpush.bf16.msra.mxu0 %v10596_v48  ;;  %v12679_v62 = vld [vmem:[%s14970_s13 + $0x144] sm:$0xf0] }
 0xaa4   :  { %4449 = vmatpush.bf16.msrb.mxu2 %v4386_v11  ;;  %v10523_v11 = vld [vmem:[%s14970_s13 + $0x10] sm:$0xf] }
 0xaa5   :  { %v10524_v19 = vor.u32 %v12641_v47, %v10523_v11  ;;  %v10669_v11 = vld [vmem:[%s14970_s13 + $0x138] sm:$0xf0] }
 0xaa7   :  { %10512 = vmatmul.msk.bf16.vlgmr.msrb.gmra.mxu2 %vm4410_vm7, %v14963_v43  ;;  %v10536_v43 = vor.u32 %v12642_v32, %v10533_v46  ;;  %4734 = vmatpush.bf16.msra.mxu0 %v10588_v23  ;;  %v12693_v32 = vld [vmem:[%s14970_s13 + $0x1b4] sm:$0xf0]  ;;  %v10797_v46 = vld [vmem:[%s14970_s13 + $0x1e0] sm:$0xf]  ;;  %v10672_v23 = vor.u32 %v12676_v31, %v10669_v11  ;;  %v10959_v31 = vld [vmem:[%s14970_s13 + $0x2d0] sm:$0xf] }
 0xaa8   :  { %4756 = vmatpush.bf16.msra.mxu2 %v10576_v4  ;;  %v10814_v4 = vor.u32 %v12703_v50, %v10813_v52  ;;  %4720 = vmatpush.bf16.msrb.mxu3 %v10524_v19  ;;  %v10798_v2 = vor.u32 %v12699_v45, %v10797_v46  ;;  %v10749_v52 = vld [vmem:[%s14970_s13 + $0x180] sm:$0xf]  ;;  %v12687_v50 = vld [vmem:[%s14970_s13 + $0x184] sm:$0xf0]  ;;  %v10632_v19 = vor.u32 %v12666_v20, %v10629_v18  ;;  %v12658_v11 = vld [vmem:[%s14970_s13 + $0xa4] sm:$0xf] }
 0xaac   :  { %4757 = vmatpush.bf16.msra.mxu2 %v10568_v60  ;;  %v10579_v60 = vld [vmem:[%s14970_s13 + $0x80] sm:$0xf] }
 0xab0   :  { %4758 = vmatpush.bf16.msra.mxu2 %v10560_v56  ;;  %v10580_v56 = vor.u32 %v12655_v44, %v10579_v60  ;;  %v12685_v60 = vld [vmem:[%s14970_s13 + $0x174] sm:$0xf0] }
 0xab2   :  { %4735 = vmatpush.bf16.msra.mxu0 %v10580_v56  ;;  %v10661_v56 = vld [vmem:[%s14970_s13 + $0x128] sm:$0xf0] }
 0xab4   :  { %4759 = vmatpush.bf16.msra.mxu2 %v10552_v29  ;;  %v12639_v29 = vld [vmem:[%s14970_s13 + $0x4] sm:$0xf0] }
 0xab5   :  { %v10516_v12 = vor.u32 %v12639_v29, %v10515_v3  ;;  %v10664_v29 = vor.u32 %v12674_v16, %v10661_v56  ;;  %v12656_v56 = vld [vmem:[%s14970_s13 + $0x94] sm:$0xf] }
 0xab7   :  { %4721 = vmatpush.bf16.msrb.mxu3 %v10516_v12  ;;  %v10621_v12 = vld [vmem:[%s14970_s13 + $0xd8] sm:$0xf0] }
 0xab8   :  { %4760 = vmatpush.bf16.msra.mxu2 %v10544_v38  ;;  %v10773_v38 = vld [vmem:[%s14970_s13 + $0x1b0] sm:$0xf]  ;;  %v10624_v45 = vor.u32 %v12664_v51, %v10621_v12  ;;  %v12713_v51 = vld [vmem:[%s14970_s13 + $0x254] sm:$0xf0] }
 0xabb   :  { %4788 = vmatpush.bf16.msra.mxu3 %v10672_v23  ;;  %v10597_v23 = vld [vmem:[%s14970_s13 + $0xa8] sm:$0xf0] }
 0xabc   :  { %4761 = vmatpush.bf16.msra.mxu2 %v10536_v43  ;;  %v10774_v43 = vor.u32 %v12693_v32, %v10773_v38  ;;  %v10733_v38 = vld [vmem:[%s14970_s13 + $0x160] sm:$0xf] }
 0xabe   :  { %5039 = vmatpush.bf16.msrb.mxu0 %v10774_v43  ;;  %v10975_v43 = vld [vmem:[%s14970_s13 + $0x2f0] sm:$0xf] }
 0xabf   :  { %4789 = vmatpush.bf16.msra.mxu3 %v10664_v29  ;;  %v10853_v29 = vld [vmem:[%s14970_s13 + $0x250] sm:$0xf] }
 0xac0   :  { %4762 = vmatpush.bf16.msra.mxu2 %v10528_v25  ;;  %v12675_v25 = vld [vmem:[%s14970_s13 + $0x124] sm:$0xf0] }
 0xac1   :  { %v10660_v15 = vor.u32 %v12675_v25, %v10659_v35  ;;  %v12683_v35 = vld [vmem:[%s14970_s13 + $0x164] sm:$0xf0]  ;;  %v12733_v25 = vld [vmem:[%s14970_s13 + $0x2f4] sm:$0xf0] }
 0xac2   :  { %v10976_v14 = vor.u32 %v12733_v25, %v10975_v43  ;;  %v12654_v43 = vld [vmem:[%s14970_s13 + $0x84] sm:$0xf]  ;;  %v12725_v25 = vld [vmem:[%s14970_s13 + $0x2b4] sm:$0xf0] }
 0xac3   :  { %4747 = vmatpush.bf16.msrb.mxu1 %v10660_v15  ;;  %v12672_v15 = vld [vmem:[%s14970_s13 + $0x114] sm:$0xf] }
 0xac4   :  { %4763 = vmatpush.bf16.msra.mxu2 %v10520_v41  ;;  %v10789_v41 = vld [vmem:[%s14970_s13 + $0x1d0] sm:$0xf] }
 0xac7   :  { %4748 = vmatpush.bf16.msrb.mxu1 %v10652_v1  ;;  %v10967_v1 = vld [vmem:[%s14970_s13 + $0x2e0] sm:$0xf] }
 0xac8   :  { %5053 = vmatpush.bf16.msrb.mxu2 %v10838_v6  ;;  %v12697_v6 = vld [vmem:[%s14970_s13 + $0x1d4] sm:$0xf0] }
 0xac9   :  { %v10790_v9 = vor.u32 %v12697_v6, %v10789_v41  ;;  %v10613_v41 = vld [vmem:[%s14970_s13 + $0xc8] sm:$0xf0]  ;;  %v10725_v6 = vld [vmem:[%s14970_s13 + $0x150] sm:$0xf] }
 0xaca   :  { %v10726_v5 = vor.u32 %v12681_v39, %v10725_v6  ;;  %v12723_v39 = vld [vmem:[%s14970_s13 + $0x2a4] sm:$0xf0] }
 0xacc   :  { %5054 = vmatpush.bf16.msrb.mxu2 %v10830_v26  ;;  %v10766_v26 = vor.u32 %v12691_v53, %v10765_v58  ;;  %v10653_v58 = vld [vmem:[%s14970_s13 + $0x118] sm:$0xf0]  ;;  %v12662_v53 = vld [vmem:[%s14970_s13 + $0xc4] sm:$0xf] }
 0xacd   :  { %v10616_v42 = vor.u32 %v12662_v53, %v10613_v41 }
 0xace   :  { %5040 = vmatpush.bf16.msrb.mxu0 %v10766_v26 }
 0xad0   :  { %5055 = vmatpush.bf16.msrb.mxu2 %v10822_v61  ;;  %v10643_v61 = vld [vmem:[%s14970_s13 + $0x100] sm:$0xf] }
 0xad1   :  { %v10644_v48 = vor.u32 %v12671_v36, %v10643_v61 }
 0xad2   :  { %5041 = vmatpush.bf16.msrb.mxu0 %v10758_v8  ;;  %v12660_v8 = vld [vmem:[%s14970_s13 + $0xb4] sm:$0xf] }
 0xad3   :  { %4749 = vmatpush.bf16.msrb.mxu1 %v10644_v48  ;;  %v10869_v48 = vld [vmem:[%s14970_s13 + $0x270] sm:$0xf] }
 0xad4   :  { %5056 = vmatpush.bf16.msrb.mxu2 %v10814_v4  ;;  %v10750_v4 = vor.u32 %v12687_v50, %v10749_v52  ;;  %v10608_v52 = vor.u32 %v12660_v8, %v10605_v24  ;;  %v10870_v50 = vor.u32 %v12717_v33, %v10869_v48  ;;  %v12756_v48 = vld [vmem:[%s14970_s13 + $0x3b4] sm:$0xf]  ;;  %v11073_v33 = vld [vmem:[%s14970_s13 + $0x3b8] sm:$0xf0] }
 0xad6   :  { %5042 = vmatpush.bf16.msrb.mxu0 %v10750_v4 }
 0xad7   :  { %4770 = vmatpush.bf16.msra.mxu1 %v10640_v40  ;;  %v10968_v40 = vor.u32 %v12731_v59, %v10967_v1  ;;  %v10871_v1 = vld [vmem:[%s14970_s13 + $0x278] sm:$0xf0] }
 0xad8   :  { %5057 = vmatpush.bf16.msrb.mxu2 %v10806_v63  ;;  %v10741_v63 = vld [vmem:[%s14970_s13 + $0x170] sm:$0xf] }
 0xad9   :  { %v10742_v44 = vor.u32 %v12685_v60, %v10741_v63  ;;  %v12715_v63 = vld [vmem:[%s14970_s13 + $0x264] sm:$0xf0]  ;;  %v10951_v60 = vld [vmem:[%s14970_s13 + $0x2c0] sm:$0xf] }
 0xadb   :  { %4771 = vmatpush.bf16.msra.mxu1 %v10632_v19  ;;  %5043 = vmatpush.bf16.msrb.mxu0 %v10742_v44  ;;  %v10600_v19 = vor.u32 %v12658_v11, %v10597_v23  ;;  %v12727_v44 = vld [vmem:[%s14970_s13 + $0x2c4] sm:$0xf0]  ;;  %v12754_v11 = vld [vmem:[%s14970_s13 + $0x3a4] sm:$0xf]  ;;  %v11065_v23 = vld [vmem:[%s14970_s13 + $0x3a8] sm:$0xf0] }
 0xadc   :  { %5058 = vmatpush.bf16.msrb.mxu2 %v10798_v2  ;;  %v10734_v2 = vor.u32 %v12683_v35, %v10733_v38  ;;  %v10854_v38 = vor.u32 %v12713_v51, %v10853_v29  ;;  %v10839_v29 = vld [vmem:[%s14970_s13 + $0x238] sm:$0xf0] }
 0xadf   :  { %4772 = vmatpush.bf16.msra.mxu1 %v10624_v45  ;;  %5044 = vmatpush.bf16.msrb.mxu0 %v10734_v2  ;;  %v10581_v45 = vld [vmem:[%s14970_s13 + $0x88] sm:$0xf0]  ;;  %v10845_v2 = vld [vmem:[%s14970_s13 + $0x240] sm:$0xf] }
 0xae0   :  { %5059 = vmatpush.bf16.msrb.mxu2 %v10790_v9 }
 0xae3   :  { %4773 = vmatpush.bf16.msra.mxu1 %v10616_v42  ;;  %5045 = vmatpush.bf16.msrb.mxu0 %v10726_v5  ;;  %v10935_v42 = vld [vmem:[%s14970_s13 + $0x2a0] sm:$0xf] }
 0xae4   :  { %5060 = vmatpush.bf16.msrb.mxu2 %v10782_v57  ;;  %v10717_v57 = vld [vmem:[%s14970_s13 + $0x140] sm:$0xf]  ;;  %v10936_v59 = vor.u32 %v12723_v39, %v10935_v42  ;;  %v10759_v42 = vld [vmem:[%s14970_s13 + $0x198] sm:$0xf0] }
 0xae5   :  { %v10718_v4 = vor.u32 %v12679_v62, %v10717_v57  ;;  %v10919_v57 = vld [vmem:[%s14970_s13 + $0x280] sm:$0xf] }
 0xae7   :  { %4774 = vmatpush.bf16.msra.mxu1 %v10608_v52  ;;  %5046 = vmatpush.bf16.msrb.mxu0 %v10718_v4  ;;  %v12712_v52 = vld [vmem:[%s14970_s13 + $0x254] sm:$0xf] }
 0xaeb   :  { %4775 = vmatpush.bf16.msra.mxu1 %v10600_v19 }
 0xafc   :  { %v4423_v49 = vpop.f32.mrf.mxu3 }
 0xafd   :  { %v4424_v47 = vadd.f32 %v4423_v49, %v15065_v55  ;;  %v12729_v49 = vld [vmem:[%s14970_s13 + $0x2d4] sm:$0xf0] }
 0xafe   :  { %v10960_v18 = vor.u32 %v12729_v49, %v10959_v31  ;;  %v11076_v31 = vor.u32 %v12756_v48, %v11073_v33  ;;  %v12684_v48 = vld [vmem:[%s14970_s13 + $0x174] sm:$0xf]  ;;  %v10743_v33 = vld [vmem:[%s14970_s13 + $0x178] sm:$0xf0] }
 0xaff   :  { %v4456_v32 = vadd.f32 %v4424_v47, %v2789_v22  ;;  %v10656_v22 = vor.u32 %v12672_v15, %v10653_v58  ;;  %v10861_v47 = vld [vmem:[%s14970_s13 + $0x260] sm:$0xf]  ;;  %v12711_v15 = vld [vmem:[%s14970_s13 + $0x244] sm:$0xf0]  ;;  %v10584_v58 = vor.u32 %v12654_v43, %v10581_v45  ;;  %v10767_v43 = vld [vmem:[%s14970_s13 + $0x1a8] sm:$0xf0] }
 0xb00   :  { %v10862_v16 = vor.u32 %v12715_v63, %v10861_v47  ;;  %v12710_v47 = vld [vmem:[%s14970_s13 + $0x244] sm:$0xf]  ;;  %v11068_v63 = vor.u32 %v12754_v11, %v11065_v23 }
 0xb01   :  { %v4462_v26 = vmax.f32 %v4456_v32, 0.0  ;;  %4790 = vmatpush.bf16.msra.mxu3 %v10656_v22  ;;  %v10952_v32 = vor.u32 %v12727_v44, %v10951_v60  ;;  %v12682_v23 = vld [vmem:[%s14970_s13 + $0x164] sm:$0xf] }
 0xb04   :  { %v4425_v3 = vpop.f32.mrf.mxu3 }
 0xb05   :  { %v4426_v46 = vadd.f32 %v4425_v3, %v15079_v37  ;;  %v10589_v3 = vld [vmem:[%s14970_s13 + $0x98] sm:$0xf0] }
 0xb06   :  { %v10592_v12 = vor.u32 %v12656_v56, %v10589_v3  ;;  %v10775_v56 = vld [vmem:[%s14970_s13 + $0x1b8] sm:$0xf0]  ;;  %v12708_v3 = vld [vmem:[%s14970_s13 + $0x234] sm:$0xf] }
 0xb07   :  { %v4459_v54 = vadd.f32 %v4426_v46, %v2792_v28  ;;  %v10645_v28 = vld [vmem:[%s14970_s13 + $0x108] sm:$0xf0]  ;;  %v10943_v46 = vld [vmem:[%s14970_s13 + $0x2b0] sm:$0xf] }
 0xb08   :  { %v10648_v36 = vor.u32 %v12670_v10, %v10645_v28  ;;  %4776 = vmatpush.bf16.msra.mxu1 %v10592_v12  ;;  %v10944_v53 = vor.u32 %v12725_v25, %v10943_v46  ;;  %v12721_v28 = vld [vmem:[%s14970_s13 + $0x294] sm:$0xf0]  ;;  %v12752_v12 = vld [vmem:[%s14970_s13 + $0x394] sm:$0xf]  ;;  %v12690_v46 = vld [vmem:[%s14970_s13 + $0x1a4] sm:$0xf] }
 0xb09   :  { %v4465_v9 = vmax.f32 %v4459_v54, 0.0  ;;  %v10846_v54 = vor.u32 %v12711_v15, %v10845_v2  ;;  %v10831_v25 = vld [vmem:[%s14970_s13 + $0x228] sm:$0xf0]  ;;  %v11031_v2 = vld [vmem:[%s14970_s13 + $0x360] sm:$0xf] }
 0xb0a   :  { %4791 = vmatpush.bf16.msra.mxu3 %v10648_v36  ;;  %v12719_v36 = vld [vmem:[%s14970_s13 + $0x284] sm:$0xf0] }
 0xb0b   :  { %v15105_v61 = vpack.c.bf16 %v4465_v9, %v4462_v26  ;;  %v12716_v9 = vld [vmem:[%s14970_s13 + $0x274] sm:$0xf] }
 0xb0c   :  { %4777 = vmatpush.bf16.msra.mxu1 %v10584_v58  ;;  %v12747_v58 = vld [vmem:[%s14970_s13 + $0x364] sm:$0xf0] }
 0xb0d   :  { %4722 = vmatmul.bf16.vlgmr.msrb.gmra.mxu3 %v15105_v61  ;;  %4764 = vmatmul.bf16.vlgmr.msra.gmra.mxu2 %v15105_v61  ;;  %v11032_v39 = vor.u32 %v12747_v58, %v11031_v2  ;;  %v12735_v2 = vld [vmem:[%s14970_s13 + $0x304] sm:$0xf0]  ;;  %v10977_v58 = vld [vmem:[%s14970_s13 + $0x2f8] sm:$0xf0] }
 0xb0e   :  { %5364 = vmatpush.bf16.msra.mxu2 %v10976_v14  ;;  %5071 = vmatpush.bf16.msrb.mxu3 %v10870_v50  ;;  %v10874_v14 = vor.u32 %v12716_v9, %v10871_v1  ;;  %v10855_v50 = vld [vmem:[%s14970_s13 + $0x258] sm:$0xf0] }
 0xb0f   :  { %v10858_v49 = vor.u32 %v12712_v52, %v10855_v50  ;;  %v10823_v9 = vld [vmem:[%s14970_s13 + $0x218] sm:$0xf0]  ;;  %v12700_v50 = vld [vmem:[%s14970_s13 + $0x1f4] sm:$0xf] }
 0xb12   :  { %5365 = vmatpush.bf16.msra.mxu2 %v10968_v40  ;;  %5072 = vmatpush.bf16.msrb.mxu3 %v10862_v16  ;;  %v10920_v40 = vor.u32 %v12719_v36, %v10919_v57  ;;  %v12692_v16 = vld [vmem:[%s14970_s13 + $0x1b4] sm:$0xf]  ;;  %v12743_v57 = vld [vmem:[%s14970_s13 + $0x344] sm:$0xf0] }
 0xb13   :  { %v10778_v13 = vor.u32 %v12692_v16, %v10775_v56  ;;  %v12680_v16 = vld [vmem:[%s14970_s13 + $0x154] sm:$0xf]  ;;  %v10727_v56 = vld [vmem:[%s14970_s13 + $0x158] sm:$0xf0] }
 0xb16   :  { %5366 = vmatpush.bf16.msra.mxu2 %v10960_v18  ;;  %5073 = vmatpush.bf16.msrb.mxu3 %v10854_v38  ;;  %v11057_v38 = vld [vmem:[%s14970_s13 + $0x398] sm:$0xf0] }
 0xb17   :  { %v11060_v15 = vor.u32 %v12752_v12, %v11057_v38  ;;  %v12678_v12 = vld [vmem:[%s14970_s13 + $0x144] sm:$0xf] }
 0xb18   :  { %v4437_v20 = vpop.f32.mrf.mxu1 }
 0xb19   :  { %v4438_v35 = vadd.f32 %v4437_v20, %v15065_v55  ;;  %v10847_v20 = vld [vmem:[%s14970_s13 + $0x248] sm:$0xf0] }
 0xb1a   :  { %5367 = vmatpush.bf16.msra.mxu2 %v10952_v32  ;;  %5074 = vmatpush.bf16.msrb.mxu3 %v10846_v54  ;;  %v10850_v60 = vor.u32 %v12710_v47, %v10847_v20  ;;  %v10842_v32 = vor.u32 %v12708_v3, %v10839_v29  ;;  %v12750_v54 = vld [vmem:[%s14970_s13 + $0x384] sm:$0xf]  ;;  %v10735_v47 = vld [vmem:[%s14970_s13 + $0x168] sm:$0xf0]  ;;  %v12696_v29 = vld [vmem:[%s14970_s13 + $0x1d4] sm:$0xf] }
 0xb1b   :  { %v4457_v41 = vadd.f32 %v4438_v35, %v2790_v21  ;;  %v10927_v21 = vld [vmem:[%s14970_s13 + $0x290] sm:$0xf]  ;;  %v12706_v35 = vld [vmem:[%s14970_s13 + $0x224] sm:$0xf] }
 0xb1c   :  { %v10928_v24 = vor.u32 %v12721_v28, %v10927_v21  ;;  %v12686_v28 = vld [vmem:[%s14970_s13 + $0x184] sm:$0xf] }
 0xb1d   :  { %v4463_v10 = vmax.f32 %v4457_v41, 0.0  ;;  %v10834_v41 = vor.u32 %v12706_v35, %v10831_v25  ;;  %v11071_v35 = vld [vmem:[%s14970_s13 + $0x3b0] sm:$0xf]  ;;  %v12757_v25 = vld [vmem:[%s14970_s13 + $0x3b4] sm:$0xf0] }
 0xb1e   :  { %5368 = vmatpush.bf16.msra.mxu2 %v10944_v53  ;;  %v10770_v53 = vor.u32 %v12690_v46, %v10767_v43  ;;  %v10783_v46 = vld [vmem:[%s14970_s13 + $0x1c8] sm:$0xf0] }
 0xb20   :  { %v4439_v22 = vpop.f32.mrf.mxu1 }
 0xb21   :  { %v4440_v6 = vadd.f32 %v4439_v22, %v15079_v37  ;;  %v11049_v22 = vld [vmem:[%s14970_s13 + $0x388] sm:$0xf0] }
 0xb22   :  { %5369 = vmatpush.bf16.msra.mxu2 %v10936_v59  ;;  %v11052_v1 = vor.u32 %v12750_v54, %v11049_v22  ;;  %v11023_v59 = vld [vmem:[%s14970_s13 + $0x350] sm:$0xf] }
 0xb23   :  { %v4460_v26 = vadd.f32 %v4440_v6, %v2793_v17  ;;  %v10863_v17 = vld [vmem:[%s14970_s13 + $0x268] sm:$0xf0]  ;;  %v12688_v6 = vld [vmem:[%s14970_s13 + $0x194] sm:$0xf] }
 0xb24   :  { %v10866_v62 = vor.u32 %v12714_v0, %v10863_v17  ;;  %v12702_v17 = vld [vmem:[%s14970_s13 + $0x204] sm:$0xf] }
 0xb25   :  { %v4466_v30 = vmax.f32 %v4460_v26, 0.0  ;;  %v12704_v26 = vld [vmem:[%s14970_s13 + $0x214] sm:$0xf] }
 0xb26   :  { %5370 = vmatpush.bf16.msra.mxu2 %v10928_v24  ;;  %v10826_v21 = vor.u32 %v12704_v26, %v10823_v9  ;;  %v11015_v24 = vld [vmem:[%s14970_s13 + $0x340] sm:$0xf]  ;;  %v12730_v26 = vld [vmem:[%s14970_s13 + $0x2e4] sm:$0xf]  ;;  %v10969_v9 = vld [vmem:[%s14970_s13 + $0x2e8] sm:$0xf0] }
 0xb27   :  { %v15142_v5 = vpack.c.bf16 %v4466_v30, %v4463_v10  ;;  %v12745_v10 = vld [vmem:[%s14970_s13 + $0x354] sm:$0xf0]  ;;  %v10762_v30 = vor.u32 %v12688_v6, %v10759_v42  ;;  %v11016_v52 = vor.u32 %v12743_v57, %v11015_v24  ;;  %v11063_v42 = vld [vmem:[%s14970_s13 + $0x3a0] sm:$0xf]  ;;  %v12726_v24 = vld [vmem:[%s14970_s13 + $0x2c4] sm:$0xf] }
 0xb28   :  { %v11024_v0 = vor.u32 %v12745_v10, %v11023_v59  ;;  %v10972_v59 = vor.u32 %v12730_v26, %v10969_v9  ;;  %v11055_v10 = vld [vmem:[%s14970_s13 + $0x390] sm:$0xf]  ;;  %v10953_v57 = vld [vmem:[%s14970_s13 + $0x2c8] sm:$0xf0] }
 0xb29   :  { %4736 = vmatmul.bf16.vlgmr.msra.gmra.mxu0 %v15142_v5  ;;  %5061 = vmatmul.bf16.vlgmr.msrb.gmra.mxu2 %v15142_v5 }
 0xb2a   :  { %v4451_v8 = vpop.f32.mrf.mxu2  ;;  %5113 = vmatpush.bf16.msra.mxu0 %v10874_v14  ;;  %5371 = vmatpush.bf16.msra.mxu2 %v10920_v40  ;;  %v10751_v14 = vld [vmem:[%s14970_s13 + $0x188] sm:$0xf0]  ;;  %v10807_v40 = vld [vmem:[%s14970_s13 + $0x1f8] sm:$0xf0] }
 0xb2b   :  { %v4452_v4 = vadd.f32 %v4451_v8, %v15065_v55  ;;  %v10815_v8 = vld [vmem:[%s14970_s13 + $0x208] sm:$0xf0]  ;;  %v10754_v36 = vor.u32 %v12686_v28, %v10751_v14  ;;  %v10810_v11 = vor.u32 %v12700_v50, %v10807_v40  ;;  %v10961_v28 = vld [vmem:[%s14970_s13 + $0x2d8] sm:$0xf0]  ;;  %v12724_v50 = vld [vmem:[%s14970_s13 + $0x2b4] sm:$0xf] }
 0xb2c   :  { %v10945_v40 = vld [vmem:[%s14970_s13 + $0x2b8] sm:$0xf0] }
 0xb2d   :  { %v4458_v19 = vadd.f32 %v4452_v4, %v2791_v27  ;;  %v12749_v27 = vld [vmem:[%s14970_s13 + $0x374] sm:$0xf0]  ;;  %v11007_v4 = vld [vmem:[%s14970_s13 + $0x330] sm:$0xf] }
 0xb2e   :  { %5114 = vmatpush.bf16.msra.mxu0 %v10866_v62  ;;  %5438 = vmatpush.bf16.msrb.mxu2 %v11076_v31  ;;  %v11040_v45 = vor.u32 %v12749_v27, %v11039_v7  ;;  %v10818_v62 = vor.u32 %v12702_v17, %v10815_v8  ;;  %v12741_v31 = vld [vmem:[%s14970_s13 + $0x334] sm:$0xf0]  ;;  %v10791_v7 = vld [vmem:[%s14970_s13 + $0x1d8] sm:$0xf0]  ;;  %v10991_v27 = vld [vmem:[%s14970_s13 + $0x310] sm:$0xf] }
 0xb2f   :  { %v11008_v20 = vor.u32 %v12741_v31, %v11007_v4  ;;  %v10794_v38 = vor.u32 %v12696_v29, %v10791_v7  ;;  %v11047_v17 = vld [vmem:[%s14970_s13 + $0x380] sm:$0xf]  ;;  %v12751_v8 = vld [vmem:[%s14970_s13 + $0x384] sm:$0xf0]  ;;  %v12746_v4 = vld [vmem:[%s14970_s13 + $0x364] sm:$0xf] }
 0xb30   :  { %v11033_v31 = vld [vmem:[%s14970_s13 + $0x368] sm:$0xf0]  ;;  %v12718_v29 = vld [vmem:[%s14970_s13 + $0x284] sm:$0xf] }
 0xb31   :  { %v10921_v7 = vld [vmem:[%s14970_s13 + $0x288] sm:$0xf0] }
 0xb32   :  { %v4453_v18 = vpop.f32.mrf.mxu2  ;;  %5115 = vmatpush.bf16.msra.mxu0 %v10858_v49  ;;  %5439 = vmatpush.bf16.msrb.mxu2 %v11068_v63  ;;  %v10746_v49 = vor.u32 %v12684_v48, %v10743_v33  ;;  %v12739_v63 = vld [vmem:[%s14970_s13 + $0x324] sm:$0xf0]  ;;  %v11048_v48 = vor.u32 %v12751_v8, %v11047_v17  ;;  %v10956_v33 = vor.u32 %v12726_v24, %v10953_v57 }
 0xb33   :  { %v4454_v55 = vadd.f32 %v4453_v18, %v15079_v37  ;;  %v4464_v37 = vmax.f32 %v4458_v19, 0.0  ;;  %v12698_v18 = vld [vmem:[%s14970_s13 + $0x1e4] sm:$0xf]  ;;  %v10799_v19 = vld [vmem:[%s14970_s13 + $0x1e8] sm:$0xf0] }
 0xb35   :  { %v4461_v44 = vadd.f32 %v4454_v55, %v2794_v34  ;;  %v10999_v55 = vld [vmem:[%s14970_s13 + $0x320] sm:$0xf] }
 0xb36   :  { %5116 = vmatpush.bf16.msra.mxu0 %v10850_v60  ;;  %5440 = vmatpush.bf16.msrb.mxu2 %v11060_v15  ;;  %v10738_v60 = vor.u32 %v12682_v23, %v10735_v47  ;;  %v11000_v3 = vor.u32 %v12739_v63, %v10999_v55  ;;  %v12732_v15 = vld [vmem:[%s14970_s13 + $0x2f4] sm:$0xf]  ;;  %v12722_v23 = vld [vmem:[%s14970_s13 + $0x2a4] sm:$0xf]  ;;  %v10937_v47 = vld [vmem:[%s14970_s13 + $0x2a8] sm:$0xf0] }
 0xb37   :  { %v4467_v51 = vmax.f32 %v4461_v44, 0.0  ;;  %v10802_v44 = vor.u32 %v12698_v18, %v10799_v19  ;;  %v10980_v6 = vor.u32 %v12732_v15, %v10977_v58  ;;  %v11025_v18 = vld [vmem:[%s14970_s13 + $0x358] sm:$0xf0]  ;;  %v10940_v19 = vor.u32 %v12722_v23, %v10937_v47  ;;  %v12720_v63 = vld [vmem:[%s14970_s13 + $0x294] sm:$0xf] }
 0xb39   :  { %v15172_v34 = vpack.c.bf16 %v4467_v51, %v4464_v37  ;;  %5047 = vmatmul.bf16.vlgmr.msrb.gmra.mxu0 %v15105_v61  ;;  %5372 = vmatmul.bf16.vlgmr.msra.gmra.mxu2 %v15105_v61  ;;  %v12737_v37 = vld [vmem:[%s14970_s13 + $0x314] sm:$0xf0]  ;;  %v10730_v51 = vor.u32 %v12680_v16, %v10727_v56  ;;  %v11017_v16 = vld [vmem:[%s14970_s13 + $0x348] sm:$0xf0] }
 0xb3a   :  { %5378 = vmatpush.bf16.msrb.mxu0 %v11040_v45  ;;  %5441 = vmatpush.bf16.msrb.mxu2 %v11052_v1  ;;  %v10992_v43 = vor.u32 %v12737_v37, %v10991_v27  ;;  %v10983_v45 = vld [vmem:[%s14970_s13 + $0x300] sm:$0xf]  ;;  %v12740_v27 = vld [vmem:[%s14970_s13 + $0x334] sm:$0xf]  ;;  %v11009_v37 = vld [vmem:[%s14970_s13 + $0x338] sm:$0xf0] }
 0xb3b   :  { %10673 = vmatmul.msk.bf16.vlgmr.msrb.gmra.mxu1 %vm3198_vm5, %v15172_v34  ;;  %10674 = vmatmul.msk.bf16.vlgmr.msra.gmra.mxu3 %vm3198_vm5, %v15172_v34 }
 0xb3c   :  { %5081 = vmatpush.bf16.msrb.mxu1 %v10778_v13  ;;  %5095 = vmatpush.bf16.msra.mxu3 %v10842_v32  ;;  %v10719_v13 = vld [vmem:[%s14970_s13 + $0x148] sm:$0xf0]  ;;  %v12694_v32 = vld [vmem:[%s14970_s13 + $0x1c4] sm:$0xf] }
 0xb3d   :  { %v10722_v54 = vor.u32 %v12678_v12, %v10719_v13  ;;  %v10786_v22 = vor.u32 %v12694_v32, %v10783_v46  ;;  %v12738_v12 = vld [vmem:[%s14970_s13 + $0x324] sm:$0xf]  ;;  %v12736_v32 = vld [vmem:[%s14970_s13 + $0x314] sm:$0xf]  ;;  %v10993_v46 = vld [vmem:[%s14970_s13 + $0x318] sm:$0xf0] }
 0xb3e   :  { %5379 = vmatpush.bf16.msrb.mxu0 %v11032_v39  ;;  %v12755_v39 = vld [vmem:[%s14970_s13 + $0x3a4] sm:$0xf0] }
 0xb3f   :  { %v11064_v1 = vor.u32 %v12755_v39, %v11063_v42 }
 0xb40   :  { %5082 = vmatpush.bf16.msrb.mxu1 %v10770_v53  ;;  %5096 = vmatpush.bf16.msra.mxu3 %v10834_v41  ;;  %v11072_v53 = vor.u32 %v12757_v25, %v11071_v35  ;;  %v10984_v41 = vor.u32 %v12735_v2, %v10983_v45  ;;  %v12734_v45 = vld [vmem:[%s14970_s13 + $0x304] sm:$0xf]  ;;  %v10985_v35 = vld [vmem:[%s14970_s13 + $0x308] sm:$0xf0] }
 0xb41   :  { %v10988_v25 = vor.u32 %v12734_v45, %v10985_v35 }
 0xb42   :  { %5380 = vmatpush.bf16.msrb.mxu0 %v11024_v0 }
 0xb44   :  { %5083 = vmatpush.bf16.msrb.mxu1 %v10762_v30  ;;  %5097 = vmatpush.bf16.msra.mxu3 %v10826_v21  ;;  %v12753_v30 = vld [vmem:[%s14970_s13 + $0x394] sm:$0xf0]  ;;  %v12728_v21 = vld [vmem:[%s14970_s13 + $0x2d4] sm:$0xf] }
 0xb45   :  { %v11056_v14 = vor.u32 %v12753_v30, %v11055_v10  ;;  %v10964_v0 = vor.u32 %v12728_v21, %v10961_v28 }
 0xb46   :  { %5381 = vmatpush.bf16.msrb.mxu0 %v11016_v52 }
 0xb48   :  { %5084 = vmatpush.bf16.msrb.mxu1 %v10754_v36  ;;  %5098 = vmatpush.bf16.msra.mxu3 %v10818_v62  ;;  %v12748_v36 = vld [vmem:[%s14970_s13 + $0x374] sm:$0xf]  ;;  %v11041_v62 = vld [vmem:[%s14970_s13 + $0x378] sm:$0xf0] }
 0xb49   :  { %10876 = vmatmul.msk.bf16.vlgmr.msra.gmra.mxu0 %vm3198_vm5, %v15172_v34  ;;  %11078 = vmatmul.msk.bf16.vlgmr.msrb.gmra.mxu2 %vm3198_vm5, %v15172_v34  ;;  %v11044_v52 = vor.u32 %v12748_v36, %v11041_v62 }
 0xb4a   :  { %5382 = vmatpush.bf16.msrb.mxu0 %v11008_v20  ;;  %v12744_v20 = vld [vmem:[%s14970_s13 + $0x354] sm:$0xf] }
 0xb4b   :  { %4778 = vmatmul.bf16.vlgmr.msra.gmra.mxu1 %v15142_v5  ;;  %10875 = vmatmul.msk.bf16.vlgmr.msrb.gmra.mxu3 %vm3198_vm5, %v15172_v34  ;;  %v11028_v55 = vor.u32 %v12744_v20, %v11025_v18 }
 0xb4c   :  { %5085 = vmatpush.bf16.msrb.mxu1 %v10746_v49  ;;  %5099 = vmatpush.bf16.msra.mxu3 %v10810_v11  ;;  %v10948_v49 = vor.u32 %v12724_v50, %v10945_v40  ;;  %v11036_v11 = vor.u32 %v12746_v4, %v11033_v31 }
 0xb4e   :  { %5383 = vmatpush.bf16.msrb.mxu0 %v11000_v3 }
 0xb50   :  { %5086 = vmatpush.bf16.msrb.mxu1 %v10738_v60  ;;  %5100 = vmatpush.bf16.msra.mxu3 %v10802_v44  ;;  %v10929_v60 = vld [vmem:[%s14970_s13 + $0x298] sm:$0xf0]  ;;  %v12742_v44 = vld [vmem:[%s14970_s13 + $0x344] sm:$0xf] }
 0xb51   :  { %v10932_v56 = vor.u32 %v12720_v63, %v10929_v60  ;;  %v11020_v3 = vor.u32 %v12742_v44, %v11017_v16 }
 0xb52   :  { %5384 = vmatpush.bf16.msrb.mxu0 %v10992_v43  ;;  %v10996_v43 = vor.u32 %v12736_v32, %v10993_v46 }
 0xb54   :  { %5087 = vmatpush.bf16.msrb.mxu1 %v10730_v51  ;;  %5101 = vmatpush.bf16.msra.mxu3 %v10794_v38  ;;  %v11012_v51 = vor.u32 %v12740_v27, %v11009_v37  ;;  %v11001_v38 = vld [vmem:[%s14970_s13 + $0x328] sm:$0xf0]  ;;  %s16277_s13 = sld [smem:[%s16456_s0 + %s13162_s10]]  }
 0xb55   :  { %v11004_v13 = vor.u32 %v12738_v12, %v11001_v38 }
 0xb56   :  { %5385 = vmatpush.bf16.msrb.mxu0 %v10984_v41 }
 0xb58   :  { %5088 = vmatpush.bf16.msrb.mxu1 %v10722_v54  ;;  %5102 = vmatpush.bf16.msra.mxu3 %v10786_v22 }
 0xb59   :  { %5386 = vmatmul.bf16.vlgmr.msrb.gmra.mxu0 %v15142_v5 }
 0xb5b   :  { %5089 = vmatmul.bf16.vlgmr.msrb.gmra.mxu1 %v15105_v61  ;;  %5103 = vmatmul.bf16.vlgmr.msra.gmra.mxu3 %v15142_v5 }
 0xb5c   :  { %5396 = vmatpush.bf16.msra.mxu1 %v11072_v53  ;;  %5406 = vmatpush.bf16.msrb.mxu3 %v10980_v6 }
 0xb60   :  { %5397 = vmatpush.bf16.msra.mxu1 %v11064_v1  ;;  %5407 = vmatpush.bf16.msrb.mxu3 %v10972_v59 }
 0xb64   :  { %5398 = vmatpush.bf16.msra.mxu1 %v11056_v14  ;;  %5408 = vmatpush.bf16.msrb.mxu3 %v10964_v0 }
 0xb68   :  { %5399 = vmatpush.bf16.msra.mxu1 %v11048_v48  ;;  %5409 = vmatpush.bf16.msrb.mxu3 %v10956_v33 }
 0xb6b   :  { %11077 = vmatmul.msk.bf16.vlgmr.msra.gmra.mxu1 %vm3198_vm5, %v15172_v34  ;;  %v10924_v34 = vor.u32 %v12718_v29, %v10921_v7  ;;  %v12758_v7 = vld [vmem:[%s8941_s17] sm:$0xff] }
 0xb6c   :  { %5420 = vmatpush.bf16.msrb.mxu1 %v11044_v52  ;;  %5410 = vmatpush.bf16.msrb.mxu3 %v10948_v49 }
 0xb70   :  { %5421 = vmatpush.bf16.msrb.mxu1 %v11036_v11  ;;  %5411 = vmatpush.bf16.msrb.mxu3 %v10940_v19 }
 0xb74   :  { %5422 = vmatpush.bf16.msrb.mxu1 %v11028_v55  ;;  %5412 = vmatpush.bf16.msrb.mxu3 %v10932_v56 }
 0xb78   :  { %5423 = vmatpush.bf16.msrb.mxu1 %v11020_v3  ;;  %5413 = vmatpush.bf16.msrb.mxu3 %v10924_v34 }
 0xb7b   :  { %5414 = vmatmul.bf16.vlgmr.msrb.gmra.mxu3 %v15105_v61 }
 0xb7c   :  { %5424 = vmatpush.bf16.msrb.mxu1 %v11012_v51 }
 0xb80   :  { %5425 = vmatpush.bf16.msrb.mxu1 %v11004_v13 }
 0xb84   :  { %5426 = vmatpush.bf16.msrb.mxu1 %v10996_v43  ;;  %v12759_v43 = vld [vmem:[%s8941_s17 + $0x8] sm:$0xff]  ;;  %s16314_s17 = sld [smem:[%s16456_s0 + %s13163_s14]]  }
 0xb88   :  { %5427 = vmatpush.bf16.msrb.mxu1 %v10988_v25 }
 0xb8b   :  { %5428 = vmatmul.bf16.vlgmr.msrb.gmra.mxu1 %v15142_v5 }
 0xb90   :  { %v4723_v58 = vpop.f32.mrf.mxu3  ;;  %v4765_v6 = vpop.f32.mrf.mxu2 }
 0xb98   :  { %v4725_v42 = vpop.f32.mrf.mxu3  ;;  %v4767_v9 = vpop.f32.mrf.mxu2 }
 0xba6   :  { %v4737_v2 = vpop.f32.mrf.mxu0 }
 0xba7   :  { %v4738_v54 = vadd.f32 %v4737_v2, %v4723_v58 }
 0xbac   :  { %v5062_v10 = vpop.f32.mrf.mxu2 }
 0xbae   :  { %v4739_v15 = vpop.f32.mrf.mxu0 }
 0xbaf   :  { %v4740_v60 = vadd.f32 %v4739_v15, %v4725_v42  ;;  %v5581_v42 = vld [vmem:[%s15300_s21 + $0x58] sm:$0xff] }
 0xbb4   :  { %v5064_v57 = vpop.f32.mrf.mxu2 }
 0xbb6   :  { %v5048_v41 = vpop.f32.mrf.mxu0 }
 0xbb7   :  { %v5063_v19 = vadd.f32 %v5062_v10, %v5048_v41  ;;  %v5583_v41 = vld [vmem:[%s15300_s21 + $0x68] sm:$0xff]  ;;  %v5578_v10 = vld [vmem:[%s15300_s21 + $0x40] sm:$0xff] }
 0xbb8   :  { %v4751_v22 = vpop.f32.mrf.mxu1 }
 0xbb9   :  { %v4752_v53 = vadd.f32 %v4751_v22, %v4738_v54  ;;  %v5585_v22 = vld [vmem:[%s15300_s21 + $0x78] sm:$0xff] }
 0xbba   :  { %5602 = vmatpush.msra.mxu3 %v5585_v22 }
 0xbbc   :  { %v5373_v33 = vpop.f32.mrf.mxu2 }
 0xbbe   :  { %v5050_v61 = vpop.f32.mrf.mxu0  ;;  %v4793_v26 = vpop.f32.mrf.mxu3 }
 0xbbf   :  { %v5065_v47 = vadd.f32 %v5064_v57, %v5050_v61  ;;  %v15308_v61 = vpop.permute.xlu2 %5464  ;;  %v15326_v57 = vld [vmem:[%s15300_s21 + $0xf8] sm:$0xff] }
 0xbc0   :  { %v4753_v39 = vpop.f32.mrf.mxu1 }
 0xbc1   :  { %v4754_v16 = vadd.f32 %v4753_v39, %v4740_v60  ;;  %v5580_v39 = vld [vmem:[%s15300_s21 + $0x50] sm:$0xff] }
 0xbc3   :  { %v5452_v29 = vpack.c.bf16 %v4754_v16, %v4752_v53  ;;  %v5584_v53 = vld [vmem:[%s15300_s21 + $0x70] sm:$0xff] }
 0xbc4   :  { %v5375_v4 = vpop.f32.mrf.mxu2  ;;  %5603 = vmatpush.msra.mxu3 %v5584_v53 }
 0xbc6   :  { %v5118_v59 = vpop.f32.mrf.mxu0  ;;  %v4795_v21 = vpop.f32.mrf.mxu3  ;;  %5604 = vmatpush.msra.mxu3 %v5583_v41 }
 0xbc8   :  { %v4779_v1 = vpop.f32.mrf.mxu1 }
 0xbc9   :  { %v4780_v30 = vadd.f32 %v4779_v1, %v4765_v6  ;;  %v5582_v6 = vld [vmem:[%s15300_s21 + $0x60] sm:$0xff] }
 0xbca   :  { %5605 = vmatpush.msra.mxu3 %v5582_v6 }
 0xbcb   :  { %v4794_v14 = vadd.f32 %v4793_v26, %v4780_v30  ;;  %v5577_v30 = vld [vmem:[%s15300_s21 + $0x38] sm:$0xff] }
 0xbcc   :  { %v5443_v37 = vpop.f32.mrf.mxu2  ;;  %5606 = vmatpush.msra.mxu3 %v5581_v42 }
 0xbce   :  { %v5120_v8 = vpop.f32.mrf.mxu0  ;;  %v5076_v36 = vpop.f32.mrf.mxu3  ;;  %5607 = vmatpush.msra.mxu3 %v5580_v39 }
 0xbcf   :  { %v5077_v44 = vadd.f32 %v5076_v36, %v5063_v19  ;;  %v15329_v36 = vld [vmem:[%s15300_s21 + $0xf0] sm:$0xff]  ;;  %v5570_v19 = vld [vmem:[%s15300_s21] sm:$0xff] }
 0xbd0   :  { %v4781_v28 = vpop.f32.mrf.mxu1 }
 0xbd1   :  { %v4782_v5 = vadd.f32 %v4781_v28, %v4767_v9  ;;  %v15310_v9 = vpop.permute.xlu2 %5469  ;;  %v5576_v28 = vld [vmem:[%s15300_s21 + $0x30] sm:$0xff] }
 0xbd3   :  { %v4796_v0 = vadd.f32 %v4795_v21, %v4782_v5 }
 0xbd4   :  { %v5445_v46 = vpop.f32.mrf.mxu2 }
 0xbd5   :  { %v5453_v17 = vpack.c.bf16 %v4796_v0, %v4794_v14  ;;  %v5575_v0 = vld [vmem:[%s15300_s21 + $0x28] sm:$0xff] }
 0xbd6   :  { %v5387_v48 = vpop.f32.mrf.mxu0  ;;  %v5078_v52 = vpop.f32.mrf.mxu3 }
 0xbd7   :  { %v5388_v49 = vadd.f32 %v5387_v48, %v5373_v33  ;;  %v5079_v55 = vadd.f32 %v5078_v52, %v5065_v47  ;;  %v5573_v33 = vld [vmem:[%s15300_s21 + $0x18] sm:$0xff] }
 0xbd8   :  { %v5090_v24 = vpop.f32.mrf.mxu1 }
 0xbd9   :  { %v5454_v56 = vpack.c.bf16 %v5079_v55, %v5077_v44  ;;  %v15317_v5 = vpop.permute.xlu2 %5474  ;;  %v15360_v55 = vld [vmem:[%s15300_s21 + $0xd8] sm:$0xff]  ;;  %v15367_v44 = vld [vmem:[%s15300_s21 + $0xd0] sm:$0xff] }
 0xbde   :  { %v5389_v40 = vpop.f32.mrf.mxu0  ;;  %v5104_v31 = vpop.f32.mrf.mxu3 }
 0xbdf   :  { %v5390_v11 = vadd.f32 %v5389_v40, %v5375_v4  ;;  %v5105_v45 = vadd.f32 %v5104_v31, %v5090_v24  ;;  %v5574_v24 = vld [vmem:[%s15300_s21 + $0x20] sm:$0xff]  ;;  %v5571_v31 = vld [vmem:[%s15300_s21 + $0x8] sm:$0xff] }
 0xbe0   :  { %v5092_v62 = vpop.f32.mrf.mxu1 }
 0xbe1   :  { %v5119_v58 = vadd.f32 %v5118_v59, %v5105_v45  ;;  %v5579_v59 = vld [vmem:[%s15300_s21 + $0x48] sm:$0xff] }
 0xbe2   :  { %5608 = vmatpush.msra.mxu3 %v5579_v59  ;;  %v5591_v45 = vld [vmem:[%s15300_s21 + $0xa8] sm:$0xff] }
 0xbe4   :  { %5609 = vmatpush.msra.mxu3 %v5578_v10 }
 0xbe6   :  { %v5106_v3 = vpop.f32.mrf.mxu3  ;;  %5610 = vmatpush.msra.mxu3 %v5577_v30 }
 0xbe7   :  { %v5107_v13 = vadd.f32 %v5106_v3, %v5092_v62 }
 0xbe8   :  { %v5401_v50 = vpop.f32.mrf.mxu1  ;;  %5611 = vmatpush.msra.mxu3 %v5576_v28 }
 0xbe9   :  { %v15278_v20 = vadd.f32 %v5401_v50, %v5388_v49  ;;  %v5121_v2 = vadd.f32 %v5120_v8, %v5107_v13  ;;  %v5572_v50 = vld [vmem:[%s15300_s21 + $0x10] sm:$0xff]  ;;  %v15346_v49 = vld [vmem:[%s15300_s21 + $0xe8] sm:$0xff]  ;;  %v15381_v13 = vld [vmem:[%s15300_s21 + $0xb8] sm:$0xff] }
 0xbea   :  { %5612 = vmatpush.msra.mxu3 %v5575_v0 }
 0xbeb   :  { %v5455_v54 = vpack.c.bf16 %v5121_v2, %v5119_v58  ;;  %v5590_v58 = vld [vmem:[%s15300_s21 + $0xa0] sm:$0xff] }
 0xbec   :  { %5613 = vmatpush.msra.mxu3 %v5574_v24 }
 0xbee   :  { %5614 = vmatpush.msra.mxu3 %v5573_v33 }
 0xbf0   :  { %v5403_v23 = vpop.f32.mrf.mxu1  ;;  %5615 = vmatpush.msra.mxu3 %v5572_v50 }
 0xbf1   :  { %v15280_v18 = vadd.f32 %v5403_v23, %v5390_v11  ;;  %v15349_v11 = vld [vmem:[%s15300_s21 + $0xe0] sm:$0xff]  ;;  %v5480_v23 = vpop.permute.xlu2 %5479 }
 0xbf2   :  { %5616 = vmatpush.msra.mxu3 %v5571_v31 }
 0xbf3   :  { %v5456_v63 = vpack.c.bf16 %v15280_v18, %v15278_v20 }
 0xbf4   :  { %5617 = vmatpush.msra.mxu3 %v5570_v19 }
 0xbf5   :  { %5503 = vmatpush.bf16.msra.mxu0 %v5456_v63 }
 0xbf9   :  { %5504 = vmatpush.bf16.msra.mxu0 %v5454_v56 }
 0xbfd   :  { %5505 = vmatpush.bf16.msra.mxu0 %v5452_v29 }
 0xbfe   :  { %v5415_v27 = vpop.f32.mrf.mxu3 }
 0xc00   :  { %11087 = vmatmul.msk.bf16.vlgmr.msra.gmra.mxu0 %vm4410_vm7, %v12758_v7 }
 0xc01   :  { %5622 = vmatpush.msrb.mxu0 %v15326_v57 }
 0xc03   :  { %5623 = vmatpush.msrb.mxu0 %v15329_v36 }
 0xc05   :  { %5624 = vmatpush.msrb.mxu0 %v15346_v49 }
 0xc06   :  { %v5417_v12 = vpop.f32.mrf.mxu3 }
 0xc07   :  { %5625 = vmatpush.msrb.mxu0 %v15349_v11 }
 0xc08   :  { %v5429_v34 = vpop.f32.mrf.mxu1 }
 0xc09   :  { %v5430_v51 = vadd.f32 %v5429_v34, %v5415_v27  ;;  %5626 = vmatpush.msrb.mxu0 %v15360_v55 }
 0xc0b   :  { %v15288_v35 = vadd.f32 %v5443_v37, %v5430_v51  ;;  %5627 = vmatpush.msrb.mxu0 %v15367_v44 }
 0xc10   :  { %v5431_v38 = vpop.f32.mrf.mxu1  ;;  %11088 = vmatmul.msk.bf16.gmra.mxu0 %vm4410_vm7, %v12759_v43 }
 0xc11   :  { %v5432_v32 = vadd.f32 %v5431_v38, %v5417_v12  ;;  %v15374_v12 = vld [vmem:[%s15300_s21 + $0xc8] sm:$0xff]  ;;  %v15377_v38 = vld [vmem:[%s15300_s21 + $0xc0] sm:$0xff] }
 0xc12   :  { %5628 = vmatpush.msrb.mxu0 %v15374_v12 }
 0xc13   :  { %v15290_v25 = vadd.f32 %v5445_v46, %v5432_v32  ;;  %v5592_v46 = vld [vmem:[%s15300_s21 + $0xb0] sm:$0xff] }
 0xc14   :  { %5629 = vmatpush.msrb.mxu0 %v15377_v38 }
 0xc15   :  { %v5457_v15 = vpack.c.bf16 %v15290_v25, %v15288_v35 }
 0xc16   :  { %5630 = vmatpush.msrb.mxu0 %v15381_v13 }
 0xc17   :  { %5522 = vmatpush.bf16.msra.mxu2 %v5457_v15 }
 0xc18   :  { %5631 = vmatpush.msrb.mxu0 %v5592_v46 }
 0xc1a   :  { %5632 = vmatpush.msrb.mxu0 %v5591_v45 }
 0xc1b   :  { %5523 = vmatpush.bf16.msra.mxu2 %v5455_v54 }
 0xc1c   :  { %5633 = vmatpush.msrb.mxu0 %v5590_v58 }
 0xc1f   :  { %5524 = vmatpush.bf16.msra.mxu2 %v5453_v17 }
 0xc22   :  { %11089 = vmatmul.msk.bf16.vlgmr.msra.gmra.mxu2 %vm4410_vm7, %v12758_v7 }
 0xc23   :  { %5727 = vmatpush.msrb.mxu2 %v5585_v22 }
 0xc25   :  { %5728 = vmatpush.msrb.mxu2 %v5584_v53  ;;  %v5589_v53 = vld [vmem:[%s15300_s21 + $0x98] sm:$0xff] }
 0xc26   :  { %5634 = vmatpush.msrb.mxu0 %v5589_v53 }
 0xc27   :  { %5729 = vmatpush.msrb.mxu2 %v5583_v41 }
 0xc29   :  { %5730 = vmatpush.msrb.mxu2 %v5582_v6  ;;  %v5588_v6 = vld [vmem:[%s15300_s21 + $0x90] sm:$0xff] }
 0xc2a   :  { %5635 = vmatpush.msrb.mxu0 %v5588_v6 }
 0xc2b   :  { %5731 = vmatpush.msrb.mxu2 %v5581_v42 }
 0xc2d   :  { %5732 = vmatpush.msrb.mxu2 %v5580_v39  ;;  %v5587_v39 = vld [vmem:[%s15300_s21 + $0x88] sm:$0xff] }
 0xc2e   :  { %5636 = vmatpush.msrb.mxu0 %v5587_v39 }
 0xc2f   :  { %5733 = vmatpush.msrb.mxu2 %v5579_v59 }
 0xc31   :  { %5734 = vmatpush.msrb.mxu2 %v5578_v10 }
 0xc32   :  { %11090 = vmatmul.msk.bf16.gmra.mxu2 %vm4410_vm7, %v12759_v43 }
 0xc33   :  { %5735 = vmatpush.msrb.mxu2 %v5577_v30 }
 0xc35   :  { %5736 = vmatpush.msrb.mxu2 %v5576_v28 }
 0xc37   :  { %5737 = vmatpush.msrb.mxu2 %v5575_v0 }
 0xc39   :  { %5738 = vmatpush.msrb.mxu2 %v5574_v24  ;;  %v5642_v24 = vld [vmem:[%s8930_s25] sm:$0xff] }
 0xc3b   :  { %5739 = vmatpush.msrb.mxu2 %v5573_v33  ;;  %v5645_v33 = vld [vmem:[%s8930_s25 + $0x18] sm:$0xff] }
 0xc3d   :  { %5740 = vmatpush.msrb.mxu2 %v5572_v50  ;;  %v5643_v50 = vld [vmem:[%s8930_s25 + $0x8] sm:$0xff] }
 0xc3f   :  { %5741 = vmatpush.msrb.mxu2 %v5571_v31 }
 0xc41   :  { %5742 = vmatpush.msrb.mxu2 %v5570_v19 }
 0xc7d   :  { %v5507_v26 = vpop.f32.mrf.mxu0 }
 0xc7e   :  { %v5508_v14 = vadd.f32 %v5507_v26, %v15308_v61 }
 0xc80   :  { %v15333_v62 = vadd.f32 %v5508_v14, %v15278_v20 }
 0xc82   :  { %v5544_v40 = vmax.f32 %v15333_v62, 0.0 }
 0xc85   :  { %v5509_v1 = vpop.f32.mrf.mxu0 }
 0xc86   :  { %v5510_v21 = vadd.f32 %v5509_v1, %v15310_v9 }
 0xc88   :  { %v15322_v8 = vadd.f32 %v5510_v21, %v15280_v18 }
 0xc8a   :  { %v5546_v52 = vmax.f32 %v15322_v8, 0.0 }
 0xc8c   :  { %v5552_v20 = vadd.f32 %v5546_v52, %v5544_v40 }
 0xc8d   :  { %v5512_v17 = vpop.f32.mrf.mxu0 }
 0xc8e   :  { %v15336_v48 = vadd.f32 %v5512_v17, %v15317_v5  ;;  %v5644_v17 = vld [vmem:[%s8930_s25 + $0x10] sm:$0xff]  ;;  %s8955_s25 = sld [smem:[%s16456_s0 + %s13165_s22]]  }
 0xc8f   :  { %5663 = vmatpush.msra.mxu1 %v5644_v17 }
 0xc90   :  { %v5548_v4 = vmax.f32 %v15336_v48, 0.0 }
 0xc91   :  { %5664 = vmatpush.msra.mxu1 %v5642_v24 }
 0xc92   :  { %v5553_v63 = vadd.f32 %v5552_v20, %v5548_v4 }
 0xc93   :  { %5683 = vmatpush.msrb.mxu1 %v5645_v33 }
 0xc95   :  { %v5514_v47 = vpop.f32.mrf.mxu0  ;;  %5684 = vmatpush.msrb.mxu1 %v5643_v50 }
 0xc96   :  { %v15356_v18 = vadd.f32 %v5514_v47, %v5480_v23 }
 0xc98   :  { %v5550_v60 = vmax.f32 %v15356_v18, 0.0 }
 0xc9a   :  { %v5554_v16 = vadd.f32 %v5553_v63, %v5550_v60 }
 0xc9c   :  { %v5555_v56 = vrot.slane %v5554_v16, 4 }
 0xc9e   :  { %v5556_v3 = vadd.f32 %v5555_v56, %v5554_v16 }
 0xca0   :  { %v5557_v7 = vrot.slane %v5556_v3, 2 }
 0xca2   :  { %v5558_v27 = vadd.f32 %v5557_v7, %v5556_v3 }
 0xca4   :  { %v5559_v37 = vrot.slane %v5558_v27, 1 }
 0xca5   :  { %v5526_v29 = vpop.f32.mrf.mxu2 }
 0xca6   :  { %v5560_v34 = vadd.f32 %v5559_v37, %v5558_v27  ;;  %v5527_v43 = vadd.f32 %v5526_v29, %v15308_v61 }
 0xca8   :  { %5618 = vmatmul.f32.vlgmr.msra.gmra.mxu3 %v5560_v34  ;;  %v15394_v54 = vadd.f32 %v5527_v43, %v15288_v35 }
 0xcaa   :  { %v5545_v42 = vmax.f32 %v15394_v54, 0.0 }
 0xcad   :  { %v5528_v51 = vpop.f32.mrf.mxu2 }
 0xcae   :  { %v5529_v32 = vadd.f32 %v5528_v51, %v15310_v9  ;;  %v5586_v9 = vld [vmem:[%s15300_s21 + $0x80] sm:$0xff]  ;;  %s16319_s21 = sld [smem:[%s16456_s0 + %s13164_s18]]  }
 0xcaf   :  { %5637 = vmatpush.msrb.mxu0 %v5586_v9 }
 0xcb0   :  { %v15390_v15 = vadd.f32 %v5529_v32, %v15290_v25 }
 0xcb1   :  { %5804 = vmatpush.msra.mxu0 %v5645_v33  ;;  %v12789_v33 = vld [vmem:[%s15484_s29 + $0xe4] sm:$0xf0] }
 0xcb2   :  { %v5547_v41 = vmax.f32 %v15390_v15, 0.0 }
 0xcb3   :  { %5805 = vmatpush.msra.mxu0 %v5643_v50 }
 0xcb4   :  { %v5561_v35 = vadd.f32 %v5547_v41, %v5545_v42 }
 0xcb5   :  { %v5531_v2 = vpop.f32.mrf.mxu2 }
 0xcb6   :  { %v15397_v22 = vadd.f32 %v5531_v2, %v15317_v5 }
 0xcb8   :  { %v5549_v25 = vmax.f32 %v15397_v22, 0.0 }
 0xcba   :  { %v5562_v1 = vadd.f32 %v5561_v35, %v5549_v25  ;;  %v11217_v35 = vld [vmem:[%s15484_s29 + $0xf0] sm:$0xf] }
 0xcbd   :  { %v5533_v61 = vpop.f32.mrf.mxu2 }
 0xcbe   :  { %v15409_v26 = vadd.f32 %v5533_v61, %v5480_v23  ;;  %v12775_v61 = vld [vmem:[%s15484_s29 + $0x74] sm:$0xf0] }
 0xcc0   :  { %v5551_v59 = vmax.f32 %v15409_v26, 0.0 }
 0xcc2   :  { %v5563_v10 = vadd.f32 %v5562_v1, %v5551_v59  ;;  %v12774_v1 = vld [vmem:[%s15484_s29 + $0x74] sm:$0xf] }
 0xcc4   :  { %v5564_v30 = vrot.slane %v5563_v10, 4 }
 0xcc6   :  { %v5565_v21 = vadd.f32 %v5564_v30, %v5563_v10 }
 0xcc8   :  { %v5566_v28 = vrot.slane %v5565_v21, 2 }
 0xcca   :  { %v5567_v5 = vadd.f32 %v5566_v28, %v5565_v21  ;;  %v12790_v21 = vld [vmem:[%s15484_s29 + $0xf4] sm:$0xf]  ;;  %v11219_v28 = vld [vmem:[%s15484_s29 + $0xf8] sm:$0xf0] }
 0xccc   :  { %v5568_v14 = vrot.slane %v5567_v5, 1 }
 0xcce   :  { %v5569_v0 = vadd.f32 %v5568_v14, %v5567_v5  ;;  %v11222_v5 = vor.u32 %v12790_v21, %v11219_v28  ;;  %v11145_v14 = vld [vmem:[%s15484_s29 + $0x60] sm:$0xf]  ;;  %v12765_v21 = vld [vmem:[%s15484_s29 + $0x24] sm:$0xf0] }
 0xcd0   :  { %5638 = vmatmul.f32.vlgmr.msrb.gmra.mxu0 %v5569_v0  ;;  %v12773_v0 = vld [vmem:[%s15484_s29 + $0x64] sm:$0xf0] }
 0xd2b   :  { %v5619_v31 = vpop.f32.mrf.mxu3 }
 0xd4d   :  { %v5639_v23 = vpop.f32.mrf.mxu0 }
 0xd4e   :  { %v5640_v47 = vadd.f32 %v5639_v23, %v5619_v31  ;;  %v12772_v31 = vld [vmem:[%s15484_s29 + $0x64] sm:$0xf]  ;;  %v11147_v23 = vld [vmem:[%s15484_s29 + $0x68] sm:$0xf0] }
 0xd50   :  { %11091 = vmatmul.msk.f32.vlgmr.msra.gmra.mxu1 %vm442_vm6, %v5640_v47 }
 0xd51   :  { %5747 = vmatpush.msra.mxu1 %v15326_v57 }
 0xd53   :  { %5748 = vmatpush.msra.mxu1 %v15329_v36 }
 0xd55   :  { %5749 = vmatpush.msra.mxu1 %v15346_v49 }
 0xd57   :  { %5750 = vmatpush.msra.mxu1 %v15349_v11 }
 0xd58   :  { %11092 = vmatmul.msk.f32.vlgmr.msrb.gmra.mxu1 %vm442_vm6, %v5640_v47  ;;  %v12788_v47 = vld [vmem:[%s15484_s29 + $0xe4] sm:$0xf] }
 0xd59   :  { %5751 = vmatpush.msra.mxu1 %v15360_v55 }
 0xd5b   :  { %5752 = vmatpush.msra.mxu1 %v15367_v44 }
 0xd5d   :  { %5753 = vmatpush.msra.mxu1 %v15374_v12 }
 0xd5f   :  { %5754 = vmatpush.msra.mxu1 %v15377_v38 }
 0xd61   :  { %5755 = vmatpush.msra.mxu1 %v15381_v13 }
 0xd63   :  { %5756 = vmatpush.msra.mxu1 %v5592_v46 }
 0xd65   :  { %5757 = vmatpush.msra.mxu1 %v5591_v45 }
 0xd67   :  { %5758 = vmatpush.msra.mxu1 %v5590_v58 }
 0xd69   :  { %5759 = vmatpush.msra.mxu1 %v5589_v53 }
 0xd6b   :  { %5760 = vmatpush.msra.mxu1 %v5588_v6 }
 0xd6d   :  { %5761 = vmatpush.msra.mxu1 %v5587_v39  ;;  %v11153_v39 = vld [vmem:[%s15484_s29 + $0x70] sm:$0xf] }
 0xd6e   :  { %v11154_v26 = vor.u32 %v12775_v61, %v11153_v39  ;;  %v11185_v39 = vld [vmem:[%s15484_s29 + $0xb0] sm:$0xf]  ;;  %v12783_v61 = vld [vmem:[%s15484_s29 + $0xb4] sm:$0xf0] }
 0xd6f   :  { %5762 = vmatpush.msra.mxu1 %v5586_v9  ;;  %v12791_v9 = vld [vmem:[%s15484_s29 + $0xf4] sm:$0xf0] }
 0xd70   :  { %v11218_v10 = vor.u32 %v12791_v9, %v11217_v35  ;;  %6072 = vmatpush.bf16.msra.mxu2 %v11154_v26  ;;  %v12766_v26 = vld [vmem:[%s15484_s29 + $0x34] sm:$0xf]  ;;  %v11123_v9 = vld [vmem:[%s15484_s29 + $0x38] sm:$0xf0] }
 0xd71   :  { %5784 = vmatpush.msrb.mxu1 %v5644_v17  ;;  %v11146_v17 = vor.u32 %v12773_v0, %v11145_v14  ;;  %v11126_v28 = vor.u32 %v12766_v26, %v11123_v9  ;;  %v12781_v14 = vld [vmem:[%s15484_s29 + $0xa4] sm:$0xf0] }
 0xd72   :  { %6091 = vmatpush.bf16.msrb.mxu3 %v11218_v10  ;;  %v11187_v10 = vld [vmem:[%s15484_s29 + $0xb8] sm:$0xf0] }
 0xd73   :  { %5785 = vmatpush.msrb.mxu1 %v5642_v24  ;;  %v11209_v24 = vld [vmem:[%s15484_s29 + $0xe0] sm:$0xf] }
 0xd74   :  { %6073 = vmatpush.bf16.msra.mxu2 %v11146_v17  ;;  %v11210_v50 = vor.u32 %v12789_v33, %v11209_v24  ;;  %v12764_v24 = vld [vmem:[%s15484_s29 + $0x24] sm:$0xf]  ;;  %v11115_v33 = vld [vmem:[%s15484_s29 + $0x28] sm:$0xf0] }
 0xd76   :  { %6092 = vmatpush.bf16.msrb.mxu3 %v11210_v50  ;;  %v12780_v50 = vld [vmem:[%s15484_s29 + $0xa4] sm:$0xf] }
 0xdcd   :  { %v5666_v57 = vpop.f32.mrf.mxu1 }
 0xdce   :  { %v5689_v36 = vmul.f32 0.001953125, %v5666_v57  ;;  %v11150_v57 = vor.u32 %v12772_v31, %v11147_v23  ;;  %v11179_v31 = vld [vmem:[%s15484_s29 + $0xa8] sm:$0xf0]  ;;  %v11105_v23 = vld [vmem:[%s15484_s29 + $0x10] sm:$0xf] }
 0xdd0   :  { %v5691_v49 = vperm.slane %v5689_v36, 0  ;;  %v11211_v36 = vld [vmem:[%s15484_s29 + $0xe8] sm:$0xf0] }
 0xdd2   :  { %v15433_v11 = vsub.f32 %v5544_v40, %v5691_v49  ;;  %v15437_v20 = vsub.f32 %v5546_v52, %v5691_v49  ;;  %v15441_v19 = vsub.f32 %v5548_v4, %v5691_v49  ;;  %v15445_v55 = vsub.f32 %v5550_v60, %v5691_v49  ;;  %v11137_v49 = vld [vmem:[%s15484_s29 + $0x50] sm:$0xf] }
 0xdd4   :  { %v5701_v63 = vmul.f32 %v15433_v11, %v15433_v11  ;;  %v5703_v62 = vmul.f32 %v15437_v20, %v15437_v20  ;;  %v5705_v8 = vmul.f32 %v15441_v19, %v15441_v19  ;;  %v5707_v48 = vmul.f32 %v15445_v55, %v15445_v55 }
 0xdd5   :  { %v5686_v40 = vpop.f32.mrf.mxu1 }
 0xdd6   :  { %v5709_v52 = vadd.f32 %v5703_v62, %v5701_v63  ;;  %v5690_v44 = vmul.f32 0.001953125, %v5686_v40  ;;  %v12771_v63 = vld [vmem:[%s15484_s29 + $0x54] sm:$0xf0]  ;;  %v11214_v62 = vor.u32 %v12788_v47, %v11211_v36 }
 0xdd7   :  { %v11138_v40 = vor.u32 %v12771_v63, %v11137_v49  ;;  %v12763_v47 = vld [vmem:[%s15484_s29 + $0x14] sm:$0xf0] }
 0xdd8   :  { %v5710_v4 = vadd.f32 %v5709_v52, %v5705_v8  ;;  %v5692_v16 = vperm.slane %v5690_v44, 0  ;;  %v11201_v8 = vld [vmem:[%s15484_s29 + $0xd0] sm:$0xf]  ;;  %v12787_v52 = vld [vmem:[%s15484_s29 + $0xd4] sm:$0xf0] }
 0xdd9   :  { %v12770_v44 = vld [vmem:[%s15484_s29 + $0x54] sm:$0xf]  ;;  %6074 = vmatpush.bf16.msra.mxu2 %v11138_v40  ;;  %v11169_v40 = vld [vmem:[%s15484_s29 + $0x90] sm:$0xf] }
 0xdda   :  { %v5711_v18 = vadd.f32 %v5710_v4, %v5707_v48  ;;  %v15457_v60 = vsub.f32 %v5545_v42, %v5692_v16  ;;  %v15461_v56 = vsub.f32 %v5547_v41, %v5692_v16  ;;  %v15465_v3 = vsub.f32 %v5549_v25, %v5692_v16 }
 0xddb   :  { %v15469_v7 = vsub.f32 %v5551_v59, %v5692_v16  ;;  %v11155_v59 = vld [vmem:[%s15484_s29 + $0x78] sm:$0xf0]  ;;  %v11202_v16 = vor.u32 %v12787_v52, %v11201_v8  ;;  %v12779_v8 = vld [vmem:[%s15484_s29 + $0x94] sm:$0xf0]  ;;  %v12762_v52 = vld [vmem:[%s15484_s29 + $0x14] sm:$0xf] }
 0xddc   :  { %v5712_v29 = vrot.slane %v5711_v18, 4  ;;  %v5702_v27 = vmul.f32 %v15457_v60, %v15457_v60  ;;  %v5704_v37 = vmul.f32 %v15461_v56, %v15461_v56  ;;  %v5706_v34 = vmul.f32 %v15465_v3, %v15465_v3 }
 0xddd   :  { %v5708_v38 = vmul.f32 %v15469_v7, %v15469_v7  ;;  %v11158_v30 = vor.u32 %v12774_v1, %v11155_v59  ;;  %6093 = vmatpush.bf16.msrb.mxu3 %v11202_v16  ;;  %v12782_v1 = vld [vmem:[%s15484_s29 + $0xb4] sm:$0xf]  ;;  %v11186_v59 = vor.u32 %v12783_v61, %v11185_v39  ;;  %v11107_v16 = vld [vmem:[%s15484_s29 + $0x18] sm:$0xf0]  ;;  %v11377_v61 = vld [vmem:[%s15484_s29 + $0x1f0] sm:$0xf] }
 0xdde   :  { %v5718_v51 = vadd.f32 %v5704_v37, %v5702_v27  ;;  %v5713_v12 = vadd.f32 %v5712_v29, %v5711_v18  ;;  %v11139_v18 = vld [vmem:[%s15484_s29 + $0x58] sm:$0xf0]  ;;  %v12786_v29 = vld [vmem:[%s15484_s29 + $0xd4] sm:$0xf]  ;;  %v11190_v0 = vor.u32 %v12782_v1, %v11187_v10 }
 0xddf   :  { %6110 = vmatpush.bf16.msrb.mxu0 %v11158_v30  ;;  %v11203_v27 = vld [vmem:[%s15484_s29 + $0xd8] sm:$0xf0]  ;;  %v11113_v30 = vld [vmem:[%s15484_s29 + $0x20] sm:$0xf]  ;;  %v12806_v1 = vld [vmem:[%s15484_s29 + $0x174] sm:$0xf] }
 0xde0   :  { %v5719_v13 = vadd.f32 %v5718_v51, %v5706_v34  ;;  %v5714_v32 = vrot.slane %v5713_v12, 2  ;;  %v11142_v51 = vor.u32 %v12770_v44, %v11139_v18  ;;  %v11114_v17 = vor.u32 %v12765_v21, %v11113_v30  ;;  %v12778_v18 = vld [vmem:[%s15484_s29 + $0x94] sm:$0xf] }
 0xde2   :  { %v5720_v46 = vadd.f32 %v5719_v13, %v5708_v38  ;;  %v5715_v43 = vadd.f32 %v5714_v32, %v5713_v12  ;;  %v11206_v12 = vor.u32 %v12786_v29, %v11203_v27  ;;  %v11129_v38 = vld [vmem:[%s15484_s29 + $0x40] sm:$0xf]  ;;  %v12769_v13 = vld [vmem:[%s15484_s29 + $0x44] sm:$0xf0]  ;;  %v11171_v29 = vld [vmem:[%s15484_s29 + $0x98] sm:$0xf0] }
 0xde3   :  { %6111 = vmatpush.bf16.msrb.mxu0 %v11150_v57  ;;  %v11130_v32 = vor.u32 %v12769_v13, %v11129_v38  ;;  %v11170_v38 = vor.u32 %v12779_v8, %v11169_v40  ;;  %v12777_v13 = vld [vmem:[%s15484_s29 + $0x84] sm:$0xf0] }
 0xde4   :  { %v5721_v45 = vrot.slane %v5720_v46, 4  ;;  %v5716_v2 = vrot.slane %v5715_v43, 1  ;;  %v5845_v8 = vld [vmem:[%s15559_s3 + $0x8] sm:$0xff] }
 0xde5   :  { %6075 = vmatpush.bf16.msra.mxu2 %v11130_v32  ;;  %v12760_v32 = vld [vmem:[%s15484_s29 + $0x4] sm:$0xf] }
 0xde6   :  { %v5722_v15 = vadd.f32 %v5721_v45, %v5720_v46  ;;  %v5717_v58 = vadd.f32 %v5716_v2, %v5715_v43  ;;  %v11193_v46 = vld [vmem:[%s15484_s29 + $0xc0] sm:$0xf]  ;;  %v12785_v43 = vld [vmem:[%s15484_s29 + $0xc4] sm:$0xf0]  ;;  %v12768_v45 = vld [vmem:[%s15484_s29 + $0x44] sm:$0xf] }
 0xde7   :  { %6112 = vmatpush.bf16.msrb.mxu0 %v11142_v51  ;;  %v11161_v51 = vld [vmem:[%s15484_s29 + $0x80] sm:$0xf] }
 0xde8   :  { %5743 = vmatmul.f32.vlgmr.msrb.gmra.mxu2 %v5717_v58  ;;  %v5723_v54 = vrot.slane %v5722_v15, 2  ;;  %v11194_v58 = vor.u32 %v12785_v43, %v11193_v46  ;;  %v11099_v46 = vld [vmem:[%s15484_s29 + $0x8] sm:$0xf0]  ;;  %v11162_v9 = vor.u32 %v12777_v13, %v11161_v51 }
 0xde9   :  { %v11102_v30 = vor.u32 %v12760_v32, %v11099_v46  ;;  %v5861_v51 = vld [vmem:[%s15574_s7 + $0x8] sm:$0xff]  ;;  %v5863_v32 = vld [vmem:[%s15574_s7 + $0x18] sm:$0xff] }
 0xdea   :  { %v5724_v22 = vadd.f32 %v5723_v54, %v5722_v15  ;;  %v11131_v54 = vld [vmem:[%s15484_s29 + $0x48] sm:$0xf0]  ;;  %6094 = vmatpush.bf16.msrb.mxu3 %v11194_v58  ;;  %v12776_v58 = vld [vmem:[%s15484_s29 + $0x84] sm:$0xf] }
 0xdec   :  { %v5725_v53 = vrot.slane %v5724_v22, 1 }
 0xdee   :  { %v5726_v41 = vadd.f32 %v5725_v53, %v5724_v22  ;;  %v11134_v22 = vor.u32 %v12768_v45, %v11131_v54  ;;  %v12784_v53 = vld [vmem:[%s15484_s29 + $0xc4] sm:$0xf]  ;;  %6095 = vmatpush.bf16.msrb.mxu3 %v11186_v59  ;;  %v11110_v45 = vor.u32 %v12762_v52, %v11107_v16  ;;  %v11163_v54 = vld [vmem:[%s15484_s29 + $0x88] sm:$0xf0]  ;;  %v11315_v59 = vld [vmem:[%s15484_s29 + $0x178] sm:$0xf0] }
 0xdef   :  { %v5847_v16 = vld [vmem:[%s15559_s3 + $0x18] sm:$0xff] }
 0xdf0   :  { %5763 = vmatmul.f32.vlgmr.msra.gmra.mxu1 %v5726_v41  ;;  %v11195_v41 = vld [vmem:[%s15484_s29 + $0xc8] sm:$0xf0]  ;;  %6113 = vmatpush.bf16.msrb.mxu0 %v11134_v22 }
 0xdf1   :  { %6129 = vmatpush.bf16.msra.mxu1 %v11222_v5  ;;  %v11177_v5 = vld [vmem:[%s15484_s29 + $0xa0] sm:$0xf] }
 0xdf2   :  { %v11178_v36 = vor.u32 %v12781_v14, %v11177_v5  ;;  %v11379_v5 = vld [vmem:[%s15484_s29 + $0x1f8] sm:$0xf0] }
 0xdf4   :  { %6114 = vmatpush.bf16.msrb.mxu0 %v11126_v28  ;;  %6096 = vmatpush.bf16.msrb.mxu3 %v11178_v36  ;;  %v12822_v28 = vld [vmem:[%s15484_s29 + $0x1f4] sm:$0xf] }
 0xdf5   :  { %6130 = vmatpush.bf16.msra.mxu1 %v11214_v62  ;;  %v11118_v62 = vor.u32 %v12764_v24, %v11115_v33  ;;  %v5844_v33 = vld [vmem:[%s15559_s3] sm:$0xff] }
 0xdf8   :  { %6115 = vmatpush.bf16.msrb.mxu0 %v11118_v62  ;;  %6097 = vmatpush.bf16.msrb.mxu3 %v11170_v38  ;;  %v11307_v62 = vld [vmem:[%s15484_s29 + $0x168] sm:$0xf0] }
 0xdf9   :  { %6131 = vmatpush.bf16.msra.mxu1 %v11206_v12 }
 0xdfc   :  { %6116 = vmatpush.bf16.msrb.mxu0 %v11110_v45  ;;  %6098 = vmatpush.bf16.msrb.mxu3 %v11162_v9 }
 0xe00   :  { %6117 = vmatpush.bf16.msrb.mxu0 %v11102_v30 }
 0xe6b   :  { %v5744_v6 = vpop.f32.mrf.mxu2 }
 0xe6d   :  { %v5764_v42 = vpop.f32.mrf.mxu1 }
 0xe6e   :  { %v5765_v25 = vadd.f32 %v5764_v42, %v5744_v6  ;;  %v11121_v6 = vld [vmem:[%s15484_s29 + $0x30] sm:$0xf]  ;;  %v11198_v42 = vor.u32 %v12784_v53, %v11195_v41  ;;  %v11174_v53 = vor.u32 %v12778_v18, %v11171_v29  ;;  %v5860_v18 = vld [vmem:[%s15574_s7] sm:$0xff] }
 0xe6f   :  { %v5862_v29 = vld [vmem:[%s15574_s7 + $0x10] sm:$0xff] }
 0xe70   :  { %11093 = vmatmul.msk.f32.vlgmr.msrb.gmra.mxu1 %vm442_vm6, %v5765_v25  ;;  %11094 = vmatmul.msk.f32.vlgmr.msra.gmra.mxu0 %vm442_vm6, %v5765_v25  ;;  %v12767_v25 = vld [vmem:[%s15484_s29 + $0x34] sm:$0xf0] }
 0xe71   :  { %v11122_v35 = vor.u32 %v12767_v25, %v11121_v6  ;;  %6132 = vmatpush.bf16.msra.mxu1 %v11198_v42  ;;  %v11313_v6 = vld [vmem:[%s15484_s29 + $0x170] sm:$0xf]  ;;  %v12807_v42 = vld [vmem:[%s15484_s29 + $0x174] sm:$0xf0] }
 0xe72   :  { %v11314_v39 = vor.u32 %v12807_v42, %v11313_v6  ;;  %v11363_v42 = vld [vmem:[%s15484_s29 + $0x1d8] sm:$0xf0] }
 0xe73   :  { %6076 = vmatpush.bf16.msra.mxu2 %v11122_v35  ;;  %v12823_v35 = vld [vmem:[%s15484_s29 + $0x1f4] sm:$0xf0] }
 0xe74   :  { %v11378_v21 = vor.u32 %v12823_v35, %v11377_v61 }
 0xe75   :  { %6133 = vmatpush.bf16.msra.mxu1 %v11190_v0  ;;  %v11166_v0 = vor.u32 %v12776_v58, %v11163_v54  ;;  %v12802_v58 = vld [vmem:[%s15484_s29 + $0x154] sm:$0xf]  ;;  %v11299_v54 = vld [vmem:[%s15484_s29 + $0x158] sm:$0xf0] }
 0xe76   :  { %6360 = vmatpush.bf16.msra.mxu3 %v11378_v21 }
 0xe77   :  { %6077 = vmatpush.bf16.msra.mxu2 %v11114_v17  ;;  %v12805_v17 = vld [vmem:[%s15484_s29 + $0x164] sm:$0xf0] }
 0xeed   :  { %v5787_v48 = vpop.f32.mrf.mxu1  ;;  %v5807_v4 = vpop.f32.mrf.mxu0 }
 0xeee   :  { %v5810_v37 = vmul.f32 0.001953125, %v5787_v48  ;;  %v5811_v34 = vmul.f32 0.001953125, %v5807_v4  ;;  %v11182_v48 = vor.u32 %v12780_v50, %v11179_v31  ;;  %v11106_v4 = vor.u32 %v12763_v47, %v11105_v23  ;;  %v11369_v31 = vld [vmem:[%s15484_s29 + $0x1e0] sm:$0xf]  ;;  %v5846_v47 = vld [vmem:[%s15559_s3 + $0x10] sm:$0xff] }
 0xeef   :  { %v11318_v50 = vor.u32 %v12806_v1, %v11315_v59  ;;  %v11302_v1 = vor.u32 %v12802_v58, %v11299_v54  ;;  %v11353_v59 = vld [vmem:[%s15484_s29 + $0x1c0] sm:$0xf]  ;;  %v12795_v58 = vld [vmem:[%s15484_s29 + $0x114] sm:$0xf0] }
 0xef0   :  { %v15515_v2 = vadd.f32 1e-05, %v5810_v37  ;;  %v15517_v15 = vadd.f32 1e-05, %v5811_v34  ;;  %v11097_v37 = vld [vmem:[%s15484_s29] sm:$0xf]  ;;  %6134 = vmatpush.bf16.msra.mxu1 %v11182_v48  ;;  %6078 = vmatpush.bf16.msra.mxu2 %v11106_v4 }
 0xef1   :  { %v12761_v34 = vld [vmem:[%s15484_s29 + $0x4] sm:$0xf0]  ;;  %v11371_v48 = vld [vmem:[%s15484_s29 + $0x1e8] sm:$0xf0]  ;;  %6379 = vmatpush.bf16.msra.mxu0 %v11318_v50 }
 0xef2   :  { %13090 = vrsqrt.f32 %v15515_v2  ;;  %v11098_v41 = vor.u32 %v12761_v34, %v11097_v37  ;;  %vm5820_vm9 = vweird.f32 %v15515_v2  ;;  %vm5830_vm12 = vweird.f32 %v15517_v15 }
 0xef3   :  { %13092 = vrsqrt.f32 %v15517_v15 }
 0xef4   :  { %6135 = vmatpush.bf16.msra.mxu1 %v11174_v53  ;;  %6079 = vmatpush.bf16.msra.mxu2 %v11098_v41 }
 0xef8   :  { %v15542_v57 = vpop.eup %13090  ;;  %6341 = vmatpush.bf16.msrb.mxu2 %v11314_v39  ;;  %6136 = vmatpush.bf16.msra.mxu1 %v11166_v0  ;;  %v12801_v39 = vld [vmem:[%s15484_s29 + $0x144] sm:$0xf0]  ;;  %v12816_v0 = vld [vmem:[%s15484_s29 + $0x1c4] sm:$0xf] }
 0xef9   :  { %v15544_v49 = vpop.eup %13092  ;;  %v5815_v63 = vmul.f32 %v15542_v57, %v15515_v2  ;;  %vm5821_vm6 = vweird.f32 %v15542_v57  ;;  %v11305_v2 = vld [vmem:[%s15484_s29 + $0x160] sm:$0xf] }
 0xefa   :  { %v5825_v44 = vmul.f32 %v15544_v49, %v15517_v15  ;;  %vm5831_vm8 = vweird.f32 %v15544_v49  ;;  %vm5822_vm10 = vmor %vm5820_vm9, %vm5821_vm6  ;;  %v12821_v15 = vld [vmem:[%s15484_s29 + $0x1e4] sm:$0xf0]  ;;  %v11306_v52 = vor.u32 %v12805_v17, %v11305_v2  ;;  %v11355_v2 = vld [vmem:[%s15484_s29 + $0x1c8] sm:$0xf0] }
 0xefb   :  { %v5816_v27 = vmul.f32 %v15542_v57, %v5815_v63  ;;  %vm5832_vm13 = vmor %vm5830_vm12, %vm5831_vm8  ;;  %v12804_v63 = vld [vmem:[%s15484_s29 + $0x164] sm:$0xf]  ;;  %v11281_v17 = vld [vmem:[%s15484_s29 + $0x130] sm:$0xf] }
 0xefc   :  { %v5826_v12 = vmul.f32 %v15544_v49, %v5825_v44  ;;  %v12820_v44 = vld [vmem:[%s15484_s29 + $0x1e4] sm:$0xf]  ;;  %6342 = vmatpush.bf16.msrb.mxu2 %v11306_v52  ;;  %v12798_v52 = vld [vmem:[%s15484_s29 + $0x134] sm:$0xf] }
 0xefd   :  { %v5817_v43 = vmul.f32 0.5, %v5816_v27  ;;  %v11370_v27 = vor.u32 %v12821_v15, %v11369_v31  ;;  %v11374_v46 = vor.u32 %v12820_v44, %v11371_v48  ;;  %v5848_v31 = vld [vmem:[%s15559_s3 + $0x20] sm:$0xff]  ;;  %v5850_v15 = vld [vmem:[%s15559_s3 + $0x30] sm:$0xff]  ;;  %v11283_v44 = vld [vmem:[%s15484_s29 + $0x138] sm:$0xf0] }
 0xefe   :  { %v5827_v22 = vmul.f32 0.5, %v5826_v12  ;;  %v12803_v12 = vld [vmem:[%s15484_s29 + $0x154] sm:$0xf0]  ;;  %v12814_v48 = vld [vmem:[%s15484_s29 + $0x1b4] sm:$0xf] }
 0xeff   :  { %v5818_v25 = vsub.f32 1.5, %v5817_v43  ;;  %v12819_v43 = vld [vmem:[%s15484_s29 + $0x1d4] sm:$0xf0]  ;;  %6361 = vmatpush.bf16.msra.mxu3 %v11370_v27  ;;  %v5864_v27 = vld [vmem:[%s15574_s7 + $0x20] sm:$0xff] }
 0xf00   :  { %v5828_v26 = vsub.f32 1.5, %v5827_v22  ;;  %v12818_v22 = vld [vmem:[%s15484_s29 + $0x1d4] sm:$0xf] }
 0xf01   :  { %v5819_v10 = vmul.f32 %v15542_v57, %v5818_v25  ;;  %v11289_v25 = vld [vmem:[%s15484_s29 + $0x140] sm:$0xf]  ;;  %v11366_v21 = vor.u32 %v12818_v22, %v11363_v42  ;;  %v11329_v42 = vld [vmem:[%s15484_s29 + $0x190] sm:$0xf] }
 0xf02   :  { %v5829_v14 = vmul.f32 %v15544_v49, %v5828_v26 }
 0xf03   :  { %v5823_v24 = vsel %vm5822_vm10, %v15542_v57, %v5819_v10  ;;  %v11382_v57 = vor.u32 %v12822_v28, %v11379_v5  ;;  %v12817_v10 = vld [vmem:[%s15484_s29 + $0x1c4] sm:$0xf0]  ;;  %v11290_v28 = vor.u32 %v12801_v39, %v11289_v25  ;;  %v12800_v5 = vld [vmem:[%s15484_s29 + $0x144] sm:$0xf]  ;;  %v12811_v25 = vld [vmem:[%s15484_s29 + $0x194] sm:$0xf0] }
 0xf04   :  { %v15600_v23 = vperm.slane %v5823_v24, 0  ;;  %v5833_v36 = vsel %vm5832_vm13, %v15544_v49, %v5829_v14  ;;  %v11291_v14 = vld [vmem:[%s15484_s29 + $0x148] sm:$0xf0]  ;;  %v12799_v24 = vld [vmem:[%s15484_s29 + $0x134] sm:$0xf0] }
 0xf05   :  { %v15606_v40 = vperm.slane %v5833_v36, 0  ;;  %6398 = vmatpush.bf16.msrb.mxu1 %v11382_v57  ;;  %v5851_v57 = vld [vmem:[%s15559_s3 + $0x38] sm:$0xff] }
 0xf06   :  { %v5836_v49 = vmul.f32 %v15600_v23, %v15433_v11  ;;  %v5838_v4 = vmul.f32 %v15600_v23, %v15437_v20  ;;  %v11310_v11 = vor.u32 %v12804_v63, %v11307_v62  ;;  %v11297_v20 = vld [vmem:[%s15484_s29 + $0x150] sm:$0xf]  ;;  %v5842_v50 = vmul.f32 %v15600_v23, %v15445_v55  ;;  %v12815_v63 = vld [vmem:[%s15484_s29 + $0x1b4] sm:$0xf0] }
 0xf07   :  { %v5837_v37 = vmul.f32 %v15606_v40, %v15457_v60  ;;  %v5839_v34 = vmul.f32 %v15606_v40, %v15461_v56  ;;  %v11361_v60 = vld [vmem:[%s15484_s29 + $0x1d0] sm:$0xf]  ;;  %v11298_v6 = vor.u32 %v12803_v12, %v11297_v20  ;;  %v5841_v36 = vmul.f32 %v15606_v40, %v15465_v3  ;;  %v11337_v20 = vld [vmem:[%s15484_s29 + $0x1a0] sm:$0xf]  ;;  %v12813_v12 = vld [vmem:[%s15484_s29 + $0x1a4] sm:$0xf0] }
 0xf08   :  { %v5852_v38 = vmul.f32 %v5844_v33, %v5836_v49  ;;  %v5854_v13 = vmul.f32 %v5846_v47, %v5838_v4  ;;  %6380 = vmatpush.bf16.msra.mxu0 %v11310_v11  ;;  %v11362_v9 = vor.u32 %v12819_v43, %v11361_v60  ;;  %v5840_v33 = vmul.f32 %v15600_v23, %v15441_v19  ;;  %v5849_v47 = vld [vmem:[%s15559_s3 + $0x28] sm:$0xff]  ;;  %v11345_v23 = vld [vmem:[%s15484_s29 + $0x1b0] sm:$0xf]  ;;  %v11347_v49 = vld [vmem:[%s15484_s29 + $0x1b8] sm:$0xf0]  ;;  %s8934_s3 = sld [smem:[%s16456_s0 + %s13167_s30]]  }
 0xf09   :  { %v5853_v45 = vmul.f32 %v5845_v8, %v5837_v37  ;;  %v5855_v56 = vmul.f32 %v5847_v16, %v5839_v34  ;;  %6399 = vmatpush.bf16.msrb.mxu1 %v11374_v46  ;;  %6343 = vmatpush.bf16.msrb.mxu2 %v11298_v6  ;;  %v11354_v19 = vor.u32 %v12817_v10, %v11353_v59  ;;  %v11273_v4 = vld [vmem:[%s15484_s29 + $0x120] sm:$0xf]  ;;  %v12797_v16 = vld [vmem:[%s15484_s29 + $0x124] sm:$0xf0]  ;;  %v5866_v37 = vld [vmem:[%s15574_s7 + $0x30] sm:$0xff] }
 0xf0a   :  { %v5868_v53 = vadd.f32 %v5860_v18, %v5852_v38  ;;  %v5870_v41 = vadd.f32 %v5862_v29, %v5854_v13  ;;  %6362 = vmatpush.bf16.msra.mxu3 %v11362_v9  ;;  %v11294_v55 = vor.u32 %v12800_v5, %v11291_v14  ;;  %v5843_v62 = vmul.f32 %v15606_v40, %v15469_v7  ;;  %v5865_v7 = vld [vmem:[%s15574_s7 + $0x28] sm:$0xff]  ;;  %v5867_v34 = vld [vmem:[%s15574_s7 + $0x38] sm:$0xff]  ;;  %v12796_v46 = vld [vmem:[%s15484_s29 + $0x124] sm:$0xf]  ;;  %s8957_s7 = sld [smem:[%s16456_s0 + %s13168_s4]]  }
 0xf0b   :  { %v5869_v61 = vadd.f32 %v5861_v51, %v5853_v45  ;;  %v5871_v35 = vadd.f32 %v5863_v32, %v5855_v56  ;;  %v11358_v8 = vor.u32 %v12816_v0, %v11355_v2  ;;  %v11282_v3 = vor.u32 %v12799_v24, %v11281_v17  ;;  %v11275_v60 = vld [vmem:[%s15484_s29 + $0x128] sm:$0xf0]  ;;  %v12812_v43 = vld [vmem:[%s15484_s29 + $0x1a4] sm:$0xf]  ;;  %v11265_v56 = vld [vmem:[%s15484_s29 + $0x110] sm:$0xf] }
 0xf0c   :  { %v15634_v26 = vpack.c.bf16 %v5870_v41, %v5868_v53  ;;  %6381 = vmatpush.bf16.msra.mxu0 %v11302_v1  ;;  %v5856_v18 = vmul.f32 %v5848_v31, %v5840_v33  ;;  %v5858_v29 = vmul.f32 %v5850_v15, %v5842_v50  ;;  %v5857_v40 = vmul.f32 %v5849_v47, %v5841_v36  ;;  %v11339_v45 = vld [vmem:[%s15484_s29 + $0x1a8] sm:$0xf0]  ;;  %v12794_v9 = vld [vmem:[%s15484_s29 + $0x114] sm:$0xf]  ;;  %v11267_v1 = vld [vmem:[%s15484_s29 + $0x118] sm:$0xf0] }
 0xf0d   :  { %v15638_v30 = vpack.c.bf16 %v5871_v35, %v5869_v61  ;;  %6400 = vmatpush.bf16.msrb.mxu1 %v11366_v21  ;;  %6344 = vmatpush.bf16.msrb.mxu2 %v11290_v28  ;;  %v11346_v51 = vor.u32 %v12815_v63, %v11345_v23  ;;  %v11286_v11 = vor.u32 %v12798_v52, %v11283_v44  ;;  %v12810_v59 = vld [vmem:[%s15484_s29 + $0x194] sm:$0xf]  ;;  %v11331_v10 = vld [vmem:[%s15484_s29 + $0x198] sm:$0xf0]  ;;  %v11257_v21 = vld [vmem:[%s15484_s29 + $0x100] sm:$0xf] }
 0xf0e   :  { %6080 = vmatmul.bf16.vlgmr.msra.gmra.mxu2 %v15634_v26  ;;  %6118 = vmatmul.bf16.vlgmr.msrb.gmra.mxu0 %v15634_v26  ;;  %v5859_v38 = vmul.f32 %v5851_v57, %v5843_v62  ;;  %v11350_v13 = vor.u32 %v12814_v48, %v11347_v49  ;;  %v11274_v32 = vor.u32 %v12797_v16, %v11273_v4  ;;  %v12793_v28 = vld [vmem:[%s15484_s29 + $0x104] sm:$0xf0]  ;;  %v11473_v5 = vld [vmem:[%s15484_s29 + $0x270] sm:$0xf]  ;;  %v12839_v14 = vld [vmem:[%s15484_s29 + $0x274] sm:$0xf0] }
 0xf0f   :  { %6099 = vmatmul.bf16.vlgmr.msrb.gmra.mxu3 %v15638_v30  ;;  %6137 = vmatmul.bf16.vlgmr.msra.gmra.mxu1 %v15638_v30  ;;  %v5872_v54 = vadd.f32 %v5864_v27, %v5856_v18  ;;  %v5874_v22 = vadd.f32 %v5866_v37, %v5858_v29  ;;  %v5873_v53 = vadd.f32 %v5865_v7, %v5857_v40  ;;  %v11321_v24 = vld [vmem:[%s15484_s29 + $0x180] sm:$0xf]  ;;  %v12809_v33 = vld [vmem:[%s15484_s29 + $0x184] sm:$0xf0]  ;;  %v12792_v50 = vld [vmem:[%s15484_s29 + $0x104] sm:$0xf] }
 0xf10   :  { %6363 = vmatpush.bf16.msra.mxu3 %v11354_v19  ;;  %6382 = vmatpush.bf16.msra.mxu0 %v11294_v55  ;;  %v11338_v41 = vor.u32 %v12813_v12, %v11337_v20  ;;  %v11278_v6 = vor.u32 %v12796_v46, %v11275_v60  ;;  %v5875_v39 = vadd.f32 %v5867_v34, %v5859_v38  ;;  %v11259_v36 = vld [vmem:[%s15484_s29 + $0x108] sm:$0xf0]  ;;  %v12808_v57 = vld [vmem:[%s15484_s29 + $0x184] sm:$0xf]  ;;  %v11537_v23 = vld [vmem:[%s15484_s29 + $0x2f0] sm:$0xf] }
 0xf11   :  { %6401 = vmatpush.bf16.msrb.mxu1 %v11358_v8  ;;  %6345 = vmatpush.bf16.msrb.mxu2 %v11282_v3  ;;  %v11342_v61 = vor.u32 %v12812_v43, %v11339_v45  ;;  %v11266_v35 = vor.u32 %v12795_v58, %v11265_v56  ;;  %v15692_v0 = vpack.c.bf16 %v5874_v22, %v5872_v54  ;;  %v11323_v19 = vld [vmem:[%s15484_s29 + $0x188] sm:$0xf0]  ;;  %v12855_v63 = vld [vmem:[%s15484_s29 + $0x2f4] sm:$0xf0]  ;;  %v12838_v62 = vld [vmem:[%s15484_s29 + $0x274] sm:$0xf] }
 0xf12   :  { %v11330_v2 = vor.u32 %v12811_v25, %v11329_v42  ;;  %v11270_v17 = vor.u32 %v12794_v9, %v11267_v1  ;;  %v15697_v31 = vpack.c.bf16 %v5875_v39, %v5873_v53  ;;  %v11334_v15 = vor.u32 %v12810_v59, %v11331_v10  ;;  %v11475_v8 = vld [vmem:[%s15484_s29 + $0x278] sm:$0xf0]  ;;  %v12854_v3 = vld [vmem:[%s15484_s29 + $0x2f4] sm:$0xf]  ;;  %v11465_v49 = vld [vmem:[%s15484_s29 + $0x260] sm:$0xf] }
 0xf13   :  { %v11258_v47 = vor.u32 %v12793_v28, %v11257_v21  ;;  %v11474_v55 = vor.u32 %v12839_v14, %v11473_v5  ;;  %v11539_v52 = vld [vmem:[%s15484_s29 + $0x2f8] sm:$0xf0]  ;;  %v11322_v44 = vor.u32 %v12809_v33, %v11321_v24  ;;  %v11262_v48 = vor.u32 %v12792_v50, %v11259_v36  ;;  %v12837_v4 = vld [vmem:[%s15484_s29 + $0x264] sm:$0xf0]  ;;  %v11529_v37 = vld [vmem:[%s15484_s29 + $0x2e0] sm:$0xf] }
 0xf14   :  { %6364 = vmatpush.bf16.msra.mxu3 %v11346_v51  ;;  %6383 = vmatpush.bf16.msra.mxu0 %v11286_v11  ;;  %v11326_v16 = vor.u32 %v12808_v57, %v11323_v19  ;;  %v11538_v18 = vor.u32 %v12855_v63, %v11537_v23  ;;  %v11478_v29 = vor.u32 %v12838_v62, %v11475_v8  ;;  %v12853_v7 = vld [vmem:[%s15484_s29 + $0x2e4] sm:$0xf0]  ;;  %v12836_v40 = vld [vmem:[%s15484_s29 + $0x264] sm:$0xf]  ;;  %v11467_v51 = vld [vmem:[%s15484_s29 + $0x268] sm:$0xf0] }
 0xf15   :  { %6402 = vmatpush.bf16.msrb.mxu1 %v11350_v13  ;;  %6346 = vmatpush.bf16.msrb.mxu2 %v11274_v32  ;;  %v11542_v27 = vor.u32 %v12854_v3, %v11539_v52  ;;  %v11466_v34 = vor.u32 %v12837_v4, %v11465_v49  ;;  %v12852_v11 = vld [vmem:[%s15484_s29 + $0x2e4] sm:$0xf]  ;;  %v11531_v20 = vld [vmem:[%s15484_s29 + $0x2e8] sm:$0xf0]  ;;  %v11457_v12 = vld [vmem:[%s15484_s29 + $0x250] sm:$0xf]  ;;  %v11530_v13 = vor.u32 %v12853_v7, %v11529_v37 }
 0xf16   :  { %v12835_v38 = vld [vmem:[%s15484_s29 + $0x254] sm:$0xf0]  ;;  %v11470_v32 = vor.u32 %v12836_v40, %v11467_v51  ;;  %v11534_v46 = vor.u32 %v12852_v11, %v11531_v20  ;;  %v11521_v60 = vld [vmem:[%s15484_s29 + $0x2d0] sm:$0xf]  ;;  %v12834_v56 = vld [vmem:[%s15484_s29 + $0x254] sm:$0xf] }
 0xf17   :  { %v12851_v43 = vld [vmem:[%s15484_s29 + $0x2d4] sm:$0xf0]  ;;  %v11458_v45 = vor.u32 %v12835_v38, %v11457_v12  ;;  %v11459_v58 = vld [vmem:[%s15484_s29 + $0x258] sm:$0xf0]  ;;  %v12850_v22 = vld [vmem:[%s15484_s29 + $0x2d4] sm:$0xf] }
 0xf18   :  { %6365 = vmatpush.bf16.msra.mxu3 %v11338_v41  ;;  %6384 = vmatpush.bf16.msra.mxu0 %v11278_v6  ;;  %v11522_v54 = vor.u32 %v12851_v43, %v11521_v60  ;;  %v11523_v53 = vld [vmem:[%s15484_s29 + $0x2d8] sm:$0xf0]  ;;  %v11449_v41 = vld [vmem:[%s15484_s29 + $0x240] sm:$0xf]  ;;  %v12833_v6 = vld [vmem:[%s15484_s29 + $0x244] sm:$0xf0]  ;;  %v11462_v39 = vor.u32 %v12834_v56, %v11459_v58 }
 0xf19   :  { %6403 = vmatpush.bf16.msrb.mxu1 %v11342_v61  ;;  %6347 = vmatpush.bf16.msrb.mxu2 %v11266_v35  ;;  %v11513_v42 = vld [vmem:[%s15484_s29 + $0x2c0] sm:$0xf]  ;;  %v12849_v25 = vld [vmem:[%s15484_s29 + $0x2c4] sm:$0xf0]  ;;  %v11526_v61 = vor.u32 %v12850_v22, %v11523_v53  ;;  %v12832_v35 = vld [vmem:[%s15484_s29 + $0x244] sm:$0xf]  ;;  %v11450_v1 = vor.u32 %v12833_v6, %v11449_v41 }
 0xf1a   :  { %v11451_v9 = vld [vmem:[%s15484_s29 + $0x248] sm:$0xf0]  ;;  %v11514_v59 = vor.u32 %v12849_v25, %v11513_v42  ;;  %v12848_v10 = vld [vmem:[%s15484_s29 + $0x2c4] sm:$0xf]  ;;  %v11441_v28 = vld [vmem:[%s15484_s29 + $0x230] sm:$0xf] }
 0xf1b   :  { %v11515_v21 = vld [vmem:[%s15484_s29 + $0x2c8] sm:$0xf0]  ;;  %v12831_v5 = vld [vmem:[%s15484_s29 + $0x234] sm:$0xf0]  ;;  %v11505_v14 = vld [vmem:[%s15484_s29 + $0x2b0] sm:$0xf] }
 0xf1c   :  { %6366 = vmatpush.bf16.msra.mxu3 %v11330_v2  ;;  %6385 = vmatpush.bf16.msra.mxu0 %v11270_v17  ;;  %v12847_v2 = vld [vmem:[%s15484_s29 + $0x2b4] sm:$0xf0]  ;;  %v11454_v17 = vor.u32 %v12832_v35, %v11451_v9  ;;  %v11518_v24 = vor.u32 %v12848_v10, %v11515_v21  ;;  %v12830_v33 = vld [vmem:[%s15484_s29 + $0x234] sm:$0xf]  ;;  %v11443_v50 = vld [vmem:[%s15484_s29 + $0x238] sm:$0xf0] }
 0xf1d   :  { %6404 = vmatpush.bf16.msrb.mxu1 %v11334_v15  ;;  %6348 = vmatpush.bf16.msrb.mxu2 %v11258_v47  ;;  %v11442_v15 = vor.u32 %v12831_v5, %v11441_v28  ;;  %v11506_v47 = vor.u32 %v12847_v2, %v11505_v14  ;;  %v12846_v36 = vld [vmem:[%s15484_s29 + $0x2b4] sm:$0xf]  ;;  %v11507_v57 = vld [vmem:[%s15484_s29 + $0x2b8] sm:$0xf0]  ;;  %v11433_v19 = vld [vmem:[%s15484_s29 + $0x220] sm:$0xf]  ;;  %v11446_v62 = vor.u32 %v12830_v33, %v11443_v50 }
 0xf1e   :  { %6085 = vmatmul.bf16.gmra.mxu2 %v15692_v0  ;;  %6123 = vmatmul.bf16.gmra.mxu0 %v15692_v0  ;;  %v11497_v23 = vld [vmem:[%s15484_s29 + $0x2a0] sm:$0xf]  ;;  %v12845_v63 = vld [vmem:[%s15484_s29 + $0x2a4] sm:$0xf0]  ;;  %v11510_v8 = vor.u32 %v12846_v36, %v11507_v57  ;;  %v12828_v3 = vld [vmem:[%s15484_s29 + $0x224] sm:$0xf] }
 0xf1f   :  { %6104 = vmatmul.bf16.gmra.mxu3 %v15697_v31  ;;  %6142 = vmatmul.bf16.gmra.mxu1 %v15697_v31  ;;  %v11435_v52 = vld [vmem:[%s15484_s29 + $0x228] sm:$0xf0]  ;;  %v12844_v49 = vld [vmem:[%s15484_s29 + $0x2a4] sm:$0xf]  ;;  %v12826_v40 = vld [vmem:[%s15484_s29 + $0x214] sm:$0xf] }
 0xf20   :  { %6367 = vmatpush.bf16.msra.mxu3 %v11322_v44  ;;  %6386 = vmatpush.bf16.msra.mxu0 %v11262_v48  ;;  %v11498_v48 = vor.u32 %v12845_v63, %v11497_v23  ;;  %v11499_v4 = vld [vmem:[%s15484_s29 + $0x2a8] sm:$0xf0]  ;;  %v11438_v37 = vor.u32 %v12828_v3, %v11435_v52  ;;  %v12842_v20 = vld [vmem:[%s15484_s29 + $0x294] sm:$0xf]  ;;  %v11491_v12 = vld [vmem:[%s15484_s29 + $0x298] sm:$0xf0] }
 0xf21   :  { %6610 = vmatpush.bf16.msra.mxu2 %v11474_v55  ;;  %6405 = vmatpush.bf16.msrb.mxu1 %v11326_v16  ;;  %v12829_v55 = vld [vmem:[%s15484_s29 + $0x224] sm:$0xf0]  ;;  %v11425_v16 = vld [vmem:[%s15484_s29 + $0x210] sm:$0xf]  ;;  %v11502_v7 = vor.u32 %v12844_v49, %v11499_v4  ;;  %v11417_v38 = vld [vmem:[%s15484_s29 + $0x200] sm:$0xf]  ;;  %v11494_v43 = vor.u32 %v12842_v20, %v11491_v12 }
 0xf22   :  { %v11434_v44 = vor.u32 %v12829_v55, %v11433_v19  ;;  %v12840_v22 = vld [vmem:[%s15484_s29 + $0x284] sm:$0xf]  ;;  %v11483_v53 = vld [vmem:[%s15484_s29 + $0x288] sm:$0xf0] }
 0xf23   :  { %v11486_v6 = vor.u32 %v12840_v22, %v11483_v53 }
 0xf24   :  { %6629 = vmatpush.bf16.msrb.mxu3 %v11538_v18  ;;  %6648 = vmatpush.bf16.msrb.mxu0 %v11478_v29  ;;  %v12827_v18 = vld [vmem:[%s15484_s29 + $0x214] sm:$0xf0]  ;;  %v11489_v29 = vld [vmem:[%s15484_s29 + $0x290] sm:$0xf] }
 0xf25   :  { %6667 = vmatpush.bf16.msra.mxu1 %v11542_v27  ;;  %6611 = vmatpush.bf16.msra.mxu2 %v11466_v34  ;;  %v12843_v27 = vld [vmem:[%s15484_s29 + $0x294] sm:$0xf0]  ;;  %v11427_v34 = vld [vmem:[%s15484_s29 + $0x218] sm:$0xf0]  ;;  %v11426_v51 = vor.u32 %v12827_v18, %v11425_v16 }
 0xf26   :  { %v11490_v11 = vor.u32 %v12843_v27, %v11489_v29  ;;  %v11430_v60 = vor.u32 %v12826_v40, %v11427_v34 }
 0xf28   :  { %6630 = vmatpush.bf16.msrb.mxu3 %v11530_v13  ;;  %6649 = vmatpush.bf16.msrb.mxu0 %v11470_v32  ;;  %v12825_v13 = vld [vmem:[%s15484_s29 + $0x204] sm:$0xf0]  ;;  %v11481_v32 = vld [vmem:[%s15484_s29 + $0x280] sm:$0xf] }
 0xf29   :  { %6668 = vmatpush.bf16.msra.mxu1 %v11534_v46  ;;  %6612 = vmatpush.bf16.msra.mxu2 %v11458_v45  ;;  %v12841_v46 = vld [vmem:[%s15484_s29 + $0x284] sm:$0xf0]  ;;  %v12824_v45 = vld [vmem:[%s15484_s29 + $0x204] sm:$0xf]  ;;  %v11418_v56 = vor.u32 %v12825_v13, %v11417_v38 }
 0xf2a   :  { %v11482_v58 = vor.u32 %v12841_v46, %v11481_v32 }
 0xf2c   :  { %6631 = vmatpush.bf16.msrb.mxu3 %v11522_v54  ;;  %6650 = vmatpush.bf16.msrb.mxu0 %v11462_v39  ;;  %v11419_v54 = vld [vmem:[%s15484_s29 + $0x208] sm:$0xf0]  ;;  %s8933_s29 = sld [smem:[%s16456_s0 + %s13166_s26]]  }
 0xf2d   :  { %6669 = vmatpush.bf16.msra.mxu1 %v11526_v61  ;;  %6613 = vmatpush.bf16.msra.mxu2 %v11450_v1  ;;  %v11422_v41 = vor.u32 %v12824_v45, %v11419_v54 }
 0xf2e   :  { %6349 = vmatmul.bf16.vlgmr.msrb.gmra.mxu2 %v15634_v26  ;;  %6387 = vmatmul.bf16.vlgmr.msra.gmra.mxu0 %v15634_v26 }
 0xf2f   :  { %6368 = vmatmul.bf16.vlgmr.msra.gmra.mxu3 %v15638_v30  ;;  %6406 = vmatmul.bf16.vlgmr.msrb.gmra.mxu1 %v15638_v30 }
 0xf30   :  { %6632 = vmatpush.bf16.msrb.mxu3 %v11514_v59  ;;  %6651 = vmatpush.bf16.msrb.mxu0 %v11454_v17 }
 0xf31   :  { %6670 = vmatpush.bf16.msra.mxu1 %v11518_v24  ;;  %6614 = vmatpush.bf16.msra.mxu2 %v11442_v15 }
 0xf34   :  { %6633 = vmatpush.bf16.msrb.mxu3 %v11506_v47  ;;  %6652 = vmatpush.bf16.msrb.mxu0 %v11446_v62 }
 0xf35   :  { %6671 = vmatpush.bf16.msra.mxu1 %v11510_v8  ;;  %6615 = vmatpush.bf16.msra.mxu2 %v11434_v44 }
 0xf38   :  { %6634 = vmatpush.bf16.msrb.mxu3 %v11498_v48  ;;  %6653 = vmatpush.bf16.msrb.mxu0 %v11438_v37 }
 0xf39   :  { %6672 = vmatpush.bf16.msra.mxu1 %v11502_v7  ;;  %6616 = vmatpush.bf16.msra.mxu2 %v11426_v51 }
 0xf3c   :  { %6635 = vmatpush.bf16.msrb.mxu3 %v11490_v11  ;;  %6654 = vmatpush.bf16.msrb.mxu0 %v11430_v60 }
 0xf3d   :  { %6673 = vmatpush.bf16.msra.mxu1 %v11494_v43  ;;  %6617 = vmatpush.bf16.msra.mxu2 %v11418_v56 }
 0xf3e   :  { %6354 = vmatmul.bf16.gmra.mxu2 %v15692_v0  ;;  %6392 = vmatmul.bf16.gmra.mxu0 %v15692_v0 }
 0xf3f   :  { %6373 = vmatmul.bf16.gmra.mxu3 %v15697_v31  ;;  %6411 = vmatmul.bf16.gmra.mxu1 %v15697_v31 }
 0xf40   :  { %6636 = vmatpush.bf16.msrb.mxu3 %v11482_v58  ;;  %6655 = vmatpush.bf16.msrb.mxu0 %v11422_v41 }
 0xf41   :  { %6674 = vmatpush.bf16.msra.mxu1 %v11486_v6 }
 0xf4e   :  { %6618 = vmatmul.bf16.vlgmr.msra.gmra.mxu2 %v15634_v26  ;;  %6656 = vmatmul.bf16.vlgmr.msrb.gmra.mxu0 %v15634_v26 }
 0xf4f   :  { %6637 = vmatmul.bf16.vlgmr.msrb.gmra.mxu3 %v15638_v30  ;;  %6675 = vmatmul.bf16.vlgmr.msra.gmra.mxu1 %v15638_v30 }
 0xf5e   :  { %6623 = vmatmul.bf16.gmra.mxu2 %v15692_v0  ;;  %6661 = vmatmul.bf16.gmra.mxu0 %v15692_v0 }
 0xf5f   :  { %6642 = vmatmul.bf16.gmra.mxu3 %v15697_v31  ;;  %6680 = vmatmul.bf16.gmra.mxu1 %v15697_v31 }
 0xf8b   :  { %v15784_v42 = vpop.f32.mrf.mxu0 }
 0xf8c   :  { %v15786_v25 = vpop.f32.mrf.mxu1 }
 0xf91   :  { %v6081_v39 = vpop.f32.mrf.mxu2 }
 0xf92   :  { %v6100_v61 = vpop.f32.mrf.mxu3 }
 0xf93   :  { %v15788_v35 = vadd.f32 %v6100_v61, %v6081_v39  ;;  %v15790_v26 = vpop.f32.mrf.mxu0 }
 0xf94   :  { %v15792_v9 = vpop.f32.mrf.mxu1 }
 0xf99   :  { %v15794_v30 = vpop.f32.mrf.mxu2 }
 0xf9a   :  { %v15796_v1 = vpop.f32.mrf.mxu3 }
 0xf9b   :  { %v6124_v0 = vpop.f32.mrf.mxu0 }
 0xf9c   :  { %v6143_v59 = vpop.f32.mrf.mxu1 }
 0xf9d   :  { %v15800_v14 = vadd.f32 %v6143_v59, %v6124_v0 }
 0xfa1   :  { %v6086_v10 = vpop.f32.mrf.mxu2 }
 0xfa2   :  { %v6105_v31 = vpop.f32.mrf.mxu3 }
 0xfa3   :  { %v15798_v21 = vadd.f32 %v6105_v31, %v6086_v10  ;;  %v6126_v28 = vpop.f32.mrf.mxu0 }
 0xfa4   :  { %v6145_v5 = vpop.f32.mrf.mxu1 }
 0xfa5   :  { %v15802_v2 = vadd.f32 %v6145_v5, %v6126_v28  ;;  %v12858_v5 = vld [vmem:[%s8947_s11] sm:$0xff]  ;;  %s8958_s11 = sld [smem:[%s16456_s0 + %s13169_s8]]  }
 0xfa7   :  { %v6693_v17 = vpack.c.bf16 %v15802_v2, %v15800_v14  ;;  %v12872_v14 = vld [vmem:[%s15840_s19 + $0x64] sm:$0xf0] }
 0xfa9   :  { %v15806_v24 = vpop.f32.mrf.mxu2 }
 0xfaa   :  { %v15808_v33 = vpop.f32.mrf.mxu3 }
 0xfab   :  { %v6388_v50 = vpop.f32.mrf.mxu0 }
 0xfac   :  { %v6407_v15 = vpop.f32.mrf.mxu1 }
 0xfad   :  { %v6408_v10 = vadd.f32 %v6407_v15, %v6388_v50  ;;  %v6141_v50 = vadd.f32 %v15792_v9, %v15790_v26  ;;  %v6103_v26 = vadd.f32 %v15796_v1, %v15794_v30  ;;  %v12874_v30 = vld [vmem:[%s15840_s19 + $0x74] sm:$0xf0]  ;;  %v11615_v1 = vld [vmem:[%s15840_s19 + $0x60] sm:$0xf] }
 0xfae   :  { %v11616_v2 = vor.u32 %v12872_v14, %v11615_v1  ;;  %v12863_v14 = vld [vmem:[%s15840_s19 + $0x24] sm:$0xf] }
 0xfb1   :  { %v15810_v47 = vpop.f32.mrf.mxu2 }
 0xfb2   :  { %v15812_v36 = vpop.f32.mrf.mxu3 }
 0xfb3   :  { %v6390_v57 = vpop.f32.mrf.mxu0  ;;  %v6370_v15 = vadd.f32 %v15812_v36, %v15810_v47 }
 0xfb4   :  { %v6409_v19 = vpop.f32.mrf.mxu1 }
 0xfb5   :  { %v6410_v61 = vadd.f32 %v6409_v19, %v6390_v57 }
 0xfb9   :  { %v6352_v55 = vpop.f32.mrf.mxu2 }
 0xfba   :  { %v6371_v23 = vpop.f32.mrf.mxu3 }
 0xfbb   :  { %v6393_v63 = vpop.f32.mrf.mxu0  ;;  %v6372_v57 = vadd.f32 %v6371_v23, %v6352_v55  ;;  %v12856_v23 = vld [vmem:[%s8945_s15] sm:$0xff] }
 0xfbc   :  { %v6412_v62 = vpop.f32.mrf.mxu1 }
 0xfbd   :  { %v6413_v41 = vadd.f32 %v6412_v62, %v6393_v63  ;;  %v6139_v63 = vadd.f32 %v15786_v25, %v15784_v42  ;;  %v6108_v62 = vadd.f32 %v15808_v33, %v15806_v24  ;;  %v6690_v42 = vpack.c.bf16 %v6103_v26, %v15788_v35  ;;  %v12857_v25 = vld [vmem:[%s8945_s15 + $0x8] sm:$0xff]  ;;  %v11623_v35 = vld [vmem:[%s15840_s19 + $0x70] sm:$0xf]  ;;  %v12870_v33 = vld [vmem:[%s15840_s19 + $0x54] sm:$0xf0]  ;;  %s8959_s15 = sld [smem:[%s16456_s0 + %s13170_s12]]  }
 0xfbe   :  { %v11607_v24 = vld [vmem:[%s15840_s19 + $0x50] sm:$0xf]  ;;  %v12898_v26 = vld [vmem:[%s15840_s19 + $0x134] sm:$0xf0] }
 0xfbf   :  { %v6691_v55 = vpack.c.bf16 %v6141_v50, %v6139_v63  ;;  %v6692_v9 = vpack.c.bf16 %v6108_v62, %v15798_v21  ;;  %v11624_v21 = vor.u32 %v12874_v30, %v11623_v35  ;;  %v11608_v47 = vor.u32 %v12870_v33, %v11607_v24  ;;  %v11593_v63 = vld [vmem:[%s15840_s19 + $0x38] sm:$0xf0]  ;;  %v11745_v62 = vld [vmem:[%s15840_s19 + $0x130] sm:$0xf]  ;;  %v11737_v33 = vld [vmem:[%s15840_s19 + $0x120] sm:$0xf] }
 0xfc1   :  { %v6355_v8 = vpop.f32.mrf.mxu2  ;;  %7064 = vmatpush.bf16.msrb.mxu1 %v11624_v21 }
 0xfc2   :  { %v6374_v3 = vpop.f32.mrf.mxu3 }
 0xfc3   :  { %v6395_v52 = vpop.f32.mrf.mxu0 }
 0xfc4   :  { %v6414_v44 = vpop.f32.mrf.mxu1 }
 0xfc5   :  { %v6415_v58 = vadd.f32 %v6414_v44, %v6395_v52  ;;  %7065 = vmatpush.bf16.msrb.mxu1 %v11616_v2  ;;  %v12868_v52 = vld [vmem:[%s15840_s19 + $0x44] sm:$0xf0]  ;;  %v11585_v2 = vld [vmem:[%s15840_s19 + $0x28] sm:$0xf0] }
 0xfc6   :  { %v11588_v24 = vor.u32 %v12863_v14, %v11585_v2 }
 0xfc7   :  { %v6697_v0 = vpack.c.bf16 %v6415_v58, %v6413_v41  ;;  %v12867_v41 = vld [vmem:[%s15840_s19 + $0x44] sm:$0xf] }
 0xfc9   :  { %v6357_v48 = vpop.f32.mrf.mxu2  ;;  %7066 = vmatpush.bf16.msrb.mxu1 %v11608_v47  ;;  %v12896_v47 = vld [vmem:[%s15840_s19 + $0x124] sm:$0xf0] }
 0xfca   :  { %v6376_v49 = vpop.f32.mrf.mxu3 }
 0xfcb   :  { %v6657_v4 = vpop.f32.mrf.mxu0  ;;  %v6377_v31 = vadd.f32 %v6376_v49, %v6357_v48  ;;  %v12873_v49 = vld [vmem:[%s15840_s19 + $0x74] sm:$0xf] }
 0xfcc   :  { %v6676_v16 = vpop.f32.mrf.mxu1 }
 0xfcd   :  { %v6677_v43 = vadd.f32 %v6676_v16, %v6657_v4  ;;  %v6695_v4 = vpack.c.bf16 %v6410_v61, %v6408_v10  ;;  %v6375_v16 = vadd.f32 %v6374_v3, %v6355_v8  ;;  %v6694_v8 = vpack.c.bf16 %v6372_v57, %v6370_v15  ;;  %v11599_v3 = vld [vmem:[%s15840_s19 + $0x40] sm:$0xf]  ;;  %v6724_v57 = vpop.permute.xlu1 %6723  ;;  %v12865_v15 = vld [vmem:[%s15840_s19 + $0x34] sm:$0xf] }
 0xfce   :  { %v11600_v48 = vor.u32 %v12868_v52, %v11599_v3  ;;  %v11639_v3 = vld [vmem:[%s15840_s19 + $0x90] sm:$0xf] }
 0xfcf   :  { %v6696_v19 = vpack.c.bf16 %v6377_v31, %v6375_v16  ;;  %v12860_v16 = vld [vmem:[%s15840_s19 + $0x4] sm:$0xf0] }
 0xfd0   :  { %7067 = vmatpush.bf16.msrb.mxu1 %v11600_v48  ;;  %v12878_v48 = vld [vmem:[%s15840_s19 + $0x94] sm:$0xf0] }
 0xfd1   :  { %v6619_v18 = vpop.f32.mrf.mxu2 }
 0xfd2   :  { %v6638_v29 = vpop.f32.mrf.mxu3 }
 0xfd3   :  { %v6659_v27 = vpop.f32.mrf.mxu0  ;;  %v6639_v59 = vadd.f32 %v6638_v29, %v6619_v18  ;;  %v11625_v18 = vld [vmem:[%s15840_s19 + $0x78] sm:$0xf0] }
 0xfd4   :  { %v6678_v37 = vpop.f32.mrf.mxu1  ;;  %v11628_v29 = vor.u32 %v12873_v49, %v11625_v18 }
 0xfd5   :  { %v6679_v46 = vadd.f32 %v6678_v37, %v6659_v27  ;;  %v11591_v27 = vld [vmem:[%s15840_s19 + $0x30] sm:$0xf]  ;;  %v12866_v37 = vld [vmem:[%s15840_s19 + $0x34] sm:$0xf0] }
 0xfd7   :  { %v6699_v54 = vpack.c.bf16 %v6679_v46, %v6677_v43  ;;  %v11609_v43 = vld [vmem:[%s15840_s19 + $0x58] sm:$0xf0] }
 0xfd9   :  { %v6621_v7 = vpop.f32.mrf.mxu2 }
 0xfda   :  { %v6640_v40 = vpop.f32.mrf.mxu3 }
 0xfdb   :  { %v6662_v34 = vpop.f32.mrf.mxu0  ;;  %v6641_v6 = vadd.f32 %v6640_v40, %v6621_v7  ;;  %v11592_v7 = vor.u32 %v12866_v37, %v11591_v27  ;;  %v12871_v40 = vld [vmem:[%s15840_s19 + $0x64] sm:$0xf]  ;;  %v11640_v27 = vor.u32 %v12878_v48, %v11639_v3  ;;  %v12881_v37 = vld [vmem:[%s15840_s19 + $0xb4] sm:$0xf] }
 0xfdc   :  { %v6681_v51 = vpop.f32.mrf.mxu1 }
 0xfdd   :  { %v6682_v13 = vadd.f32 %v6681_v51, %v6662_v34  ;;  %v6698_v28 = vpack.c.bf16 %v6641_v6, %v6639_v59  ;;  %v11617_v34 = vld [vmem:[%s15840_s19 + $0x68] sm:$0xf0]  ;;  %7068 = vmatpush.bf16.msrb.mxu1 %v11592_v7  ;;  %v12882_v59 = vld [vmem:[%s15840_s19 + $0xb4] sm:$0xf0]  ;;  %v11657_v7 = vld [vmem:[%s15840_s19 + $0xb8] sm:$0xf0] }
 0xfde   :  { %v11601_v6 = vld [vmem:[%s15840_s19 + $0x48] sm:$0xf0] }
 0xfdf   :  { %v11604_v61 = vor.u32 %v12867_v41, %v11601_v6  ;;  %v12906_v41 = vld [vmem:[%s15840_s19 + $0x174] sm:$0xf0]  ;;  %v12879_v6 = vld [vmem:[%s15840_s19 + $0xa4] sm:$0xf] }
 0xfe1   :  { %v6624_v11 = vpop.f32.mrf.mxu2 }
 0xfe2   :  { %v6643_v20 = vpop.f32.mrf.mxu3 }
 0xfe3   :  { %v6664_v12 = vpop.f32.mrf.mxu0  ;;  %v6644_v22 = vadd.f32 %v6643_v20, %v6624_v11  ;;  %v11620_v11 = vor.u32 %v12871_v40, %v11617_v34  ;;  %v12861_v40 = vld [vmem:[%s15840_s19 + $0x14] sm:$0xf]  ;;  %v11660_v34 = vor.u32 %v12881_v37, %v11657_v7 }
 0xfe4   :  { %v6683_v38 = vpop.f32.mrf.mxu1 }
 0xfe5   :  { %v6684_v32 = vadd.f32 %v6683_v38, %v6664_v12  ;;  %v11583_v12 = vld [vmem:[%s15840_s19 + $0x20] sm:$0xf]  ;;  %v12864_v38 = vld [vmem:[%s15840_s19 + $0x24] sm:$0xf0] }
 0xfe6   :  { %v11584_v46 = vor.u32 %v12864_v38, %v11583_v12  ;;  %v11729_v12 = vld [vmem:[%s15840_s19 + $0x110] sm:$0xf] }
 0xfe7   :  { %v6701_v60 = vpack.c.bf16 %v6684_v32, %v6682_v13  ;;  %v6719_v13 = vpop.permute.xlu0 %6718 }
 0xfe8   :  { %7069 = vmatpush.bf16.msrb.mxu1 %v11584_v46 }
 0xfe9   :  { %6764 = vmatpush.bf16.msra.mxu3 %v6701_v60  ;;  %v6626_v45 = vpop.f32.mrf.mxu2 }
 0xfea   :  { %v6645_v56 = vpop.f32.mrf.mxu3 }
 0xfeb   :  { %v6646_v53 = vadd.f32 %v6645_v56, %v6626_v45 }
 0xfed   :  { %v6700_v39 = vpack.c.bf16 %v6646_v53, %v6644_v22  ;;  %6765 = vmatpush.bf16.msra.mxu3 %v6699_v54  ;;  %v12862_v22 = vld [vmem:[%s15840_s19 + $0x14] sm:$0xf0] }
 0xfef   :  { %6745 = vmatpush.bf16.msrb.mxu2 %v6700_v39  ;;  %6809 = vmatpush.bf16.msra.mxu0 %v6700_v39  ;;  %v15874_v39 = vpop.permute.xlu2 %6708 }
 0xff1   :  { %6766 = vmatpush.bf16.msra.mxu3 %v6697_v0  ;;  %v11655_v0 = vld [vmem:[%s15840_s19 + $0xb0] sm:$0xf] }
 0xff2   :  { %v11656_v31 = vor.u32 %v12882_v59, %v11655_v0  ;;  %v12859_v59 = vld [vmem:[%s15840_s19 + $0x4] sm:$0xf] }
 0xff3   :  { %6746 = vmatpush.bf16.msrb.mxu2 %v6698_v28  ;;  %6810 = vmatpush.bf16.msra.mxu0 %v6698_v28 }
 0xff5   :  { %6767 = vmatpush.bf16.msra.mxu3 %v6695_v4  ;;  %v11567_v4 = vld [vmem:[%s15840_s19] sm:$0xf] }
 0xff6   :  { %11559 = vmatmul.msk.bf16.vlgmr.msra.gmra.mxu0 %vm883_vm0, %v12858_v5  ;;  %v11568_v50 = vor.u32 %v12860_v16, %v11567_v4  ;;  %v11569_v4 = vld [vmem:[%s15840_s19 + $0x8] sm:$0xf0]  ;;  %v11721_v16 = vld [vmem:[%s15840_s19 + $0x100] sm:$0xf] }
 0xff7   :  { %6823 = vmatpush.bf16.msrb.mxu0 %v6701_v60  ;;  %6747 = vmatpush.bf16.msrb.mxu2 %v6696_v19  ;;  %v12869_v60 = vld [vmem:[%s15840_s19 + $0x54] sm:$0xf]  ;;  %v15897_v49 = vpop.permute.xlu2 %6713 }
 0xff8   :  { %v11612_v56 = vor.u32 %v12869_v60, %v11609_v43  ;;  %v12894_v60 = vld [vmem:[%s15840_s19 + $0x114] sm:$0xf0]  ;;  %v11631_v43 = vld [vmem:[%s15840_s19 + $0x80] sm:$0xf] }
 0xff9   :  { %6768 = vmatpush.bf16.msra.mxu3 %v6693_v17 }
 0xffb   :  { %6824 = vmatpush.bf16.msrb.mxu0 %v6699_v54  ;;  %6748 = vmatpush.bf16.msrb.mxu2 %v6694_v8  ;;  %v11575_v54 = vld [vmem:[%s15840_s19 + $0x10] sm:$0xf] }
 0xffc   :  { %v11576_v53 = vor.u32 %v12862_v22, %v11575_v54  ;;  %v11777_v54 = vld [vmem:[%s15840_s19 + $0x170] sm:$0xf] }
 0xffd   :  { %6769 = vmatpush.bf16.msra.mxu3 %v6691_v55 }
 0xffe   :  { %7070 = vmatpush.bf16.msrb.mxu1 %v11576_v53 }
 0xfff   :  { %6749 = vmatpush.bf16.msrb.mxu2 %v6692_v9  ;;  %v11647_v9 = vld [vmem:[%s15840_s19 + $0xa0] sm:$0xf]  ;;  %7110 = vmatpush.bf16.msra.mxu0 %v11660_v34 }
0x1000   :  { %11553 = vmatmul.msk.bf16.vlgmr.msra.gmra.mxu3 %vm6736_vm14, %v12856_v23 }
0x1001   :  { %7092 = vmatpush.bf16.msrb.mxu3 %v11628_v29  ;;  %v11738_v29 = vor.u32 %v12896_v47, %v11737_v33  ;;  %v12877_v33 = vld [vmem:[%s15840_s19 + $0x94] sm:$0xf]  ;;  %v11641_v47 = vld [vmem:[%s15840_s19 + $0x98] sm:$0xf0] }
0x1002   :  { %7071 = vmatpush.bf16.msrb.mxu1 %v11568_v50 }
0x1003   :  { %6750 = vmatpush.bf16.msrb.mxu2 %v6690_v42  ;;  %v11746_v42 = vor.u32 %v12898_v26, %v11745_v62  ;;  %v12897_v62 = vld [vmem:[%s15840_s19 + $0x134] sm:$0xf]  ;;  %v11747_v26 = vld [vmem:[%s15840_s19 + $0x138] sm:$0xf0] }
0x1005   :  { %7093 = vmatpush.bf16.msrb.mxu3 %v11620_v11  ;;  %v11577_v11 = vld [vmem:[%s15840_s19 + $0x18] sm:$0xf0] }
0x1006   :  { %11551 = vmatmul.msk.bf16.vlgmr.msrb.gmra.mxu2 %vm6736_vm14, %v12856_v23  ;;  %11560 = vmatmul.msk.bf16.vlgmr.msrb.gmra.mxu0 %vm883_vm0, %v12858_v5  ;;  %v11596_v23 = vor.u32 %v12865_v15, %v11593_v63  ;;  %v11580_v46 = vor.u32 %v12861_v40, %v11577_v11  ;;  %v11572_v15 = vor.u32 %v12859_v59, %v11569_v4  ;;  %v12892_v63 = vld [vmem:[%s15840_s19 + $0x104] sm:$0xf0]  ;;  %v12895_v11 = vld [vmem:[%s15840_s19 + $0x124] sm:$0xf]  ;;  %v11705_v59 = vld [vmem:[%s15840_s19 + $0xe0] sm:$0xf] }
0x1007   :  { %7082 = vmatpush.bf16.msra.mxu2 %v11656_v31  ;;  %7265 = vmatpush.bf16.msra.mxu1 %v11746_v42  ;;  %v11722_v42 = vor.u32 %v12892_v63, %v11721_v16 }
0x1009   :  { %7094 = vmatpush.bf16.msrb.mxu3 %v11612_v56  ;;  %v11730_v56 = vor.u32 %v12894_v60, %v11729_v12  ;;  %v11739_v12 = vld [vmem:[%s15840_s19 + $0x128] sm:$0xf0] }
0x100b   :  { %7266 = vmatpush.bf16.msra.mxu1 %v11738_v29  ;;  %v11713_v29 = vld [vmem:[%s15840_s19 + $0xf0] sm:$0xf] }
0x100d   :  { %7095 = vmatpush.bf16.msrb.mxu3 %v11604_v61  ;;  %v11649_v61 = vld [vmem:[%s15840_s19 + $0xa8] sm:$0xf0] }
0x100e   :  { %v11652_v50 = vor.u32 %v12879_v6, %v11649_v61 }
0x100f   :  { %7267 = vmatpush.bf16.msra.mxu1 %v11730_v56 }
0x1010   :  { %11554 = vmatmul.msk.bf16.gmra.mxu3 %vm6736_vm14, %v12857_v25  ;;  %7111 = vmatpush.bf16.msra.mxu0 %v11652_v50  ;;  %v11731_v50 = vld [vmem:[%s15840_s19 + $0x118] sm:$0xf0] }
0x1011   :  { %7096 = vmatpush.bf16.msrb.mxu3 %v11596_v23 }
0x1013   :  { %7268 = vmatpush.bf16.msra.mxu1 %v11722_v42  ;;  %v11779_v42 = vld [vmem:[%s15840_s19 + $0x178] sm:$0xf0] }
0x1015   :  { %7097 = vmatpush.bf16.msrb.mxu3 %v11588_v24 }
0x1016   :  { %11552 = vmatmul.msk.bf16.gmra.mxu2 %vm6736_vm14, %v12857_v25  ;;  %v12880_v25 = vld [vmem:[%s15840_s19 + $0xa4] sm:$0xf0] }
0x1017   :  { %v11648_v1 = vor.u32 %v12880_v25, %v11647_v9  ;;  %v11750_v25 = vor.u32 %v12897_v62, %v11747_v26  ;;  %v12900_v26 = vld [vmem:[%s15840_s19 + $0x144] sm:$0xf0] }
0x1019   :  { %7083 = vmatpush.bf16.msra.mxu2 %v11648_v1  ;;  %7098 = vmatpush.bf16.msrb.mxu3 %v11580_v46  ;;  %v12902_v46 = vld [vmem:[%s15840_s19 + $0x154] sm:$0xf0] }
0x101d   :  { %7084 = vmatpush.bf16.msra.mxu2 %v11640_v27  ;;  %7099 = vmatpush.bf16.msrb.mxu3 %v11572_v15  ;;  %v12890_v27 = vld [vmem:[%s15840_s19 + $0xf4] sm:$0xf0] }
0x101e   :  { %v11714_v34 = vor.u32 %v12890_v27, %v11713_v29  ;;  %v12883_v29 = vld [vmem:[%s15840_s19 + $0xc4] sm:$0xf] }
0x1020   :  { %7269 = vmatpush.bf16.msra.mxu1 %v11714_v34 }
0x1021   :  { %7293 = vmatpush.bf16.msra.mxu3 %v11750_v25 }
0x1073   :  { %v15862_v51 = vpop.f32.mrf.mxu0 }
0x107b   :  { %v15878_v28 = vpop.f32.mrf.mxu0 }
0x1083   :  { %v15846_v17 = vpop.f32.mrf.mxu3 }
0x1089   :  { %v15850_v36 = vpop.f32.mrf.mxu2 }
0x108a   :  { %v15985_v15 = vadd.f32 %v15850_v36, %v15874_v39 }
0x108b   :  { %v15854_v44 = vpop.f32.mrf.mxu3 }
0x108c   :  { %v6774_v7 = vadd.f32 %v15854_v44, %v15897_v49 }
0x1091   :  { %v15864_v20 = vpop.f32.mrf.mxu2 }
0x1093   :  { %v6776_v32 = vpop.f32.mrf.mxu3 }
0x1094   :  { %v6777_v45 = vadd.f32 %v6776_v32, %v6719_v13 }
0x1096   :  { %v11562_v58 = vmul.f32 -1.442695, %v6777_v45 }
0x1098   :  { %13094 = vpow2.f32 %v11562_v58  ;;  %v12876_v58 = vld [vmem:[%s15840_s19 + $0x84] sm:$0xf0] }
0x1099   :  { %v6757_v10 = vpop.f32.mrf.mxu2  ;;  %v11632_v53 = vor.u32 %v12876_v58, %v11631_v43  ;;  %v11742_v58 = vor.u32 %v12895_v11, %v11739_v12  ;;  %v11771_v11 = vld [vmem:[%s15840_s19 + $0x168] sm:$0xf0] }
0x109a   :  { %v6758_v5 = vadd.f32 %v6757_v10, %v6719_v13  ;;  %v6826_v13 = vpop.f32.mrf.mxu0 }
0x109b   :  { %v6778_v19 = vpop.f32.mrf.mxu3  ;;  %7085 = vmatpush.bf16.msra.mxu2 %v11632_v53  ;;  %v11633_v53 = vld [vmem:[%s15840_s19 + $0x88] sm:$0xf0]  ;;  %7294 = vmatpush.bf16.msra.mxu3 %v11742_v58  ;;  %v12889_v58 = vld [vmem:[%s15840_s19 + $0xf4] sm:$0xf] }
0x109c   :  { %v11561_v8 = vmul.f32 -1.442695, %v6758_v5  ;;  %v6779_v55 = vadd.f32 %v6778_v19, %v6724_v57  ;;  %v11778_v5 = vor.u32 %v12906_v41, %v11777_v54 }
0x109e   :  { %v13095_v35 = vpop.eup %13094  ;;  %13096 = vpow2.f32 %v11561_v8  ;;  %v11564_v30 = vmul.f32 -1.442695, %v6779_v55  ;;  %v6772_v8 = vadd.f32 %v15846_v17, %v15874_v39  ;;  %v6793_v17 = vpop.permute.xlu2 %6792 }
0x109f   :  { %v15888_v21 = vadd.f32 1.0, %v13095_v35  ;;  %7283 = vmatpush.bf16.msrb.mxu2 %v11778_v5  ;;  %v11769_v35 = vld [vmem:[%s15840_s19 + $0x160] sm:$0xf] }
0x10a0   :  { %13098 = vpow2.f32 %v11564_v30  ;;  %v12904_v30 = vld [vmem:[%s15840_s19 + $0x164] sm:$0xf0] }
0x10a1   :  { %13100 = vrcp.f32 %v15888_v21  ;;  %v6759_v52 = vpop.f32.mrf.mxu2  ;;  %v6877_v19 = vand.u32 2147483648, %v15888_v21  ;;  %v6875_v9 = vand.u32 2147483647, %v15888_v21  ;;  %v11770_v24 = vor.u32 %v12904_v30, %v11769_v35 }
0x10a2   :  { %v6760_v18 = vadd.f32 %v6759_v52, %v6724_v57  ;;  %v6788_v57 = vpop.permute.xlu0 %6787  ;;  %v15942_v52 = vadd.f32 %v15878_v28, %v6793_v17  ;;  %v6828_v40 = vpop.f32.mrf.mxu0  ;;  %vm6871_vm2 = vweird.f32 %v15888_v21 }
0x10a3   :  { %v6827_v55 = vadd.f32 %v6826_v13, %v6788_v57  ;;  %v15934_v14 = vadd.f32 %v15862_v51, %v6788_v57  ;;  %v15944_v48 = vor.u32 1.1754944e-38, %v6877_v19  ;;  %v11644_v51 = vor.u32 %v12877_v33, %v11641_v47  ;;  %7284 = vmatpush.bf16.msrb.mxu2 %v11770_v24  ;;  %v12893_v19 = vld [vmem:[%s15840_s19 + $0x114] sm:$0xf]  ;;  %v12891_v33 = vld [vmem:[%s15840_s19 + $0x104] sm:$0xf] }
0x10a4   :  { %v13097_v38 = vpop.eup %13096  ;;  %v11563_v32 = vmul.f32 -1.442695, %v6760_v18  ;;  %vm15960_vm1 = vcmp.eq.f32.partialorder %v6875_v9, 8.507059e+37  ;;  %v6829_v41 = vadd.f32 %v6828_v40, %v6793_v17  ;;  %v12905_v9 = vld [vmem:[%s15840_s19 + $0x174] sm:$0xf] }
0x10a5   :  { %v15906_v45 = vadd.f32 1.0, %v13097_v38  ;;  %v15950_v37 = vadd.f32 %v6827_v55, %v6772_v8  ;;  %v11761_v38 = vld [vmem:[%s15840_s19 + $0x150] sm:$0xf]  ;;  %7112 = vmatpush.bf16.msra.mxu0 %v11644_v51  ;;  %v11734_v55 = vor.u32 %v12893_v19, %v11731_v50  ;;  %v12886_v17 = vld [vmem:[%s15840_s19 + $0xd4] sm:$0xf0]  ;;  %v6831_v63 = vadd.f32 %v15934_v14, %v15985_v15 }
0x10a6   :  { %v13099_v22 = vpop.eup %13098  ;;  %13102 = vpow2.f32 %v11563_v32  ;;  %v11762_v54 = vor.u32 %v12902_v46, %v11761_v38  ;;  %v11723_v47 = vld [vmem:[%s15840_s19 + $0x108] sm:$0xf0]  ;;  %v12903_v51 = vld [vmem:[%s15840_s19 + $0x164] sm:$0xf]  ;;  %v11867_v40 = vld [vmem:[%s15840_s19 + $0x1f0] sm:$0xf] }
0x10a7   :  { %v15913_v0 = vpop.eup %13100  ;;  %13104 = vrcp.f32 %v15906_v45  ;;  %v15919_v31 = vadd.f32 1.0, %v13099_v22  ;;  %v12875_v22 = vld [vmem:[%s15840_s19 + $0x84] sm:$0xf]  ;;  %v6860_v6 = vand.u32 2147483647, %v15906_v45  ;;  %v6862_v4 = vand.u32 2147483648, %v15906_v45  ;;  %7295 = vmatpush.bf16.msra.mxu3 %v11734_v55 }
0x10a8   :  { %v6867_v10 = vmul.f32 %v15913_v0, %v15888_v21  ;;  %vm6872_vm15 = vweird.f32 %v15913_v0  ;;  %7285 = vmatpush.bf16.msrb.mxu2 %v11762_v54  ;;  %v11636_v16 = vor.u32 %v12875_v22, %v11633_v53  ;;  %vm6856_vm9 = vweird.f32 %v15906_v45  ;;  %v11715_v54 = vld [vmem:[%s15840_s19 + $0xf8] sm:$0xf0]  ;;  %v11859_v19 = vld [vmem:[%s15840_s19 + $0x1e0] sm:$0xf]  ;;  %v12920_v50 = vld [vmem:[%s15840_s19 + $0x1e4] sm:$0xf0] }
0x10a9   :  { %13106 = vrcp.f32 %v15919_v31  ;;  %v6905_v32 = vand.u32 2147483647, %v15919_v31  ;;  %v6907_v44 = vand.u32 2147483648, %v15919_v31  ;;  %vm15991_vm3 = vmor %vm6871_vm2, %vm6872_vm15  ;;  %vm6901_vm10 = vweird.f32 %v15919_v31  ;;  %v12921_v55 = vld [vmem:[%s15840_s19 + $0x1f4] sm:$0xf] }
0x10aa   :  { %v6868_v23 = vsub.f32 1.0, %v6867_v10  ;;  %v12888_v10 = vld [vmem:[%s15840_s19 + $0xe4] sm:$0xf0]  ;;  %7113 = vmatpush.bf16.msra.mxu0 %v11636_v16  ;;  %v11726_v34 = vor.u32 %v12891_v33, %v11723_v47  ;;  %v11774_v46 = vor.u32 %v12903_v51, %v11771_v11  ;;  %vm6861_vm15 = vcmp.eq.f32.partialorder %v6860_v6, 8.507059e+37  ;;  %v12887_v6 = vld [vmem:[%s15840_s19 + $0xe4] sm:$0xf] }
0x10ab   :  { %v11706_v57 = vor.u32 %v12888_v10, %v11705_v59  ;;  %vm15995_vm4 = vcmp.eq.f32.partialorder %v6905_v32, 8.507059e+37  ;;  %v6908_v39 = vor.u32 1.1754944e-38, %v6907_v44  ;;  %v12922_v44 = vld [vmem:[%s15840_s19 + $0x1f4] sm:$0xf0]  ;;  %v11763_v59 = vld [vmem:[%s15840_s19 + $0x158] sm:$0xf0] }
0x10ac   :  { %v13103_v1 = vpop.eup %13102  ;;  %v6869_v2 = vmul.f32 %v15913_v0, %v6868_v23  ;;  %v11753_v23 = vld [vmem:[%s15840_s19 + $0x140] sm:$0xf]  ;;  %7296 = vmatpush.bf16.msra.mxu3 %v11726_v34  ;;  %v11755_v14 = vld [vmem:[%s15840_s19 + $0x148] sm:$0xf0]  ;;  %v11699_v15 = vld [vmem:[%s15840_s19 + $0xd8] sm:$0xf0] }
0x10ad   :  { %v15939_v3 = vpop.eup %13104  ;;  %v15946_v18 = vadd.f32 1.0, %v13103_v1  ;;  %v11754_v21 = vor.u32 %v12900_v26, %v11753_v23  ;;  %7270 = vmatpush.bf16.msra.mxu1 %v11706_v57  ;;  %v11697_v1 = vld [vmem:[%s15840_s19 + $0xd0] sm:$0xf]  ;;  %v11869_v23 = vld [vmem:[%s15840_s19 + $0x1f8] sm:$0xf0] }
0x10ae   :  { %v6852_v28 = vmul.f32 %v15939_v3, %v15906_v45  ;;  %v6870_v43 = vadd.f32 %v15913_v0, %v6869_v2  ;;  %vm6857_vm6 = vweird.f32 %v15939_v3  ;;  %v6834_v2 = vadd.f32 %v6829_v41, %v6774_v7  ;;  %v11707_v45 = vld [vmem:[%s15840_s19 + $0xe8] sm:$0xf0]  ;;  %v12929_v34 = vld [vmem:[%s15840_s19 + $0x234] sm:$0xf] }
0x10af   :  { %13108 = vrcp.f32 %v15946_v18  ;;  %v15968_v60 = vpop.eup %13106  ;;  %7286 = vmatpush.bf16.msrb.mxu2 %v11754_v21  ;;  %vm16023_vm12 = vmor %vm6856_vm9, %vm6857_vm6  ;;  %v6890_v7 = vand.u32 2147483647, %v15946_v18  ;;  %v6892_v32 = vand.u32 2147483648, %v15946_v18  ;;  %v11710_v26 = vor.u32 %v12887_v6, %v11707_v45  ;;  %v12912_v6 = vld [vmem:[%s15840_s19 + $0x1a4] sm:$0xf0] }
0x10b0   :  { %v6853_v56 = vsub.f32 1.0, %v6852_v28  ;;  %v6897_v61 = vmul.f32 %v15968_v60, %v15919_v31  ;;  %v6874_v36 = vsel %vm15991_vm3, %v15913_v0, %v6870_v43  ;;  %vm6902_vm8 = vweird.f32 %v15968_v60  ;;  %v11689_v43 = vld [vmem:[%s15840_s19 + $0xc0] sm:$0xf]  ;;  %v12884_v31 = vld [vmem:[%s15840_s19 + $0xc4] sm:$0xf0] }
0x10b1   :  { %v11782_v0 = vor.u32 %v12905_v9, %v11779_v42  ;;  %v11698_v28 = vor.u32 %v12886_v17, %v11697_v1  ;;  %v6879_v12 = vsel %vm15960_vm1, %v15944_v48, %v6874_v36  ;;  %vm6903_vm13 = vmor %vm6901_vm10, %vm6902_vm8  ;;  %vm6886_vm1 = vweird.f32 %v15946_v18  ;;  %v12899_v36 = vld [vmem:[%s15840_s19 + $0x144] sm:$0xf]  ;;  %v12930_v1 = vld [vmem:[%s15840_s19 + $0x234] sm:$0xf0] }
0x10b2   :  { %v6854_v5 = vmul.f32 %v15939_v3, %v6853_v56  ;;  %v6898_v62 = vsub.f32 1.0, %v6897_v61  ;;  %v6755_v56 = vadd.f32 %v15864_v20, %v15897_v49  ;;  %v11690_v20 = vor.u32 %v12884_v31, %v11689_v43  ;;  %v11835_v31 = vld [vmem:[%s15840_s19 + $0x1b0] sm:$0xf] }
0x10b3   :  { %7311 = vmatpush.bf16.msrb.mxu0 %v11782_v0  ;;  %7271 = vmatpush.bf16.msra.mxu1 %v11698_v28  ;;  %v11718_v49 = vor.u32 %v12889_v58, %v11715_v54  ;;  %v16060_v41 = vmul.f32 %v6879_v12, %v15950_v37  ;;  %vm6891_vm3 = vcmp.eq.f32.partialorder %v6890_v7, 8.507059e+37  ;;  %v6893_v57 = vor.u32 1.1754944e-38, %v6892_v32  ;;  %v12918_v0 = vld [vmem:[%s15840_s19 + $0x1d4] sm:$0xf0]  ;;  %v12928_v28 = vld [vmem:[%s15840_s19 + $0x224] sm:$0xf0] }
0x10b4   :  { %v6855_v35 = vadd.f32 %v15939_v3, %v6854_v5  ;;  %v6899_v30 = vmul.f32 %v15968_v60, %v6898_v62  ;;  %v11868_v5 = vor.u32 %v12922_v44, %v11867_v40  ;;  %v6833_v62 = vadd.f32 %v15942_v52, %v6755_v56  ;;  %v12885_v52 = vld [vmem:[%s15840_s19 + $0xd4] sm:$0xf]  ;;  %v11891_v40 = vld [vmem:[%s15840_s19 + $0x220] sm:$0xf]  ;;  %v11901_v32 = vld [vmem:[%s15840_s19 + $0x238] sm:$0xf0] }
0x10b5   :  { %v16007_v25 = vpop.eup %13108  ;;  %7297 = vmatpush.bf16.msra.mxu3 %v11718_v49  ;;  %v11860_v21 = vor.u32 %v12920_v50, %v11859_v19  ;;  %v11758_v33 = vor.u32 %v12899_v36, %v11755_v14  ;;  %v11702_v47 = vor.u32 %v12885_v52, %v11699_v15  ;;  %v11843_v12 = vld [vmem:[%s15840_s19 + $0x1c0] sm:$0xf]  ;;  %v12917_v44 = vld [vmem:[%s15840_s19 + $0x1d4] sm:$0xf]  ;;  %v11892_v56 = vor.u32 %v12928_v28, %v11891_v40  ;;  %v12914_v58 = vld [vmem:[%s15840_s19 + $0x1b4] sm:$0xf0] }
0x10b6   :  { %v6882_v24 = vmul.f32 %v16007_v25, %v15946_v18  ;;  %v6900_v27 = vadd.f32 %v15968_v60, %v6899_v30  ;;  %v6859_v13 = vsel %vm16023_vm12, %v15939_v3, %v6855_v35  ;;  %vm6887_vm14 = vweird.f32 %v16007_v25  ;;  %v12901_v3 = vld [vmem:[%s15840_s19 + $0x154] sm:$0xf]  ;;  %v11851_v30 = vld [vmem:[%s15840_s19 + $0x1d0] sm:$0xf]  ;;  %v11845_v49 = vld [vmem:[%s15840_s19 + $0x1c8] sm:$0xf0] }
0x10b7   :  { %7312 = vmatpush.bf16.msrb.mxu0 %v11774_v46  ;;  %v11766_v16 = vor.u32 %v12901_v3, %v11763_v59  ;;  %vm16071_vm2 = vmor %vm6886_vm1, %vm6887_vm14  ;;  %7272 = vmatpush.bf16.msra.mxu1 %v11690_v20  ;;  %v11872_v35 = vor.u32 %v12921_v55, %v11869_v23  ;;  %v11852_v7 = vor.u32 %v12918_v0, %v11851_v30  ;;  %v11853_v46 = vld [vmem:[%s15840_s19 + $0x1d8] sm:$0xf0]  ;;  %v12926_v20 = vld [vmem:[%s15840_s19 + $0x214] sm:$0xf0] }
0x10b8   :  { %v6883_v38 = vsub.f32 1.0, %v6882_v24  ;;  %v6904_v48 = vsel %vm6903_vm13, %v15968_v60, %v6900_v27  ;;  %v6863_v60 = vor.u32 1.1754944e-38, %v6862_v4  ;;  %v11861_v24 = vld [vmem:[%s15840_s19 + $0x1e8] sm:$0xf0]  ;;  %v11856_v54 = vor.u32 %v12917_v44, %v11853_v46  ;;  %v12927_v3 = vld [vmem:[%s15840_s19 + $0x224] sm:$0xf] }
0x10b9   :  { %v6909_v22 = vsel %vm15995_vm4, %v6908_v39, %v6904_v48  ;;  %7298 = vmatpush.bf16.msra.mxu3 %v11710_v26  ;;  %v11691_v27 = vld [vmem:[%s15840_s19 + $0xc8] sm:$0xf0]  ;;  %v11836_v59 = vor.u32 %v12914_v58, %v11835_v31  ;;  %v11837_v37 = vld [vmem:[%s15840_s19 + $0x1b8] sm:$0xf0]  ;;  %v12924_v19 = vld [vmem:[%s15840_s19 + $0x204] sm:$0xf0] }
0x10ba   :  { %v6884_v53 = vmul.f32 %v16007_v25, %v6883_v38  ;;  %v16062_v61 = vmul.f32 %v6909_v22, %v6834_v2  ;;  %v6864_v4 = vsel %vm6861_vm15, %v6863_v60, %v6859_v13  ;;  %v12919_v2 = vld [vmem:[%s15840_s19 + $0x1e4] sm:$0xf]  ;;  %v12916_v38 = vld [vmem:[%s15840_s19 + $0x1c4] sm:$0xf0]  ;;  %v11694_v43 = vor.u32 %v12883_v29, %v11691_v27  ;;  %v11893_v60 = vld [vmem:[%s15840_s19 + $0x228] sm:$0xf0] }
0x10bb   :  { %v16097_v9 = vmul.f32 %v6864_v4, %v6831_v63  ;;  %7313 = vmatpush.bf16.msrb.mxu0 %v11766_v16  ;;  %v11864_v11 = vor.u32 %v12919_v2, %v11861_v24  ;;  %v11904_v13 = vor.u32 %v12929_v34, %v11901_v32  ;;  %v11844_v48 = vor.u32 %v12916_v38, %v11843_v12  ;;  %v12915_v22 = vld [vmem:[%s15840_s19 + $0x1c4] sm:$0xf]  ;;  %v11827_v16 = vld [vmem:[%s15840_s19 + $0x1a0] sm:$0xf]  ;;  %v12913_v4 = vld [vmem:[%s15840_s19 + $0x1b4] sm:$0xf] }
0x10bc   :  { %v6885_v10 = vadd.f32 %v16007_v25, %v6884_v53  ;;  %v16077_v18 = vpack.c.bf16 %v16062_v61, %v16060_v41  ;;  %v11883_v53 = vld [vmem:[%s15840_s19 + $0x210] sm:$0xf]  ;;  %v11896_v45 = vor.u32 %v12927_v3, %v11893_v60  ;;  %v12925_v50 = vld [vmem:[%s15840_s19 + $0x214] sm:$0xf]  ;;  %v11885_v63 = vld [vmem:[%s15840_s19 + $0x218] sm:$0xf0] }
0x10bd   :  { %7299 = vmatpush.bf16.msra.mxu3 %v11702_v47  ;;  %v11819_v55 = vld [vmem:[%s15840_s19 + $0x190] sm:$0xf]  ;;  %v12910_v23 = vld [vmem:[%s15840_s19 + $0x194] sm:$0xf0]  ;;  %v12911_v26 = vld [vmem:[%s15840_s19 + $0x1a4] sm:$0xf]  ;;  %v11888_v14 = vor.u32 %v12925_v50, %v11885_v63 }
0x10be   :  { %v6889_v8 = vsel %vm16071_vm2, %v16007_v25, %v6885_v10  ;;  %11661 = vmatmul.msk.bf16.vlgmr.msra.gmra.mxu2 %vm3198_vm5, %v16077_v18  ;;  %11662 = vmatmul.msk.bf16.vlgmr.msra.gmra.mxu0 %vm3198_vm5, %v16077_v18  ;;  %v11899_v25 = vld [vmem:[%s15840_s19 + $0x230] sm:$0xf]  ;;  %v11884_v10 = vor.u32 %v12926_v20, %v11883_v53  ;;  %v11829_v36 = vld [vmem:[%s15840_s19 + $0x1a8] sm:$0xf0]  ;;  %v12923_v52 = vld [vmem:[%s15840_s19 + $0x204] sm:$0xf] }
0x10bf   :  { %v6894_v39 = vsel %vm6891_vm3, %v6893_v57, %v6889_v8  ;;  %7466 = vmatpush.bf16.msra.mxu2 %v11868_v5  ;;  %v11900_v51 = vor.u32 %v12930_v1, %v11899_v25  ;;  %7314 = vmatpush.bf16.msrb.mxu0 %v11758_v33  ;;  %v11848_v5 = vor.u32 %v12915_v22, %v11845_v49  ;;  %v11875_v57 = vld [vmem:[%s15840_s19 + $0x200] sm:$0xf]  ;;  %v11877_v15 = vld [vmem:[%s15840_s19 + $0x208] sm:$0xf0]  ;;  %v12908_v30 = vld [vmem:[%s15840_s19 + $0x184] sm:$0xf0] }
0x10c0   :  { %v16099_v42 = vmul.f32 %v6894_v39, %v6833_v62  ;;  %v11828_v62 = vor.u32 %v12912_v6, %v11827_v16  ;;  %v11840_v8 = vor.u32 %v12913_v4, %v11837_v37  ;;  %v11876_v39 = vor.u32 %v12924_v19, %v11875_v57  ;;  %v12909_v0 = vld [vmem:[%s15840_s19 + $0x194] sm:$0xf]  ;;  %v11821_v1 = vld [vmem:[%s15840_s19 + $0x198] sm:$0xf0]  ;;  %v12907_v47 = vld [vmem:[%s15840_s19 + $0x184] sm:$0xf] }
0x10c1   :  { %7300 = vmatpush.bf16.msra.mxu3 %v11694_v43  ;;  %v11832_v25 = vor.u32 %v12911_v26, %v11829_v36  ;;  %v11880_v2 = vor.u32 %v12923_v52, %v11877_v15  ;;  %v11824_v33 = vor.u32 %v12909_v0, %v11821_v1  ;;  %v12939_v31 = vld [vmem:[%s16168_s23 + $0x38] sm:$0xff]  ;;  %v12938_v22 = vld [vmem:[%s16168_s23 + $0x30] sm:$0xff]  ;;  %v12937_v49 = vld [vmem:[%s16168_s23 + $0x28] sm:$0xff] }
0x10c2   :  { %v16107_v17 = vpack.c.bf16 %v16099_v42, %v16097_v9  ;;  %v12951_v58 = vld [vmem:[%s16168_s23 + $0x98] sm:$0xff]  ;;  %v12950_v53 = vld [vmem:[%s16168_s23 + $0x90] sm:$0xff]  ;;  %v12949_v3 = vld [vmem:[%s16168_s23 + $0x88] sm:$0xff] }
0x10c3   :  { %7467 = vmatpush.bf16.msra.mxu2 %v11860_v21  ;;  %7484 = vmatpush.bf16.msra.mxu0 %v11900_v51  ;;  %v11820_v21 = vor.u32 %v12910_v23, %v11819_v55  ;;  %v11813_v51 = vld [vmem:[%s15840_s19 + $0x188] sm:$0xf0]  ;;  %v12948_v16 = vld [vmem:[%s16168_s23 + $0x80] sm:$0xff]  ;;  %v12935_v0 = vld [vmem:[%s16168_s23 + $0x18] sm:$0xff] }
0x10c4   :  { %7072 = vmatmul.bf16.vlgmr.msrb.gmra.mxu1 %v16107_v17  ;;  %7100 = vmatmul.bf16.vlgmr.msrb.gmra.mxu3 %v16107_v17  ;;  %v11816_v29 = vor.u32 %v12907_v47, %v11813_v51  ;;  %v12931_v52 = vld [vmem:[%s8949_s27] sm:$0xff]  ;;  %v12947_v1 = vld [vmem:[%s16168_s23 + $0x78] sm:$0xff]  ;;  %v12941_v47 = vld [vmem:[%s16168_s23 + $0x48] sm:$0xff] }
0x10c5   :  { %7494 = vmatpush.bf16.msrb.mxu1 %v11872_v35  ;;  %7512 = vmatpush.bf16.msrb.mxu3 %v11904_v13  ;;  %v11811_v35 = vld [vmem:[%s15840_s19 + $0x180] sm:$0xf]  ;;  %v12933_v51 = vld [vmem:[%s16168_s23 + $0x8] sm:$0xff] }
0x10c6   :  { %v11812_v24 = vor.u32 %v12908_v30, %v11811_v35  ;;  %v12943_v30 = vld [vmem:[%s16168_s23 + $0x58] sm:$0xff] }
0x10c7   :  { %7468 = vmatpush.bf16.msra.mxu2 %v11852_v7  ;;  %7485 = vmatpush.bf16.msra.mxu0 %v11892_v56 }
0x10c9   :  { %7495 = vmatpush.bf16.msrb.mxu1 %v11864_v11  ;;  %7513 = vmatpush.bf16.msrb.mxu3 %v11896_v45 }
0x10cb   :  { %7469 = vmatpush.bf16.msra.mxu2 %v11844_v48  ;;  %7486 = vmatpush.bf16.msra.mxu0 %v11884_v10 }
0x10cd   :  { %7496 = vmatpush.bf16.msrb.mxu1 %v11856_v54  ;;  %7514 = vmatpush.bf16.msrb.mxu3 %v11888_v14 }
0x10ce   :  { %11783 = vmatmul.msk.bf16.vlgmr.msrb.gmra.mxu2 %vm3198_vm5, %v16077_v18  ;;  %11784 = vmatmul.msk.bf16.vlgmr.msrb.gmra.mxu0 %vm3198_vm5, %v16077_v18 }
0x10cf   :  { %7470 = vmatpush.bf16.msra.mxu2 %v11836_v59  ;;  %7487 = vmatpush.bf16.msra.mxu0 %v11876_v39 }
0x10d1   :  { %7497 = vmatpush.bf16.msrb.mxu1 %v11848_v5  ;;  %7515 = vmatpush.bf16.msrb.mxu3 %v11880_v2  ;;  %v12936_v5 = vld [vmem:[%s16168_s23 + $0x20] sm:$0xff]  ;;  %v12942_v2 = vld [vmem:[%s16168_s23 + $0x50] sm:$0xff] }
0x10d3   :  { %7471 = vmatpush.bf16.msra.mxu2 %v11828_v62 }
0x10d4   :  { %7273 = vmatmul.bf16.vlgmr.msra.gmra.mxu1 %v16107_v17  ;;  %7301 = vmatmul.bf16.vlgmr.msra.gmra.mxu3 %v16107_v17 }
0x10d5   :  { %7498 = vmatpush.bf16.msrb.mxu1 %v11840_v8  ;;  %7687 = vmatpush.bf16.msra.mxu3 %v12939_v31  ;;  %v12958_v31 = vld [vmem:[%s16168_s23 + $0xd0] sm:$0xff] }
0x10d7   :  { %7472 = vmatpush.bf16.msra.mxu2 %v11820_v21 }
0x10d9   :  { %7499 = vmatpush.bf16.msrb.mxu1 %v11832_v25  ;;  %7688 = vmatpush.bf16.msra.mxu3 %v12938_v22 }
0x10db   :  { %7473 = vmatpush.bf16.msra.mxu2 %v11812_v24  ;;  %v12934_v24 = vld [vmem:[%s16168_s23 + $0x10] sm:$0xff] }
0x10dd   :  { %7500 = vmatpush.bf16.msrb.mxu1 %v11824_v33  ;;  %7689 = vmatpush.bf16.msra.mxu3 %v12937_v49  ;;  %v12946_v33 = vld [vmem:[%s16168_s23 + $0x70] sm:$0xff]  ;;  %v12957_v49 = vld [vmem:[%s16168_s23 + $0xc8] sm:$0xff] }
0x10de   :  { %7474 = vmatmul.bf16.vlgmr.msra.gmra.mxu2 %v16107_v17  ;;  %11905 = vmatmul.msk.bf16.vlgmr.msra.gmra.mxu0 %vm3198_vm5, %v16077_v18 }
0x10e1   :  { %7501 = vmatpush.bf16.msrb.mxu1 %v11816_v29  ;;  %7690 = vmatpush.bf16.msra.mxu3 %v12936_v5  ;;  %v12945_v29 = vld [vmem:[%s16168_s23 + $0x68] sm:$0xff] }
0x10e4   :  { %7502 = vmatmul.bf16.vlgmr.msrb.gmra.mxu1 %v16107_v17  ;;  %11906 = vmatmul.msk.bf16.vlgmr.msrb.gmra.mxu3 %vm3198_vm5, %v16077_v18 }
0x10e5   :  { %7812 = vmatpush.bf16.msra.mxu1 %v12951_v58  ;;  %7691 = vmatpush.bf16.msra.mxu3 %v12935_v0  ;;  %v12965_v58 = vld [vmem:[%s16168_s23 + $0x108] sm:$0xff] }
0x10e9   :  { %7813 = vmatpush.bf16.msra.mxu1 %v12950_v53  ;;  %7692 = vmatpush.bf16.msra.mxu3 %v12934_v24 }
0x10ed   :  { %7814 = vmatpush.bf16.msra.mxu1 %v12949_v3  ;;  %7693 = vmatpush.bf16.msra.mxu3 %v12933_v51  ;;  %v12964_v3 = vld [vmem:[%s16168_s23 + $0x100] sm:$0xff]  ;;  %v8063_v51 = vld [vmem:[%s16233_s5 + $0x78] sm:$0xff] }
0x10f1   :  { %7815 = vmatpush.bf16.msra.mxu1 %v12948_v16  ;;  %v12956_v16 = vld [vmem:[%s16168_s23 + $0xc0] sm:$0xff] }
0x10f5   :  { %7816 = vmatpush.bf16.msra.mxu1 %v12947_v1 }
0x10f9   :  { %7817 = vmatpush.bf16.msra.mxu1 %v12946_v33  ;;  %v12968_v33 = vld [vmem:[%s8951_s1] sm:$0xff] }
0x10fd   :  { %7818 = vmatpush.bf16.msra.mxu1 %v12945_v29  ;;  %v8062_v29 = vld [vmem:[%s16233_s5 + $0x70] sm:$0xff] }
0x113b   :  { %v16163_v27 = vpop.f32.mrf.mxu0 }
0x1141   :  { %v7073_v7 = vpop.f32.mrf.mxu1  ;;  %v7087_v40 = vpop.f32.mrf.mxu2 }
0x1142   :  { %v7088_v23 = vadd.f32 %v7087_v40, %v7073_v7  ;;  %v12932_v7 = vld [vmem:[%s16168_s23] sm:$0xff] }
0x1143   :  { %v7117_v28 = vpop.f32.mrf.mxu0  ;;  %v12944_v40 = vld [vmem:[%s16168_s23 + $0x60] sm:$0xff]  ;;  %7694 = vmatpush.bf16.msra.mxu3 %v12932_v7 }
0x1144   :  { %7819 = vmatpush.bf16.msra.mxu1 %v12944_v40  ;;  %v8060_v7 = vld [vmem:[%s16233_s5 + $0x60] sm:$0xff]  ;;  %v8059_v40 = vld [vmem:[%s16233_s5 + $0x58] sm:$0xff] }
0x1147   :  { %v7101_v34 = vpop.f32.mrf.mxu3 }
0x1148   :  { %v7116_v25 = vadd.f32 %v16163_v27, %v7101_v34  ;;  %v12940_v27 = vld [vmem:[%s16168_s23 + $0x40] sm:$0xff]  ;;  %v12963_v34 = vld [vmem:[%s16168_s23 + $0xf8] sm:$0xff]  ;;  %8064 = vmatpush.msrb.mxu1 %v8063_v51 }
0x1149   :  { %v7075_v11 = vpop.f32.mrf.mxu1  ;;  %v7089_v12 = vpop.f32.mrf.mxu2 }
0x114a   :  { %v7090_v63 = vadd.f32 %v7089_v12, %v7075_v11  ;;  %v12954_v11 = vld [vmem:[%s16168_s23 + $0xb0] sm:$0xff]  ;;  %8065 = vmatpush.msrb.mxu1 %v8062_v29 }
0x114b   :  { %v7316_v38 = vpop.f32.mrf.mxu0  ;;  %v12962_v12 = vld [vmem:[%s16168_s23 + $0xf0] sm:$0xff] }
0x114c   :  { %v7524_v39 = vpack.c.bf16 %v7090_v63, %v7088_v23 }
0x114f   :  { %v7103_v32 = vpop.f32.mrf.mxu3 }
0x1150   :  { %v7118_v15 = vadd.f32 %v7117_v28, %v7103_v32  ;;  %v12955_v28 = vld [vmem:[%s16168_s23 + $0xb8] sm:$0xff]  ;;  %v12961_v32 = vld [vmem:[%s16168_s23 + $0xe8] sm:$0xff] }
0x1151   :  { %v7274_v44 = vpop.f32.mrf.mxu1  ;;  %v7288_v46 = vpop.f32.mrf.mxu2 }
0x1152   :  { %v7289_v57 = vadd.f32 %v7288_v46, %v7274_v44  ;;  %v7525_v35 = vpack.c.bf16 %v7118_v15, %v7116_v25  ;;  %v12952_v44 = vld [vmem:[%s16168_s23 + $0xa0] sm:$0xff] }
0x1153   :  { %v7318_v43 = vpop.f32.mrf.mxu0  ;;  %v12960_v46 = vld [vmem:[%s16168_s23 + $0xe0] sm:$0xff] }
0x1157   :  { %v7302_v56 = vpop.f32.mrf.mxu3 }
0x1158   :  { %v7317_v14 = vadd.f32 %v7316_v38, %v7302_v56  ;;  %v12953_v38 = vld [vmem:[%s16168_s23 + $0xa8] sm:$0xff] }
0x1159   :  { %v7290_v18 = vpop.f32.mrf.mxu2  ;;  %v7276_v17 = vpop.f32.mrf.mxu1 }
0x115a   :  { %v7291_v4 = vadd.f32 %v7290_v18, %v7276_v17  ;;  %v12959_v18 = vld [vmem:[%s16168_s23 + $0xd8] sm:$0xff]  ;;  %v12966_v17 = vld [vmem:[%s16168_s23 + $0x110] sm:$0xff] }
0x115b   :  { %v7489_v13 = vpop.f32.mrf.mxu0 }
0x115c   :  { %v7526_v62 = vpack.c.bf16 %v7291_v4, %v7289_v57 }
0x115f   :  { %v7304_v48 = vpop.f32.mrf.mxu3 }
0x1160   :  { %v7319_v26 = vadd.f32 %v7318_v43, %v7304_v48  ;;  %v12967_v43 = vld [vmem:[%s16168_s23 + $0x118] sm:$0xff] }
0x1161   :  { %v7475_v54 = vpop.f32.mrf.mxu2  ;;  %v7503_v20 = vpop.f32.mrf.mxu1 }
0x1162   :  { %v7490_v6 = vadd.f32 %v7489_v13, %v7475_v54  ;;  %v7527_v21 = vpack.c.bf16 %v7319_v26, %v7317_v14  ;;  %v7535_v13 = vpop.permute.xlu1 %7534  ;;  %v7540_v54 = vpop.permute.xlu0 %7539 }
0x1163   :  { %v7491_v59 = vpop.f32.mrf.mxu0 }
0x1167   :  { %v7517_v60 = vpop.f32.mrf.mxu3 }
0x1168   :  { %v7518_v8 = vadd.f32 %v7517_v60, %v7503_v20 }
0x1169   :  { %v7477_v10 = vpop.f32.mrf.mxu2  ;;  %v7505_v19 = vpop.f32.mrf.mxu1 }
0x116a   :  { %v7492_v45 = vadd.f32 %v7491_v59, %v7477_v10 }
0x116c   :  { %v7528_v37 = vpack.c.bf16 %v7492_v45, %v7490_v6 }
0x116e   :  { %7555 = vmatpush.bf16.msrb.mxu0 %v7528_v37 }
0x116f   :  { %v7519_v50 = vpop.f32.mrf.mxu3 }
0x1170   :  { %v7520_v55 = vadd.f32 %v7519_v50, %v7505_v19 }
0x1172   :  { %v7529_v36 = vpack.c.bf16 %v7520_v55, %v7518_v8  ;;  %7556 = vmatpush.bf16.msrb.mxu0 %v7526_v62 }
0x1174   :  { %7569 = vmatpush.bf16.msrb.mxu2 %v7529_v36 }
0x1176   :  { %7557 = vmatpush.bf16.msrb.mxu0 %v7524_v39 }
0x1178   :  { %7570 = vmatpush.bf16.msrb.mxu2 %v7527_v21 }
0x1179   :  { %11911 = vmatmul.msk.bf16.vlgmr.msrb.gmra.mxu0 %vm4410_vm7, %v12931_v52 }
0x117a   :  { %7705 = vmatpush.bf16.msra.mxu0 %v12943_v30 }
0x117c   :  { %7571 = vmatpush.bf16.msrb.mxu2 %v7525_v35 }
0x117e   :  { %7706 = vmatpush.bf16.msra.mxu0 %v12942_v2 }
0x117f   :  { %11912 = vmatmul.msk.bf16.vlgmr.msrb.gmra.mxu2 %vm4410_vm7, %v12931_v52 }
0x1180   :  { %7830 = vmatpush.bf16.msra.mxu2 %v12955_v28  ;;  %v8058_v28 = vld [vmem:[%s16233_s5 + $0x50] sm:$0xff] }
0x1182   :  { %7707 = vmatpush.bf16.msra.mxu0 %v12941_v47  ;;  %v12969_v47 = vld [vmem:[%s8951_s1 + $0x8] sm:$0xff] }
0x1184   :  { %7831 = vmatpush.bf16.msra.mxu2 %v12954_v11 }
0x1186   :  { %7708 = vmatpush.bf16.msra.mxu0 %v12940_v27  ;;  %v8061_v27 = vld [vmem:[%s16233_s5 + $0x68] sm:$0xff] }
0x1187   :  { %8066 = vmatpush.msrb.mxu1 %v8061_v27 }
0x1188   :  { %7832 = vmatpush.bf16.msra.mxu2 %v12953_v38  ;;  %v8056_v38 = vld [vmem:[%s16233_s5 + $0x40] sm:$0xff] }
0x1189   :  { %8067 = vmatpush.msrb.mxu1 %v8060_v7 }
0x118a   :  { %7937 = vmatpush.bf16.msrb.mxu0 %v12963_v34 }
0x118b   :  { %8068 = vmatpush.msrb.mxu1 %v8059_v40 }
0x118c   :  { %7833 = vmatpush.bf16.msra.mxu2 %v12952_v44  ;;  %v7984_v44 = vpop.permute.xlu1 %7983 }
0x118d   :  { %8069 = vmatpush.msrb.mxu1 %v8058_v28 }
0x118e   :  { %7938 = vmatpush.bf16.msrb.mxu0 %v12962_v12  ;;  %v8057_v12 = vld [vmem:[%s16233_s5 + $0x48] sm:$0xff] }
0x118f   :  { %8070 = vmatpush.msrb.mxu1 %v8057_v12 }
0x1190   :  { %7955 = vmatpush.bf16.msrb.mxu2 %v12967_v43 }
0x1191   :  { %8071 = vmatpush.msrb.mxu1 %v8056_v38 }
0x1192   :  { %7939 = vmatpush.bf16.msrb.mxu0 %v12961_v32  ;;  %v8055_v32 = vld [vmem:[%s16233_s5 + $0x38] sm:$0xff] }
0x1193   :  { %8072 = vmatpush.msrb.mxu1 %v8055_v32 }
0x1194   :  { %7956 = vmatpush.bf16.msrb.mxu2 %v12966_v17 }
0x1196   :  { %7940 = vmatpush.bf16.msrb.mxu0 %v12960_v46  ;;  %v8084_v46 = vld [vmem:[%s8932_s9] sm:$0xff] }
0x1198   :  { %7957 = vmatpush.bf16.msrb.mxu2 %v12965_v58  ;;  %v8052_v58 = vld [vmem:[%s16233_s5 + $0x20] sm:$0xff] }
0x119a   :  { %7941 = vmatpush.bf16.msrb.mxu0 %v12959_v18  ;;  %v7979_v18 = vpop.permute.xlu2 %7978 }
0x119c   :  { %7958 = vmatpush.bf16.msrb.mxu2 %v12964_v3  ;;  %v8050_v3 = vld [vmem:[%s16233_s5 + $0x10] sm:$0xff] }
0x119e   :  { %7942 = vmatpush.bf16.msrb.mxu0 %v12958_v31 }
0x11a2   :  { %7943 = vmatpush.bf16.msrb.mxu0 %v12957_v49 }
0x11a6   :  { %7944 = vmatpush.bf16.msrb.mxu0 %v12956_v16 }
0x11f6   :  { %v7559_v56 = vpop.f32.mrf.mxu0 }
0x11f7   :  { %v7560_v48 = vadd.f32 %v7559_v56, %v7535_v13  ;;  %v8054_v56 = vld [vmem:[%s16233_s5 + $0x30] sm:$0xff] }
0x11f8   :  { %8073 = vmatpush.msrb.mxu1 %v8054_v56 }
0x11f9   :  { %v7578_v53 = vadd.f32 %v7560_v48, %v16097_v9 }
0x11fb   :  { %v7582_v10 = vmax.f32 %v7578_v53, 0.0 }
0x11fe   :  { %v7561_v22 = vpop.f32.mrf.mxu0 }
0x11ff   :  { %v7562_v20 = vadd.f32 %v7561_v22, %v7540_v54 }
0x1201   :  { %v7580_v60 = vadd.f32 %v7562_v20, %v16099_v42  ;;  %v8051_v20 = vld [vmem:[%s16233_s5 + $0x18] sm:$0xff] }
0x1202   :  { %v7573_v59 = vpop.f32.mrf.mxu2 }
0x1203   :  { %v7584_v5 = vmax.f32 %v7580_v60, 0.0  ;;  %v7574_v45 = vadd.f32 %v7573_v59, %v7535_v13  ;;  %v8053_v13 = vld [vmem:[%s16233_s5 + $0x28] sm:$0xff] }
0x1204   :  { %8074 = vmatpush.msrb.mxu1 %v8053_v13 }
0x1205   :  { %v7610_v6 = vpack.c.bf16 %v7584_v5, %v7582_v10  ;;  %v7579_v9 = vadd.f32 %v7574_v45, %v16060_v41  ;;  %v8049_v10 = vld [vmem:[%s16233_s5 + $0x8] sm:$0xff]  ;;  %v7994_v5 = vpop.permute.xlu2 %7993 }
0x1206   :  { %8075 = vmatpush.msrb.mxu1 %v8052_v58 }
0x1207   :  { %7695 = vmatmul.bf16.vlgmr.msra.gmra.mxu3 %v7610_v6  ;;  %7820 = vmatmul.bf16.vlgmr.msra.gmra.mxu1 %v7610_v6  ;;  %v7583_v19 = vmax.f32 %v7579_v9, 0.0 }
0x1208   :  { %8076 = vmatpush.msrb.mxu1 %v8051_v20 }
0x120a   :  { %v7575_v4 = vpop.f32.mrf.mxu2  ;;  %8077 = vmatpush.msrb.mxu1 %v8050_v3 }
0x120b   :  { %v7576_v37 = vadd.f32 %v7575_v4, %v7540_v54  ;;  %v7989_v54 = vpop.permute.xlu0 %7988  ;;  %v8048_v4 = vld [vmem:[%s16233_s5] sm:$0xff] }
0x120c   :  { %8078 = vmatpush.msrb.mxu1 %v8049_v10 }
0x120d   :  { %v7581_v57 = vadd.f32 %v7576_v37, %v16062_v61 }
0x120e   :  { %8079 = vmatpush.msrb.mxu1 %v8048_v4 }
0x120f   :  { %v7585_v50 = vmax.f32 %v7581_v57, 0.0 }
0x1211   :  { %v7611_v42 = vpack.c.bf16 %v7585_v50, %v7583_v19 }
0x1213   :  { %11961 = vmatmul.msk.bf16.vlgmr.msra.gmra.mxu0 %vm3198_vm5, %v7611_v42  ;;  %12034 = vmatmul.msk.bf16.vlgmr.msra.gmra.mxu2 %vm3198_vm5, %v7611_v42 }
0x1214   :  { %8104 = vmatpush.msra.mxu0 %v8084_v46 }
0x1223   :  { %7945 = vmatmul.bf16.vlgmr.msrb.gmra.mxu0 %v7610_v6  ;;  %12107 = vmatmul.msk.bf16.vlgmr.msrb.gmra.mxu2 %vm3198_vm5, %v7611_v42  ;;  %vm8085_vm5 = vcmask 64512  }
0x1224   :  { %8166 = vmatpush.msrb.mxu0 %v8084_v46  ;;  %v12991_v46 = vld [vmem:[%s16277_s13 + $0xa8] sm:$0xff] }
0x1284   :  { %v7821_v26 = vpop.f32.mrf.mxu1 }
0x128a   :  { %v7696_v36 = vpop.f32.mrf.mxu3 }
0x128c   :  { %v7823_v15 = vpop.f32.mrf.mxu1 }
0x1290   :  { %v7710_v63 = vpop.f32.mrf.mxu0 }
0x1291   :  { %v7711_v2 = vadd.f32 %v7710_v63, %v7696_v36 }
0x1292   :  { %v7698_v30 = vpop.f32.mrf.mxu3 }
0x1296   :  { %v7835_v62 = vpop.f32.mrf.mxu2 }
0x1297   :  { %v7836_v35 = vadd.f32 %v7835_v62, %v7821_v26 }
0x1298   :  { %v7712_v8 = vpop.f32.mrf.mxu0 }
0x1299   :  { %v7713_v0 = vadd.f32 %v7712_v8, %v7698_v30 }
0x129b   :  { %v7969_v24 = vpack.c.bf16 %v7713_v0, %v7711_v2 }
0x129e   :  { %v7837_v55 = vpop.f32.mrf.mxu2 }
0x129f   :  { %v7838_v21 = vadd.f32 %v7837_v55, %v7823_v15 }
0x12a0   :  { %v7946_v23 = vpop.f32.mrf.mxu0 }
0x12a1   :  { %v7970_v1 = vpack.c.bf16 %v7838_v21, %v7836_v35 }
0x12a6   :  { %v7960_v41 = vpop.f32.mrf.mxu2 }
0x12a7   :  { %v16219_v14 = vadd.f32 %v7960_v41, %v7946_v23 }
0x12a8   :  { %v7948_v39 = vpop.f32.mrf.mxu0 }
0x12ae   :  { %v7962_v61 = vpop.f32.mrf.mxu2 }
0x12af   :  { %v16221_v52 = vadd.f32 %v7962_v61, %v7948_v39 }
0x12b1   :  { %v7971_v25 = vpack.c.bf16 %v16221_v52, %v16219_v14 }
0x12b3   :  { %8017 = vmatpush.bf16.msrb.mxu3 %v7971_v25 }
0x12b7   :  { %8018 = vmatpush.bf16.msrb.mxu3 %v7970_v1 }
0x12bb   :  { %8019 = vmatpush.bf16.msrb.mxu3 %v7969_v24 }
0x12be   :  { %12116 = vmatmul.msk.bf16.vlgmr.msrb.gmra.mxu3 %vm4410_vm7, %v12968_v33 }
0x12bf   :  { %8128 = vmatpush.msra.mxu3 %v8063_v51 }
0x12c1   :  { %8129 = vmatpush.msra.mxu3 %v8062_v29 }
0x12c3   :  { %8130 = vmatpush.msra.mxu3 %v8061_v27  ;;  %v12977_v27 = vld [vmem:[%s16277_s13 + $0x38] sm:$0xff] }
0x12c4   :  { %8270 = vmatpush.bf16.msra.mxu2 %v12977_v27 }
0x12c5   :  { %8131 = vmatpush.msra.mxu3 %v8060_v7  ;;  %v12985_v7 = vld [vmem:[%s16277_s13 + $0x78] sm:$0xff] }
0x12c7   :  { %8132 = vmatpush.msra.mxu3 %v8059_v40  ;;  %v12993_v40 = vld [vmem:[%s16277_s13 + $0xb8] sm:$0xff] }
0x12c8   :  { %8438 = vmatpush.bf16.msra.mxu1 %v12993_v40 }
0x12c9   :  { %8133 = vmatpush.msra.mxu3 %v8058_v28  ;;  %v13001_v28 = vld [vmem:[%s16277_s13 + $0xf8] sm:$0xff] }
0x12cb   :  { %8134 = vmatpush.msra.mxu3 %v8057_v12  ;;  %v12992_v12 = vld [vmem:[%s16277_s13 + $0xb0] sm:$0xff] }
0x12cc   :  { %8439 = vmatpush.bf16.msra.mxu1 %v12992_v12 }
0x12cd   :  { %8135 = vmatpush.msra.mxu3 %v8056_v38  ;;  %v13000_v38 = vld [vmem:[%s16277_s13 + $0xf0] sm:$0xff] }
0x12ce   :  { %12117 = vmatmul.msk.bf16.gmra.mxu3 %vm4410_vm7, %v12969_v47 }
0x12cf   :  { %8136 = vmatpush.msra.mxu3 %v8055_v32  ;;  %v12975_v32 = vld [vmem:[%s16277_s13 + $0x28] sm:$0xff] }
0x12d0   :  { %8440 = vmatpush.bf16.msra.mxu1 %v12991_v46 }
0x12d1   :  { %8137 = vmatpush.msra.mxu3 %v8054_v56  ;;  %v12974_v56 = vld [vmem:[%s16277_s13 + $0x20] sm:$0xff] }
0x12d3   :  { %8138 = vmatpush.msra.mxu3 %v8053_v13  ;;  %v12990_v13 = vld [vmem:[%s16277_s13 + $0xa0] sm:$0xff] }
0x12d4   :  { %8441 = vmatpush.bf16.msra.mxu1 %v12990_v13 }
0x12d5   :  { %8139 = vmatpush.msra.mxu3 %v8052_v58 }
0x12d7   :  { %8140 = vmatpush.msra.mxu3 %v8051_v20  ;;  %v12997_v20 = vld [vmem:[%s16277_s13 + $0xd8] sm:$0xff] }
0x12d9   :  { %8141 = vmatpush.msra.mxu3 %v8050_v3  ;;  %v12980_v3 = vld [vmem:[%s16277_s13 + $0x50] sm:$0xff] }
0x12db   :  { %8142 = vmatpush.msra.mxu3 %v8049_v10 }
0x12dd   :  { %8143 = vmatpush.msra.mxu3 %v8048_v4  ;;  %v12995_v4 = vld [vmem:[%s16277_s13 + $0xc8] sm:$0xff] }
0x12df   :  { %8522 = vmatpush.bf16.msrb.mxu3 %v13001_v28 }
0x12e3   :  { %8523 = vmatpush.bf16.msrb.mxu3 %v13000_v38 }
0x1341   :  { %v8021_v34 = vpop.f32.mrf.mxu3 }
0x1342   :  { %v8022_v17 = vadd.f32 %v8021_v34, %v7979_v18  ;;  %v12976_v34 = vld [vmem:[%s16277_s13 + $0x30] sm:$0xff]  ;;  %v12982_v18 = vld [vmem:[%s16277_s13 + $0x60] sm:$0xff] }
0x1343   :  { %8271 = vmatpush.bf16.msra.mxu2 %v12976_v34 }
0x1344   :  { %v8031_v22 = vadd.f32 %v8022_v17, %v16219_v14 }
0x1346   :  { %v8035_v60 = vmax.f32 %v8031_v22, 0.0  ;;  %v12981_v22 = vld [vmem:[%s16277_s13 + $0x58] sm:$0xff] }
0x1347   :  { %8272 = vmatpush.bf16.msra.mxu2 %v12975_v32 }
0x1349   :  { %v8023_v11 = vpop.f32.mrf.mxu3 }
0x134a   :  { %v8024_v43 = vadd.f32 %v8023_v11, %v7984_v44  ;;  %v12984_v11 = vld [vmem:[%s16277_s13 + $0x70] sm:$0xff]  ;;  %v12983_v44 = vld [vmem:[%s16277_s13 + $0x68] sm:$0xff] }
0x134b   :  { %8273 = vmatpush.bf16.msra.mxu2 %v12974_v56 }
0x134c   :  { %v8032_v31 = vadd.f32 %v8024_v43, %v16221_v52  ;;  %v12999_v43 = vld [vmem:[%s16277_s13 + $0xe8] sm:$0xff] }
0x134d   :  { %8524 = vmatpush.bf16.msrb.mxu3 %v12999_v43 }
0x134e   :  { %v8036_v49 = vmax.f32 %v8032_v31, 0.0 }
0x1350   :  { %v8039_v6 = vadd.f32 %v8036_v49, %v8035_v60 }
0x1351   :  { %v8026_v48 = vpop.f32.mrf.mxu3 }
0x1352   :  { %v8027_v53 = vadd.f32 %v8026_v48, %v7989_v54  ;;  %v12998_v48 = vld [vmem:[%s16277_s13 + $0xe0] sm:$0xff]  ;;  %v12973_v54 = vld [vmem:[%s16277_s13 + $0x18] sm:$0xff] }
0x1353   :  { %8525 = vmatpush.bf16.msrb.mxu3 %v12998_v48  ;;  %8274 = vmatpush.bf16.msra.mxu2 %v12973_v54 }
0x1354   :  { %v8037_v59 = vmax.f32 %v8027_v53, 0.0  ;;  %v12989_v53 = vld [vmem:[%s16277_s13 + $0x98] sm:$0xff] }
0x1355   :  { %8442 = vmatpush.bf16.msra.mxu1 %v12989_v53 }
0x1356   :  { %v8040_v9 = vadd.f32 %v8039_v6, %v8037_v59 }
0x1357   :  { %8526 = vmatpush.bf16.msrb.mxu3 %v12997_v20 }
0x1359   :  { %v8028_v16 = vpop.f32.mrf.mxu3 }
0x135a   :  { %v8029_v45 = vadd.f32 %v8028_v16, %v7994_v5  ;;  %v12971_v5 = vld [vmem:[%s16277_s13 + $0x8] sm:$0xff] }
0x135b   :  { %v12979_v16 = vld [vmem:[%s16277_s13 + $0x48] sm:$0xff] }
0x135c   :  { %v8038_v37 = vmax.f32 %v8029_v45, 0.0  ;;  %v12987_v45 = vld [vmem:[%s16277_s13 + $0x88] sm:$0xff] }
0x135e   :  { %v8041_v57 = vadd.f32 %v8040_v9, %v8038_v37 }
0x1360   :  { %v8042_v19 = vrot.slane %v8041_v57, 4 }
0x1362   :  { %v8043_v50 = vadd.f32 %v8042_v19, %v8041_v57  ;;  %v12978_v57 = vld [vmem:[%s16277_s13 + $0x40] sm:$0xff] }
0x1364   :  { %v8044_v42 = vrot.slane %v8043_v50, 2 }
0x1366   :  { %v8045_v63 = vadd.f32 %v8044_v42, %v8043_v50  ;;  %v12986_v50 = vld [vmem:[%s16277_s13 + $0x80] sm:$0xff] }
0x1367   :  { %v12994_v42 = vld [vmem:[%s16277_s13 + $0xc0] sm:$0xff] }
0x1368   :  { %v8046_v62 = vrot.slane %v8045_v63, 1 }
0x136a   :  { %v8047_v8 = vadd.f32 %v8046_v62, %v8045_v63 }
0x136c   :  { %8080 = vmatmul.f32.vlgmr.msrb.gmra.mxu1 %v8047_v8 }
0x13e9   :  { %v8081_v55 = vpop.f32.mrf.mxu1 }
0x13ea   :  { %12118 = vmatmul.msk.f32.vlgmr.msra.gmra.mxu0 %vm8085_vm5, %v8081_v55 }
0x13eb   :  { %8354 = vmatpush.bf16.msra.mxu0 %v12985_v7 }
0x13ef   :  { %8355 = vmatpush.bf16.msra.mxu0 %v12984_v11 }
0x13f3   :  { %8356 = vmatpush.bf16.msra.mxu0 %v12983_v44 }
0x13f7   :  { %8357 = vmatpush.bf16.msra.mxu0 %v12982_v18 }
0x13fb   :  { %8358 = vmatpush.bf16.msra.mxu0 %v12981_v22 }
0x13ff   :  { %8359 = vmatpush.bf16.msra.mxu0 %v12980_v3 }
0x1403   :  { %8360 = vmatpush.bf16.msra.mxu0 %v12979_v16 }
0x1407   :  { %8361 = vmatpush.bf16.msra.mxu0 %v12978_v57 }
0x1467   :  { %v8106_v23 = vpop.f32.mrf.mxu0 }
0x1468   :  { %v8109_v26 = vmul.f32 0.001953125, %v8106_v23  ;;  %v8188_v23 = vld [vmem:[%s16314_s17] sm:$0xff] }
0x146a   :  { %v8110_v41 = vperm.slane %v8109_v26, 0  ;;  %v8189_v26 = vld [vmem:[%s16314_s17 + $0x8] sm:$0xff] }
0x146c   :  { %v16257_v36 = vsub.f32 %v8035_v60, %v8110_v41  ;;  %v16259_v39 = vsub.f32 %v8036_v49, %v8110_v41  ;;  %v16261_v61 = vsub.f32 %v8037_v59, %v8110_v41  ;;  %v16263_v14 = vsub.f32 %v8038_v37, %v8110_v41  ;;  %v12972_v49 = vld [vmem:[%s16277_s13 + $0x10] sm:$0xff]  ;;  %v12970_v37 = vld [vmem:[%s16277_s13] sm:$0xff] }
0x146d   :  { %v12988_v60 = vld [vmem:[%s16277_s13 + $0x90] sm:$0xff]  ;;  %8275 = vmatpush.bf16.msra.mxu2 %v12972_v49 }
0x146e   :  { %v8115_v52 = vmul.f32 %v16257_v36, %v16257_v36  ;;  %v8116_v15 = vmul.f32 %v16259_v39, %v16259_v39  ;;  %v8117_v21 = vmul.f32 %v16261_v61, %v16261_v61  ;;  %v8118_v35 = vmul.f32 %v16263_v14, %v16263_v14  ;;  %v12996_v59 = vld [vmem:[%s16277_s13 + $0xd0] sm:$0xff]  ;;  %8443 = vmatpush.bf16.msra.mxu1 %v12988_v60  ;;  %v13002_v60 = vld [vmem:[%s8955_s25] sm:$0xff] }
0x146f   :  { %8527 = vmatpush.bf16.msrb.mxu3 %v12996_v59  ;;  %v13003_v59 = vld [vmem:[%s8955_s25 + $0x8] sm:$0xff] }
0x1470   :  { %v8119_v25 = vadd.f32 %v8116_v15, %v8115_v52  ;;  %v8196_v15 = vld [vmem:[%s16319_s21] sm:$0xff] }
0x1471   :  { %8276 = vmatpush.bf16.msra.mxu2 %v12971_v5  ;;  %v13005_v5 = vld [vmem:[%s8955_s25 + $0x18] sm:$0xff] }
0x1472   :  { %v8120_v30 = vadd.f32 %v8119_v25, %v8117_v21  ;;  %8444 = vmatpush.bf16.msra.mxu1 %v12987_v45  ;;  %v8197_v21 = vld [vmem:[%s16319_s21 + $0x8] sm:$0xff] }
0x1473   :  { %8528 = vmatpush.bf16.msrb.mxu3 %v12995_v4 }
0x1474   :  { %v8121_v0 = vadd.f32 %v8120_v30, %v8118_v35 }
0x1475   :  { %8277 = vmatpush.bf16.msra.mxu2 %v12970_v37 }
0x1476   :  { %v8122_v1 = vrot.slane %v8121_v0, 4  ;;  %8445 = vmatpush.bf16.msra.mxu1 %v12986_v50  ;;  %v8593_v50 = vpop.permute.xlu0 %8592 }
0x1477   :  { %8529 = vmatpush.bf16.msrb.mxu3 %v12994_v42 }
0x1478   :  { %v8123_v2 = vadd.f32 %v8122_v1, %v8121_v0 }
0x147a   :  { %v8124_v24 = vrot.slane %v8123_v2, 2 }
0x147c   :  { %v8125_v33 = vadd.f32 %v8124_v24, %v8123_v2  ;;  %v8190_v24 = vld [vmem:[%s16314_s17 + $0x10] sm:$0xff] }
0x147e   :  { %v8126_v47 = vrot.slane %v8125_v33, 1 }
0x1480   :  { %v8127_v51 = vadd.f32 %v8126_v47, %v8125_v33  ;;  %v8191_v33 = vld [vmem:[%s16314_s17 + $0x18] sm:$0xff] }
0x1482   :  { %8144 = vmatmul.f32.vlgmr.msra.gmra.mxu3 %v8127_v51  ;;  %v8198_v51 = vld [vmem:[%s16319_s21 + $0x10] sm:$0xff] }
0x1505   :  { %v8145_v29 = vpop.f32.mrf.mxu3 }
0x1506   :  { %12119 = vmatmul.msk.f32.vlgmr.msrb.gmra.mxu0 %vm8085_vm5, %v8145_v29  ;;  %v8199_v29 = vld [vmem:[%s16319_s21 + $0x18] sm:$0xff] }
0x1583   :  { %v8168_v17 = vpop.f32.mrf.mxu0 }
0x1584   :  { %v8171_v31 = vmul.f32 0.001953125, %v8168_v17 }
0x1586   :  { %v8172_v58 = vadd.f32 1e-05, %v8171_v31 }
0x1588   :  { %13110 = vrsqrt.f32 %v8172_v58  ;;  %vm8179_vm4 = vweird.f32 %v8172_v58 }
0x158e   :  { %v13111_v10 = vpop.eup %13110 }
0x158f   :  { %v8174_v6 = vmul.f32 %v13111_v10, %v8172_v58  ;;  %vm8180_vm7 = vweird.f32 %v13111_v10 }
0x1590   :  { %vm8181_vm6 = vmor %vm8179_vm4, %vm8180_vm7 }
0x1591   :  { %v8175_v9 = vmul.f32 %v13111_v10, %v8174_v6 }
0x1593   :  { %v8176_v19 = vmul.f32 0.5, %v8175_v9  ;;  %v8588_v9 = vpop.permute.xlu1 %8587 }
0x1595   :  { %v8177_v63 = vsub.f32 1.5, %v8176_v19 }
0x1597   :  { %v8178_v62 = vmul.f32 %v13111_v10, %v8177_v63 }
0x1599   :  { %v8182_v8 = vsel %vm8181_vm6, %v13111_v10, %v8178_v62  ;;  %v13004_v10 = vld [vmem:[%s8955_s25 + $0x10] sm:$0xff] }
0x159a   :  { %v8183_v55 = vperm.slane %v8182_v8, 0 }
0x159c   :  { %v8184_v41 = vmul.f32 %v8183_v55, %v16257_v36  ;;  %v8185_v52 = vmul.f32 %v8183_v55, %v16259_v39  ;;  %v8186_v2 = vmul.f32 %v8183_v55, %v16261_v61  ;;  %v8187_v36 = vmul.f32 %v8183_v55, %v16263_v14 }
0x159e   :  { %v8192_v25 = vmul.f32 %v8188_v23, %v8184_v41  ;;  %v8193_v35 = vmul.f32 %v8189_v26, %v8185_v52  ;;  %v8194_v39 = vmul.f32 %v8190_v24, %v8186_v2  ;;  %v8195_v47 = vmul.f32 %v8191_v33, %v8187_v36  ;;  %v8598_v23 = vpop.permute.xlu2 %8597  ;;  %v8758_v2 = vld [vmem:[%s8933_s29 + $0x18] sm:$0xff]  ;;  %v8757_v36 = vld [vmem:[%s8933_s29 + $0x10] sm:$0xff] }
0x159f   :  { %8774 = vmatpush.msrb.mxu0 %v8758_v2 }
0x15a0   :  { %v8200_v30 = vadd.f32 %v8196_v15, %v8192_v25  ;;  %v8201_v0 = vadd.f32 %v8197_v21, %v8193_v35  ;;  %v8202_v27 = vadd.f32 %v8198_v51, %v8194_v39  ;;  %v8203_v7 = vadd.f32 %v8199_v29, %v8195_v47  ;;  %v8603_v35 = vpop.permute.xlu1 %8602  ;;  %v8756_v51 = vld [vmem:[%s8933_s29 + $0x8] sm:$0xff] }
0x15a1   :  { %8775 = vmatpush.msrb.mxu0 %v8757_v36 }
0x15a2   :  { %v8220_v1 = vpack.c.bf16 %v8201_v0, %v8200_v30  ;;  %v8221_v40 = vpack.c.bf16 %v8203_v7, %v8202_v27  ;;  %v8755_v7 = vld [vmem:[%s8933_s29] sm:$0xff] }
0x15a3   :  { %8776 = vmatpush.msrb.mxu0 %v8756_v51 }
0x15a4   :  { %8278 = vmatmul.bf16.vlgmr.msra.gmra.mxu2 %v8220_v1  ;;  %8362 = vmatmul.bf16.vlgmr.msra.gmra.mxu0 %v8220_v1 }
0x15a5   :  { %8446 = vmatmul.bf16.vlgmr.msra.gmra.mxu1 %v8220_v1  ;;  %8530 = vmatmul.bf16.vlgmr.msrb.gmra.mxu3 %v8220_v1 }
0x15a6   :  { %8777 = vmatpush.msrb.mxu0 %v8755_v7 }
0x15a8   :  { %8848 = vmatpush.msra.mxu0 %v8758_v2 }
0x15aa   :  { %8849 = vmatpush.msra.mxu0 %v8757_v36 }
0x15ac   :  { %8850 = vmatpush.msra.mxu0 %v8756_v51 }
0x15ae   :  { %8851 = vmatpush.msra.mxu0 %v8755_v7 }
0x15b4   :  { %8283 = vmatmul.bf16.gmra.mxu2 %v8221_v40  ;;  %8367 = vmatmul.bf16.gmra.mxu0 %v8221_v40 }
0x15b5   :  { %8451 = vmatmul.bf16.gmra.mxu1 %v8221_v40  ;;  %8535 = vmatmul.bf16.gmra.mxu3 %v8221_v40 }
0x1621   :  { %v8363_v11 = vpop.f32.mrf.mxu0 }
0x1622   :  { %v8447_v28 = vpop.f32.mrf.mxu1 }
0x1627   :  { %v8279_v12 = vpop.f32.mrf.mxu2 }
0x1628   :  { %v16333_v34 = vpop.f32.mrf.mxu3 }
0x1629   :  { %v8365_v32 = vpop.f32.mrf.mxu0 }
0x162a   :  { %v8449_v14 = vpop.f32.mrf.mxu1  ;;  %v8551_v53 = vpack.c.bf16 %v8365_v32, %v8363_v11 }
0x162b   :  { %v8553_v58 = vpack.c.bf16 %v8449_v14, %v8447_v28 }
0x162f   :  { %v8281_v56 = vpop.f32.mrf.mxu2 }
0x1630   :  { %v16335_v61 = vpop.f32.mrf.mxu3  ;;  %v8549_v3 = vpack.c.bf16 %v8281_v56, %v8279_v12 }
0x1631   :  { %v8368_v18 = vpop.f32.mrf.mxu0  ;;  %v8555_v17 = vpack.c.bf16 %v16335_v61, %v16333_v34 }
0x1632   :  { %v8452_v44 = vpop.f32.mrf.mxu1 }
0x1637   :  { %v8284_v31 = vpop.f32.mrf.mxu2 }
0x1638   :  { %v16337_v38 = vpop.f32.mrf.mxu3 }
0x1639   :  { %v8370_v54 = vpop.f32.mrf.mxu0 }
0x163a   :  { %v8454_v13 = vpop.f32.mrf.mxu1  ;;  %v8552_v22 = vpack.c.bf16 %v8370_v54, %v8368_v18 }
0x163b   :  { %v8554_v48 = vpack.c.bf16 %v8454_v13, %v8452_v44  ;;  %v8568_v44 = vpop.permute.xlu0 %8567  ;;  %v8573_v13 = vpop.permute.xlu2 %8572 }
0x163f   :  { %v8286_v20 = vpop.f32.mrf.mxu2 }
0x1640   :  { %v16339_v46 = vpop.f32.mrf.mxu3  ;;  %v8550_v49 = vpack.c.bf16 %v8286_v20, %v8284_v31 }
0x1641   :  { %v8556_v43 = vpack.c.bf16 %v16339_v46, %v16337_v38 }
0x1643   :  { %8629 = vmatpush.bf16.msrb.mxu2 %v8556_v43 }
0x1647   :  { %8630 = vmatpush.bf16.msrb.mxu2 %v8555_v17 }
0x164b   :  { %8631 = vmatpush.bf16.msrb.mxu2 %v8554_v48 }
0x164f   :  { %8632 = vmatpush.bf16.msrb.mxu2 %v8553_v58 }
0x1653   :  { %8633 = vmatpush.bf16.msrb.mxu2 %v8552_v22 }
0x1657   :  { %8634 = vmatpush.bf16.msrb.mxu2 %v8551_v53 }
0x165b   :  { %8635 = vmatpush.bf16.msrb.mxu2 %v8550_v49  ;;  %v8782_v49 = vld [vmem:[%s8934_s3] sm:$0x3] }
0x165c   :  { %12317 = vmatpush.msk.msrb.mxu1 %vm492_vm11, %v8782_v49 }
0x165e   :  { %12320 = vmatpush.msk.msra.mxu1 %vm492_vm11, %v8782_v49 }
0x165f   :  { %8636 = vmatpush.bf16.msrb.mxu2 %v8549_v3  ;;  %v8578_v3 = vpop.permute.xlu1 %8577 }
0x1662   :  { %8637 = vmatmul.bf16.vlgmr.msrb.gmra.mxu2 %v13002_v60 }
0x1672   :  { %8642 = vmatmul.bf16.gmra.mxu2 %v13003_v59 }
0x1682   :  { %8647 = vmatmul.bf16.gmra.mxu2 %v13004_v10 }
0x1692   :  { %8652 = vmatmul.bf16.gmra.mxu2 %v13005_v5 }
0x16e5   :  { %v16348_v16 = vpop.f32.mrf.mxu2 }
0x16ed   :  { %v16350_v6 = vpop.f32.mrf.mxu2 }
0x16ee   :  { %v8641_v54 = vadd.f32 %v16350_v6, %v8573_v13  ;;  %v8639_v6 = vadd.f32 %v16348_v16, %v8568_v44 }
0x16f5   :  { %v16352_v45 = vpop.f32.mrf.mxu2 }
0x16fd   :  { %v16354_v4 = vpop.f32.mrf.mxu2 }
0x1705   :  { %v8648_v37 = vpop.f32.mrf.mxu2 }
0x1706   :  { %v8649_v57 = vadd.f32 %v8648_v37, %v8588_v9  ;;  %v8644_v9 = vadd.f32 %v16352_v45, %v8578_v3 }
0x1708   :  { %v12312_v19 = vmul.f32 -1.442695, %v8649_v57 }
0x170a   :  { %13112 = vpow2.f32 %v12312_v19 }
0x170d   :  { %v8650_v42 = vpop.f32.mrf.mxu2 }
0x170e   :  { %v8651_v63 = vadd.f32 %v8650_v42, %v8593_v50 }
0x1710   :  { %v13113_v62 = vpop.eup %13112  ;;  %v12313_v8 = vmul.f32 -1.442695, %v8651_v63  ;;  %v8659_v63 = vadd.f32 %v8641_v54, %v16335_v61 }
0x1711   :  { %v16356_v55 = vadd.f32 1.0, %v13113_v62 }
0x1712   :  { %13114 = vpow2.f32 %v12313_v8 }
0x1713   :  { %13116 = vrcp.f32 %v16356_v55  ;;  %v8689_v48 = vand.u32 2147483648, %v16356_v55  ;;  %vm8683_vm12 = vweird.f32 %v16356_v55  ;;  %v8687_v22 = vand.u32 2147483647, %v16356_v55 }
0x1715   :  { %v8653_v26 = vpop.f32.mrf.mxu2  ;;  %v8690_v19 = vor.u32 1.1754944e-38, %v8689_v48  ;;  %vm8688_vm3 = vcmp.eq.f32.partialorder %v8687_v22, 8.507059e+37 }
0x1716   :  { %v8654_v41 = vadd.f32 %v8653_v26, %v8598_v23  ;;  %v8658_v23 = vadd.f32 %v8639_v6, %v16333_v34 }
0x1718   :  { %v13115_v52 = vpop.eup %13114  ;;  %v12314_v15 = vmul.f32 -1.442695, %v8654_v41  ;;  %v8583_v41 = vpop.permute.xlu0 %8582 }
0x1719   :  { %v16362_v21 = vadd.f32 1.0, %v13115_v52  ;;  %v16365_v25 = vpop.eup %13116  ;;  %v8660_v52 = vadd.f32 %v8644_v9, %v16337_v38  ;;  %v8646_v61 = vadd.f32 %v16354_v4, %v8583_v41 }
0x171a   :  { %13118 = vpow2.f32 %v12314_v15  ;;  %v8679_v1 = vmul.f32 %v16365_v25, %v16356_v55  ;;  %vm8684_vm9 = vweird.f32 %v16365_v25 }
0x171b   :  { %13120 = vrcp.f32 %v16362_v21  ;;  %v8704_v17 = vand.u32 2147483648, %v16362_v21  ;;  %vm8698_vm10 = vweird.f32 %v16362_v21  ;;  %v8702_v31 = vand.u32 2147483647, %v16362_v21  ;;  %vm16405_vm14 = vmor %vm8683_vm12, %vm8684_vm9 }
0x171c   :  { %v8680_v27 = vsub.f32 1.0, %v8679_v1  ;;  %v8661_v34 = vadd.f32 %v8646_v61, %v16339_v46  ;;  %vm8783_vm9 = vcmask 15360   ;;  %v8898_v61 = vld [vmem:[%s8957_s7 + $0x10] sm:$0xff] }
0x171d   :  { %v8655_v30 = vpop.f32.mrf.mxu2  ;;  %v8705_v57 = vor.u32 1.1754944e-38, %v8704_v17  ;;  %vm8703_vm1 = vcmp.eq.f32.partialorder %v8702_v31, 8.507059e+37 }
0x171e   :  { %v8656_v0 = vadd.f32 %v8655_v30, %v8603_v35  ;;  %v8681_v11 = vmul.f32 %v16365_v25, %v8680_v27 }
0x1720   :  { %v13119_v24 = vpop.eup %13118  ;;  %v12315_v33 = vmul.f32 -1.442695, %v8656_v0  ;;  %v8682_v18 = vadd.f32 %v16365_v25, %v8681_v11 }
0x1721   :  { %v16369_v39 = vpop.eup %13120  ;;  %v16371_v47 = vadd.f32 1.0, %v13119_v24 }
0x1722   :  { %v8694_v29 = vmul.f32 %v16369_v39, %v16362_v21  ;;  %13122 = vpow2.f32 %v12315_v33  ;;  %vm8699_vm8 = vweird.f32 %v16369_v39  ;;  %v8686_v37 = vsel %vm16405_vm14, %v16365_v25, %v8682_v18 }
0x1723   :  { %13124 = vrcp.f32 %v16371_v47  ;;  %vm16398_vm13 = vmor %vm8698_vm10, %vm8699_vm8  ;;  %v8719_v20 = vand.u32 2147483648, %v16371_v47  ;;  %v8717_v5 = vand.u32 2147483647, %v16371_v47  ;;  %vm8713_vm2 = vweird.f32 %v16371_v47 }
0x1724   :  { %v8695_v40 = vsub.f32 1.0, %v8694_v29  ;;  %v8691_v45 = vsel %vm8688_vm3, %v8690_v19, %v8686_v37 }
0x1725   :  { %v8720_v16 = vor.u32 1.1754944e-38, %v8719_v20  ;;  %vm8718_vm7 = vcmp.eq.f32.partialorder %v8717_v5, 8.507059e+37  ;;  %v8738_v25 = vmul.f32 %v8691_v45, %v8658_v23 }
0x1726   :  { %v8696_v28 = vmul.f32 %v16369_v39, %v8695_v40 }
0x1727   :  { %v8742_v24 = vsel %vm883_vm0, %v8738_v25, 0.0 }
0x1728   :  { %v13123_v14 = vpop.eup %13122  ;;  %v8697_v43 = vadd.f32 %v16369_v39, %v8696_v28 }
0x1729   :  { %v13125_v12 = vpop.eup %13124  ;;  %v16381_v32 = vadd.f32 1.0, %v13123_v14 }
0x172a   :  { %v8709_v56 = vmul.f32 %v13125_v12, %v16371_v47  ;;  %v8701_v59 = vsel %vm16398_vm13, %v16369_v39, %v8697_v43  ;;  %vm8714_vm15 = vweird.f32 %v13125_v12 }
0x172b   :  { %13126 = vrcp.f32 %v16381_v32  ;;  %v8706_v62 = vsel %vm8703_vm1, %v8705_v57, %v8701_v59  ;;  %vm8715_vm5 = vmor %vm8713_vm2, %vm8714_vm15  ;;  %v8734_v35 = vand.u32 2147483648, %v16381_v32  ;;  %v8732_v1 = vand.u32 2147483647, %v16381_v32 }
0x172c   :  { %v8710_v58 = vsub.f32 1.0, %v8709_v56  ;;  %v8739_v15 = vmul.f32 %v8706_v62, %v8659_v63  ;;  %vm8728_vm4 = vweird.f32 %v16381_v32 }
0x172d   :  { %v8735_v38 = vor.u32 1.1754944e-38, %v8734_v35  ;;  %vm8733_vm8 = vcmp.eq.f32.partialorder %v8732_v1, 8.507059e+37 }
0x172e   :  { %v8711_v10 = vmul.f32 %v13125_v12, %v8710_v58  ;;  %v8743_v2 = vsel %vm883_vm0, %v8739_v15, 0.0 }
0x172f   :  { %v8744_v39 = vadd.f32 %v8743_v2, %v8742_v24  ;;  %v8904_v2 = vld [vmem:[%s8958_s11] sm:$0xff] }
0x1730   :  { %v8712_v50 = vadd.f32 %v13125_v12, %v8711_v10 }
0x1731   :  { %v13127_v42 = vpop.eup %13126 }
0x1732   :  { %v8716_v8 = vsel %vm8715_vm5, %v13125_v12, %v8712_v50  ;;  %v8724_v55 = vmul.f32 %v13127_v42, %v16381_v32  ;;  %vm8729_vm11 = vweird.f32 %v13127_v42 }
0x1733   :  { %v8721_v26 = vsel %vm8718_vm7, %v8720_v16, %v8716_v8  ;;  %vm8730_vm6 = vmor %vm8728_vm4, %vm8729_vm11 }
0x1734   :  { %v8725_v21 = vsub.f32 1.0, %v8724_v55  ;;  %v8740_v30 = vmul.f32 %v8721_v26, %v8660_v52 }
0x1736   :  { %v8726_v0 = vmul.f32 %v13127_v42, %v8725_v21  ;;  %v8745_v4 = vsel %vm883_vm0, %v8740_v30, 0.0  ;;  %v8897_v21 = vld [vmem:[%s8957_s7 + $0x8] sm:$0xff] }
0x1737   :  { %v8746_v29 = vadd.f32 %v8745_v4, %v8744_v39  ;;  %v8907_v39 = vld [vmem:[%s8958_s11 + $0x18] sm:$0xff] }
0x1738   :  { %v8727_v36 = vadd.f32 %v13127_v42, %v8726_v0 }
0x173a   :  { %v8731_v33 = vsel %vm8730_vm6, %v13127_v42, %v8727_v36  ;;  %v8905_v36 = vld [vmem:[%s8958_s11 + $0x8] sm:$0xff] }
0x173b   :  { %v8736_v47 = vsel %vm8733_vm8, %v8735_v38, %v8731_v33 }
0x173c   :  { %v8741_v51 = vmul.f32 %v8736_v47, %v8661_v34  ;;  %v8906_v34 = vld [vmem:[%s8958_s11 + $0x10] sm:$0xff] }
0x173e   :  { %v8747_v27 = vsel %vm883_vm0, %v8741_v51, 0.0 }
0x173f   :  { %v8748_v7 = vadd.f32 %v8747_v27, %v8746_v29 }
0x1741   :  { %v8749_v40 = vrot.slane %v8748_v7, 4 }
0x1743   :  { %v8750_v28 = vadd.f32 %v8749_v40, %v8748_v7 }
0x1745   :  { %v8751_v11 = vrot.slane %v8750_v28, 2 }
0x1747   :  { %v8752_v14 = vadd.f32 %v8751_v11, %v8750_v28 }
0x1749   :  { %v8753_v46 = vrot.slane %v8752_v14, 1 }
0x174b   :  { %v8754_v12 = vadd.f32 %v8753_v46, %v8752_v14 }
0x174d   :  { %12316 = vmatmul.msk.f32.vlgmr.msrb.gmra.mxu0 %vm883_vm0, %v8754_v12 }
0x17ca   :  { %v8779_v32 = vpop.f32.mrf.mxu0 }
0x17cb   :  { %12318 = vmatmul.msk.f32.vlgmr.msrb.gmra.mxu1 %vm8783_vm9, %v8779_v32 }
0x1848   :  { %v8807_v44 = vpop.f32.mrf.mxu1 }
0x1849   :  { %v8810_v43 = vmul.f32 0.001953125, %v8807_v44 }
0x184b   :  { %v8811_v56 = vperm.slane %v8810_v43, 0 }
0x184d   :  { %v8812_v18 = vsub.f32 %v8738_v25, %v8811_v56  ;;  %v8813_v17 = vsub.f32 %v8739_v15, %v8811_v56  ;;  %v8814_v13 = vsub.f32 %v8740_v30, %v8811_v56  ;;  %v8815_v48 = vsub.f32 %v8741_v51, %v8811_v56  ;;  %v8896_v15 = vld [vmem:[%s8957_s7] sm:$0xff]  ;;  %v8899_v25 = vld [vmem:[%s8957_s7 + $0x18] sm:$0xff] }
0x184f   :  { %v8816_v31 = vmul.f32 %v8812_v18, %v8812_v18  ;;  %v8817_v58 = vmul.f32 %v8813_v17, %v8813_v17  ;;  %v8818_v54 = vmul.f32 %v8814_v13, %v8814_v13  ;;  %v8819_v22 = vmul.f32 %v8815_v48, %v8815_v48 }
0x1851   :  { %v8820_v53 = vsel %vm883_vm0, %v8816_v31, 0.0  ;;  %v8821_v20 = vsel %vm883_vm0, %v8817_v58, 0.0  ;;  %v8823_v3 = vsel %vm883_vm0, %v8818_v54, 0.0  ;;  %v8825_v59 = vsel %vm883_vm0, %v8819_v22, 0.0 }
0x1852   :  { %v8822_v49 = vadd.f32 %v8821_v20, %v8820_v53 }
0x1854   :  { %v8824_v60 = vadd.f32 %v8823_v3, %v8822_v49 }
0x1856   :  { %v8826_v10 = vadd.f32 %v8825_v59, %v8824_v60 }
0x1858   :  { %v8827_v5 = vrot.slane %v8826_v10, 4 }
0x185a   :  { %v8828_v6 = vadd.f32 %v8827_v5, %v8826_v10 }
0x185c   :  { %v8829_v9 = vrot.slane %v8828_v6, 2 }
0x185e   :  { %v8830_v37 = vadd.f32 %v8829_v9, %v8828_v6 }
0x1860   :  { %v8831_v57 = vrot.slane %v8830_v37, 1 }
0x1862   :  { %v8832_v19 = vadd.f32 %v8831_v57, %v8830_v37 }
0x1864   :  { %12319 = vmatmul.msk.f32.vlgmr.msra.gmra.mxu0 %vm883_vm0, %v8832_v19 }
0x18e1   :  { %v8853_v50 = vpop.f32.mrf.mxu0 }
0x18e2   :  { %12321 = vmatmul.msk.f32.vlgmr.msra.gmra.mxu1 %vm8783_vm9, %v8853_v50 }
0x195f   :  { %v8876_v42 = vpop.f32.mrf.mxu1 }
0x1960   :  { %v8879_v63 = vmul.f32 0.001953125, %v8876_v42 }
0x1962   :  { %v8880_v62 = vadd.f32 1e-05, %v8879_v63 }
0x1964   :  { %13128 = vrsqrt.f32 %v8880_v62  ;;  %vm8887_vm12 = vweird.f32 %v8880_v62 }
0x196a   :  { %v13129_v16 = vpop.eup %13128 }
0x196b   :  { %v8882_v45 = vmul.f32 %v13129_v16, %v8880_v62  ;;  %vm8888_vm10 = vweird.f32 %v13129_v16 }
0x196c   :  { %vm8889_vm13 = vmor %vm8887_vm12, %vm8888_vm10 }
0x196d   :  { %v8883_v8 = vmul.f32 %v13129_v16, %v8882_v45 }
0x196f   :  { %v8884_v55 = vmul.f32 0.5, %v8883_v8 }
0x1971   :  { %v8885_v23 = vsub.f32 1.5, %v8884_v55 }
0x1973   :  { %v8886_v26 = vmul.f32 %v13129_v16, %v8885_v23 }
0x1975   :  { %v8890_v41 = vsel %vm8889_vm13, %v13129_v16, %v8886_v26 }
0x1976   :  { %v8891_v52 = vperm.slane %v8890_v41, 0 }
0x1978   :  { %v8892_v35 = vmul.f32 %v8891_v52, %v8812_v18  ;;  %v8893_v30 = vmul.f32 %v8891_v52, %v8813_v17  ;;  %v8894_v0 = vmul.f32 %v8891_v52, %v8814_v13  ;;  %v8895_v1 = vmul.f32 %v8891_v52, %v8815_v48 }
0x197a   :  { %v8900_v38 = vmul.f32 %v8896_v15, %v8892_v35  ;;  %v8901_v24 = vmul.f32 %v8897_v21, %v8893_v30  ;;  %v8902_v4 = vmul.f32 %v8898_v61, %v8894_v0  ;;  %v8903_v33 = vmul.f32 %v8899_v25, %v8895_v1 }
0x197c   :  { %v8908_v47 = vadd.f32 %v8904_v2, %v8900_v38  ;;  %v8909_v51 = vadd.f32 %v8905_v36, %v8901_v24  ;;  %v8910_v29 = vadd.f32 %v8906_v34, %v8902_v4  ;;  %v8911_v27 = vadd.f32 %v8907_v39, %v8903_v33 }
0x197e   :  { %8912 = vst.msk [vmem:[%s8959_s15] sm:$0xff] %vm883_vm0, %v8908_v47 }
0x197f   :  { %8913 = vst.msk [vmem:[%s8959_s15 + $0x8] sm:$0xff] %vm883_vm0, %v8909_v51 }
0x1980   :  { %8914 = vst.msk [vmem:[%s8959_s15 + $0x10] sm:$0xff] %vm883_vm0, %v8910_v29 }
0x1981   :  { %8915 = vst.msk [vmem:[%s8959_s15 + $0x18] sm:$0xff] %vm883_vm0, %v8911_v27 }

</bundles_post_ra>
